<compile_context>
chip_gen: v6e
topology: v6e:2x2x1
jax: 0.10.0
libtpu: 0.0.40
codegen_flags: <defaults>
</compile_context>

<pallas_src>
import functools
import math

import jax
import jax.numpy as jnp
from jax.experimental import pallas as pl
from jax.experimental.pallas import tpu as pltpu


NUM_CLASSES = 43
CP1, CP2, CP3 = 128, 256, 256        # padded output widths of conv1/conv2/conv3
FC1P, FC2P = 384, 128                # padded output widths of fc1 / fc2
TM_TARGET = 1024                     # target rows of A per grid step
VMEM_LIMIT = 48 * 1024 * 1024        # <= ~48 MiB keeps headroom on v7x (64 MiB)


def _round_up(x, m):
    return (x + m - 1) // m * m


def _cdiv(a, b):
    return (a + b - 1) // b


def _m_grid(M):
    """(grid, tm). Single full-M block when small (block dim == array dim is
    always legal); otherwise ~TM_TARGET-row tiles with >=2 steps so the
    'parallel' grid axis can feed both v7x TensorCores."""
    if M < 512:
        return 1, M
    g = max(2, _cdiv(M, TM_TARGET))
    tm = _round_up(_cdiv(M, g), 16)            # bf16 sublane packing
    return g, tm


# ----------------------------- Pallas kernels -----------------------------

def matmul_bias_act_kernel(a_ref, w_ref, b_ref, o_ref, *, activation):
    """o = act(A_tile @ W + bias). Single K block; bf16 MXU operands, f32
    accumulation + epilogue; output cast to o_ref.dtype (bf16 intermediates)."""
    y = jnp.dot(a_ref[...], w_ref[...], preferred_element_type=jnp.float32)
    y = y + b_ref[...]
    if activation == "leaky_relu":             # nn.LeakyReLU default slope 0.01
        y = jnp.where(y >= 0, y, 0.01 * y)
    elif activation == "relu":
        y = jnp.maximum(y, 0.0)
    o_ref[...] = y.astype(o_ref.dtype)


def fc_pair_kernel(a_ref, w1_ref, b1_ref, w2_ref, b2_ref, o_ref, *,
                   act1, log_softmax, n_valid):
    """o = (log_softmax | id)( act1(A @ W1 + b1) @ W2 + b2 ).
    Both weight slabs are resident in VMEM; hidden activation never hits HBM."""
    h = jnp.dot(a_ref[...], w1_ref[...], preferred_element_type=jnp.float32)
    h = h + b1_ref[...]
    if act1 == "leaky_relu":
        h = jnp.where(h >= 0, h, 0.01 * h)
    elif act1 == "relu":
        h = jnp.maximum(h, 0.0)
    y = jnp.dot(h.astype(jnp.bfloat16), w2_ref[...],
                preferred_element_type=jnp.float32)
    y = y + b2_ref[...]
    if log_softmax:
        # log_softmax over the first n_valid lanes (padding lanes masked out of
        # the max/sum; they receive finite garbage that the caller slices off).
        lane = jax.lax.broadcasted_iota(jnp.int32, y.shape, dimension=1)
        masked = jnp.where(lane < n_valid, y, -jnp.inf)
        m = jnp.max(masked, axis=-1, keepdims=True)
        s = jnp.sum(jnp.exp(masked - m), axis=-1, keepdims=True)
        y = y - m - jnp.log(s)
    o_ref[...] = y.astype(o_ref.dtype)


# ----------------------------- Pallas wrappers -----------------------------

def matmul_bias_act(a, layer, activation, out_dtype=jnp.bfloat16):
    """a:[M,K] @ w:[K,Np] + b with fused activation. K is a single block (full
    dim), M is tiled on a 'parallel' grid axis. No wrapper-side pad/slice."""
    w, b = layer
    M, K = a.shape
    Kw, Np = w.shape
    assert Kw == K, (Kw, K)
    g, tm = _m_grid(M)
    return pl.pallas_call(
        functools.partial(matmul_bias_act_kernel, activation=activation),
        out_shape=jax.ShapeDtypeStruct((M, Np), out_dtype),
        grid=(g,),
        in_specs=[
            pl.BlockSpec((tm, K), lambda m: (m, 0)),
            pl.BlockSpec((K, Np), lambda m: (0, 0)),
            pl.BlockSpec((1, Np), lambda m: (0, 0)),
        ],
        out_specs=pl.BlockSpec((tm, Np), lambda m: (m, 0)),
        compiler_params=pltpu.CompilerParams(
            dimension_semantics=("parallel",),
            vmem_limit_bytes=VMEM_LIMIT),
    )(a.astype(jnp.bfloat16), w, b)


def fc_pair(a, layer1, layer2, act1, log_softmax=False, n_valid=0,
            out_dtype=jnp.float32):
    """Fused  act1(a @ W1 + b1) @ W2 + b2  (+ optional masked log_softmax)."""
    w1, b1 = layer1
    w2, b2 = layer2
    M, K = a.shape
    N1 = w1.shape[1]
    N2 = w2.shape[1]
    assert w1.shape[0] == K and w2.shape[0] == N1
    g, tm = _m_grid(M)
    return pl.pallas_call(
        functools.partial(fc_pair_kernel, act1=act1, log_softmax=log_softmax,
                          n_valid=n_valid),
        out_shape=jax.ShapeDtypeStruct((M, N2), out_dtype),
        grid=(g,),
        in_specs=[
            pl.BlockSpec((tm, K), lambda m: (m, 0)),
            pl.BlockSpec((K, N1), lambda m: (0, 0)),
            pl.BlockSpec((1, N1), lambda m: (0, 0)),
            pl.BlockSpec((N1, N2), lambda m: (0, 0)),
            pl.BlockSpec((1, N2), lambda m: (0, 0)),
        ],
        out_specs=pl.BlockSpec((tm, N2), lambda m: (m, 0)),
        compiler_params=pltpu.CompilerParams(
            dimension_semantics=("parallel",),
            vmem_limit_bytes=VMEM_LIMIT),
    )(a.astype(jnp.bfloat16), w1, b1, w2, b2)


# ----------------------------- conv / pool glue -----------------------------

def im2col(x_nhwc, kh, kw):
    # TODO(synk): at large batch (>= ~64) replace this XLA-level im2col with
    # in-kernel per-tap shifted-matmul accumulation to cut HBM traffic; at the
    # 32x32 sizes here the single fat MXU matmul per conv is the better trade.
    n, h, w, c = x_nhwc.shape
    oh, ow = h - kh + 1, w - kw + 1
    patches = [x_nhwc[:, i:i + oh, j:j + ow, :]
               for i in range(kh) for j in range(kw)]
    p = jnp.stack(patches, axis=3)                  # [n, oh, ow, kh*kw, c]
    return p.reshape(n * oh * ow, kh * kw * c), (oh, ow)


def conv2d(x_nhwc, layer, kh, kw, activation):
    """Valid conv, stride 1. Weight rows: [(ki*kw + kj) * C_in_pad + c_in]."""
    n = x_nhwc.shape[0]
    cols, (oh, ow) = im2col(x_nhwc, kh, kw)
    y = matmul_bias_act(cols, layer, activation)    # bf16, padded lanes == 0
    return y.reshape(n, oh, ow, layer[0].shape[1])


def max_pool_2x2(x_nhwc):
    n, h, w, c = x_nhwc.shape
    h2, w2 = h // 2, w // 2
    x = x_nhwc[:, :h2 * 2, :w2 * 2, :]
    x = x.reshape(n, h2, 2, w2, 2, c)
    return x.max(axis=(2, 4))


def affine_grid_sample(x_nhwc, theta):
    # TODO(synk): F.affine_grid + F.grid_sample (bilinear gather, zero padding,
    # align_corners=False) is a data-dependent gather with no clean Pallas
    # equivalent; implemented in plain JAX (f32).
    n, h, w, c = x_nhwc.shape
    xs = (2.0 * (jnp.arange(w, dtype=jnp.float32) + 0.5)) / w - 1.0
    ys = (2.0 * (jnp.arange(h, dtype=jnp.float32) + 0.5)) / h - 1.0
    gx, gy = jnp.meshgrid(xs, ys)                            # [h, w]
    base = jnp.stack([gx, gy, jnp.ones_like(gx)], axis=-1)   # [h, w, 3]
    grid = jnp.einsum("hwk,nlk->nhwl", base, theta)          # [n, h, w, 2] (x,y)
    ix = ((grid[..., 0] + 1.0) * w - 1.0) / 2.0
    iy = ((grid[..., 1] + 1.0) * h - 1.0) / 2.0
    x0 = jnp.floor(ix)
    y0 = jnp.floor(iy)

    def gather(xf, yf):
        valid = (xf >= 0) & (xf <= w - 1) & (yf >= 0) & (yf <= h - 1)
        xi = jnp.clip(xf, 0, w - 1).astype(jnp.int32)
        yi = jnp.clip(yf, 0, h - 1).astype(jnp.int32)
        bidx = jnp.arange(n)[:, None, None]
        vals = x_nhwc[bidx, yi, xi]                          # [n, h, w, c]
        return vals * valid[..., None].astype(x_nhwc.dtype)

    wx1 = ix - x0
    wx0 = 1.0 - wx1
    wy1 = iy - y0
    wy0 = 1.0 - wy1
    out = (gather(x0, y0) * (wx0 * wy0)[..., None]
           + gather(x0 + 1.0, y0) * (wx1 * wy0)[..., None]
           + gather(x0, y0 + 1.0) * (wx0 * wy1)[..., None]
           + gather(x0 + 1.0, y0 + 1.0) * (wx1 * wy1)[..., None])
    return out  # NHWC, f32


# ----------------------------- model -----------------------------

def forward(x_nchw, pp):
    n = x_nchw.shape[0]
    x_nhwc = jnp.transpose(x_nchw, (0, 2, 3, 1)).astype(jnp.float32)
    x_bf16 = x_nhwc.astype(jnp.bfloat16)

    # ---- STN localization (ReLU is monotone -> fused before max-pool, exact;
    # channel widths here are tiny so outputs stay unpadded) ----
    l = conv2d(x_bf16, pp["loc_c1"], 7, 7, "relu")           # [n, 26, 26, 8]
    l = max_pool_2x2(l)                                      # [n, 13, 13, 8]
    l = conv2d(l, pp["loc_c2"], 5, 5, "relu")                # [n,  9,  9, 10]
    l = max_pool_2x2(l)                                      # [n,  4,  4, 10]
    l_flat = jnp.transpose(l, (0, 3, 1, 2)).reshape(n, -1)   # NCHW .view order
    theta = fc_pair(l_flat, pp["fc_loc1"], pp["fc_loc2"], act1="relu",
                    out_dtype=jnp.float32).reshape(n, 2, 3)
    xs = affine_grid_sample(x_nhwc, theta)                   # f32 [n, 32, 32, 3]

    # ---- main trunk (Dropout2d/Dropout = identity in eval mode) ----
    # LeakyReLU fused before the 2x2 max-pool (monotone, exact). Eval-mode
    # BN1/BN2/BN3 are folded into conv2/conv3/fc1 at prepare_params() time.
    y = conv2d(xs.astype(jnp.bfloat16), pp["conv1"], 5, 5, "leaky_relu")
    y = max_pool_2x2(y)                                      # [n, 14, 14, 128]
    y = conv2d(y, pp["conv2"], 3, 3, "leaky_relu")           # consumes bn1(.)
    y = max_pool_2x2(y)                                      # [n,  6,  6, 256]
    y = conv2d(y, pp["conv3"], 3, 3, "leaky_relu")           # consumes bn2(.)
    y = max_pool_2x2(y)                                      # [n,  2,  2, 256]
    y_flat = jnp.transpose(y, (0, 3, 1, 2)).reshape(n, -1)   # [n, 1024]

    out = fc_pair(y_flat, pp["fc1"], pp["fc2"], act1="leaky_relu",
                  log_softmax=True, n_valid=NUM_CLASSES,
                  out_dtype=jnp.float32)                     # consumes bn3(.)
    return out[:, :NUM_CLASSES]                              # the only slice


# ----------------------------- params -----------------------------

def init_params(key):
    keys = jax.random.split(key, 16)

    def w(k, shape, fan_in):
        return jax.random.normal(k, shape, jnp.float32) / math.sqrt(fan_in)

    p = {}
    p["conv1_w"] = w(keys[0], (5 * 5 * 3, 100), 75)
    p["conv1_b"] = w(keys[1], (100,), 75)
    p["conv2_w"] = w(keys[2], (3 * 3 * 100, 150), 900)
    p["conv2_b"] = jnp.zeros((150,), jnp.float32)       # conv2: bias=False
    p["conv3_w"] = w(keys[3], (3 * 3 * 150, 250), 1350)
    p["conv3_b"] = w(keys[4], (250,), 1350)
    for i, c in ((1, 100), (2, 150), (3, 250)):         # default BatchNorm init
        p[f"bn{i}_g"] = jnp.ones((c,), jnp.float32)
        p[f"bn{i}_b"] = jnp.zeros((c,), jnp.float32)
        p[f"bn{i}_m"] = jnp.zeros((c,), jnp.float32)
        p[f"bn{i}_v"] = jnp.ones((c,), jnp.float32)
    p["fc1_w"] = w(keys[5], (1000, 350), 1000)
    p["fc1_b"] = w(keys[6], (350,), 1000)
    p["fc2_w"] = w(keys[7], (350, NUM_CLASSES), 350)
    p["fc2_b"] = w(keys[8], (NUM_CLASSES,), 350)
    p["loc_c1_w"] = w(keys[9], (7 * 7 * 3, 8), 147)
    p["loc_c1_b"] = w(keys[10], (8,), 147)
    p["loc_c2_w"] = w(keys[11], (5 * 5 * 8, 10), 200)
    p["loc_c2_b"] = w(keys[12], (10,), 200)
    p["fc_loc1_w"] = w(keys[13], (160, 32), 160)
    p["fc_loc1_b"] = w(keys[14], (32,), 160)
    p["fc_loc2_w"] = jnp.zeros((32, 6), jnp.float32)               # as in __init__
    p["fc_loc2_b"] = jnp.array([1, 0, 0, 0, 1, 0], jnp.float32)    # identity theta
    return p


def _pad_cols(w, b, n_pad):
    """Pad weight columns / bias lanes to n_pad (zero lanes), cast W to bf16."""
    K, N = w.shape
    w_p = jnp.zeros((K, n_pad), jnp.float32).at[:, :N].set(w).astype(jnp.bfloat16)
    b_p = jnp.zeros((1, n_pad), jnp.float32).at[0, :N].set(b)
    return (w_p, b_p)


def _expand_inner(w, outer, inner, inner_pad):
    """Rows (o*inner + i) -> (o*inner_pad + i); padded-i rows are zero.
    Used to re-lay-out conv weights for channel-padded im2col inputs."""
    N = w.shape[1]
    w3 = w.reshape(outer, inner, N)
    return (jnp.zeros((outer, inner_pad, N), w.dtype)
            .at[:, :inner, :].set(w3).reshape(outer * inner_pad, N))


def _expand_outer(w, outer, inner, outer_pad):
    """Rows (o*inner + i) -> same, but the outer (channel) axis padded."""
    N = w.shape[1]
    w3 = w.reshape(outer, inner, N)
    return (jnp.zeros((outer_pad, inner, N), w.dtype)
            .at[:outer].set(w3).reshape(outer_pad * inner, N))


def prepare_params(p, eps=1e-5):
    """Fold eval-mode BN into the next matmul, re-lay-out weights for the
    channel-padded activation flow, pad output lanes, cast to bf16 — all once,
    outside the jitted forward."""
    def bn_affine(i):
        inv = p[f"bn{i}_g"] / jnp.sqrt(p[f"bn{i}_v"] + eps)
        return inv, p[f"bn{i}_b"] - p[f"bn{i}_m"] * inv

    pp = {}
    # conv1: 3 -> 100 output channels, padded to CP1 (zero lanes).
    pp["conv1"] = _pad_cols(p["conv1_w"], p["conv1_b"], CP1)

    # bn1 folded into conv2 (valid conv => exact); in-channels re-laid 100->CP1.
    s1, t1 = bn_affine(1)
    w2 = p["conv2_w"] * jnp.tile(s1, 9)[:, None]
    b2 = p["conv2_b"] + jnp.tile(t1, 9) @ p["conv2_w"]
    pp["conv2"] = _pad_cols(_expand_inner(w2, 9, 100, CP1), b2, CP2)

    # bn2 folded into conv3; in-channels re-laid 150 -> CP2.
    s2, t2 = bn_affine(2)
    w3 = p["conv3_w"] * jnp.tile(s2, 9)[:, None]
    b3 = p["conv3_b"] + jnp.tile(t2, 9) @ p["conv3_w"]
    pp["conv3"] = _pad_cols(_expand_inner(w3, 9, 150, CP2), b3, CP3)

    # bn3 folded into fc1. fc1 rows follow the NCHW flatten (c*4 + s); channels
    # padded 250 -> CP3 (padded rows land at the end and are zero).
    s3, t3 = bn_affine(3)
    wf1 = p["fc1_w"] * jnp.repeat(s3, 4)[:, None]
    bf1 = p["fc1_b"] + jnp.repeat(t3, 4) @ p["fc1_w"]
    pp["fc1"] = _pad_cols(_expand_outer(wf1, 250, 4, CP3), bf1, FC1P)

    # fc2: rows padded 350 -> FC1P (they multiply exactly-zero hidden lanes),
    # columns padded 43 -> FC2P (lane-dense final store; sliced once at the end).
    wf2 = jnp.zeros((FC1P, p["fc2_w"].shape[1]), jnp.float32).at[:350].set(p["fc2_w"])
    pp["fc2"] = _pad_cols(wf2, p["fc2_b"], FC2P)

    # STN localization branch: channel counts are tiny (8/10/32/6), so outputs
    # stay unpadded (block dims equal the full array dims — legal, tiny traffic).
    pp["loc_c1"] = _pad_cols(p["loc_c1_w"], p["loc_c1_b"], 8)
    pp["loc_c2"] = _pad_cols(p["loc_c2_w"], p["loc_c2_b"], 10)
    pp["fc_loc1"] = _pad_cols(p["fc_loc1_w"], p["fc_loc1_b"], 32)
    pp["fc_loc2"] = _pad_cols(p["fc_loc2_w"], p["fc_loc2_b"], 6)
    return pp


if __name__ == "__main__":
    key = jax.random.PRNGKey(0)
    kx, kp = jax.random.split(key)
    params = prepare_params(init_params(kp))     # fold/layout/pad once, outside jit
    x = jax.random.normal(kx, (2, 3, 32, 32), jnp.float32)
    fwd = jax.jit(lambda xx: forward(xx, params))
    out = jax.block_until_ready(fwd(x))
    assert out.shape == (2, NUM_CLASSES) and out.dtype == jnp.float32
    assert bool(jnp.all(jnp.isfinite(out)))
    # log-softmax rows must (approximately) normalize
    assert bool(jnp.all(jnp.abs(jnp.sum(jnp.exp(out), axis=1) - 1.0) < 1e-3))
    print("KERNEL_OK")
</pallas_src>

<mosaic_0001>
module attributes {stable_mosaic.version = 11 : i64} {
  func.func @matmul_bias_act_kernel(%arg0: i32, %arg1: memref<688x147xbf16, #tpu.memory_space<vmem>>, %arg2: memref<147x8xbf16, #tpu.memory_space<vmem>>, %arg3: memref<1x8xf32, #tpu.memory_space<vmem>>, %arg4: memref<688x8xbf16, #tpu.memory_space<vmem>>) attributes {dimension_semantics = [#tpu.dimension_semantics<parallel>], iteration_bounds = array<i64: 2>, scalar_prefetch = 0 : i64, scratch_operands = 0 : i64, tpu.core_type = #tpu.core_type<tc>, window_params = [{transform_indices = @transform_0, window_bounds = array<i64: 688, 147>}, {pipeline_mode = #tpu.pipeline_mode<synchronous>, transform_indices = @transform_1, window_bounds = array<i64: 147, 8>}, {pipeline_mode = #tpu.pipeline_mode<synchronous>, transform_indices = @transform_2, window_bounds = array<i64: 1, 8>}, {transform_indices = @transform_3, window_bounds = array<i64: 688, 8>}]} {
    %c0 = arith.constant 0 : index
    %c0_0 = arith.constant 0 : index
    %0 = vector.load %arg1[%c0, %c0_0] : memref<688x147xbf16, #tpu.memory_space<vmem>>, vector<688x147xbf16>
    %c0_1 = arith.constant 0 : index
    %c0_2 = arith.constant 0 : index
    %1 = vector.load %arg2[%c0_1, %c0_2] : memref<147x8xbf16, #tpu.memory_space<vmem>>, vector<147x8xbf16>
    %cst = arith.constant dense<0.000000e+00> : vector<688x8xf32>
    %2 = tpu.matmul %0, %1, %cst {dimension_numbers = #tpu.dot_dimension_numbers<[1], [0], [0], [1], [0, 0, 1, 1], [], []>} : vector<688x147xbf16>, vector<147x8xbf16>, vector<688x8xf32> -> vector<688x8xf32>
    %c0_3 = arith.constant 0 : index
    %c0_4 = arith.constant 0 : index
    %3 = vector.load %arg3[%c0_3, %c0_4] : memref<1x8xf32, #tpu.memory_space<vmem>>, vector<1x8xf32>
    %4 = vector.broadcast %3 : vector<1x8xf32> to vector<688x8xf32>
    %5 = arith.addf %2, %4 : vector<688x8xf32>
    %cst_5 = arith.constant 0.000000e+00 : f32
    %6 = vector.broadcast %cst_5 : f32 to vector<688x8xf32>
    %7 = arith.maximumf %5, %6 : vector<688x8xf32>
    %8 = arith.truncf %7 : vector<688x8xf32> to vector<688x8xbf16>
    %c0_6 = arith.constant 0 : index
    %c0_7 = arith.constant 0 : index
    %9 = vector.load %arg4[%c0_6, %c0_7] : memref<688x8xbf16, #tpu.memory_space<vmem>>, vector<688x8xbf16>
    tpu.vector_store %arg4[%c0_6, %c0_7], %8 {strides = array<i32>} : memref<688x8xbf16, #tpu.memory_space<vmem>>, vector<688x8xbf16>,
    return
  }
  func.func @transform_0(%arg0: i32) -> (i32, i32) {
    %c0_i32 = arith.constant 0 : i32
    %c0_i32_0 = arith.constant 0 : i32
    return %arg0, %c0_i32 : i32, i32
  }
  func.func @transform_1(%arg0: i32) -> (i32, i32) {
    %c0_i32 = arith.constant 0 : i32
    %c0_i32_0 = arith.constant 0 : i32
    %c0_i32_1 = arith.constant 0 : i32
    return %c0_i32, %c0_i32_0 : i32, i32
  }
  func.func @transform_2(%arg0: i32) -> (i32, i32) {
    %c0_i32 = arith.constant 0 : i32
    %c0_i32_0 = arith.constant 0 : i32
    %c0_i32_1 = arith.constant 0 : i32
    return %c0_i32, %c0_i32_0 : i32, i32
  }
  func.func @transform_3(%arg0: i32) -> (i32, i32) {
    %c0_i32 = arith.constant 0 : i32
    %c0_i32_0 = arith.constant 0 : i32
    return %arg0, %c0_i32 : i32, i32
  }
}

module attributes {stable_mosaic.version = 11 : i64} {
  func.func @matmul_bias_act_kernel(%arg0: i32, %arg1: memref<162x200xbf16, #tpu.memory_space<vmem>>, %arg2: memref<200x10xbf16, #tpu.memory_space<vmem>>, %arg3: memref<1x10xf32, #tpu.memory_space<vmem>>, %arg4: memref<162x10xbf16, #tpu.memory_space<vmem>>) attributes {dimension_semantics = [#tpu.dimension_semantics<parallel>], iteration_bounds = array<i64: 1>, scalar_prefetch = 0 : i64, scratch_operands = 0 : i64, tpu.core_type = #tpu.core_type<tc>, window_params = [{transform_indices = @transform_0, window_bounds = array<i64: 162, 200>}, {pipeline_mode = #tpu.pipeline_mode<synchronous>, transform_indices = @transform_1, window_bounds = array<i64: 200, 10>}, {pipeline_mode = #tpu.pipeline_mode<synchronous>, transform_indices = @transform_2, window_bounds = array<i64: 1, 10>}, {transform_indices = @transform_3, window_bounds = array<i64: 162, 10>}]} {
    %c0 = arith.constant 0 : index
    %c0_0 = arith.constant 0 : index
    %0 = vector.load %arg1[%c0, %c0_0] : memref<162x200xbf16, #tpu.memory_space<vmem>>, vector<162x200xbf16>
    %c0_1 = arith.constant 0 : index
    %c0_2 = arith.constant 0 : index
    %1 = vector.load %arg2[%c0_1, %c0_2] : memref<200x10xbf16, #tpu.memory_space<vmem>>, vector<200x10xbf16>
    %cst = arith.constant dense<0.000000e+00> : vector<162x10xf32>
    %2 = tpu.matmul %0, %1, %cst {dimension_numbers = #tpu.dot_dimension_numbers<[1], [0], [0], [1], [0, 0, 1, 1], [], []>} : vector<162x200xbf16>, vector<200x10xbf16>, vector<162x10xf32> -> vector<162x10xf32>
    %c0_3 = arith.constant 0 : index
    %c0_4 = arith.constant 0 : index
    %3 = vector.load %arg3[%c0_3, %c0_4] : memref<1x10xf32, #tpu.memory_space<vmem>>, vector<1x10xf32>
    %4 = vector.broadcast %3 : vector<1x10xf32> to vector<162x10xf32>
    %5 = arith.addf %2, %4 : vector<162x10xf32>
    %cst_5 = arith.constant 0.000000e+00 : f32
    %6 = vector.broadcast %cst_5 : f32 to vector<162x10xf32>
    %7 = arith.maximumf %5, %6 : vector<162x10xf32>
    %8 = arith.truncf %7 : vector<162x10xf32> to vector<162x10xbf16>
    %c0_6 = arith.constant 0 : index
    %c0_7 = arith.constant 0 : index
    %9 = vector.load %arg4[%c0_6, %c0_7] : memref<162x10xbf16, #tpu.memory_space<vmem>>, vector<162x10xbf16>
    tpu.vector_store %arg4[%c0_6, %c0_7], %8 {strides = array<i32>} : memref<162x10xbf16, #tpu.memory_space<vmem>>, vector<162x10xbf16>,
    return
  }
  func.func @transform_0(%arg0: i32) -> (i32, i32) {
    %c0_i32 = arith.constant 0 : i32
    %c0_i32_0 = arith.constant 0 : i32
    return %arg0, %c0_i32 : i32, i32
  }
  func.func @transform_1(%arg0: i32) -> (i32, i32) {
    %c0_i32 = arith.constant 0 : i32
    %c0_i32_0 = arith.constant 0 : i32
    %c0_i32_1 = arith.constant 0 : i32
    return %c0_i32, %c0_i32_0 : i32, i32
  }
  func.func @transform_2(%arg0: i32) -> (i32, i32) {
    %c0_i32 = arith.constant 0 : i32
    %c0_i32_0 = arith.constant 0 : i32
    %c0_i32_1 = arith.constant 0 : i32
    return %c0_i32, %c0_i32_0 : i32, i32
  }
  func.func @transform_3(%arg0: i32) -> (i32, i32) {
    %c0_i32 = arith.constant 0 : i32
    %c0_i32_0 = arith.constant 0 : i32
    return %arg0, %c0_i32 : i32, i32
  }
}

module attributes {stable_mosaic.version = 11 : i64} {
  func.func @fc_pair_kernel(%arg0: i32, %arg1: memref<2x160xbf16, #tpu.memory_space<vmem>>, %arg2: memref<160x32xbf16, #tpu.memory_space<vmem>>, %arg3: memref<1x32xf32, #tpu.memory_space<vmem>>, %arg4: memref<32x6xbf16, #tpu.memory_space<vmem>>, %arg5: memref<1x6xf32, #tpu.memory_space<vmem>>, %arg6: memref<2x6xf32, #tpu.memory_space<vmem>>) attributes {dimension_semantics = [#tpu.dimension_semantics<parallel>], iteration_bounds = array<i64: 1>, scalar_prefetch = 0 : i64, scratch_operands = 0 : i64, tpu.core_type = #tpu.core_type<tc>, window_params = [{transform_indices = @transform_0, window_bounds = array<i64: 2, 160>}, {pipeline_mode = #tpu.pipeline_mode<synchronous>, transform_indices = @transform_1, window_bounds = array<i64: 160, 32>}, {pipeline_mode = #tpu.pipeline_mode<synchronous>, transform_indices = @transform_2, window_bounds = array<i64: 1, 32>}, {pipeline_mode = #tpu.pipeline_mode<synchronous>, transform_indices = @transform_3, window_bounds = array<i64: 32, 6>}, {pipeline_mode = #tpu.pipeline_mode<synchronous>, transform_indices = @transform_4, window_bounds = array<i64: 1, 6>}, {transform_indices = @transform_5, window_bounds = array<i64: 2, 6>}]} {
    %c0 = arith.constant 0 : index
    %c0_0 = arith.constant 0 : index
    %0 = vector.load %arg1[%c0, %c0_0] : memref<2x160xbf16, #tpu.memory_space<vmem>>, vector<2x160xbf16>
    %c0_1 = arith.constant 0 : index
    %c0_2 = arith.constant 0 : index
    %1 = vector.load %arg2[%c0_1, %c0_2] : memref<160x32xbf16, #tpu.memory_space<vmem>>, vector<160x32xbf16>
    %cst = arith.constant dense<0.000000e+00> : vector<2x32xf32>
    %2 = tpu.matmul %0, %1, %cst {dimension_numbers = #tpu.dot_dimension_numbers<[1], [0], [0], [1], [0, 0, 1, 1], [], []>} : vector<2x160xbf16>, vector<160x32xbf16>, vector<2x32xf32> -> vector<2x32xf32>
    %c0_3 = arith.constant 0 : index
    %c0_4 = arith.constant 0 : index
    %3 = vector.load %arg3[%c0_3, %c0_4] : memref<1x32xf32, #tpu.memory_space<vmem>>, vector<1x32xf32>
    %4 = vector.broadcast %3 : vector<1x32xf32> to vector<2x32xf32>
    %5 = arith.addf %2, %4 : vector<2x32xf32>
    %cst_5 = arith.constant 0.000000e+00 : f32
    %6 = vector.broadcast %cst_5 : f32 to vector<2x32xf32>
    %7 = arith.maximumf %5, %6 : vector<2x32xf32>
    %8 = arith.truncf %7 : vector<2x32xf32> to vector<2x32xbf16>
    %c0_6 = arith.constant 0 : index
    %c0_7 = arith.constant 0 : index
    %9 = vector.load %arg4[%c0_6, %c0_7] : memref<32x6xbf16, #tpu.memory_space<vmem>>, vector<32x6xbf16>
    %cst_8 = arith.constant dense<0.000000e+00> : vector<2x6xf32>
    %10 = tpu.matmul %8, %9, %cst_8 {dimension_numbers = #tpu.dot_dimension_numbers<[1], [0], [0], [1], [0, 0, 1, 1], [], []>} : vector<2x32xbf16>, vector<32x6xbf16>, vector<2x6xf32> -> vector<2x6xf32>
    %c0_9 = arith.constant 0 : index
    %c0_10 = arith.constant 0 : index
    %11 = vector.load %arg5[%c0_9, %c0_10] : memref<1x6xf32, #tpu.memory_space<vmem>>, vector<1x6xf32>
    %12 = vector.broadcast %11 : vector<1x6xf32> to vector<2x6xf32>
    %13 = arith.addf %10, %12 : vector<2x6xf32>
    %c0_11 = arith.constant 0 : index
    %c0_12 = arith.constant 0 : index
    %14 = vector.load %arg6[%c0_11, %c0_12] : memref<2x6xf32, #tpu.memory_space<vmem>>, vector<2x6xf32>
    tpu.vector_store %arg6[%c0_11, %c0_12], %13 {strides = array<i32>} : memref<2x6xf32, #tpu.memory_space<vmem>>, vector<2x6xf32>,
    return
  }
  func.func @transform_0(%arg0: i32) -> (i32, i32) {
    %c0_i32 = arith.constant 0 : i32
    %c0_i32_0 = arith.constant 0 : i32
    return %arg0, %c0_i32 : i32, i32
  }
  func.func @transform_1(%arg0: i32) -> (i32, i32) {
    %c0_i32 = arith.constant 0 : i32
    %c0_i32_0 = arith.constant 0 : i32
    %c0_i32_1 = arith.constant 0 : i32
    return %c0_i32, %c0_i32_0 : i32, i32
  }
  func.func @transform_2(%arg0: i32) -> (i32, i32) {
    %c0_i32 = arith.constant 0 : i32
    %c0_i32_0 = arith.constant 0 : i32
    %c0_i32_1 = arith.constant 0 : i32
    return %c0_i32, %c0_i32_0 : i32, i32
  }
  func.func @transform_3(%arg0: i32) -> (i32, i32) {
    %c0_i32 = arith.constant 0 : i32
    %c0_i32_0 = arith.constant 0 : i32
    %c0_i32_1 = arith.constant 0 : i32
    return %c0_i32, %c0_i32_0 : i32, i32
  }
  func.func @transform_4(%arg0: i32) -> (i32, i32) {
    %c0_i32 = arith.constant 0 : i32
    %c0_i32_0 = arith.constant 0 : i32
    %c0_i32_1 = arith.constant 0 : i32
    return %c0_i32, %c0_i32_0 : i32, i32
  }
  func.func @transform_5(%arg0: i32) -> (i32, i32) {
    %c0_i32 = arith.constant 0 : i32
    %c0_i32_0 = arith.constant 0 : i32
    return %arg0, %c0_i32 : i32, i32
  }
}

module attributes {stable_mosaic.version = 11 : i64} {
  func.func @matmul_bias_act_kernel(%arg0: i32, %arg1: memref<784x75xbf16, #tpu.memory_space<vmem>>, %arg2: memref<75x128xbf16, #tpu.memory_space<vmem>>, %arg3: memref<1x128xf32, #tpu.memory_space<vmem>>, %arg4: memref<784x128xbf16, #tpu.memory_space<vmem>>) attributes {dimension_semantics = [#tpu.dimension_semantics<parallel>], iteration_bounds = array<i64: 2>, scalar_prefetch = 0 : i64, scratch_operands = 0 : i64, tpu.core_type = #tpu.core_type<tc>, window_params = [{transform_indices = @transform_0, window_bounds = array<i64: 784, 75>}, {pipeline_mode = #tpu.pipeline_mode<synchronous>, transform_indices = @transform_1, window_bounds = array<i64: 75, 128>}, {pipeline_mode = #tpu.pipeline_mode<synchronous>, transform_indices = @transform_2, window_bounds = array<i64: 1, 128>}, {transform_indices = @transform_3, window_bounds = array<i64: 784, 128>}]} {
    %c0 = arith.constant 0 : index
    %c0_0 = arith.constant 0 : index
    %0 = vector.load %arg1[%c0, %c0_0] : memref<784x75xbf16, #tpu.memory_space<vmem>>, vector<784x75xbf16>
    %c0_1 = arith.constant 0 : index
    %c0_2 = arith.constant 0 : index
    %1 = vector.load %arg2[%c0_1, %c0_2] : memref<75x128xbf16, #tpu.memory_space<vmem>>, vector<75x128xbf16>
    %cst = arith.constant dense<0.000000e+00> : vector<784x128xf32>
    %2 = tpu.matmul %0, %1, %cst {dimension_numbers = #tpu.dot_dimension_numbers<[1], [0], [0], [1], [0, 0, 1, 1], [], []>} : vector<784x75xbf16>, vector<75x128xbf16>, vector<784x128xf32> -> vector<784x128xf32>
    %c0_3 = arith.constant 0 : index
    %c0_4 = arith.constant 0 : index
    %3 = vector.load %arg3[%c0_3, %c0_4] : memref<1x128xf32, #tpu.memory_space<vmem>>, vector<1x128xf32>
    %4 = vector.broadcast %3 : vector<1x128xf32> to vector<784x128xf32>
    %5 = arith.addf %2, %4 : vector<784x128xf32>
    %cst_5 = arith.constant 0.000000e+00 : f32
    %6 = vector.broadcast %cst_5 : f32 to vector<784x128xf32>
    %7 = arith.cmpf oge, %5, %6 : vector<784x128xf32>
    %cst_6 = arith.constant 0.00999999977 : f32
    %8 = vector.broadcast %cst_6 : f32 to vector<784x128xf32>
    %9 = arith.mulf %8, %5 : vector<784x128xf32>
    %10 = arith.select %7, %5, %9 : vector<784x128xi1>, vector<784x128xf32>
    %11 = arith.truncf %10 : vector<784x128xf32> to vector<784x128xbf16>
    %c0_7 = arith.constant 0 : index
    %c0_8 = arith.constant 0 : index
    %12 = vector.load %arg4[%c0_7, %c0_8] : memref<784x128xbf16, #tpu.memory_space<vmem>>, vector<784x128xbf16>
    tpu.vector_store %arg4[%c0_7, %c0_8], %11 {strides = array<i32>} : memref<784x128xbf16, #tpu.memory_space<vmem>>, vector<784x128xbf16>,
    return
  }
  func.func @transform_0(%arg0: i32) -> (i32, i32) {
    %c0_i32 = arith.constant 0 : i32
    %c0_i32_0 = arith.constant 0 : i32
    return %arg0, %c0_i32 : i32, i32
  }
  func.func @transform_1(%arg0: i32) -> (i32, i32) {
    %c0_i32 = arith.constant 0 : i32
    %c0_i32_0 = arith.constant 0 : i32
    %c0_i32_1 = arith.constant 0 : i32
    return %c0_i32, %c0_i32_0 : i32, i32
  }
  func.func @transform_2(%arg0: i32) -> (i32, i32) {
    %c0_i32 = arith.constant 0 : i32
    %c0_i32_0 = arith.constant 0 : i32
    %c0_i32_1 = arith.constant 0 : i32
    return %c0_i32, %c0_i32_0 : i32, i32
  }
  func.func @transform_3(%arg0: i32) -> (i32, i32) {
    %c0_i32 = arith.constant 0 : i32
    %c0_i32_0 = arith.constant 0 : i32
    return %arg0, %c0_i32 : i32, i32
  }
}

module attributes {stable_mosaic.version = 11 : i64} {
  func.func @matmul_bias_act_kernel(%arg0: i32, %arg1: memref<288x1152xbf16, #tpu.memory_space<vmem>>, %arg2: memref<1152x256xbf16, #tpu.memory_space<vmem>>, %arg3: memref<1x256xf32, #tpu.memory_space<vmem>>, %arg4: memref<288x256xbf16, #tpu.memory_space<vmem>>) attributes {dimension_semantics = [#tpu.dimension_semantics<parallel>], iteration_bounds = array<i64: 1>, scalar_prefetch = 0 : i64, scratch_operands = 0 : i64, tpu.core_type = #tpu.core_type<tc>, window_params = [{transform_indices = @transform_0, window_bounds = array<i64: 288, 1152>}, {pipeline_mode = #tpu.pipeline_mode<synchronous>, transform_indices = @transform_1, window_bounds = array<i64: 1152, 256>}, {pipeline_mode = #tpu.pipeline_mode<synchronous>, transform_indices = @transform_2, window_bounds = array<i64: 1, 256>}, {transform_indices = @transform_3, window_bounds = array<i64: 288, 256>}]} {
    %c0 = arith.constant 0 : index
    %c0_0 = arith.constant 0 : index
    %0 = vector.load %arg1[%c0, %c0_0] : memref<288x1152xbf16, #tpu.memory_space<vmem>>, vector<288x1152xbf16>
    %c0_1 = arith.constant 0 : index
    %c0_2 = arith.constant 0 : index
    %1 = vector.load %arg2[%c0_1, %c0_2] : memref<1152x256xbf16, #tpu.memory_space<vmem>>, vector<1152x256xbf16>
    %cst = arith.constant dense<0.000000e+00> : vector<288x256xf32>
    %2 = tpu.matmul %0, %1, %cst {dimension_numbers = #tpu.dot_dimension_numbers<[1], [0], [0], [1], [0, 0, 1, 1], [], []>} : vector<288x1152xbf16>, vector<1152x256xbf16>, vector<288x256xf32> -> vector<288x256xf32>
    %c0_3 = arith.constant 0 : index
    %c0_4 = arith.constant 0 : index
    %3 = vector.load %arg3[%c0_3, %c0_4] : memref<1x256xf32, #tpu.memory_space<vmem>>, vector<1x256xf32>
    %4 = vector.broadcast %3 : vector<1x256xf32> to vector<288x256xf32>
    %5 = arith.addf %2, %4 : vector<288x256xf32>
    %cst_5 = arith.constant 0.000000e+00 : f32
    %6 = vector.broadcast %cst_5 : f32 to vector<288x256xf32>
    %7 = arith.cmpf oge, %5, %6 : vector<288x256xf32>
    %cst_6 = arith.constant 0.00999999977 : f32
    %8 = vector.broadcast %cst_6 : f32 to vector<288x256xf32>
    %9 = arith.mulf %8, %5 : vector<288x256xf32>
    %10 = arith.select %7, %5, %9 : vector<288x256xi1>, vector<288x256xf32>
    %11 = arith.truncf %10 : vector<288x256xf32> to vector<288x256xbf16>
    %c0_7 = arith.constant 0 : index
    %c0_8 = arith.constant 0 : index
    %12 = vector.load %arg4[%c0_7, %c0_8] : memref<288x256xbf16, #tpu.memory_space<vmem>>, vector<288x256xbf16>
    tpu.vector_store %arg4[%c0_7, %c0_8], %11 {strides = array<i32>} : memref<288x256xbf16, #tpu.memory_space<vmem>>, vector<288x256xbf16>,
    return
  }
  func.func @transform_0(%arg0: i32) -> (i32, i32) {
    %c0_i32 = arith.constant 0 : i32
    %c0_i32_0 = arith.constant 0 : i32
    return %arg0, %c0_i32 : i32, i32
  }
  func.func @transform_1(%arg0: i32) -> (i32, i32) {
    %c0_i32 = arith.constant 0 : i32
    %c0_i32_0 = arith.constant 0 : i32
    %c0_i32_1 = arith.constant 0 : i32
    return %c0_i32, %c0_i32_0 : i32, i32
  }
  func.func @transform_2(%arg0: i32) -> (i32, i32) {
    %c0_i32 = arith.constant 0 : i32
    %c0_i32_0 = arith.constant 0 : i32
    %c0_i32_1 = arith.constant 0 : i32
    return %c0_i32, %c0_i32_0 : i32, i32
  }
  func.func @transform_3(%arg0: i32) -> (i32, i32) {
    %c0_i32 = arith.constant 0 : i32
    %c0_i32_0 = arith.constant 0 : i32
    return %arg0, %c0_i32 : i32, i32
  }
}

module attributes {stable_mosaic.version = 11 : i64} {
  func.func @matmul_bias_act_kernel(%arg0: i32, %arg1: memref<32x2304xbf16, #tpu.memory_space<vmem>>, %arg2: memref<2304x256xbf16, #tpu.memory_space<vmem>>, %arg3: memref<1x256xf32, #tpu.memory_space<vmem>>, %arg4: memref<32x256xbf16, #tpu.memory_space<vmem>>) attributes {dimension_semantics = [#tpu.dimension_semantics<parallel>], iteration_bounds = array<i64: 1>, scalar_prefetch = 0 : i64, scratch_operands = 0 : i64, tpu.core_type = #tpu.core_type<tc>, window_params = [{transform_indices = @transform_0, window_bounds = array<i64: 32, 2304>}, {pipeline_mode = #tpu.pipeline_mode<synchronous>, transform_indices = @transform_1, window_bounds = array<i64: 2304, 256>}, {pipeline_mode = #tpu.pipeline_mode<synchronous>, transform_indices = @transform_2, window_bounds = array<i64: 1, 256>}, {transform_indices = @transform_3, window_bounds = array<i64: 32, 256>}]} {
    %c0 = arith.constant 0 : index
    %c0_0 = arith.constant 0 : index
    %0 = vector.load %arg1[%c0, %c0_0] : memref<32x2304xbf16, #tpu.memory_space<vmem>>, vector<32x2304xbf16>
    %c0_1 = arith.constant 0 : index
    %c0_2 = arith.constant 0 : index
    %1 = vector.load %arg2[%c0_1, %c0_2] : memref<2304x256xbf16, #tpu.memory_space<vmem>>, vector<2304x256xbf16>
    %cst = arith.constant dense<0.000000e+00> : vector<32x256xf32>
    %2 = tpu.matmul %0, %1, %cst {dimension_numbers = #tpu.dot_dimension_numbers<[1], [0], [0], [1], [0, 0, 1, 1], [], []>} : vector<32x2304xbf16>, vector<2304x256xbf16>, vector<32x256xf32> -> vector<32x256xf32>
    %c0_3 = arith.constant 0 : index
    %c0_4 = arith.constant 0 : index
    %3 = vector.load %arg3[%c0_3, %c0_4] : memref<1x256xf32, #tpu.memory_space<vmem>>, vector<1x256xf32>
    %4 = vector.broadcast %3 : vector<1x256xf32> to vector<32x256xf32>
    %5 = arith.addf %2, %4 : vector<32x256xf32>
    %cst_5 = arith.constant 0.000000e+00 : f32
    %6 = vector.broadcast %cst_5 : f32 to vector<32x256xf32>
    %7 = arith.cmpf oge, %5, %6 : vector<32x256xf32>
    %cst_6 = arith.constant 0.00999999977 : f32
    %8 = vector.broadcast %cst_6 : f32 to vector<32x256xf32>
    %9 = arith.mulf %8, %5 : vector<32x256xf32>
    %10 = arith.select %7, %5, %9 : vector<32x256xi1>, vector<32x256xf32>
    %11 = arith.truncf %10 : vector<32x256xf32> to vector<32x256xbf16>
    %c0_7 = arith.constant 0 : index
    %c0_8 = arith.constant 0 : index
    %12 = vector.load %arg4[%c0_7, %c0_8] : memref<32x256xbf16, #tpu.memory_space<vmem>>, vector<32x256xbf16>
    tpu.vector_store %arg4[%c0_7, %c0_8], %11 {strides = array<i32>} : memref<32x256xbf16, #tpu.memory_space<vmem>>, vector<32x256xbf16>,
    return
  }
  func.func @transform_0(%arg0: i32) -> (i32, i32) {
    %c0_i32 = arith.constant 0 : i32
    %c0_i32_0 = arith.constant 0 : i32
    return %arg0, %c0_i32 : i32, i32
  }
  func.func @transform_1(%arg0: i32) -> (i32, i32) {
    %c0_i32 = arith.constant 0 : i32
    %c0_i32_0 = arith.constant 0 : i32
    %c0_i32_1 = arith.constant 0 : i32
    return %c0_i32, %c0_i32_0 : i32, i32
  }
  func.func @transform_2(%arg0: i32) -> (i32, i32) {
    %c0_i32 = arith.constant 0 : i32
    %c0_i32_0 = arith.constant 0 : i32
    %c0_i32_1 = arith.constant 0 : i32
    return %c0_i32, %c0_i32_0 : i32, i32
  }
  func.func @transform_3(%arg0: i32) -> (i32, i32) {
    %c0_i32 = arith.constant 0 : i32
    %c0_i32_0 = arith.constant 0 : i32
    return %arg0, %c0_i32 : i32, i32
  }
}

module attributes {stable_mosaic.version = 11 : i64} {
  func.func @fc_pair_kernel(%arg0: i32, %arg1: memref<2x1024xbf16, #tpu.memory_space<vmem>>, %arg2: memref<1024x384xbf16, #tpu.memory_space<vmem>>, %arg3: memref<1x384xf32, #tpu.memory_space<vmem>>, %arg4: memref<384x128xbf16, #tpu.memory_space<vmem>>, %arg5: memref<1x128xf32, #tpu.memory_space<vmem>>, %arg6: memref<2x128xf32, #tpu.memory_space<vmem>>) attributes {dimension_semantics = [#tpu.dimension_semantics<parallel>], iteration_bounds = array<i64: 1>, scalar_prefetch = 0 : i64, scratch_operands = 0 : i64, tpu.core_type = #tpu.core_type<tc>, window_params = [{transform_indices = @transform_0, window_bounds = array<i64: 2, 1024>}, {pipeline_mode = #tpu.pipeline_mode<synchronous>, transform_indices = @transform_1, window_bounds = array<i64: 1024, 384>}, {pipeline_mode = #tpu.pipeline_mode<synchronous>, transform_indices = @transform_2, window_bounds = array<i64: 1, 384>}, {pipeline_mode = #tpu.pipeline_mode<synchronous>, transform_indices = @transform_3, window_bounds = array<i64: 384, 128>}, {pipeline_mode = #tpu.pipeline_mode<synchronous>, transform_indices = @transform_4, window_bounds = array<i64: 1, 128>}, {transform_indices = @transform_5, window_bounds = array<i64: 2, 128>}]} {
    %c0 = arith.constant 0 : index
    %c0_0 = arith.constant 0 : index
    %0 = vector.load %arg1[%c0, %c0_0] : memref<2x1024xbf16, #tpu.memory_space<vmem>>, vector<2x1024xbf16>
    %c0_1 = arith.constant 0 : index
    %c0_2 = arith.constant 0 : index
    %1 = vector.load %arg2[%c0_1, %c0_2] : memref<1024x384xbf16, #tpu.memory_space<vmem>>, vector<1024x384xbf16>
    %cst = arith.constant dense<0.000000e+00> : vector<2x384xf32>
    %2 = tpu.matmul %0, %1, %cst {dimension_numbers = #tpu.dot_dimension_numbers<[1], [0], [0], [1], [0, 0, 1, 1], [], []>} : vector<2x1024xbf16>, vector<1024x384xbf16>, vector<2x384xf32> -> vector<2x384xf32>
    %c0_3 = arith.constant 0 : index
    %c0_4 = arith.constant 0 : index
    %3 = vector.load %arg3[%c0_3, %c0_4] : memref<1x384xf32, #tpu.memory_space<vmem>>, vector<1x384xf32>
    %4 = vector.broadcast %3 : vector<1x384xf32> to vector<2x384xf32>
    %5 = arith.addf %2, %4 : vector<2x384xf32>
    %cst_5 = arith.constant 0.000000e+00 : f32
    %6 = vector.broadcast %cst_5 : f32 to vector<2x384xf32>
    %7 = arith.cmpf oge, %5, %6 : vector<2x384xf32>
    %cst_6 = arith.constant 0.00999999977 : f32
    %8 = vector.broadcast %cst_6 : f32 to vector<2x384xf32>
    %9 = arith.mulf %8, %5 : vector<2x384xf32>
    %10 = arith.select %7, %5, %9 : vector<2x384xi1>, vector<2x384xf32>
    %11 = arith.truncf %10 : vector<2x384xf32> to vector<2x384xbf16>
    %c0_7 = arith.constant 0 : index
    %c0_8 = arith.constant 0 : index
    %12 = vector.load %arg4[%c0_7, %c0_8] : memref<384x128xbf16, #tpu.memory_space<vmem>>, vector<384x128xbf16>
    %cst_9 = arith.constant dense<0.000000e+00> : vector<2x128xf32>
    %13 = tpu.matmul %11, %12, %cst_9 {dimension_numbers = #tpu.dot_dimension_numbers<[1], [0], [0], [1], [0, 0, 1, 1], [], []>} : vector<2x384xbf16>, vector<384x128xbf16>, vector<2x128xf32> -> vector<2x128xf32>
    %c0_10 = arith.constant 0 : index
    %c0_11 = arith.constant 0 : index
    %14 = vector.load %arg5[%c0_10, %c0_11] : memref<1x128xf32, #tpu.memory_space<vmem>>, vector<1x128xf32>
    %15 = vector.broadcast %14 : vector<1x128xf32> to vector<2x128xf32>
    %16 = arith.addf %13, %15 : vector<2x128xf32>
    %17 = tpu.iota {dimensions = array<i32: 1>} : vector<2x128xi32>
    %c43_i32 = arith.constant 43 : i32
    %18 = vector.broadcast %c43_i32 : i32 to vector<2x128xi32>
    %19 = arith.cmpi slt, %17, %18 : vector<2x128xi32>
    %cst_12 = arith.constant 0xFF800000 : f32
    %20 = vector.broadcast %cst_12 : f32 to vector<2x128xf32>
    %21 = arith.select %19, %16, %20 : vector<2x128xi1>, vector<2x128xf32>
    %cst_13 = arith.constant dense<0xFF800000> : vector<2xf32>
    %22 = vector.multi_reduction <maximumf>, %21, %cst_13 [1] : vector<2x128xf32> to vector<2xf32>
    %23 = vector.shape_cast %22 : vector<2xf32> to vector<2x1xf32>
    %24 = vector.broadcast %23 : vector<2x1xf32> to vector<2x128xf32>
    %25 = arith.subf %21, %24 : vector<2x128xf32>
    %26 = math.exp %25 : vector<2x128xf32>
    %cst_14 = arith.constant dense<0.000000e+00> : vector<2xf32>
    %27 = vector.multi_reduction <add>, %26, %cst_14 [1] : vector<2x128xf32> to vector<2xf32>
    %28 = vector.shape_cast %27 : vector<2xf32> to vector<2x1xf32>
    %29 = vector.broadcast %23 : vector<2x1xf32> to vector<2x128xf32>
    %30 = arith.subf %16, %29 : vector<2x128xf32>
    %31 = math.log %28 : vector<2x1xf32>
    %32 = vector.broadcast %31 : vector<2x1xf32> to vector<2x128xf32>
    %33 = arith.subf %30, %32 : vector<2x128xf32>
    %c0_15 = arith.constant 0 : index
    %c0_16 = arith.constant 0 : index
    %34 = vector.load %arg6[%c0_15, %c0_16] : memref<2x128xf32, #tpu.memory_space<vmem>>, vector<2x128xf32>
    tpu.vector_store %arg6[%c0_15, %c0_16], %33 {strides = array<i32>} : memref<2x128xf32, #tpu.memory_space<vmem>>, vector<2x128xf32>,
    return
  }
  func.func @transform_0(%arg0: i32) -> (i32, i32) {
    %c0_i32 = arith.constant 0 : i32
    %c0_i32_0 = arith.constant 0 : i32
    return %arg0, %c0_i32 : i32, i32
  }
  func.func @transform_1(%arg0: i32) -> (i32, i32) {
    %c0_i32 = arith.constant 0 : i32
    %c0_i32_0 = arith.constant 0 : i32
    %c0_i32_1 = arith.constant 0 : i32
    return %c0_i32, %c0_i32_0 : i32, i32
  }
  func.func @transform_2(%arg0: i32) -> (i32, i32) {
    %c0_i32 = arith.constant 0 : i32
    %c0_i32_0 = arith.constant 0 : i32
    %c0_i32_1 = arith.constant 0 : i32
    return %c0_i32, %c0_i32_0 : i32, i32
  }
  func.func @transform_3(%arg0: i32) -> (i32, i32) {
    %c0_i32 = arith.constant 0 : i32
    %c0_i32_0 = arith.constant 0 : i32
    %c0_i32_1 = arith.constant 0 : i32
    return %c0_i32, %c0_i32_0 : i32, i32
  }
  func.func @transform_4(%arg0: i32) -> (i32, i32) {
    %c0_i32 = arith.constant 0 : i32
    %c0_i32_0 = arith.constant 0 : i32
    %c0_i32_1 = arith.constant 0 : i32
    return %c0_i32, %c0_i32_0 : i32, i32
  }
  func.func @transform_5(%arg0: i32) -> (i32, i32) {
    %c0_i32 = arith.constant 0 : i32
    %c0_i32_0 = arith.constant 0 : i32
    return %arg0, %c0_i32 : i32, i32
  }
}

</mosaic_0001>

<bundles_post_ra>
// kernel: _lambda_.7
= control target key start
LH: loop header
LB: loop body
LE: loop exit
PB: predicated region body
PF: predicated region fallthrough
CT: control target
= control target key end

     0   :  { %s2954_s12 = smov 0   ;;  %s2956_s13 = smov 0   ;;  %s3619_s0 = inlined_call_operand.vmem [shape: bf16[1352,147], index: 0, kind: input, shape index: {}]   ;;  %s3620_s1 = inlined_call_operand.vmem [shape: bf16[147,8], index: 1, kind: input, shape index: {}]   ;;  %s3621_s2 = inlined_call_operand.vmem [shape: f32[1,8], index: 2, kind: input, shape index: {}]   ;;  %s3622_s3 = inlined_call_operand.vmem [shape: bf16[1352,8], index: 3, kind: output, shape index: {}]  }
   0x1   :  { %s2958_s14 = smov 0  }
   0x2 LB: > { %s2967_s15 = sadd.s32 4294967295, %s2898_s14   ;;  %s2969_s16 = sadd.s32 1, %s2898_s14   ;;  %s2898_s14 = sphi %s2958_s14, %s3629_s14   ;;  %s2894_s13 = sphi %s2956_s13, %s3628_s13   ;;  %s2890_s12 = sphi %s2954_s12, %s3627_s12  }
   0x3   : > { %s85_s17 = ssub.s32 %s2898_s14, %s2969_s16  ;;  %s88_s18 = sadd.s32 1, %s2894_s13 }
   0x4   : > { %p86_p0 = scmp.eq.s32.totalorder %s85_s17, 0  ;;  %p98_p1 = scmp.ne.s32.totalorder %s2894_s13, %s2890_s12 }
   0x5   : > { %p99_p2 = scmp.eq.s32.totalorder %s2967_s15, 1  ;;  %p2259_p3 = scmp.ge.s32.totalorder %s2898_s14, 1 }
   0x6   : > { %s2977_s19 = scalar_select %p86_p0, %s2894_s13, %s88_s18  }
   0x7   : > { %p2979_p4 = por %p99_p2, %p98_p1  ;;  %p149_p5 = scmp.lt.s32.totalorder %s2898_s14, 3 }
   0x9   : > { %p150_p6 = pnand %p2259_p3, %p149_p5 }
   0xa   : > { %s2993_s27 = smul.u32 (!%p150_p6), 86, %s2967_s15  ;;  %s175_s26 = sand.u32 (!%p150_p6), 1, %s2890_s12  }
   0xb   : > { %153 = sbr.rel (%p150_p6) target bundleno = 510 (0x1fe), region = 32 }
   0xc   : > { %p184_p7 = scmp.lt.s32.totalorder (!%p150_p6), %s2993_s27, 168 }
  0x10   : > { %v2704_v0 = vld [vmem:[%s3620_s1 + $0x38] sm:$0xff]   ;;  %v2932_v1 = vmov 0   ;;  %v2705_v2 = vld [vmem:[%s3620_s1 + $0x30] sm:$0xff]   ;;  %v2706_v3 = vld [vmem:[%s3620_s1 + $0x28] sm:$0xff]   ;;  %s185_s30 = scalar_select %p184_p7, %s2993_s27, 168  ;;  %vm757_vm0 = vcmask 154624  }
  0x11   : > { %894 = vmatprep.subr.bf16.mxu0 %v2932_v1  ;;  %2593 = vmatprep.subr.bf16.mxu1 %v2932_v1  ;;  %v2707_v4 = vld [vmem:[%s3620_s1 + $0x20] sm:$0xff]   ;;  %v2708_v5 = vld [vmem:[%s3620_s1 + $0x18] sm:$0xff]   ;;  %v2709_v8 = vld [vmem:[%s3620_s1 + $0x10] sm:$0xff]   ;;  %vm887_vm1 = vcmask 1040384   ;;  %vm888_vm2 = vcmask 1041408   ;;  %v2933_v10 = vmov 65535  }
  0x12   : > { %895 = vmatpush1.bf16.msra.mxu0 %v2704_v0  ;;  %2603 = vmatpush1.bf16.msra.mxu1 %v2704_v0  ;;  %s2503_s4 = sshll.u32 %s185_s30, 3  ;;  %v2710_v9 = vld [vmem:[%s3620_s1 + $0x8] sm:$0xff]   ;;  %v889_v11 = vsel %vm887_vm1, 4294967295, %v2933_v10  ;;  %v2711_v12 = vld [vmem:[%s3620_s1] sm:$0xff]   ;;  %s2613_s30 = smul.u32 344, %s175_s26  ;;  %vm1701_vm3 = vcmask 60416  }
  0x13   : > { %896 = vmatprep.subr.bf16.mxu0 %v2932_v1  ;;  %2594 = vmatprep.subr.bf16.mxu1 %v2932_v1  ;;  %s3006_s9 = scalar_lea.vmem %s3619_s0, %s2503_s4  ;;  %v2712_v13 = vld [vmem:[%s3620_s1 + $0x48] ss:$0 sps:$4 sm:$0x33]   ;;  %v890_v14 = vsel %vm888_vm2, %v889_v11, 0  ;;  %v2713_v16 = vld [vmem:[%s3620_s1 + $0x40] sm:$0xff]   ;;  %s1796_s6 = ssub.s32 (%p2979_p4), 169, %s2993_s27 }
  0x14   : > { %v2716_v6 = vld [vmem:[%s3006_s9 + $0x4] ss:$8 sps:$4 sm:$0xff]   ;;  %v892_v15 = vand.u32 %v2712_v13, %v890_v14  ;;  %v2714_v17 = vld [vmem:[%s3006_s9] ss:$8 sps:$4 sm:$0xff]   ;;  %v2720_v19 = vld [vmem:[%s3006_s9 + $0x14] ss:$8 sps:$4 sm:$0xff]  }
  0x15   : > { %v2719_v7 = vld [vmem:[%s3006_s9 + $0x164] ss:$8 sps:$4 sm:$0xff]   ;;  %2359 = vmatprep.mubr.msk.bf16.mxu0 %vm757_vm0, %v2716_v6  ;;  %v2717_v18 = vld [vmem:[%s3006_s9 + $0x160] ss:$8 sps:$4 sm:$0xff]   ;;  %v2723_v20 = vld [vmem:[%s3006_s9 + $0x174] ss:$8 sps:$4 sm:$0xff]  }
  0x16   : > { %897 = vmatpush1.bf16.msra.mxu0 %v2705_v2  ;;  %2604 = vmatpush1.bf16.msra.mxu1 %v2705_v2  ;;  %v2722_v21 = vld [vmem:[%s3006_s9 + $0x10] ss:$8 sps:$4 sm:$0xff]   ;;  %v2726_v23 = vld [vmem:[%s3006_s9 + $0x24] ss:$8 sps:$4 sm:$0xff]   ;;  %v2728_v25 = vld [vmem:[%s3006_s9 + $0x20] ss:$8 sps:$4 sm:$0xff]  }
  0x17   : > { %898 = vmatprep.subr.bf16.mxu0 %v2932_v1  ;;  %2595 = vmatprep.subr.bf16.mxu1 %v2932_v1  ;;  %v2725_v22 = vld [vmem:[%s3006_s9 + $0x170] ss:$8 sps:$4 sm:$0xff]   ;;  %v2729_v24 = vld [vmem:[%s3006_s9 + $0x184] ss:$8 sps:$4 sm:$0xff]   ;;  %v2731_v26 = vld [vmem:[%s3006_s9 + $0x180] ss:$8 sps:$4 sm:$0xff]  }
  0x18   : > { %2381 = vmatprep.mubr.msk.bf16.mxu1 %vm757_vm0, %v2719_v7  ;;  %v2732_v27 = vld [vmem:[%s3006_s9 + $0x34] ss:$8 sps:$4 sm:$0xff]   ;;  %v2734_v29 = vld [vmem:[%s3006_s9 + $0x30] ss:$8 sps:$4 sm:$0xff]   ;;  %v2738_v31 = vld [vmem:[%s3006_s9 + $0x44] ss:$8 sps:$4 sm:$0xff]  }
  0x19   : > { %v2735_v28 = vld [vmem:[%s3006_s9 + $0x194] ss:$8 sps:$4 sm:$0xff]   ;;  %v2737_v30 = vld [vmem:[%s3006_s9 + $0x190] ss:$8 sps:$4 sm:$0xff]   ;;  %v2741_v32 = vld [vmem:[%s3006_s9 + $0x1a4] ss:$8 sps:$4 sm:$0xff]  }
  0x1a   : > { %899 = vmatpush1.bf16.msra.mxu0 %v2706_v3  ;;  %2605 = vmatpush1.bf16.msra.mxu1 %v2706_v3  ;;  %v2740_v33 = vld [vmem:[%s3006_s9 + $0x40] ss:$8 sps:$4 sm:$0xff]   ;;  %v2744_v35 = vld [vmem:[%s3006_s9 + $0x54] ss:$8 sps:$4 sm:$0xff]   ;;  %v2746_v37 = vld [vmem:[%s3006_s9 + $0x50] ss:$8 sps:$4 sm:$0xff]  }
  0x1b   : > { %900 = vmatprep.subr.bf16.mxu0 %v2932_v1  ;;  %2596 = vmatprep.subr.bf16.mxu1 %v2932_v1  ;;  %v2743_v34 = vld [vmem:[%s3006_s9 + $0x1a0] ss:$8 sps:$4 sm:$0xff]   ;;  %v2747_v36 = vld [vmem:[%s3006_s9 + $0x1b4] ss:$8 sps:$4 sm:$0xff]   ;;  %v2749_v38 = vld [vmem:[%s3006_s9 + $0x1b0] ss:$8 sps:$4 sm:$0xff]  }
  0x1c   : > { %v2750_v39 = vld [vmem:[%s3006_s9 + $0x64] ss:$8 sps:$4 sm:$0xff]   ;;  %v2752_v41 = vld [vmem:[%s3006_s9 + $0x60] ss:$8 sps:$4 sm:$0xff]   ;;  %v2756_v43 = vld [vmem:[%s3006_s9 + $0x74] ss:$8 sps:$4 sm:$0xff]  }
  0x1d   : > { %v2753_v40 = vld [vmem:[%s3006_s9 + $0x1c4] ss:$8 sps:$4 sm:$0xff]   ;;  %v2755_v42 = vld [vmem:[%s3006_s9 + $0x1c0] ss:$8 sps:$4 sm:$0xff]   ;;  %v2759_v44 = vld [vmem:[%s3006_s9 + $0x1d4] ss:$8 sps:$4 sm:$0xff]  }
  0x1e   : > { %901 = vmatpush1.bf16.msra.mxu0 %v2707_v4  ;;  %2606 = vmatpush1.bf16.msra.mxu1 %v2707_v4  ;;  %v2758_v45 = vld [vmem:[%s3006_s9 + $0x70] ss:$8 sps:$4 sm:$0xff]   ;;  %v2762_v47 = vld [vmem:[%s3006_s9 + $0x84] ss:$8 sps:$4 sm:$0xff]   ;;  %v2764_v49 = vld [vmem:[%s3006_s9 + $0x80] ss:$8 sps:$4 sm:$0xff]  }
  0x1f   : > { %902 = vmatprep.subr.bf16.mxu0 %v2932_v1  ;;  %2597 = vmatprep.subr.bf16.mxu1 %v2932_v1  ;;  %v2761_v46 = vld [vmem:[%s3006_s9 + $0x1d0] ss:$8 sps:$4 sm:$0xff]   ;;  %v2765_v48 = vld [vmem:[%s3006_s9 + $0x1e4] ss:$8 sps:$4 sm:$0xff]   ;;  %v2767_v50 = vld [vmem:[%s3006_s9 + $0x1e0] ss:$8 sps:$4 sm:$0xff]  }
  0x20   : > { %v2768_v51 = vld [vmem:[%s3006_s9 + $0x94] ss:$8 sps:$4 sm:$0xff]   ;;  %v2770_v53 = vld [vmem:[%s3006_s9 + $0x90] ss:$8 sps:$4 sm:$0xff]   ;;  %v2774_v55 = vld [vmem:[%s3006_s9 + $0xa4] ss:$8 sps:$4 sm:$0xff]  }
  0x21   : > { %v2771_v52 = vld [vmem:[%s3006_s9 + $0x1f4] ss:$8 sps:$4 sm:$0xff]   ;;  %v2773_v54 = vld [vmem:[%s3006_s9 + $0x1f0] ss:$8 sps:$4 sm:$0xff]   ;;  %v2777_v56 = vld [vmem:[%s3006_s9 + $0x204] ss:$8 sps:$4 sm:$0xff]  }
  0x22   : > { %903 = vmatpush1.bf16.msra.mxu0 %v2708_v5  ;;  %2607 = vmatpush1.bf16.msra.mxu1 %v2708_v5  ;;  %v2776_v57 = vld [vmem:[%s3006_s9 + $0xa0] ss:$8 sps:$4 sm:$0xff]   ;;  %v2780_v59 = vld [vmem:[%s3006_s9 + $0xb4] ss:$8 sps:$4 sm:$0xff]   ;;  %v2782_v61 = vld [vmem:[%s3006_s9 + $0xb0] ss:$8 sps:$4 sm:$0xff]  }
  0x23   : > { %904 = vmatprep.subr.bf16.mxu0 %v2932_v1  ;;  %2598 = vmatprep.subr.bf16.mxu1 %v2932_v1  ;;  %v2779_v58 = vld [vmem:[%s3006_s9 + $0x200] ss:$8 sps:$4 sm:$0xff]   ;;  %v2783_v60 = vld [vmem:[%s3006_s9 + $0x214] ss:$8 sps:$4 sm:$0xff]   ;;  %v2785_v62 = vld [vmem:[%s3006_s9 + $0x210] ss:$8 sps:$4 sm:$0xff]  }
  0x24   : > { %v2786_v63 = vld [vmem:[%s3006_s9 + $0xc4] ss:$8 sps:$4 sm:$0xff]   ;;  %v2791_v2 = vld [vmem:[%s3006_s9 + $0x220] ss:$8 sps:$4 sm:$0xff]   ;;  %v2792_v3 = vld [vmem:[%s3006_s9 + $0xd4] ss:$8 sps:$4 sm:$0xff]  }
  0x25   : > { %v2789_v0 = vld [vmem:[%s3006_s9 + $0x224] ss:$8 sps:$4 sm:$0xff]   ;;  %v2795_v4 = vld [vmem:[%s3006_s9 + $0x234] ss:$8 sps:$4 sm:$0xff]   ;;  %v2794_v5 = vld [vmem:[%s3006_s9 + $0xd0] ss:$8 sps:$4 sm:$0xff]  }
  0x26   : > { %905 = vmatpush1.bf16.msra.mxu0 %v2709_v8  ;;  %2608 = vmatpush1.bf16.msra.mxu1 %v2709_v8  ;;  %v2797_v6 = vld [vmem:[%s3006_s9 + $0x230] ss:$8 sps:$4 sm:$0xff]   ;;  %v2798_v7 = vld [vmem:[%s3006_s9 + $0xe4] ss:$8 sps:$4 sm:$0xff]   ;;  %v2803_v10 = vld [vmem:[%s3006_s9 + $0x240] ss:$8 sps:$4 sm:$0xff]  }
  0x27   : > { %906 = vmatprep.subr.bf16.mxu0 %v2932_v1  ;;  %2599 = vmatprep.subr.bf16.mxu1 %v2932_v1  ;;  %v2801_v8 = vld [vmem:[%s3006_s9 + $0x244] ss:$8 sps:$4 sm:$0xff]   ;;  %v2804_v11 = vld [vmem:[%s3006_s9 + $0xf4] ss:$8 sps:$4 sm:$0xff]   ;;  %v2806_v13 = vld [vmem:[%s3006_s9 + $0xf0] ss:$8 sps:$4 sm:$0xff]  }
  0x28   : > { %v2809_v14 = vld [vmem:[%s3006_s9 + $0x250] ss:$8 sps:$4 sm:$0xff]   ;;  %s3162_s12 = scalar_lea.vmem [#allocation2], %s2613_s30   ;;  %s2590_s7 = smul.u32 (%p2979_p4), 344, %s2967_s15 }
  0x29   : > { %p1797_p8 = scmp.lt.s32.totalorder (%p2979_p4), %s1796_s6, 86 }
  0x2a   : > { %907 = vmatpush1.bf16.msra.mxu0 %v2710_v9  ;;  %2609 = vmatpush1.bf16.msra.mxu1 %v2710_v9  ;;  %v2800_v9 = vld [vmem:[%s3006_s9 + $0xe0] ss:$8 sps:$4 sm:$0xff]   ;;  %s3427_s10 = scalar_lea.vmem (%p2979_p4), %s3622_s3, %s2590_s7  }
  0x2b   : > { %908 = vmatprep.subr.bf16.mxu0 %v2932_v1  ;;  %2600 = vmatprep.subr.bf16.mxu1 %v2932_v1 }
  0x2e   : > { %909 = vmatpush1.bf16.msra.mxu0 %v2711_v12  ;;  %2610 = vmatpush1.bf16.msra.mxu1 %v2711_v12  ;;  %v2807_v12 = vld [vmem:[%s3006_s9 + $0x254] ss:$8 sps:$4 sm:$0xff]  }
  0x2f   : > { %922 = vmatprep.subr.bf16.mxu0 %v2932_v1  ;;  %2601 = vmatprep.subr.bf16.mxu1 %v2932_v1 }
  0x32   : > { %923 = vmatpush2.bf16.msra.mxu0 %v892_v15  ;;  %2611 = vmatpush2.bf16.msra.mxu1 %v892_v15  ;;  %v2810_v15 = vld [vmem:[%s3006_s9 + $0x104] ss:$8 sps:$4 sm:$0xff]  }
  0x33   : > { %924 = vmatprep.subr.bf16.mxu0 %v2932_v1  ;;  %2602 = vmatprep.subr.bf16.mxu1 %v2932_v1  ;;  %v2788_v1 = vld [vmem:[%s3006_s9 + $0xc0] ss:$8 sps:$4 sm:$0xff]  }
  0x36   : > { %925 = vmatpush2.bf16.msra.mxu0 %v2713_v16  ;;  %2612 = vmatpush2.bf16.msra.mxu1 %v2713_v16  ;;  %v2813_v16 = vld [vmem:[%s3006_s9 + $0x264] ss:$8 sps:$4 sm:$0xff]  }
  0x39   : > { %927 = vmatmul.mubr.bf16.vlgmr.msra.gmra.mxu0 %v2714_v17  ;;  %1103 = vmatmul.mubr.bf16.vlgmr.msra.gmra.mxu1 %v2717_v18  ;;  %v2812_v17 = vld [vmem:[%s3006_s9 + $0x100] ss:$8 sps:$4 sm:$0xff]  }
  0x3a   : > { %2360 = vmatprep.mubr.msk.bf16.mxu0 %vm757_vm0, %v2720_v19  ;;  %2382 = vmatprep.mubr.msk.bf16.mxu1 %vm757_vm0, %v2723_v20  ;;  %v2815_v18 = vld [vmem:[%s3006_s9 + $0x260] ss:$8 sps:$4 sm:$0xff]   ;;  %v2816_v19 = vld [vmem:[%s3006_s9 + $0x114] ss:$8 sps:$4 sm:$0xff]  }
  0x3b   : > { %v2819_v20 = vld [vmem:[%s3006_s9 + $0x274] ss:$8 sps:$4 sm:$0xff]  }
  0x41   : > { %935 = vmatmul.mubr.bf16.gmra.mxu0 %v2722_v21  ;;  %1111 = vmatmul.mubr.bf16.gmra.mxu1 %v2725_v22  ;;  %v2818_v21 = vld [vmem:[%s3006_s9 + $0x110] ss:$8 sps:$4 sm:$0xff]  }
  0x42   : > { %2361 = vmatprep.mubr.msk.bf16.mxu0 %vm757_vm0, %v2726_v23  ;;  %2383 = vmatprep.mubr.msk.bf16.mxu1 %vm757_vm0, %v2729_v24  ;;  %v2821_v22 = vld [vmem:[%s3006_s9 + $0x270] ss:$8 sps:$4 sm:$0xff]   ;;  %v2822_v23 = vld [vmem:[%s3006_s9 + $0x124] ss:$8 sps:$4 sm:$0xff]  }
  0x43   : > { %v2825_v24 = vld [vmem:[%s3006_s9 + $0x284] ss:$8 sps:$4 sm:$0xff]  }
  0x49   : > { %943 = vmatmul.mubr.bf16.gmra.mxu0 %v2728_v25  ;;  %1119 = vmatmul.mubr.bf16.gmra.mxu1 %v2731_v26  ;;  %v2824_v25 = vld [vmem:[%s3006_s9 + $0x120] ss:$8 sps:$4 sm:$0xff]  }
  0x4a   : > { %2362 = vmatprep.mubr.msk.bf16.mxu0 %vm757_vm0, %v2732_v27  ;;  %2384 = vmatprep.mubr.msk.bf16.mxu1 %vm757_vm0, %v2735_v28  ;;  %v2827_v26 = vld [vmem:[%s3006_s9 + $0x280] ss:$8 sps:$4 sm:$0xff]   ;;  %v2828_v27 = vld [vmem:[%s3006_s9 + $0x134] ss:$8 sps:$4 sm:$0xff]  }
  0x4b   : > { %v2831_v28 = vld [vmem:[%s3006_s9 + $0x294] ss:$8 sps:$4 sm:$0xff]  }
  0x51   : > { %951 = vmatmul.mubr.bf16.gmra.mxu0 %v2734_v29  ;;  %1127 = vmatmul.mubr.bf16.gmra.mxu1 %v2737_v30  ;;  %v2830_v29 = vld [vmem:[%s3006_s9 + $0x130] ss:$8 sps:$4 sm:$0xff]  }
  0x52   : > { %2363 = vmatprep.mubr.msk.bf16.mxu0 %vm757_vm0, %v2738_v31  ;;  %2385 = vmatprep.mubr.msk.bf16.mxu1 %vm757_vm0, %v2741_v32  ;;  %v2833_v30 = vld [vmem:[%s3006_s9 + $0x290] ss:$8 sps:$4 sm:$0xff]   ;;  %v2834_v31 = vld [vmem:[%s3006_s9 + $0x144] ss:$8 sps:$4 sm:$0xff]  }
  0x53   : > { %v2837_v32 = vld [vmem:[%s3006_s9 + $0x2a4] ss:$8 sps:$4 sm:$0xff]  }
  0x59   : > { %959 = vmatmul.mubr.bf16.gmra.mxu0 %v2740_v33  ;;  %1135 = vmatmul.mubr.bf16.gmra.mxu1 %v2743_v34  ;;  %v2836_v33 = vld [vmem:[%s3006_s9 + $0x140] ss:$8 sps:$4 sm:$0xff]  }
  0x5a   : > { %2364 = vmatprep.mubr.msk.bf16.mxu0 %vm757_vm0, %v2744_v35  ;;  %2386 = vmatprep.mubr.msk.bf16.mxu1 %vm757_vm0, %v2747_v36  ;;  %v2839_v34 = vld [vmem:[%s3006_s9 + $0x2a0] ss:$8 sps:$4 sm:$0xff]   ;;  %v2840_v35 = vld [vmem:[%s3006_s9 + $0x154] ss:$8 sps:$4 sm:$0xff]   ;;  %v2842_v36 = vld [vmem:[%s3006_s9 + $0x150] ss:$8 sps:$4 sm:$0xff]  }
  0x61   : > { %967 = vmatmul.mubr.bf16.gmra.mxu0 %v2746_v37  ;;  %1143 = vmatmul.mubr.bf16.gmra.mxu1 %v2749_v38  ;;  %v3156_v37 = vld [vmem:[%s3621_s2] ss:$0 sm:$0xff] }
  0x62   : > { %2365 = vmatprep.mubr.msk.bf16.mxu0 %vm757_vm0, %v2750_v39  ;;  %2387 = vmatprep.mubr.msk.bf16.mxu1 %vm757_vm0, %v2753_v40 }
  0x69   : > { %975 = vmatmul.mubr.bf16.gmra.mxu0 %v2752_v41  ;;  %1151 = vmatmul.mubr.bf16.gmra.mxu1 %v2755_v42 }
  0x6a   : > { %2366 = vmatprep.mubr.msk.bf16.mxu0 %vm757_vm0, %v2756_v43  ;;  %2388 = vmatprep.mubr.msk.bf16.mxu1 %vm757_vm0, %v2759_v44 }
  0x71   : > { %983 = vmatmul.mubr.bf16.gmra.mxu0 %v2758_v45  ;;  %1159 = vmatmul.mubr.bf16.gmra.mxu1 %v2761_v46 }
  0x72   : > { %2367 = vmatprep.mubr.msk.bf16.mxu0 %vm757_vm0, %v2762_v47  ;;  %2389 = vmatprep.mubr.msk.bf16.mxu1 %vm757_vm0, %v2765_v48 }
  0x79   : > { %991 = vmatmul.mubr.bf16.gmra.mxu0 %v2764_v49  ;;  %1167 = vmatmul.mubr.bf16.gmra.mxu1 %v2767_v50 }
  0x7a   : > { %2368 = vmatprep.mubr.msk.bf16.mxu0 %vm757_vm0, %v2768_v51  ;;  %2390 = vmatprep.mubr.msk.bf16.mxu1 %vm757_vm0, %v2771_v52 }
  0x81   : > { %999 = vmatmul.mubr.bf16.gmra.mxu0 %v2770_v53  ;;  %1175 = vmatmul.mubr.bf16.gmra.mxu1 %v2773_v54 }
  0x82   : > { %2369 = vmatprep.mubr.msk.bf16.mxu0 %vm757_vm0, %v2774_v55  ;;  %2391 = vmatprep.mubr.msk.bf16.mxu1 %vm757_vm0, %v2777_v56 }
  0x89   : > { %1007 = vmatmul.mubr.bf16.gmra.mxu0 %v2776_v57  ;;  %1183 = vmatmul.mubr.bf16.gmra.mxu1 %v2779_v58 }
  0x8a   : > { %2370 = vmatprep.mubr.msk.bf16.mxu0 %vm757_vm0, %v2780_v59  ;;  %2392 = vmatprep.mubr.msk.bf16.mxu1 %vm757_vm0, %v2783_v60 }
  0x91   : > { %1015 = vmatmul.mubr.bf16.gmra.mxu0 %v2782_v61  ;;  %1191 = vmatmul.mubr.bf16.gmra.mxu1 %v2785_v62 }
  0x92   : > { %2371 = vmatprep.mubr.msk.bf16.mxu0 %vm757_vm0, %v2786_v63  ;;  %2393 = vmatprep.mubr.msk.bf16.mxu1 %vm757_vm0, %v2789_v0 }
  0x99   : > { %1023 = vmatmul.mubr.bf16.gmra.mxu0 %v2788_v1  ;;  %1199 = vmatmul.mubr.bf16.gmra.mxu1 %v2791_v2 }
  0x9a   : > { %2372 = vmatprep.mubr.msk.bf16.mxu0 %vm757_vm0, %v2792_v3  ;;  %2394 = vmatprep.mubr.msk.bf16.mxu1 %vm757_vm0, %v2795_v4 }
  0xa1   : > { %1031 = vmatmul.mubr.bf16.gmra.mxu0 %v2794_v5  ;;  %1207 = vmatmul.mubr.bf16.gmra.mxu1 %v2797_v6 }
  0xa2   : > { %2373 = vmatprep.mubr.msk.bf16.mxu0 %vm757_vm0, %v2798_v7  ;;  %2395 = vmatprep.mubr.msk.bf16.mxu1 %vm757_vm0, %v2801_v8 }
  0xa9   : > { %1039 = vmatmul.mubr.bf16.gmra.mxu0 %v2800_v9  ;;  %1215 = vmatmul.mubr.bf16.gmra.mxu1 %v2803_v10 }
  0xaa   : > { %2374 = vmatprep.mubr.msk.bf16.mxu0 %vm757_vm0, %v2804_v11  ;;  %2396 = vmatprep.mubr.msk.bf16.mxu1 %vm757_vm0, %v2807_v12 }
  0xb1   : > { %1047 = vmatmul.mubr.bf16.gmra.mxu0 %v2806_v13  ;;  %1223 = vmatmul.mubr.bf16.gmra.mxu1 %v2809_v14 }
  0xb2   : > { %2375 = vmatprep.mubr.msk.bf16.mxu0 %vm757_vm0, %v2810_v15  ;;  %2397 = vmatprep.mubr.msk.bf16.mxu1 %vm757_vm0, %v2813_v16 }
  0xb9   : > { %1055 = vmatmul.mubr.bf16.gmra.mxu0 %v2812_v17  ;;  %1231 = vmatmul.mubr.bf16.gmra.mxu1 %v2815_v18 }
  0xba   : > { %2376 = vmatprep.mubr.msk.bf16.mxu0 %vm757_vm0, %v2816_v19  ;;  %2398 = vmatprep.mubr.msk.bf16.mxu1 %vm757_vm0, %v2819_v20 }
  0xc1   : > { %1063 = vmatmul.mubr.bf16.gmra.mxu0 %v2818_v21  ;;  %1239 = vmatmul.mubr.bf16.gmra.mxu1 %v2821_v22 }
  0xc2   : > { %2377 = vmatprep.mubr.msk.bf16.mxu0 %vm757_vm0, %v2822_v23  ;;  %2399 = vmatprep.mubr.msk.bf16.mxu1 %vm757_vm0, %v2825_v24 }
  0xc9   : > { %1071 = vmatmul.mubr.bf16.gmra.mxu0 %v2824_v25  ;;  %1247 = vmatmul.mubr.bf16.gmra.mxu1 %v2827_v26 }
  0xca   : > { %2378 = vmatprep.mubr.msk.bf16.mxu0 %vm757_vm0, %v2828_v27  ;;  %2400 = vmatprep.mubr.msk.bf16.mxu1 %vm757_vm0, %v2831_v28 }
  0xd1   : > { %1079 = vmatmul.mubr.bf16.gmra.mxu0 %v2830_v29  ;;  %1255 = vmatmul.mubr.bf16.gmra.mxu1 %v2833_v30 }
  0xd2   : > { %2379 = vmatprep.mubr.msk.bf16.mxu0 %vm757_vm0, %v2834_v31  ;;  %2401 = vmatprep.mubr.msk.bf16.mxu1 %vm757_vm0, %v2837_v32 }
  0xd9   : > { %1087 = vmatmul.mubr.bf16.gmra.mxu0 %v2836_v33  ;;  %1263 = vmatmul.mubr.bf16.gmra.mxu1 %v2839_v34 }
  0xda   : > { %2380 = vmatprep.mubr.msk.bf16.mxu0 %vm757_vm0, %v2840_v35 }
  0xe1   : > { %1095 = vmatmul.mubr.bf16.gmra.mxu0 %v2842_v36 }
  0xf9   : > { %v928_v38 = vpop.f32.mrf.mxu0  ;;  %v1104_v39 = vpop.f32.mrf.mxu1 }
  0xfa   : > { %v929_v40 = vadd.f32 %v3156_v37, %v928_v38  ;;  %v1105_v41 = vadd.f32 %v3156_v37, %v1104_v39 }
  0xfb   : > { %v930_v42 = vpop.f32.mrf.mxu0  ;;  %v1106_v43 = vpop.f32.mrf.mxu1 }
  0xfc   : > { %v1271_v44 = vmax.f32 %v929_v40, 0.0  ;;  %v1315_v45 = vmax.f32 %v1105_v41, 0.0 }
  0xfd   : > { %v931_v46 = vpop.f32.mrf.mxu0  ;;  %v1107_v47 = vpop.f32.mrf.mxu1 }
  0xfe   : > { %v2504_v48 = vpack.c.bf16 %v1271_v44, %v1271_v44  ;;  %v2548_v49 = vpack.c.bf16 %v1315_v45, %v1315_v45  ;;  %v932_v50 = vadd.f32 %v3156_v37, %v931_v46  ;;  %v1108_v51 = vadd.f32 %v3156_v37, %v1107_v47 }
  0xff   : > { %v933_v52 = vpop.f32.mrf.mxu0  ;;  %v1109_v53 = vpop.f32.mrf.mxu1 }
 0x100   : > { %1702 = vst.msk [vmem:[%s3162_s12] sm:$0xf] %vm1701_vm3, %v2504_v48  ;;  %1746 = vst.msk [vmem:[%s3162_s12 + $0xb0] sm:$0xf] %vm1701_vm3, %v2548_v49  ;;  %v1272_v54 = vmax.f32 %v932_v50, 0.0  ;;  %v1316_v55 = vmax.f32 %v1108_v51, 0.0 }
 0x101   : > { %v936_v56 = vpop.f32.mrf.mxu0  ;;  %v1112_v57 = vpop.f32.mrf.mxu1 }
 0x102   : > { %v2505_v58 = vpack.c.bf16 %v1272_v54, %v1272_v54  ;;  %v2549_v59 = vpack.c.bf16 %v1316_v55, %v1316_v55  ;;  %v937_v60 = vadd.f32 %v3156_v37, %v936_v56  ;;  %v1113_v61 = vadd.f32 %v3156_v37, %v1112_v57 }
 0x103   : > { %v938_v62 = vpop.f32.mrf.mxu0  ;;  %v1114_v63 = vpop.f32.mrf.mxu1 }
 0x104   : > { %1703 = vst.msk [vmem:[%s3162_s12 + $0x4] sm:$0xf] %vm1701_vm3, %v2505_v58  ;;  %1747 = vst.msk [vmem:[%s3162_s12 + $0xb4] sm:$0xf] %vm1701_vm3, %v2549_v59  ;;  %v1273_v0 = vmax.f32 %v937_v60, 0.0  ;;  %v1317_v1 = vmax.f32 %v1113_v61, 0.0 }
 0x105   : > { %v939_v2 = vpop.f32.mrf.mxu0  ;;  %v1115_v3 = vpop.f32.mrf.mxu1 }
 0x106   : > { %v2506_v4 = vpack.c.bf16 %v1273_v0, %v1273_v0  ;;  %v2550_v5 = vpack.c.bf16 %v1317_v1, %v1317_v1  ;;  %v940_v6 = vadd.f32 %v3156_v37, %v939_v2  ;;  %v1116_v7 = vadd.f32 %v3156_v37, %v1115_v3 }
 0x107   : > { %v941_v8 = vpop.f32.mrf.mxu0  ;;  %v1117_v9 = vpop.f32.mrf.mxu1 }
 0x108   : > { %1704 = vst.msk [vmem:[%s3162_s12 + $0x8] sm:$0xf] %vm1701_vm3, %v2506_v4  ;;  %1748 = vst.msk [vmem:[%s3162_s12 + $0xb8] sm:$0xf] %vm1701_vm3, %v2550_v5  ;;  %v1274_v10 = vmax.f32 %v940_v6, 0.0  ;;  %v1318_v11 = vmax.f32 %v1116_v7, 0.0 }
 0x109   : > { %v944_v12 = vpop.f32.mrf.mxu0  ;;  %v1120_v13 = vpop.f32.mrf.mxu1 }
 0x10a   : > { %v2507_v14 = vpack.c.bf16 %v1274_v10, %v1274_v10  ;;  %v2551_v15 = vpack.c.bf16 %v1318_v11, %v1318_v11  ;;  %v945_v16 = vadd.f32 %v3156_v37, %v944_v12  ;;  %v1121_v17 = vadd.f32 %v3156_v37, %v1120_v13 }
 0x10b   : > { %v946_v18 = vpop.f32.mrf.mxu0  ;;  %v1122_v19 = vpop.f32.mrf.mxu1 }
 0x10c   : > { %1705 = vst.msk [vmem:[%s3162_s12 + $0xc] sm:$0xf] %vm1701_vm3, %v2507_v14  ;;  %1749 = vst.msk [vmem:[%s3162_s12 + $0xbc] sm:$0xf] %vm1701_vm3, %v2551_v15  ;;  %v1275_v20 = vmax.f32 %v945_v16, 0.0  ;;  %v1319_v21 = vmax.f32 %v1121_v17, 0.0 }
 0x10d   : > { %v947_v22 = vpop.f32.mrf.mxu0  ;;  %v1123_v23 = vpop.f32.mrf.mxu1 }
 0x10e   : > { %v2508_v24 = vpack.c.bf16 %v1275_v20, %v1275_v20  ;;  %v2552_v25 = vpack.c.bf16 %v1319_v21, %v1319_v21  ;;  %v948_v26 = vadd.f32 %v3156_v37, %v947_v22  ;;  %v1124_v27 = vadd.f32 %v3156_v37, %v1123_v23 }
 0x10f   : > { %v949_v28 = vpop.f32.mrf.mxu0  ;;  %v1125_v29 = vpop.f32.mrf.mxu1 }
 0x110   : > { %1706 = vst.msk [vmem:[%s3162_s12 + $0x10] sm:$0xf] %vm1701_vm3, %v2508_v24  ;;  %1750 = vst.msk [vmem:[%s3162_s12 + $0xc0] sm:$0xf] %vm1701_vm3, %v2552_v25  ;;  %v1276_v30 = vmax.f32 %v948_v26, 0.0  ;;  %v1320_v31 = vmax.f32 %v1124_v27, 0.0 }
 0x111   : > { %v952_v32 = vpop.f32.mrf.mxu0  ;;  %v1128_v33 = vpop.f32.mrf.mxu1 }
 0x112   : > { %v2509_v34 = vpack.c.bf16 %v1276_v30, %v1276_v30  ;;  %v2553_v35 = vpack.c.bf16 %v1320_v31, %v1320_v31  ;;  %v953_v36 = vadd.f32 %v3156_v37, %v952_v32  ;;  %v1129_v38 = vadd.f32 %v3156_v37, %v1128_v33 }
 0x113   : > { %v954_v39 = vpop.f32.mrf.mxu0  ;;  %v1130_v40 = vpop.f32.mrf.mxu1 }
 0x114   : > { %1707 = vst.msk [vmem:[%s3162_s12 + $0x14] sm:$0xf] %vm1701_vm3, %v2509_v34  ;;  %1751 = vst.msk [vmem:[%s3162_s12 + $0xc4] sm:$0xf] %vm1701_vm3, %v2553_v35  ;;  %v1277_v41 = vmax.f32 %v953_v36, 0.0  ;;  %v1321_v42 = vmax.f32 %v1129_v38, 0.0 }
 0x115   : > { %v955_v43 = vpop.f32.mrf.mxu0  ;;  %v1131_v44 = vpop.f32.mrf.mxu1 }
 0x116   : > { %v2510_v45 = vpack.c.bf16 %v1277_v41, %v1277_v41  ;;  %v2554_v46 = vpack.c.bf16 %v1321_v42, %v1321_v42  ;;  %v956_v47 = vadd.f32 %v3156_v37, %v955_v43  ;;  %v1132_v48 = vadd.f32 %v3156_v37, %v1131_v44 }
 0x117   : > { %v957_v49 = vpop.f32.mrf.mxu0  ;;  %v1133_v50 = vpop.f32.mrf.mxu1 }
 0x118   : > { %1708 = vst.msk [vmem:[%s3162_s12 + $0x18] sm:$0xf] %vm1701_vm3, %v2510_v45  ;;  %1752 = vst.msk [vmem:[%s3162_s12 + $0xc8] sm:$0xf] %vm1701_vm3, %v2554_v46  ;;  %v1278_v51 = vmax.f32 %v956_v47, 0.0  ;;  %v1322_v52 = vmax.f32 %v1132_v48, 0.0 }
 0x119   : > { %v960_v53 = vpop.f32.mrf.mxu0  ;;  %v1136_v54 = vpop.f32.mrf.mxu1 }
 0x11a   : > { %v2511_v55 = vpack.c.bf16 %v1278_v51, %v1278_v51  ;;  %v2555_v56 = vpack.c.bf16 %v1322_v52, %v1322_v52  ;;  %v961_v57 = vadd.f32 %v3156_v37, %v960_v53  ;;  %v1137_v58 = vadd.f32 %v3156_v37, %v1136_v54 }
 0x11b   : > { %v962_v59 = vpop.f32.mrf.mxu0  ;;  %v1138_v60 = vpop.f32.mrf.mxu1 }
 0x11c   : > { %1709 = vst.msk [vmem:[%s3162_s12 + $0x1c] sm:$0xf] %vm1701_vm3, %v2511_v55  ;;  %1753 = vst.msk [vmem:[%s3162_s12 + $0xcc] sm:$0xf] %vm1701_vm3, %v2555_v56  ;;  %v1279_v61 = vmax.f32 %v961_v57, 0.0  ;;  %v1323_v62 = vmax.f32 %v1137_v58, 0.0 }
 0x11d   : > { %v963_v63 = vpop.f32.mrf.mxu0  ;;  %v1139_v0 = vpop.f32.mrf.mxu1 }
 0x11e   : > { %v2512_v1 = vpack.c.bf16 %v1279_v61, %v1279_v61  ;;  %v2556_v2 = vpack.c.bf16 %v1323_v62, %v1323_v62  ;;  %v964_v3 = vadd.f32 %v3156_v37, %v963_v63  ;;  %v1140_v4 = vadd.f32 %v3156_v37, %v1139_v0 }
 0x11f   : > { %v965_v5 = vpop.f32.mrf.mxu0  ;;  %v1141_v6 = vpop.f32.mrf.mxu1 }
 0x120   : > { %1710 = vst.msk [vmem:[%s3162_s12 + $0x20] sm:$0xf] %vm1701_vm3, %v2512_v1  ;;  %1754 = vst.msk [vmem:[%s3162_s12 + $0xd0] sm:$0xf] %vm1701_vm3, %v2556_v2  ;;  %v1280_v7 = vmax.f32 %v964_v3, 0.0  ;;  %v1324_v8 = vmax.f32 %v1140_v4, 0.0 }
 0x121   : > { %v968_v9 = vpop.f32.mrf.mxu0  ;;  %v1144_v10 = vpop.f32.mrf.mxu1 }
 0x122   : > { %v2513_v11 = vpack.c.bf16 %v1280_v7, %v1280_v7  ;;  %v2557_v12 = vpack.c.bf16 %v1324_v8, %v1324_v8  ;;  %v969_v13 = vadd.f32 %v3156_v37, %v968_v9  ;;  %v1145_v14 = vadd.f32 %v3156_v37, %v1144_v10 }
 0x123   : > { %v970_v15 = vpop.f32.mrf.mxu0  ;;  %v1146_v16 = vpop.f32.mrf.mxu1 }
 0x124   : > { %1711 = vst.msk [vmem:[%s3162_s12 + $0x24] sm:$0xf] %vm1701_vm3, %v2513_v11  ;;  %1755 = vst.msk [vmem:[%s3162_s12 + $0xd4] sm:$0xf] %vm1701_vm3, %v2557_v12  ;;  %v1281_v17 = vmax.f32 %v969_v13, 0.0  ;;  %v1325_v18 = vmax.f32 %v1145_v14, 0.0 }
 0x125   : > { %v971_v19 = vpop.f32.mrf.mxu0  ;;  %v1147_v20 = vpop.f32.mrf.mxu1 }
 0x126   : > { %v2514_v21 = vpack.c.bf16 %v1281_v17, %v1281_v17  ;;  %v2558_v22 = vpack.c.bf16 %v1325_v18, %v1325_v18  ;;  %v972_v23 = vadd.f32 %v3156_v37, %v971_v19  ;;  %v1148_v24 = vadd.f32 %v3156_v37, %v1147_v20 }
 0x127   : > { %v973_v25 = vpop.f32.mrf.mxu0  ;;  %v1149_v26 = vpop.f32.mrf.mxu1 }
 0x128   : > { %1712 = vst.msk [vmem:[%s3162_s12 + $0x28] sm:$0xf] %vm1701_vm3, %v2514_v21  ;;  %1756 = vst.msk [vmem:[%s3162_s12 + $0xd8] sm:$0xf] %vm1701_vm3, %v2558_v22  ;;  %v1282_v27 = vmax.f32 %v972_v23, 0.0  ;;  %v1326_v28 = vmax.f32 %v1148_v24, 0.0 }
 0x129   : > { %v976_v29 = vpop.f32.mrf.mxu0  ;;  %v1152_v30 = vpop.f32.mrf.mxu1 }
 0x12a   : > { %v2515_v31 = vpack.c.bf16 %v1282_v27, %v1282_v27  ;;  %v2559_v32 = vpack.c.bf16 %v1326_v28, %v1326_v28  ;;  %v977_v33 = vadd.f32 %v3156_v37, %v976_v29  ;;  %v1153_v34 = vadd.f32 %v3156_v37, %v1152_v30 }
 0x12b   : > { %v978_v35 = vpop.f32.mrf.mxu0  ;;  %v1154_v36 = vpop.f32.mrf.mxu1 }
 0x12c   : > { %1713 = vst.msk [vmem:[%s3162_s12 + $0x2c] sm:$0xf] %vm1701_vm3, %v2515_v31  ;;  %1757 = vst.msk [vmem:[%s3162_s12 + $0xdc] sm:$0xf] %vm1701_vm3, %v2559_v32  ;;  %v1283_v38 = vmax.f32 %v977_v33, 0.0  ;;  %v1327_v39 = vmax.f32 %v1153_v34, 0.0 }
 0x12d   : > { %v979_v40 = vpop.f32.mrf.mxu0  ;;  %v1155_v41 = vpop.f32.mrf.mxu1 }
 0x12e   : > { %v2516_v42 = vpack.c.bf16 %v1283_v38, %v1283_v38  ;;  %v2560_v43 = vpack.c.bf16 %v1327_v39, %v1327_v39  ;;  %v980_v44 = vadd.f32 %v3156_v37, %v979_v40  ;;  %v1156_v45 = vadd.f32 %v3156_v37, %v1155_v41 }
 0x12f   : > { %v981_v46 = vpop.f32.mrf.mxu0  ;;  %v1157_v47 = vpop.f32.mrf.mxu1 }
 0x130   : > { %1714 = vst.msk [vmem:[%s3162_s12 + $0x30] sm:$0xf] %vm1701_vm3, %v2516_v42  ;;  %1758 = vst.msk [vmem:[%s3162_s12 + $0xe0] sm:$0xf] %vm1701_vm3, %v2560_v43  ;;  %v1284_v48 = vmax.f32 %v980_v44, 0.0  ;;  %v1328_v49 = vmax.f32 %v1156_v45, 0.0 }
 0x131   : > { %v984_v50 = vpop.f32.mrf.mxu0  ;;  %v1160_v51 = vpop.f32.mrf.mxu1 }
 0x132   : > { %v2517_v52 = vpack.c.bf16 %v1284_v48, %v1284_v48  ;;  %v2561_v53 = vpack.c.bf16 %v1328_v49, %v1328_v49  ;;  %v985_v54 = vadd.f32 %v3156_v37, %v984_v50  ;;  %v1161_v55 = vadd.f32 %v3156_v37, %v1160_v51 }
 0x133   : > { %v986_v56 = vpop.f32.mrf.mxu0  ;;  %v1162_v57 = vpop.f32.mrf.mxu1 }
 0x134   : > { %1715 = vst.msk [vmem:[%s3162_s12 + $0x34] sm:$0xf] %vm1701_vm3, %v2517_v52  ;;  %1759 = vst.msk [vmem:[%s3162_s12 + $0xe4] sm:$0xf] %vm1701_vm3, %v2561_v53  ;;  %v1285_v58 = vmax.f32 %v985_v54, 0.0  ;;  %v1329_v59 = vmax.f32 %v1161_v55, 0.0 }
 0x135   : > { %v987_v60 = vpop.f32.mrf.mxu0  ;;  %v1163_v61 = vpop.f32.mrf.mxu1 }
 0x136   : > { %v2518_v62 = vpack.c.bf16 %v1285_v58, %v1285_v58  ;;  %v2562_v63 = vpack.c.bf16 %v1329_v59, %v1329_v59  ;;  %v988_v0 = vadd.f32 %v3156_v37, %v987_v60  ;;  %v1164_v1 = vadd.f32 %v3156_v37, %v1163_v61 }
 0x137   : > { %v989_v2 = vpop.f32.mrf.mxu0  ;;  %v1165_v3 = vpop.f32.mrf.mxu1 }
 0x138   : > { %1716 = vst.msk [vmem:[%s3162_s12 + $0x38] sm:$0xf] %vm1701_vm3, %v2518_v62  ;;  %1760 = vst.msk [vmem:[%s3162_s12 + $0xe8] sm:$0xf] %vm1701_vm3, %v2562_v63  ;;  %v1286_v4 = vmax.f32 %v988_v0, 0.0  ;;  %v1330_v5 = vmax.f32 %v1164_v1, 0.0 }
 0x139   : > { %v992_v6 = vpop.f32.mrf.mxu0  ;;  %v1168_v7 = vpop.f32.mrf.mxu1 }
 0x13a   : > { %v2519_v8 = vpack.c.bf16 %v1286_v4, %v1286_v4  ;;  %v2563_v9 = vpack.c.bf16 %v1330_v5, %v1330_v5  ;;  %v993_v10 = vadd.f32 %v3156_v37, %v992_v6  ;;  %v1169_v11 = vadd.f32 %v3156_v37, %v1168_v7 }
 0x13b   : > { %v994_v12 = vpop.f32.mrf.mxu0  ;;  %v1170_v13 = vpop.f32.mrf.mxu1 }
 0x13c   : > { %1717 = vst.msk [vmem:[%s3162_s12 + $0x3c] sm:$0xf] %vm1701_vm3, %v2519_v8  ;;  %1761 = vst.msk [vmem:[%s3162_s12 + $0xec] sm:$0xf] %vm1701_vm3, %v2563_v9  ;;  %v1287_v14 = vmax.f32 %v993_v10, 0.0  ;;  %v1331_v15 = vmax.f32 %v1169_v11, 0.0 }
 0x13d   : > { %v995_v16 = vpop.f32.mrf.mxu0  ;;  %v1171_v17 = vpop.f32.mrf.mxu1 }
 0x13e   : > { %v2520_v18 = vpack.c.bf16 %v1287_v14, %v1287_v14  ;;  %v2564_v19 = vpack.c.bf16 %v1331_v15, %v1331_v15  ;;  %v996_v20 = vadd.f32 %v3156_v37, %v995_v16  ;;  %v1172_v21 = vadd.f32 %v3156_v37, %v1171_v17 }
 0x13f   : > { %v997_v22 = vpop.f32.mrf.mxu0  ;;  %v1173_v23 = vpop.f32.mrf.mxu1 }
 0x140   : > { %1718 = vst.msk [vmem:[%s3162_s12 + $0x40] sm:$0xf] %vm1701_vm3, %v2520_v18  ;;  %1762 = vst.msk [vmem:[%s3162_s12 + $0xf0] sm:$0xf] %vm1701_vm3, %v2564_v19  ;;  %v1288_v24 = vmax.f32 %v996_v20, 0.0  ;;  %v1332_v25 = vmax.f32 %v1172_v21, 0.0 }
 0x141   : > { %v1000_v26 = vpop.f32.mrf.mxu0  ;;  %v1176_v27 = vpop.f32.mrf.mxu1 }
 0x142   : > { %v2521_v28 = vpack.c.bf16 %v1288_v24, %v1288_v24  ;;  %v2565_v29 = vpack.c.bf16 %v1332_v25, %v1332_v25  ;;  %v1001_v30 = vadd.f32 %v3156_v37, %v1000_v26  ;;  %v1177_v31 = vadd.f32 %v3156_v37, %v1176_v27 }
 0x143   : > { %v1002_v32 = vpop.f32.mrf.mxu0  ;;  %v1178_v33 = vpop.f32.mrf.mxu1 }
 0x144   : > { %1719 = vst.msk [vmem:[%s3162_s12 + $0x44] sm:$0xf] %vm1701_vm3, %v2521_v28  ;;  %1763 = vst.msk [vmem:[%s3162_s12 + $0xf4] sm:$0xf] %vm1701_vm3, %v2565_v29  ;;  %v1289_v34 = vmax.f32 %v1001_v30, 0.0  ;;  %v1333_v35 = vmax.f32 %v1177_v31, 0.0 }
 0x145   : > { %v1003_v36 = vpop.f32.mrf.mxu0  ;;  %v1179_v38 = vpop.f32.mrf.mxu1 }
 0x146   : > { %v2522_v39 = vpack.c.bf16 %v1289_v34, %v1289_v34  ;;  %v2566_v40 = vpack.c.bf16 %v1333_v35, %v1333_v35  ;;  %v1004_v41 = vadd.f32 %v3156_v37, %v1003_v36  ;;  %v1180_v42 = vadd.f32 %v3156_v37, %v1179_v38 }
 0x147   : > { %v1005_v43 = vpop.f32.mrf.mxu0  ;;  %v1181_v44 = vpop.f32.mrf.mxu1 }
 0x148   : > { %1720 = vst.msk [vmem:[%s3162_s12 + $0x48] sm:$0xf] %vm1701_vm3, %v2522_v39  ;;  %1764 = vst.msk [vmem:[%s3162_s12 + $0xf8] sm:$0xf] %vm1701_vm3, %v2566_v40  ;;  %v1290_v45 = vmax.f32 %v1004_v41, 0.0  ;;  %v1334_v46 = vmax.f32 %v1180_v42, 0.0 }
 0x149   : > { %v1008_v47 = vpop.f32.mrf.mxu0  ;;  %v1184_v48 = vpop.f32.mrf.mxu1 }
 0x14a   : > { %v2523_v49 = vpack.c.bf16 %v1290_v45, %v1290_v45  ;;  %v2567_v50 = vpack.c.bf16 %v1334_v46, %v1334_v46  ;;  %v1009_v51 = vadd.f32 %v3156_v37, %v1008_v47  ;;  %v1185_v52 = vadd.f32 %v3156_v37, %v1184_v48 }
 0x14b   : > { %v1010_v53 = vpop.f32.mrf.mxu0  ;;  %v1186_v54 = vpop.f32.mrf.mxu1 }
 0x14c   : > { %1721 = vst.msk [vmem:[%s3162_s12 + $0x4c] sm:$0xf] %vm1701_vm3, %v2523_v49  ;;  %1765 = vst.msk [vmem:[%s3162_s12 + $0xfc] sm:$0xf] %vm1701_vm3, %v2567_v50  ;;  %v1291_v55 = vmax.f32 %v1009_v51, 0.0  ;;  %v1335_v56 = vmax.f32 %v1185_v52, 0.0 }
 0x14d   : > { %v1011_v57 = vpop.f32.mrf.mxu0  ;;  %v1187_v58 = vpop.f32.mrf.mxu1 }
 0x14e   : > { %v2524_v59 = vpack.c.bf16 %v1291_v55, %v1291_v55  ;;  %v2568_v60 = vpack.c.bf16 %v1335_v56, %v1335_v56  ;;  %v1012_v61 = vadd.f32 %v3156_v37, %v1011_v57  ;;  %v1188_v62 = vadd.f32 %v3156_v37, %v1187_v58 }
 0x14f   : > { %v1013_v63 = vpop.f32.mrf.mxu0  ;;  %v1189_v0 = vpop.f32.mrf.mxu1 }
 0x150   : > { %1722 = vst.msk [vmem:[%s3162_s12 + $0x50] sm:$0xf] %vm1701_vm3, %v2524_v59  ;;  %1766 = vst.msk [vmem:[%s3162_s12 + $0x100] sm:$0xf] %vm1701_vm3, %v2568_v60  ;;  %v1292_v1 = vmax.f32 %v1012_v61, 0.0  ;;  %v1336_v2 = vmax.f32 %v1188_v62, 0.0 }
 0x151   : > { %v1016_v3 = vpop.f32.mrf.mxu0  ;;  %v1192_v4 = vpop.f32.mrf.mxu1 }
 0x152   : > { %v2525_v5 = vpack.c.bf16 %v1292_v1, %v1292_v1  ;;  %v2569_v6 = vpack.c.bf16 %v1336_v2, %v1336_v2  ;;  %v1017_v7 = vadd.f32 %v3156_v37, %v1016_v3  ;;  %v1193_v8 = vadd.f32 %v3156_v37, %v1192_v4 }
 0x153   : > { %v1018_v9 = vpop.f32.mrf.mxu0  ;;  %v1194_v10 = vpop.f32.mrf.mxu1 }
 0x154   : > { %1723 = vst.msk [vmem:[%s3162_s12 + $0x54] sm:$0xf] %vm1701_vm3, %v2525_v5  ;;  %1767 = vst.msk [vmem:[%s3162_s12 + $0x104] sm:$0xf] %vm1701_vm3, %v2569_v6  ;;  %v1293_v11 = vmax.f32 %v1017_v7, 0.0  ;;  %v1337_v12 = vmax.f32 %v1193_v8, 0.0 }
 0x155   : > { %v1019_v13 = vpop.f32.mrf.mxu0  ;;  %v1195_v14 = vpop.f32.mrf.mxu1 }
 0x156   : > { %v2526_v15 = vpack.c.bf16 %v1293_v11, %v1293_v11  ;;  %v2570_v16 = vpack.c.bf16 %v1337_v12, %v1337_v12  ;;  %v1020_v17 = vadd.f32 %v3156_v37, %v1019_v13  ;;  %v1196_v18 = vadd.f32 %v3156_v37, %v1195_v14 }
 0x157   : > { %v1021_v19 = vpop.f32.mrf.mxu0  ;;  %v1197_v20 = vpop.f32.mrf.mxu1 }
 0x158   : > { %1724 = vst.msk [vmem:[%s3162_s12 + $0x58] sm:$0xf] %vm1701_vm3, %v2526_v15  ;;  %1768 = vst.msk [vmem:[%s3162_s12 + $0x108] sm:$0xf] %vm1701_vm3, %v2570_v16  ;;  %v1294_v21 = vmax.f32 %v1020_v17, 0.0  ;;  %v1338_v22 = vmax.f32 %v1196_v18, 0.0 }
 0x159   : > { %v1024_v23 = vpop.f32.mrf.mxu0  ;;  %v1200_v24 = vpop.f32.mrf.mxu1 }
 0x15a   : > { %v2527_v25 = vpack.c.bf16 %v1294_v21, %v1294_v21  ;;  %v2571_v26 = vpack.c.bf16 %v1338_v22, %v1338_v22  ;;  %v1025_v27 = vadd.f32 %v3156_v37, %v1024_v23  ;;  %v1201_v28 = vadd.f32 %v3156_v37, %v1200_v24 }
 0x15b   : > { %v1026_v29 = vpop.f32.mrf.mxu0  ;;  %v1202_v30 = vpop.f32.mrf.mxu1 }
 0x15c   : > { %1725 = vst.msk [vmem:[%s3162_s12 + $0x5c] sm:$0xf] %vm1701_vm3, %v2527_v25  ;;  %1769 = vst.msk [vmem:[%s3162_s12 + $0x10c] sm:$0xf] %vm1701_vm3, %v2571_v26  ;;  %v1295_v31 = vmax.f32 %v1025_v27, 0.0  ;;  %v1339_v32 = vmax.f32 %v1201_v28, 0.0 }
 0x15d   : > { %v1027_v33 = vpop.f32.mrf.mxu0  ;;  %v1203_v34 = vpop.f32.mrf.mxu1 }
 0x15e   : > { %v2528_v35 = vpack.c.bf16 %v1295_v31, %v1295_v31  ;;  %v2572_v36 = vpack.c.bf16 %v1339_v32, %v1339_v32  ;;  %v1028_v38 = vadd.f32 %v3156_v37, %v1027_v33  ;;  %v1204_v39 = vadd.f32 %v3156_v37, %v1203_v34 }
 0x15f   : > { %v1029_v40 = vpop.f32.mrf.mxu0  ;;  %v1205_v41 = vpop.f32.mrf.mxu1 }
 0x160   : > { %1726 = vst.msk [vmem:[%s3162_s12 + $0x60] sm:$0xf] %vm1701_vm3, %v2528_v35  ;;  %1770 = vst.msk [vmem:[%s3162_s12 + $0x110] sm:$0xf] %vm1701_vm3, %v2572_v36  ;;  %v1296_v42 = vmax.f32 %v1028_v38, 0.0  ;;  %v1340_v43 = vmax.f32 %v1204_v39, 0.0 }
 0x161   : > { %v1032_v44 = vpop.f32.mrf.mxu0  ;;  %v1208_v45 = vpop.f32.mrf.mxu1 }
 0x162   : > { %v2529_v46 = vpack.c.bf16 %v1296_v42, %v1296_v42  ;;  %v2573_v47 = vpack.c.bf16 %v1340_v43, %v1340_v43  ;;  %v1033_v48 = vadd.f32 %v3156_v37, %v1032_v44  ;;  %v1209_v49 = vadd.f32 %v3156_v37, %v1208_v45 }
 0x163   : > { %v1034_v50 = vpop.f32.mrf.mxu0  ;;  %v1210_v51 = vpop.f32.mrf.mxu1 }
 0x164   : > { %1727 = vst.msk [vmem:[%s3162_s12 + $0x64] sm:$0xf] %vm1701_vm3, %v2529_v46  ;;  %1771 = vst.msk [vmem:[%s3162_s12 + $0x114] sm:$0xf] %vm1701_vm3, %v2573_v47  ;;  %v1297_v52 = vmax.f32 %v1033_v48, 0.0  ;;  %v1341_v53 = vmax.f32 %v1209_v49, 0.0 }
 0x165   : > { %v1035_v54 = vpop.f32.mrf.mxu0  ;;  %v1211_v55 = vpop.f32.mrf.mxu1 }
 0x166   : > { %v2530_v56 = vpack.c.bf16 %v1297_v52, %v1297_v52  ;;  %v2574_v57 = vpack.c.bf16 %v1341_v53, %v1341_v53  ;;  %v1036_v58 = vadd.f32 %v3156_v37, %v1035_v54  ;;  %v1212_v59 = vadd.f32 %v3156_v37, %v1211_v55 }
 0x167   : > { %v1037_v60 = vpop.f32.mrf.mxu0  ;;  %v1213_v61 = vpop.f32.mrf.mxu1 }
 0x168   : > { %1728 = vst.msk [vmem:[%s3162_s12 + $0x68] sm:$0xf] %vm1701_vm3, %v2530_v56  ;;  %1772 = vst.msk [vmem:[%s3162_s12 + $0x118] sm:$0xf] %vm1701_vm3, %v2574_v57  ;;  %v1298_v62 = vmax.f32 %v1036_v58, 0.0  ;;  %v1342_v63 = vmax.f32 %v1212_v59, 0.0 }
 0x169   : > { %v1040_v0 = vpop.f32.mrf.mxu0  ;;  %v1216_v1 = vpop.f32.mrf.mxu1 }
 0x16a   : > { %v2531_v2 = vpack.c.bf16 %v1298_v62, %v1298_v62  ;;  %v2575_v3 = vpack.c.bf16 %v1342_v63, %v1342_v63  ;;  %v1041_v4 = vadd.f32 %v3156_v37, %v1040_v0  ;;  %v1217_v5 = vadd.f32 %v3156_v37, %v1216_v1 }
 0x16b   : > { %v1042_v6 = vpop.f32.mrf.mxu0  ;;  %v1218_v7 = vpop.f32.mrf.mxu1 }
 0x16c   : > { %1729 = vst.msk [vmem:[%s3162_s12 + $0x6c] sm:$0xf] %vm1701_vm3, %v2531_v2  ;;  %1773 = vst.msk [vmem:[%s3162_s12 + $0x11c] sm:$0xf] %vm1701_vm3, %v2575_v3  ;;  %v1299_v8 = vmax.f32 %v1041_v4, 0.0  ;;  %v1343_v9 = vmax.f32 %v1217_v5, 0.0 }
 0x16d   : > { %v1043_v10 = vpop.f32.mrf.mxu0  ;;  %v1219_v11 = vpop.f32.mrf.mxu1 }
 0x16e   : > { %v2532_v12 = vpack.c.bf16 %v1299_v8, %v1299_v8  ;;  %v2576_v13 = vpack.c.bf16 %v1343_v9, %v1343_v9  ;;  %v1044_v14 = vadd.f32 %v3156_v37, %v1043_v10  ;;  %v1220_v15 = vadd.f32 %v3156_v37, %v1219_v11 }
 0x16f   : > { %v1045_v16 = vpop.f32.mrf.mxu0  ;;  %v1221_v17 = vpop.f32.mrf.mxu1 }
 0x170   : > { %1730 = vst.msk [vmem:[%s3162_s12 + $0x70] sm:$0xf] %vm1701_vm3, %v2532_v12  ;;  %1774 = vst.msk [vmem:[%s3162_s12 + $0x120] sm:$0xf] %vm1701_vm3, %v2576_v13  ;;  %v1300_v18 = vmax.f32 %v1044_v14, 0.0  ;;  %v1344_v19 = vmax.f32 %v1220_v15, 0.0 }
 0x171   : > { %v1048_v20 = vpop.f32.mrf.mxu0  ;;  %v1224_v21 = vpop.f32.mrf.mxu1 }
 0x172   : > { %v2533_v22 = vpack.c.bf16 %v1300_v18, %v1300_v18  ;;  %v2577_v23 = vpack.c.bf16 %v1344_v19, %v1344_v19  ;;  %v1049_v24 = vadd.f32 %v3156_v37, %v1048_v20  ;;  %v1225_v25 = vadd.f32 %v3156_v37, %v1224_v21 }
 0x173   : > { %v1050_v26 = vpop.f32.mrf.mxu0  ;;  %v1226_v27 = vpop.f32.mrf.mxu1 }
 0x174   : > { %1731 = vst.msk [vmem:[%s3162_s12 + $0x74] sm:$0xf] %vm1701_vm3, %v2533_v22  ;;  %1775 = vst.msk [vmem:[%s3162_s12 + $0x124] sm:$0xf] %vm1701_vm3, %v2577_v23  ;;  %v1301_v28 = vmax.f32 %v1049_v24, 0.0  ;;  %v1345_v29 = vmax.f32 %v1225_v25, 0.0 }
 0x175   : > { %v1051_v30 = vpop.f32.mrf.mxu0  ;;  %v1227_v31 = vpop.f32.mrf.mxu1 }
 0x176   : > { %v2534_v32 = vpack.c.bf16 %v1301_v28, %v1301_v28  ;;  %v2578_v33 = vpack.c.bf16 %v1345_v29, %v1345_v29  ;;  %v1052_v34 = vadd.f32 %v3156_v37, %v1051_v30  ;;  %v1228_v35 = vadd.f32 %v3156_v37, %v1227_v31 }
 0x177   : > { %v1053_v36 = vpop.f32.mrf.mxu0  ;;  %v1229_v38 = vpop.f32.mrf.mxu1 }
 0x178   : > { %1732 = vst.msk [vmem:[%s3162_s12 + $0x78] sm:$0xf] %vm1701_vm3, %v2534_v32  ;;  %1776 = vst.msk [vmem:[%s3162_s12 + $0x128] sm:$0xf] %vm1701_vm3, %v2578_v33  ;;  %v1302_v39 = vmax.f32 %v1052_v34, 0.0  ;;  %v1346_v40 = vmax.f32 %v1228_v35, 0.0 }
 0x179   : > { %v1056_v41 = vpop.f32.mrf.mxu0  ;;  %v1232_v42 = vpop.f32.mrf.mxu1 }
 0x17a   : > { %v2535_v43 = vpack.c.bf16 %v1302_v39, %v1302_v39  ;;  %v2579_v44 = vpack.c.bf16 %v1346_v40, %v1346_v40  ;;  %v1057_v45 = vadd.f32 %v3156_v37, %v1056_v41  ;;  %v1233_v46 = vadd.f32 %v3156_v37, %v1232_v42 }
 0x17b   : > { %v1058_v47 = vpop.f32.mrf.mxu0  ;;  %v1234_v48 = vpop.f32.mrf.mxu1 }
 0x17c   : > { %1733 = vst.msk [vmem:[%s3162_s12 + $0x7c] sm:$0xf] %vm1701_vm3, %v2535_v43  ;;  %1777 = vst.msk [vmem:[%s3162_s12 + $0x12c] sm:$0xf] %vm1701_vm3, %v2579_v44  ;;  %v1303_v49 = vmax.f32 %v1057_v45, 0.0  ;;  %v1347_v50 = vmax.f32 %v1233_v46, 0.0 }
 0x17d   : > { %v1059_v51 = vpop.f32.mrf.mxu0  ;;  %v1235_v52 = vpop.f32.mrf.mxu1 }
 0x17e   : > { %v2536_v53 = vpack.c.bf16 %v1303_v49, %v1303_v49  ;;  %v2580_v54 = vpack.c.bf16 %v1347_v50, %v1347_v50  ;;  %v1060_v55 = vadd.f32 %v3156_v37, %v1059_v51  ;;  %v1236_v56 = vadd.f32 %v3156_v37, %v1235_v52 }
 0x17f   : > { %v1061_v57 = vpop.f32.mrf.mxu0  ;;  %v1237_v58 = vpop.f32.mrf.mxu1 }
 0x180   : > { %1734 = vst.msk [vmem:[%s3162_s12 + $0x80] sm:$0xf] %vm1701_vm3, %v2536_v53  ;;  %1778 = vst.msk [vmem:[%s3162_s12 + $0x130] sm:$0xf] %vm1701_vm3, %v2580_v54  ;;  %v1304_v59 = vmax.f32 %v1060_v55, 0.0  ;;  %v1348_v60 = vmax.f32 %v1236_v56, 0.0 }
 0x181   : > { %v1064_v61 = vpop.f32.mrf.mxu0  ;;  %v1240_v62 = vpop.f32.mrf.mxu1 }
 0x182   : > { %v2537_v63 = vpack.c.bf16 %v1304_v59, %v1304_v59  ;;  %v2581_v0 = vpack.c.bf16 %v1348_v60, %v1348_v60  ;;  %v1065_v1 = vadd.f32 %v3156_v37, %v1064_v61  ;;  %v1241_v2 = vadd.f32 %v3156_v37, %v1240_v62 }
 0x183   : > { %v1066_v3 = vpop.f32.mrf.mxu0  ;;  %v1242_v4 = vpop.f32.mrf.mxu1 }
 0x184   : > { %1735 = vst.msk [vmem:[%s3162_s12 + $0x84] sm:$0xf] %vm1701_vm3, %v2537_v63  ;;  %1779 = vst.msk [vmem:[%s3162_s12 + $0x134] sm:$0xf] %vm1701_vm3, %v2581_v0  ;;  %v1305_v5 = vmax.f32 %v1065_v1, 0.0  ;;  %v1349_v6 = vmax.f32 %v1241_v2, 0.0 }
 0x185   : > { %v1067_v7 = vpop.f32.mrf.mxu0  ;;  %v1243_v8 = vpop.f32.mrf.mxu1 }
 0x186   : > { %v2538_v9 = vpack.c.bf16 %v1305_v5, %v1305_v5  ;;  %v2582_v10 = vpack.c.bf16 %v1349_v6, %v1349_v6  ;;  %v1068_v11 = vadd.f32 %v3156_v37, %v1067_v7  ;;  %v1244_v12 = vadd.f32 %v3156_v37, %v1243_v8 }
 0x187   : > { %v1069_v13 = vpop.f32.mrf.mxu0  ;;  %v1245_v14 = vpop.f32.mrf.mxu1 }
 0x188   : > { %1736 = vst.msk [vmem:[%s3162_s12 + $0x88] sm:$0xf] %vm1701_vm3, %v2538_v9  ;;  %1780 = vst.msk [vmem:[%s3162_s12 + $0x138] sm:$0xf] %vm1701_vm3, %v2582_v10  ;;  %v1306_v15 = vmax.f32 %v1068_v11, 0.0  ;;  %v1350_v16 = vmax.f32 %v1244_v12, 0.0 }
 0x189   : > { %v1072_v17 = vpop.f32.mrf.mxu0  ;;  %v1248_v18 = vpop.f32.mrf.mxu1 }
 0x18a   : > { %v2539_v19 = vpack.c.bf16 %v1306_v15, %v1306_v15  ;;  %v2583_v20 = vpack.c.bf16 %v1350_v16, %v1350_v16  ;;  %v1073_v21 = vadd.f32 %v3156_v37, %v1072_v17  ;;  %v1249_v22 = vadd.f32 %v3156_v37, %v1248_v18 }
 0x18b   : > { %v1074_v23 = vpop.f32.mrf.mxu0  ;;  %v1250_v24 = vpop.f32.mrf.mxu1 }
 0x18c   : > { %1737 = vst.msk [vmem:[%s3162_s12 + $0x8c] sm:$0xf] %vm1701_vm3, %v2539_v19  ;;  %1781 = vst.msk [vmem:[%s3162_s12 + $0x13c] sm:$0xf] %vm1701_vm3, %v2583_v20  ;;  %v1307_v25 = vmax.f32 %v1073_v21, 0.0  ;;  %v1351_v26 = vmax.f32 %v1249_v22, 0.0 }
 0x18d   : > { %v1075_v27 = vpop.f32.mrf.mxu0  ;;  %v1251_v28 = vpop.f32.mrf.mxu1  ;;  %v2843_v22 = vld [vmem:[%s3621_s2] ss:$0 sm:$0xff] }
 0x18e   : > { %v2540_v29 = vpack.c.bf16 %v1307_v25, %v1307_v25  ;;  %v2584_v30 = vpack.c.bf16 %v1351_v26, %v1351_v26  ;;  %v1076_v31 = vadd.f32 %v3156_v37, %v1075_v27  ;;  %v1252_v32 = vadd.f32 %v3156_v37, %v1251_v28 }
 0x18f   : > { %v1077_v33 = vpop.f32.mrf.mxu0  ;;  %v1253_v34 = vpop.f32.mrf.mxu1 }
 0x190   : > { %1738 = vst.msk [vmem:[%s3162_s12 + $0x90] sm:$0xf] %vm1701_vm3, %v2540_v29  ;;  %1782 = vst.msk [vmem:[%s3162_s12 + $0x140] sm:$0xf] %vm1701_vm3, %v2584_v30  ;;  %v1308_v35 = vmax.f32 %v1076_v31, 0.0  ;;  %v1352_v36 = vmax.f32 %v1252_v32, 0.0 }
 0x191   : > { %v1080_v38 = vpop.f32.mrf.mxu0  ;;  %v1256_v39 = vpop.f32.mrf.mxu1 }
 0x192   : > { %v2541_v40 = vpack.c.bf16 %v1308_v35, %v1308_v35  ;;  %v2585_v41 = vpack.c.bf16 %v1352_v36, %v1352_v36  ;;  %v1081_v42 = vadd.f32 %v3156_v37, %v1080_v38  ;;  %v1257_v43 = vadd.f32 %v3156_v37, %v1256_v39 }
 0x193   : > { %v1082_v44 = vpop.f32.mrf.mxu0  ;;  %v1258_v45 = vpop.f32.mrf.mxu1 }
 0x194   : > { %1739 = vst.msk [vmem:[%s3162_s12 + $0x94] sm:$0xf] %vm1701_vm3, %v2541_v40  ;;  %1783 = vst.msk [vmem:[%s3162_s12 + $0x144] sm:$0xf] %vm1701_vm3, %v2585_v41  ;;  %v1309_v46 = vmax.f32 %v1081_v42, 0.0  ;;  %v1353_v47 = vmax.f32 %v1257_v43, 0.0 }
 0x195   : > { %v1083_v48 = vpop.f32.mrf.mxu0  ;;  %v1259_v49 = vpop.f32.mrf.mxu1 }
 0x196   : > { %v2542_v50 = vpack.c.bf16 %v1309_v46, %v1309_v46  ;;  %v2586_v51 = vpack.c.bf16 %v1353_v47, %v1353_v47  ;;  %v1084_v52 = vadd.f32 %v3156_v37, %v1083_v48  ;;  %v1260_v53 = vadd.f32 %v3156_v37, %v1259_v49 }
 0x197   : > { %v1085_v54 = vpop.f32.mrf.mxu0  ;;  %v1261_v55 = vpop.f32.mrf.mxu1 }
 0x198   : > { %1740 = vst.msk [vmem:[%s3162_s12 + $0x98] sm:$0xf] %vm1701_vm3, %v2542_v50  ;;  %1784 = vst.msk [vmem:[%s3162_s12 + $0x148] sm:$0xf] %vm1701_vm3, %v2586_v51  ;;  %v1310_v56 = vmax.f32 %v1084_v52, 0.0  ;;  %v1354_v57 = vmax.f32 %v1260_v53, 0.0 }
 0x199   : > { %v1088_v58 = vpop.f32.mrf.mxu0  ;;  %v1264_v59 = vpop.f32.mrf.mxu1 }
 0x19a   : > { %v2543_v60 = vpack.c.bf16 %v1310_v56, %v1310_v56  ;;  %v2587_v61 = vpack.c.bf16 %v1354_v57, %v1354_v57  ;;  %v1089_v62 = vadd.f32 %v3156_v37, %v1088_v58  ;;  %v1265_v63 = vadd.f32 %v3156_v37, %v1264_v59 }
 0x19b   : > { %v1090_v0 = vpop.f32.mrf.mxu0  ;;  %v1266_v1 = vpop.f32.mrf.mxu1 }
 0x19c   : > { %1741 = vst.msk [vmem:[%s3162_s12 + $0x9c] sm:$0xf] %vm1701_vm3, %v2543_v60  ;;  %1785 = vst.msk [vmem:[%s3162_s12 + $0x14c] sm:$0xf] %vm1701_vm3, %v2587_v61  ;;  %v1311_v2 = vmax.f32 %v1089_v62, 0.0  ;;  %v1355_v3 = vmax.f32 %v1265_v63, 0.0 }
 0x19d   : > { %v1091_v4 = vpop.f32.mrf.mxu0  ;;  %v1267_v5 = vpop.f32.mrf.mxu1 }
 0x19e   : > { %v2544_v6 = vpack.c.bf16 %v1311_v2, %v1311_v2  ;;  %v2588_v7 = vpack.c.bf16 %v1355_v3, %v1355_v3  ;;  %v1092_v8 = vadd.f32 %v3156_v37, %v1091_v4  ;;  %v1268_v9 = vadd.f32 %v3156_v37, %v1267_v5 }
 0x19f   : > { %v1093_v10 = vpop.f32.mrf.mxu0  ;;  %v1269_v11 = vpop.f32.mrf.mxu1 }
 0x1a0   : > { %1742 = vst.msk [vmem:[%s3162_s12 + $0xa0] sm:$0xf] %vm1701_vm3, %v2544_v6  ;;  %1786 = vst.msk [vmem:[%s3162_s12 + $0x150] sm:$0xf] %vm1701_vm3, %v2588_v7  ;;  %v1312_v12 = vmax.f32 %v1092_v8, 0.0  ;;  %v1356_v13 = vmax.f32 %v1268_v9, 0.0 }
 0x1a1   : > { %v1096_v14 = vpop.f32.mrf.mxu0 }
 0x1a2   : > { %v2545_v15 = vpack.c.bf16 %v1312_v12, %v1312_v12  ;;  %v2589_v16 = vpack.c.bf16 %v1356_v13, %v1356_v13  ;;  %v1097_v17 = vadd.f32 %v3156_v37, %v1096_v14 }
 0x1a3   : > { %v1098_v18 = vpop.f32.mrf.mxu0 }
 0x1a4   : > { %1743 = vst.msk [vmem:[%s3162_s12 + $0xa4] sm:$0xf] %vm1701_vm3, %v2545_v15  ;;  %1787 = vst.msk [vmem:[%s3162_s12 + $0x154] sm:$0xf] %vm1701_vm3, %v2589_v16  ;;  %v1313_v19 = vmax.f32 %v1097_v17, 0.0 }
 0x1a5   : > { %v1099_v20 = vpop.f32.mrf.mxu0 }
 0x1a6   : > { %v2546_v21 = vpack.c.bf16 %v1313_v19, %v1313_v19  ;;  %v1100_v23 = vadd.f32 %v2843_v22, %v1099_v20 }
 0x1a7   : > { %v1101_v24 = vpop.f32.mrf.mxu0 }
 0x1a8   : > { %1744 = vst.msk [vmem:[%s3162_s12 + $0xa8] sm:$0xf] %vm1701_vm3, %v2546_v21  ;;  %v1314_v25 = vmax.f32 %v1100_v23, 0.0  ;;  %1794 = sbr.rel (!%p2979_p4) target bundleno = 510 (0x1fe), region = 36 }
 0x1aa   : > { %v2547_v26 = vpack.c.bf16 %v1314_v25, %v1314_v25 }
 0x1ac   : > { %1745 = vst.msk [vmem:[%s3162_s12 + $0xac] sm:$0xf] %vm1701_vm3, %v2547_v26 }
 0x1ad   : > { %s3631_s6 = smov (!%p1797_p8, %s1796_s6), 86 }
 0x1ae   : > { %s2488_s11 = sshll.u32 %s3631_s6, 6 }
 0x1af   : > { %p2491_p9 = scmp.eq.s32.totalorder %s2488_s11, 0 }
 0x1b0   : > { %s3433_s14 = sshrl.u32 (!%p2491_p9), %s3631_s6, 6 }
 0x1b1   : > { %1805 = sbr.rel (%p2491_p9) target bundleno = 510 (0x1fe), region = 40  ;;  %p2492_p10 = scmp.le.s32.totalorder (!%p2491_p9), %s3433_s14, 0 }
 0x1b6   : > { %2212 = sbr.rel (%p2492_p10) target bundleno = 493 (0x1ed), region = 112  ;;  %s3624_s15 = smov (!%p2492_p10), %s3427_s10 }
 0x1b7   : > { %s3625_s20 = smov (!%p2492_p10), %s3162_s12  ;;  %s3442_s27 = smov (!%p2492_p10), 0  }
 0x1b8   : > { %s3444_s17 = smov (!%p2492_p10), 0  }
 0x1bb LB: >> { %v1822_v37 = vld [vmem:[%s2906_s20] sm:$0xf]  ;;  %v1824_v27 = vld [vmem:[%s2906_s20 + $0x4] sm:$0xf]  ;;  %v1826_v28 = vld [vmem:[%s2906_s20 + $0x8] sm:$0xf]  ;;  %s2914_s17 = sphi %s3444_s17, %s1816_s17   ;;  %s2910_s27 = sphi %s3442_s27, %s3626_s27   ;;  %s2906_s20 = sphi %s3625_s20, %s1955_s20   ;;  %s2902_s15 = sphi %s3624_s15, %s1956_s15  }
 0x1bc   : >> { %1823 = vst [vmem:[%s2902_s15] sm:$0xf] %v1822_v37  ;;  %1825 = vst [vmem:[%s2902_s15 + $0x4] sm:$0xf] %v1824_v27  ;;  %v1828_v29 = vld [vmem:[%s2906_s20 + $0xc] sm:$0xf]  ;;  %s1950_s18 = sadd.s32 1, %s2910_s27 }
 0x1bd   : >> { %1827 = vst [vmem:[%s2902_s15 + $0x8] sm:$0xf] %v1826_v28  ;;  %v1830_v30 = vld [vmem:[%s2906_s20 + $0x10] sm:$0xf]  ;;  %v1832_v31 = vld [vmem:[%s2906_s20 + $0x14] sm:$0xf]  ;;  %p1951_p11 = scmp.ge.s32.totalorder %s1950_s18, %s3433_s14 }
 0x1be   : >> { %1829 = vst [vmem:[%s2902_s15 + $0xc] sm:$0xf] %v1828_v29  ;;  %1831 = vst [vmem:[%s2902_s15 + $0x10] sm:$0xf] %v1830_v30  ;;  %v1834_v32 = vld [vmem:[%s2906_s20 + $0x18] sm:$0xf] }
 0x1bf   : >> { %1833 = vst [vmem:[%s2902_s15 + $0x14] sm:$0xf] %v1832_v31  ;;  %v1836_v33 = vld [vmem:[%s2906_s20 + $0x1c] sm:$0xf]  ;;  %v1838_v34 = vld [vmem:[%s2906_s20 + $0x20] sm:$0xf] }
 0x1c0   : >> { %1835 = vst [vmem:[%s2902_s15 + $0x18] sm:$0xf] %v1834_v32  ;;  %1837 = vst [vmem:[%s2902_s15 + $0x1c] sm:$0xf] %v1836_v33  ;;  %v1840_v35 = vld [vmem:[%s2906_s20 + $0x24] sm:$0xf] }
 0x1c1   : >> { %1839 = vst [vmem:[%s2902_s15 + $0x20] sm:$0xf] %v1838_v34  ;;  %v1842_v36 = vld [vmem:[%s2906_s20 + $0x28] sm:$0xf]  ;;  %v1844_v38 = vld [vmem:[%s2906_s20 + $0x2c] sm:$0xf] }
 0x1c2   : >> { %1841 = vst [vmem:[%s2902_s15 + $0x24] sm:$0xf] %v1840_v35  ;;  %1843 = vst [vmem:[%s2902_s15 + $0x28] sm:$0xf] %v1842_v36  ;;  %v1846_v39 = vld [vmem:[%s2906_s20 + $0x30] sm:$0xf] }
 0x1c3   : >> { %1845 = vst [vmem:[%s2902_s15 + $0x2c] sm:$0xf] %v1844_v38  ;;  %v1848_v40 = vld [vmem:[%s2906_s20 + $0x34] sm:$0xf]  ;;  %v1850_v41 = vld [vmem:[%s2906_s20 + $0x38] sm:$0xf] }
 0x1c4   : >> { %1847 = vst [vmem:[%s2902_s15 + $0x30] sm:$0xf] %v1846_v39  ;;  %1849 = vst [vmem:[%s2902_s15 + $0x34] sm:$0xf] %v1848_v40  ;;  %v1852_v42 = vld [vmem:[%s2906_s20 + $0x3c] sm:$0xf] }
 0x1c5   : >> { %1851 = vst [vmem:[%s2902_s15 + $0x38] sm:$0xf] %v1850_v41  ;;  %v1854_v43 = vld [vmem:[%s2906_s20 + $0x40] sm:$0xf]  ;;  %v1856_v44 = vld [vmem:[%s2906_s20 + $0x44] sm:$0xf] }
 0x1c6   : >> { %1853 = vst [vmem:[%s2902_s15 + $0x3c] sm:$0xf] %v1852_v42  ;;  %1855 = vst [vmem:[%s2902_s15 + $0x40] sm:$0xf] %v1854_v43  ;;  %v1858_v45 = vld [vmem:[%s2906_s20 + $0x48] sm:$0xf] }
 0x1c7   : >> { %1857 = vst [vmem:[%s2902_s15 + $0x44] sm:$0xf] %v1856_v44  ;;  %v1860_v46 = vld [vmem:[%s2906_s20 + $0x4c] sm:$0xf]  ;;  %v1862_v47 = vld [vmem:[%s2906_s20 + $0x50] sm:$0xf] }
 0x1c8   : >> { %1859 = vst [vmem:[%s2902_s15 + $0x48] sm:$0xf] %v1858_v45  ;;  %1861 = vst [vmem:[%s2902_s15 + $0x4c] sm:$0xf] %v1860_v46  ;;  %v1864_v48 = vld [vmem:[%s2906_s20 + $0x54] sm:$0xf] }
 0x1c9   : >> { %1863 = vst [vmem:[%s2902_s15 + $0x50] sm:$0xf] %v1862_v47  ;;  %v1866_v49 = vld [vmem:[%s2906_s20 + $0x58] sm:$0xf]  ;;  %v1868_v50 = vld [vmem:[%s2906_s20 + $0x5c] sm:$0xf] }
 0x1ca   : >> { %1865 = vst [vmem:[%s2902_s15 + $0x54] sm:$0xf] %v1864_v48  ;;  %1867 = vst [vmem:[%s2902_s15 + $0x58] sm:$0xf] %v1866_v49  ;;  %v1870_v51 = vld [vmem:[%s2906_s20 + $0x60] sm:$0xf] }
 0x1cb   : >> { %1869 = vst [vmem:[%s2902_s15 + $0x5c] sm:$0xf] %v1868_v50  ;;  %v1872_v52 = vld [vmem:[%s2906_s20 + $0x64] sm:$0xf]  ;;  %v1874_v53 = vld [vmem:[%s2906_s20 + $0x68] sm:$0xf] }
 0x1cc   : >> { %1871 = vst [vmem:[%s2902_s15 + $0x60] sm:$0xf] %v1870_v51  ;;  %1873 = vst [vmem:[%s2902_s15 + $0x64] sm:$0xf] %v1872_v52  ;;  %v1876_v54 = vld [vmem:[%s2906_s20 + $0x6c] sm:$0xf] }
 0x1cd   : >> { %1875 = vst [vmem:[%s2902_s15 + $0x68] sm:$0xf] %v1874_v53  ;;  %v1878_v55 = vld [vmem:[%s2906_s20 + $0x70] sm:$0xf]  ;;  %v1880_v56 = vld [vmem:[%s2906_s20 + $0x74] sm:$0xf] }
 0x1ce   : >> { %1877 = vst [vmem:[%s2902_s15 + $0x6c] sm:$0xf] %v1876_v54  ;;  %1879 = vst [vmem:[%s2902_s15 + $0x70] sm:$0xf] %v1878_v55  ;;  %v1882_v57 = vld [vmem:[%s2906_s20 + $0x78] sm:$0xf] }
 0x1cf   : >> { %1881 = vst [vmem:[%s2902_s15 + $0x74] sm:$0xf] %v1880_v56  ;;  %v1884_v58 = vld [vmem:[%s2906_s20 + $0x7c] sm:$0xf]  ;;  %v1886_v59 = vld [vmem:[%s2906_s20 + $0x80] sm:$0xf] }
 0x1d0   : >> { %1883 = vst [vmem:[%s2902_s15 + $0x78] sm:$0xf] %v1882_v57  ;;  %1885 = vst [vmem:[%s2902_s15 + $0x7c] sm:$0xf] %v1884_v58  ;;  %v1888_v60 = vld [vmem:[%s2906_s20 + $0x84] sm:$0xf] }
 0x1d1   : >> { %1887 = vst [vmem:[%s2902_s15 + $0x80] sm:$0xf] %v1886_v59  ;;  %v1890_v61 = vld [vmem:[%s2906_s20 + $0x88] sm:$0xf]  ;;  %v1892_v62 = vld [vmem:[%s2906_s20 + $0x8c] sm:$0xf] }
 0x1d2   : >> { %1889 = vst [vmem:[%s2902_s15 + $0x84] sm:$0xf] %v1888_v60  ;;  %1891 = vst [vmem:[%s2902_s15 + $0x88] sm:$0xf] %v1890_v61  ;;  %v1894_v63 = vld [vmem:[%s2906_s20 + $0x90] sm:$0xf] }
 0x1d3   : >> { %1893 = vst [vmem:[%s2902_s15 + $0x8c] sm:$0xf] %v1892_v62  ;;  %v1896_v0 = vld [vmem:[%s2906_s20 + $0x94] sm:$0xf]  ;;  %v1898_v1 = vld [vmem:[%s2906_s20 + $0x98] sm:$0xf] }
 0x1d4   : >> { %1895 = vst [vmem:[%s2902_s15 + $0x90] sm:$0xf] %v1894_v63  ;;  %1897 = vst [vmem:[%s2902_s15 + $0x94] sm:$0xf] %v1896_v0  ;;  %v1900_v2 = vld [vmem:[%s2906_s20 + $0x9c] sm:$0xf] }
 0x1d5   : >> { %1899 = vst [vmem:[%s2902_s15 + $0x98] sm:$0xf] %v1898_v1  ;;  %v1902_v3 = vld [vmem:[%s2906_s20 + $0xa0] sm:$0xf]  ;;  %v1904_v4 = vld [vmem:[%s2906_s20 + $0xa4] sm:$0xf] }
 0x1d6   : >> { %1901 = vst [vmem:[%s2902_s15 + $0x9c] sm:$0xf] %v1900_v2  ;;  %1903 = vst [vmem:[%s2902_s15 + $0xa0] sm:$0xf] %v1902_v3  ;;  %v1906_v5 = vld [vmem:[%s2906_s20 + $0xa8] sm:$0xf] }
 0x1d7   : >> { %1905 = vst [vmem:[%s2902_s15 + $0xa4] sm:$0xf] %v1904_v4  ;;  %v1908_v6 = vld [vmem:[%s2906_s20 + $0xac] sm:$0xf]  ;;  %v1910_v7 = vld [vmem:[%s2906_s20 + $0xb0] sm:$0xf] }
 0x1d8   : >> { %1907 = vst [vmem:[%s2902_s15 + $0xa8] sm:$0xf] %v1906_v5  ;;  %1909 = vst [vmem:[%s2902_s15 + $0xac] sm:$0xf] %v1908_v6  ;;  %v1912_v8 = vld [vmem:[%s2906_s20 + $0xb4] sm:$0xf] }
 0x1d9   : >> { %1911 = vst [vmem:[%s2902_s15 + $0xb0] sm:$0xf] %v1910_v7  ;;  %v1914_v9 = vld [vmem:[%s2906_s20 + $0xb8] sm:$0xf]  ;;  %v1916_v10 = vld [vmem:[%s2906_s20 + $0xbc] sm:$0xf] }
 0x1da   : >> { %1913 = vst [vmem:[%s2902_s15 + $0xb4] sm:$0xf] %v1912_v8  ;;  %1915 = vst [vmem:[%s2902_s15 + $0xb8] sm:$0xf] %v1914_v9  ;;  %v1918_v11 = vld [vmem:[%s2906_s20 + $0xc0] sm:$0xf] }
 0x1db   : >> { %1917 = vst [vmem:[%s2902_s15 + $0xbc] sm:$0xf] %v1916_v10  ;;  %v1920_v12 = vld [vmem:[%s2906_s20 + $0xc4] sm:$0xf]  ;;  %v1922_v13 = vld [vmem:[%s2906_s20 + $0xc8] sm:$0xf] }
 0x1dc   : >> { %1919 = vst [vmem:[%s2902_s15 + $0xc0] sm:$0xf] %v1918_v11  ;;  %1921 = vst [vmem:[%s2902_s15 + $0xc4] sm:$0xf] %v1920_v12  ;;  %v1924_v14 = vld [vmem:[%s2906_s20 + $0xcc] sm:$0xf] }
 0x1dd   : >> { %1923 = vst [vmem:[%s2902_s15 + $0xc8] sm:$0xf] %v1922_v13  ;;  %v1926_v15 = vld [vmem:[%s2906_s20 + $0xd0] sm:$0xf]  ;;  %v1928_v16 = vld [vmem:[%s2906_s20 + $0xd4] sm:$0xf] }
 0x1de   : >> { %1925 = vst [vmem:[%s2902_s15 + $0xcc] sm:$0xf] %v1924_v14  ;;  %1927 = vst [vmem:[%s2902_s15 + $0xd0] sm:$0xf] %v1926_v15  ;;  %v1930_v17 = vld [vmem:[%s2906_s20 + $0xd8] sm:$0xf] }
 0x1df   : >> { %1929 = vst [vmem:[%s2902_s15 + $0xd4] sm:$0xf] %v1928_v16  ;;  %v1932_v18 = vld [vmem:[%s2906_s20 + $0xdc] sm:$0xf]  ;;  %v1934_v19 = vld [vmem:[%s2906_s20 + $0xe0] sm:$0xf] }
 0x1e0   : >> { %1931 = vst [vmem:[%s2902_s15 + $0xd8] sm:$0xf] %v1930_v17  ;;  %1933 = vst [vmem:[%s2902_s15 + $0xdc] sm:$0xf] %v1932_v18  ;;  %v1936_v20 = vld [vmem:[%s2906_s20 + $0xe4] sm:$0xf] }
 0x1e1   : >> { %1935 = vst [vmem:[%s2902_s15 + $0xe0] sm:$0xf] %v1934_v19  ;;  %v1938_v21 = vld [vmem:[%s2906_s20 + $0xe8] sm:$0xf]  ;;  %v1940_v22 = vld [vmem:[%s2906_s20 + $0xec] sm:$0xf] }
 0x1e2   : >> { %1937 = vst [vmem:[%s2902_s15 + $0xe4] sm:$0xf] %v1936_v20  ;;  %1939 = vst [vmem:[%s2902_s15 + $0xe8] sm:$0xf] %v1938_v21  ;;  %v1942_v23 = vld [vmem:[%s2906_s20 + $0xf0] sm:$0xf] }
 0x1e3   : >> { %1941 = vst [vmem:[%s2902_s15 + $0xec] sm:$0xf] %v1940_v22  ;;  %v1944_v24 = vld [vmem:[%s2906_s20 + $0xf4] sm:$0xf]  ;;  %v1946_v25 = vld [vmem:[%s2906_s20 + $0xf8] sm:$0xf] }
 0x1e4   : >> { %1943 = vst [vmem:[%s2902_s15 + $0xf0] sm:$0xf] %v1942_v23  ;;  %1945 = vst [vmem:[%s2902_s15 + $0xf4] sm:$0xf] %v1944_v24  ;;  %v1948_v26 = vld [vmem:[%s2906_s20 + $0xfc] sm:$0xf] }
 0x1e5   : >> { %1947 = vst [vmem:[%s2902_s15 + $0xf8] sm:$0xf] %v1946_v25  ;;  %1949 = vst [vmem:[%s2902_s15 + $0xfc] sm:$0xf] %v1948_v26  ;;  %s3633_s18 = smov (%p1951_p11, %s1950_s18), 0  ;;  %s1816_s17 = sadd.s32 1, %s2914_s17  }
 0x1e6   : >> { %s2493_s21 = sshll.u32 %s3633_s18, 8  ;;  %p1815_p12 = scmp.ge.s32.totalorder %s1816_s17, %s3433_s14 }
 0x1e7   : >> { %s1955_s20 = scalar_lea.vmem %s3162_s12, %s2493_s21 [#allocation2]   ;;  %s1956_s15 = scalar_lea.vmem %s3427_s10, %s2493_s21  }
 0x1e8   : >> { %s3626_s27 = smov %s3633_s18  ;;  %1818 = sbr.rel (!%p1815_p12) target bundleno = 443 (0x1bb), region = 118 }
 0x1ed PF: > { %s3601_s22 = sand.u32 63, %s3631_s6   ;;  %s2591_s23 = sshll.u32 %s3433_s14, 8 }
 0x1ee   : > { %s1961_s24 = scalar_lea.vmem %s3162_s12, %s2591_s23 [#allocation2]   ;;  %s1963_s25 = scalar_lea.vmem %s3427_s10, %s2591_s23  }
 0x1ef   : > { %p2498_p13 = scmp.le.s32.totalorder %s3601_s22, 0 }
 0x1f0   : > { %s2916_s26 = smov (!%p2498_p13), %s1963_s25   ;;  %s2920_s28 = smov (!%p2498_p13), %s1961_s24  }
 0x1f1   : > { %2226 = sbr.rel (%p2498_p13) target bundleno = 510 (0x1fe), region = 123  ;;  %s2924_s29 = smov (!%p2498_p13), 0  }
 0x1f2   : > { %s2928_s30 = smov (!%p2498_p13), 0  }
 0x1f6 LB: >> { %v1973_v37 = vld [vmem:[%s2922_s28] sm:$0xf]  ;;  %s1975_s4 = sadd.s32 1, %s2926_s29  ;;  %s1967_s30 = sadd.s32 1, %s2930_s30   ;;  %s2930_s30 = sphi %s2928_s30, %s1967_s30   ;;  %s2926_s29 = sphi %s2924_s29, %s2925_s29   ;;  %s2922_s28 = sphi %s2920_s28, %s1980_s28   ;;  %s2918_s26 = sphi %s2916_s26, %s1981_s26  }
 0x1f7   : >> { %1974 = vst [vmem:[%s2918_s26] sm:$0xf] %v1973_v37  ;;  %p1976_p0 = scmp.ge.s32.totalorder %s1975_s4, %s3601_s22  ;;  %p1966_p1 = scmp.ge.s32.totalorder %s1967_s30, %s3601_s22 }
 0x1f9   : >> { %s3635_s4 = smov (%p1976_p0, %s1975_s4), 0  ;;  %1969 = sbr.rel (!%p1966_p1) target bundleno = 502 (0x1f6), region = 129 }
 0x1fa   : >> { %s2499_s12 = sshll.u32 %s3635_s4, 2  ;;  %s2925_s29 = smov %s3635_s4  }
 0x1fb   : >> { %s1980_s28 = scalar_lea.vmem %s1961_s24, %s2499_s12 [#allocation2]   ;;  %s1981_s26 = scalar_lea.vmem %s1963_s25, %s2499_s12  }
 0x1fe PF: > { %p10_p2 = scmp.ge.s32.totalorder %s2969_s16, 4   ;;  %s3627_s12 = smov %s2894_s13 }
 0x1ff   : > { %s3628_s13 = smov %s2977_s19  ;;  %s3629_s14 = smov %s2969_s16 }
 0x200   :  { %12 = sbr.rel (!%p10_p2) target bundleno = 2 (0x2), region = 140 }

// kernel: _lambda_.8
= control target key start
LH: loop header
LB: loop body
LE: loop exit
PB: predicated region body
PF: predicated region fallthrough
CT: control target
= control target key end

     0   :  { %v691_v0 = vmov 0   ;;  %vm239_vm0 = vcmask 588800   ;;  %vm273_vm1 = vcmask 1043456   ;;  %vm503_vm2 = vcmask 76800   ;;  %s960_s1 = inlined_call_operand.vmem [shape: bf16[200,10], index: 1, kind: input, shape index: {}]   ;;  %s961_s0 = inlined_call_operand.vmem [shape: bf16[162,200], index: 0, kind: input, shape index: {}]   ;;  %s962_s2 = inlined_call_operand.vmem [shape: f32[1,10], index: 2, kind: input, shape index: {}]   ;;  %s963_s3 = inlined_call_operand.vmem [shape: bf16[162,10], index: 3, kind: output, shape index: {}]  }
   0x1   :  { %277 = vmatprep.subr.bf16.mxu0 %v691_v0  ;;  %v646_v1 = vld [vmem:[%s960_s1 + $0x38] sm:$0xff]   ;;  %619 = vmatprep.subr.bf16.mxu1 %v691_v0  ;;  %v647_v2 = vld [vmem:[%s960_s1 + $0x30] sm:$0xff]   ;;  %v648_v3 = vld [vmem:[%s960_s1 + $0x28] sm:$0xff]   ;;  %vm524_vm3 = vcmask 73728  }
   0x2   :  { %278 = vmatpush1.bf16.msra.mxu0 %v646_v1  ;;  %632 = vmatpush1.bf16.msra.mxu1 %v646_v1  ;;  %v649_v4 = vld [vmem:[%s960_s1 + $0x20] sm:$0xff]   ;;  %v650_v6 = vld [vmem:[%s960_s1 + $0x18] sm:$0xff]   ;;  %v651_v8 = vld [vmem:[%s960_s1 + $0x10] sm:$0xff]  }
   0x3   :  { %279 = vmatprep.subr.bf16.mxu0 %v691_v0  ;;  %620 = vmatprep.subr.bf16.mxu1 %v691_v0  ;;  %v661_v5 = vld [vmem:[%s961_s0 + $0x4] ss:$8 sps:$4 sm:$0xff]   ;;  %v654_v11 = vld [vmem:[%s960_s1 + $0x60] ss:$0 sps:$4 sm:$0xff]   ;;  %v655_v13 = vld [vmem:[%s960_s1 + $0x58] sm:$0xff]  }
   0x4   :  { %v664_v7 = vld [vmem:[%s961_s0 + $0x64] ss:$8 sps:$4 sm:$0xff]   ;;  %566 = vmatprep.mubr.msk.bf16.mxu0 %vm239_vm0, %v661_v5  ;;  %v275_v12 = vsel %vm273_vm1, %v654_v11, 0  ;;  %v656_v14 = vld [vmem:[%s960_s1 + $0x50] sm:$0xff]   ;;  %v659_v17 = vld [vmem:[%s961_s0] ss:$8 sps:$4 sm:$0xff]  }
   0x5   :  { %572 = vmatprep.mubr.msk.bf16.mxu1 %vm239_vm0, %v664_v7  ;;  %v652_v9 = vld [vmem:[%s960_s1 + $0x8] sm:$0xff]   ;;  %v653_v10 = vld [vmem:[%s960_s1] sm:$0xff]   ;;  %v665_v19 = vld [vmem:[%s961_s0 + $0x14] ss:$8 sps:$4 sm:$0xff]  }
   0x6   :  { %280 = vmatpush1.bf16.msra.mxu0 %v647_v2  ;;  %633 = vmatpush1.bf16.msra.mxu1 %v647_v2  ;;  %v657_v15 = vld [vmem:[%s960_s1 + $0x48] sm:$0xff]   ;;  %v658_v16 = vld [vmem:[%s960_s1 + $0x40] sm:$0xff]   ;;  %v668_v20 = vld [vmem:[%s961_s0 + $0x74] ss:$8 sps:$4 sm:$0xff]  }
   0x7   :  { %281 = vmatprep.subr.bf16.mxu0 %v691_v0  ;;  %621 = vmatprep.subr.bf16.mxu1 %v691_v0  ;;  %v662_v18 = vld [vmem:[%s961_s0 + $0x60] ss:$8 sps:$4 sm:$0xff]   ;;  %v667_v21 = vld [vmem:[%s961_s0 + $0x10] ss:$8 sps:$4 sm:$0xff]   ;;  %v671_v23 = vld [vmem:[%s961_s0 + $0x24] ss:$8 sps:$4 sm:$0xff]  }
   0x8   :  { %v670_v22 = vld [vmem:[%s961_s0 + $0x70] ss:$8 sps:$4 sm:$0xff]   ;;  %v674_v24 = vld [vmem:[%s961_s0 + $0x84] ss:$8 sps:$4 sm:$0xff]   ;;  %v673_v25 = vld [vmem:[%s961_s0 + $0x20] ss:$8 sps:$4 sm:$0xff]  }
   0x9   :  { %v676_v26 = vld [vmem:[%s961_s0 + $0x80] ss:$8 sps:$4 sm:$0xff]   ;;  %v677_v27 = vld [vmem:[%s961_s0 + $0x34] ss:$8 sps:$4 sm:$0xff]   ;;  %v679_v30 = vld [vmem:[%s961_s0 + $0x30] ss:$8 sps:$4 sm:$0xff]  }
   0xa   :  { %282 = vmatpush1.bf16.msra.mxu0 %v648_v3  ;;  %634 = vmatpush1.bf16.msra.mxu1 %v648_v3  ;;  %v680_v28 = vld [vmem:[%s961_s0 + $0x94] ss:$8 sps:$4 sm:$0xff]   ;;  %v35_v29 = vld [vmem:[%s961_s0 + $0xa0] sm:$0x11]  ;;  %v682_v31 = vld [vmem:[%s961_s0 + $0x90] ss:$8 sps:$4 sm:$0xff]  }
   0xb   :  { %283 = vmatprep.subr.bf16.mxu0 %v691_v0  ;;  %622 = vmatprep.subr.bf16.mxu1 %v691_v0  ;;  %v683_v32 = vld [vmem:[%s961_s0 + $0x44] ss:$8 sps:$4 sm:$0xff]   ;;  %v552_v33 = vcombine.high %v35_v29, %v35_v29  ;;  %v685_v34 = vld [vmem:[%s961_s0 + $0x40] ss:$8 sps:$4 sm:$0xff]   ;;  %v551_v35 = vcombine.low %v35_v29, %v35_v29  ;;  %v688_v36 = vld [vmem:[%s961_s0 + $0x54] ss:$8 sps:$4 sm:$0xff]  }
   0xc   :  { %v690_v37 = vld [vmem:[%s961_s0 + $0x50] ss:$8 sps:$4 sm:$0xff]   ;;  %v854_v38 = vld [vmem:[%s962_s2] ss:$0 sm:$0xff] }
   0xe   :  { %284 = vmatpush1.bf16.msra.mxu0 %v649_v4  ;;  %635 = vmatpush1.bf16.msra.mxu1 %v649_v4 }
   0xf   :  { %285 = vmatprep.subr.bf16.mxu0 %v691_v0  ;;  %623 = vmatprep.subr.bf16.mxu1 %v691_v0 }
  0x12   :  { %286 = vmatpush1.bf16.msra.mxu0 %v650_v6  ;;  %636 = vmatpush1.bf16.msra.mxu1 %v650_v6 }
  0x13   :  { %287 = vmatprep.subr.bf16.mxu0 %v691_v0  ;;  %624 = vmatprep.subr.bf16.mxu1 %v691_v0 }
  0x16   :  { %288 = vmatpush1.bf16.msra.mxu0 %v651_v8  ;;  %637 = vmatpush1.bf16.msra.mxu1 %v651_v8 }
  0x17   :  { %289 = vmatprep.subr.bf16.mxu0 %v691_v0  ;;  %625 = vmatprep.subr.bf16.mxu1 %v691_v0 }
  0x1a   :  { %290 = vmatpush1.bf16.msra.mxu0 %v652_v9  ;;  %638 = vmatpush1.bf16.msra.mxu1 %v652_v9 }
  0x1b   :  { %291 = vmatprep.subr.bf16.mxu0 %v691_v0  ;;  %626 = vmatprep.subr.bf16.mxu1 %v691_v0 }
  0x1e   :  { %292 = vmatpush1.bf16.msra.mxu0 %v653_v10  ;;  %639 = vmatpush1.bf16.msra.mxu1 %v653_v10 }
  0x1f   :  { %299 = vmatprep.subr.bf16.mxu0 %v691_v0  ;;  %627 = vmatprep.subr.bf16.mxu1 %v691_v0 }
  0x22   :  { %300 = vmatpush2.bf16.msra.mxu0 %v275_v12  ;;  %640 = vmatpush2.bf16.msra.mxu1 %v275_v12 }
  0x23   :  { %301 = vmatprep.subr.bf16.mxu0 %v691_v0  ;;  %628 = vmatprep.subr.bf16.mxu1 %v691_v0 }
  0x26   :  { %302 = vmatpush2.bf16.msra.mxu0 %v655_v13  ;;  %641 = vmatpush2.bf16.msra.mxu1 %v655_v13 }
  0x27   :  { %303 = vmatprep.subr.bf16.mxu0 %v691_v0  ;;  %629 = vmatprep.subr.bf16.mxu1 %v691_v0 }
  0x2a   :  { %304 = vmatpush2.bf16.msra.mxu0 %v656_v14  ;;  %642 = vmatpush2.bf16.msra.mxu1 %v656_v14 }
  0x2b   :  { %305 = vmatprep.subr.bf16.mxu0 %v691_v0  ;;  %630 = vmatprep.subr.bf16.mxu1 %v691_v0 }
  0x2e   :  { %306 = vmatpush2.bf16.msra.mxu0 %v657_v15  ;;  %643 = vmatpush2.bf16.msra.mxu1 %v657_v15 }
  0x2f   :  { %307 = vmatprep.subr.bf16.mxu0 %v691_v0  ;;  %631 = vmatprep.subr.bf16.mxu1 %v691_v0 }
  0x32   :  { %308 = vmatpush2.bf16.msra.mxu0 %v658_v16  ;;  %644 = vmatpush2.bf16.msra.mxu1 %v658_v16 }
  0x35   :  { %310 = vmatmul.mubr.bf16.vlgmr.msra.gmra.mxu0 %v659_v17  ;;  %358 = vmatmul.mubr.bf16.vlgmr.msra.gmra.mxu1 %v662_v18 }
  0x36   :  { %567 = vmatprep.mubr.msk.bf16.mxu0 %vm239_vm0, %v665_v19  ;;  %573 = vmatprep.mubr.msk.bf16.mxu1 %vm239_vm0, %v668_v20 }
  0x3d   :  { %318 = vmatmul.mubr.bf16.gmra.mxu0 %v667_v21  ;;  %366 = vmatmul.mubr.bf16.gmra.mxu1 %v670_v22 }
  0x3e   :  { %568 = vmatprep.mubr.msk.bf16.mxu0 %vm239_vm0, %v671_v23  ;;  %574 = vmatprep.mubr.msk.bf16.mxu1 %vm239_vm0, %v674_v24 }
  0x45   :  { %326 = vmatmul.mubr.bf16.gmra.mxu0 %v673_v25  ;;  %374 = vmatmul.mubr.bf16.gmra.mxu1 %v676_v26 }
  0x46   :  { %569 = vmatprep.mubr.msk.bf16.mxu0 %vm239_vm0, %v677_v27  ;;  %575 = vmatprep.mubr.msk.bf16.mxu1 %vm239_vm0, %v680_v28 }
  0x4d   :  { %334 = vmatmul.mubr.bf16.gmra.mxu0 %v679_v30  ;;  %382 = vmatmul.mubr.bf16.gmra.mxu1 %v682_v31 }
  0x4e   :  { %570 = vmatprep.mubr.msk.bf16.mxu0 %vm239_vm0, %v683_v32  ;;  %576 = vmatprep.mubr.msk.bf16.mxu1 %vm239_vm0, %v552_v33 }
  0x55   :  { %342 = vmatmul.mubr.bf16.gmra.mxu0 %v685_v34  ;;  %390 = vmatmul.mubr.bf16.gmra.mxu1 %v551_v35 }
  0x56   :  { %571 = vmatprep.mubr.msk.bf16.mxu0 %vm239_vm0, %v688_v36 }
  0x5d   :  { %350 = vmatmul.mubr.bf16.gmra.mxu0 %v690_v37 }
  0xf5   :  { %v311_v39 = vpop.f32.mrf.mxu0  ;;  %v359_v40 = vpop.f32.mrf.mxu1 }
  0xf6   :  { %v312_v41 = vadd.f32 %v854_v38, %v311_v39  ;;  %v360_v42 = vadd.f32 %v854_v38, %v359_v40 }
  0xf7   :  { %v313_v43 = vpop.f32.mrf.mxu0  ;;  %v361_v44 = vpop.f32.mrf.mxu1 }
  0xf8   :  { %v397_v45 = vmax.f32 %v312_v41, 0.0  ;;  %v409_v46 = vmax.f32 %v360_v42, 0.0 }
  0xf9   :  { %v314_v47 = vpop.f32.mrf.mxu0  ;;  %v362_v48 = vpop.f32.mrf.mxu1 }
  0xfa   :  { %v598_v49 = vpack.c.bf16 %v397_v45, %v397_v45  ;;  %v315_v50 = vadd.f32 %v854_v38, %v314_v47  ;;  %v610_v51 = vpack.c.bf16 %v409_v46, %v409_v46  ;;  %v363_v52 = vadd.f32 %v854_v38, %v362_v48 }
  0xfb   :  { %v316_v53 = vpop.f32.mrf.mxu0  ;;  %v364_v54 = vpop.f32.mrf.mxu1 }
  0xfc   :  { %504 = vst.msk [vmem:[%s963_s3] sm:$0xf] %vm503_vm2, %v598_v49  ;;  %v398_v55 = vmax.f32 %v315_v50, 0.0  ;;  %516 = vst.msk [vmem:[%s963_s3 + $0x30] sm:$0xf] %vm503_vm2, %v610_v51  ;;  %v410_v56 = vmax.f32 %v363_v52, 0.0 }
  0xfd   :  { %v319_v57 = vpop.f32.mrf.mxu0  ;;  %v367_v58 = vpop.f32.mrf.mxu1 }
  0xfe   :  { %v599_v59 = vpack.c.bf16 %v398_v55, %v398_v55  ;;  %v320_v60 = vadd.f32 %v854_v38, %v319_v57  ;;  %v611_v61 = vpack.c.bf16 %v410_v56, %v410_v56  ;;  %v368_v62 = vadd.f32 %v854_v38, %v367_v58 }
  0xff   :  { %v321_v63 = vpop.f32.mrf.mxu0  ;;  %v369_v0 = vpop.f32.mrf.mxu1 }
 0x100   :  { %505 = vst.msk [vmem:[%s963_s3 + $0x4] sm:$0xf] %vm503_vm2, %v599_v59  ;;  %v399_v1 = vmax.f32 %v320_v60, 0.0  ;;  %517 = vst.msk [vmem:[%s963_s3 + $0x34] sm:$0xf] %vm503_vm2, %v611_v61  ;;  %v411_v2 = vmax.f32 %v368_v62, 0.0 }
 0x101   :  { %v322_v3 = vpop.f32.mrf.mxu0  ;;  %v370_v4 = vpop.f32.mrf.mxu1 }
 0x102   :  { %v600_v5 = vpack.c.bf16 %v399_v1, %v399_v1  ;;  %v323_v6 = vadd.f32 %v854_v38, %v322_v3  ;;  %v612_v7 = vpack.c.bf16 %v411_v2, %v411_v2  ;;  %v371_v8 = vadd.f32 %v854_v38, %v370_v4 }
 0x103   :  { %v324_v9 = vpop.f32.mrf.mxu0  ;;  %v372_v10 = vpop.f32.mrf.mxu1 }
 0x104   :  { %506 = vst.msk [vmem:[%s963_s3 + $0x8] sm:$0xf] %vm503_vm2, %v600_v5  ;;  %v400_v11 = vmax.f32 %v323_v6, 0.0  ;;  %518 = vst.msk [vmem:[%s963_s3 + $0x38] sm:$0xf] %vm503_vm2, %v612_v7  ;;  %v412_v12 = vmax.f32 %v371_v8, 0.0 }
 0x105   :  { %v327_v13 = vpop.f32.mrf.mxu0  ;;  %v375_v14 = vpop.f32.mrf.mxu1 }
 0x106   :  { %v601_v15 = vpack.c.bf16 %v400_v11, %v400_v11  ;;  %v328_v16 = vadd.f32 %v854_v38, %v327_v13  ;;  %v613_v17 = vpack.c.bf16 %v412_v12, %v412_v12  ;;  %v376_v18 = vadd.f32 %v854_v38, %v375_v14 }
 0x107   :  { %v329_v19 = vpop.f32.mrf.mxu0  ;;  %v377_v20 = vpop.f32.mrf.mxu1 }
 0x108   :  { %507 = vst.msk [vmem:[%s963_s3 + $0xc] sm:$0xf] %vm503_vm2, %v601_v15  ;;  %v401_v21 = vmax.f32 %v328_v16, 0.0  ;;  %519 = vst.msk [vmem:[%s963_s3 + $0x3c] sm:$0xf] %vm503_vm2, %v613_v17  ;;  %v413_v22 = vmax.f32 %v376_v18, 0.0 }
 0x109   :  { %v330_v23 = vpop.f32.mrf.mxu0  ;;  %v378_v24 = vpop.f32.mrf.mxu1 }
 0x10a   :  { %v602_v25 = vpack.c.bf16 %v401_v21, %v401_v21  ;;  %v331_v26 = vadd.f32 %v854_v38, %v330_v23  ;;  %v614_v27 = vpack.c.bf16 %v413_v22, %v413_v22  ;;  %v379_v28 = vadd.f32 %v854_v38, %v378_v24 }
 0x10b   :  { %v332_v29 = vpop.f32.mrf.mxu0  ;;  %v380_v30 = vpop.f32.mrf.mxu1 }
 0x10c   :  { %508 = vst.msk [vmem:[%s963_s3 + $0x10] sm:$0xf] %vm503_vm2, %v602_v25  ;;  %v402_v31 = vmax.f32 %v331_v26, 0.0  ;;  %520 = vst.msk [vmem:[%s963_s3 + $0x40] sm:$0xf] %vm503_vm2, %v614_v27  ;;  %v414_v32 = vmax.f32 %v379_v28, 0.0 }
 0x10d   :  { %v335_v33 = vpop.f32.mrf.mxu0  ;;  %v383_v34 = vpop.f32.mrf.mxu1 }
 0x10e   :  { %v603_v35 = vpack.c.bf16 %v402_v31, %v402_v31  ;;  %v336_v36 = vadd.f32 %v854_v38, %v335_v33  ;;  %v615_v37 = vpack.c.bf16 %v414_v32, %v414_v32  ;;  %v384_v39 = vadd.f32 %v854_v38, %v383_v34 }
 0x10f   :  { %v337_v40 = vpop.f32.mrf.mxu0  ;;  %v385_v41 = vpop.f32.mrf.mxu1 }
 0x110   :  { %509 = vst.msk [vmem:[%s963_s3 + $0x14] sm:$0xf] %vm503_vm2, %v603_v35  ;;  %v403_v42 = vmax.f32 %v336_v36, 0.0  ;;  %521 = vst.msk [vmem:[%s963_s3 + $0x44] sm:$0xf] %vm503_vm2, %v615_v37  ;;  %v415_v43 = vmax.f32 %v384_v39, 0.0 }
 0x111   :  { %v338_v44 = vpop.f32.mrf.mxu0  ;;  %v386_v45 = vpop.f32.mrf.mxu1 }
 0x112   :  { %v604_v46 = vpack.c.bf16 %v403_v42, %v403_v42  ;;  %v339_v47 = vadd.f32 %v854_v38, %v338_v44  ;;  %v616_v48 = vpack.c.bf16 %v415_v43, %v415_v43  ;;  %v387_v49 = vadd.f32 %v854_v38, %v386_v45 }
 0x113   :  { %v340_v50 = vpop.f32.mrf.mxu0  ;;  %v388_v51 = vpop.f32.mrf.mxu1 }
 0x114   :  { %510 = vst.msk [vmem:[%s963_s3 + $0x18] sm:$0xf] %vm503_vm2, %v604_v46  ;;  %v404_v52 = vmax.f32 %v339_v47, 0.0  ;;  %522 = vst.msk [vmem:[%s963_s3 + $0x48] sm:$0xf] %vm503_vm2, %v616_v48  ;;  %v416_v53 = vmax.f32 %v387_v49, 0.0 }
 0x115   :  { %v343_v54 = vpop.f32.mrf.mxu0  ;;  %v391_v55 = vpop.f32.mrf.mxu1 }
 0x116   :  { %v605_v56 = vpack.c.bf16 %v404_v52, %v404_v52  ;;  %v344_v57 = vadd.f32 %v854_v38, %v343_v54  ;;  %v617_v58 = vpack.c.bf16 %v416_v53, %v416_v53  ;;  %v392_v59 = vadd.f32 %v854_v38, %v391_v55 }
 0x117   :  { %v345_v60 = vpop.f32.mrf.mxu0  ;;  %v393_v61 = vpop.f32.mrf.mxu1 }
 0x118   :  { %511 = vst.msk [vmem:[%s963_s3 + $0x1c] sm:$0xf] %vm503_vm2, %v605_v56  ;;  %v405_v62 = vmax.f32 %v344_v57, 0.0  ;;  %523 = vst.msk [vmem:[%s963_s3 + $0x4c] sm:$0xf] %vm503_vm2, %v617_v58  ;;  %v417_v63 = vmax.f32 %v392_v59, 0.0 }
 0x119   :  { %v346_v0 = vpop.f32.mrf.mxu0  ;;  %v394_v1 = vpop.f32.mrf.mxu1 }
 0x11a   :  { %v606_v2 = vpack.c.bf16 %v405_v62, %v405_v62  ;;  %v347_v3 = vadd.f32 %v854_v38, %v346_v0  ;;  %v618_v4 = vpack.c.bf16 %v417_v63, %v417_v63 }
 0x11b   :  { %v348_v5 = vpop.f32.mrf.mxu0  ;;  %v395_v6 = vpop.f32.mrf.mxu1 }
 0x11c   :  { %512 = vst.msk [vmem:[%s963_s3 + $0x20] sm:$0xf] %vm503_vm2, %v606_v2  ;;  %v406_v7 = vmax.f32 %v347_v3, 0.0 }
 0x11d   :  { %525 = vst.msk [vmem:[%s963_s3 + $0x50] sm:$0x1] %vm524_vm3, %v618_v4  ;;  %v351_v8 = vpop.f32.mrf.mxu0 }
 0x11e   :  { %v607_v9 = vpack.c.bf16 %v406_v7, %v406_v7  ;;  %v352_v10 = vadd.f32 %v854_v38, %v351_v8 }
 0x11f   :  { %v353_v11 = vpop.f32.mrf.mxu0 }
 0x120   :  { %513 = vst.msk [vmem:[%s963_s3 + $0x24] sm:$0xf] %vm503_vm2, %v607_v9  ;;  %v407_v12 = vmax.f32 %v352_v10, 0.0 }
 0x121   :  { %v354_v13 = vpop.f32.mrf.mxu0 }
 0x122   :  { %v608_v14 = vpack.c.bf16 %v407_v12, %v407_v12  ;;  %v355_v15 = vadd.f32 %v854_v38, %v354_v13 }
 0x123   :  { %v356_v16 = vpop.f32.mrf.mxu0 }
 0x124   :  { %514 = vst.msk [vmem:[%s963_s3 + $0x28] sm:$0xf] %vm503_vm2, %v608_v14  ;;  %v408_v17 = vmax.f32 %v355_v15, 0.0 }
 0x126   :  { %v609_v18 = vpack.c.bf16 %v408_v17, %v408_v17 }
 0x128   :  { %515 = vst.msk [vmem:[%s963_s3 + $0x2c] sm:$0xf] %vm503_vm2, %v609_v18 }

// kernel: _lambda_.9
= control target key start
LH: loop header
LB: loop body
LE: loop exit
PB: predicated region body
PF: predicated region fallthrough
CT: control target
= control target key end

     0   :  { %v295_v0 = vmov 0   ;;  %v296_v2 = vmov 1966171168   ;;  %v61_v4 = vlaneseq  ;;  %v297_v5 = vmov 0.0   ;;  %s379_s1 = inlined_call_operand.vmem [shape: bf16[160,32], index: 1, kind: input, shape index: {}]   ;;  %s380_s0 = inlined_call_operand.vmem [shape: bf16[2,160], index: 0, kind: input, shape index: {}]   ;;  %s381_s3 = inlined_call_operand.vmem [shape: bf16[32,6], index: 3, kind: input, shape index: {}]   ;;  %s382_s2 = inlined_call_operand.vmem [shape: f32[1,32], index: 2, kind: input, shape index: {}]   ;;  %s383_s4 = inlined_call_operand.vmem [shape: f32[1,6], index: 4, kind: input, shape index: {}]   ;;  %s384_s5 = inlined_call_operand.vmem [shape: f32[2,6], index: 5, kind: output, shape index: {}]  }
   0x1   :  { %137 = vmatprep.subr.bf16.mxu0 %v295_v0  ;;  %v283_v1 = vld [vmem:[%s379_s1 + $0x38] sm:$0xff]   ;;  %v59_v3 = vunpack.c.l.s4 %v296_v2  ;;  %271 = vmatprep.subr.bf16.mxu1 %v297_v5  ;;  %v284_v6 = vld [vmem:[%s379_s1 + $0x30] sm:$0xff]   ;;  %v285_v9 = vld [vmem:[%s379_s1 + $0x28] sm:$0xff]   ;;  %vm133_vm0 = vcmask 261120   ;;  %vm298_vm1 = vmmov 0   ;;  %vm245_vm2 = vcmask 41984  }
   0x2   :  { %138 = vmatpush1.bf16.msra.mxu0 %v283_v1  ;;  %v62_v8 = vshrl.u32 %v61_v4, 7  ;;  %v286_v11 = vld [vmem:[%s379_s1 + $0x20] sm:$0xff]   ;;  %v287_v15 = vld [vmem:[%s379_s1 + $0x18] sm:$0xff]   ;;  %v288_v16 = vld [vmem:[%s379_s1 + $0x10] sm:$0xff]   ;;  %275 = vmatprep.mubr.msk.bf16.mxu1 %vm298_vm1, %v297_v5 }
   0x3   :  { %139 = vmatprep.subr.bf16.mxu0 %v295_v0  ;;  %v60_v7 = vunpack.c.0.s8 %v59_v3  ;;  %v252_v12 = vld.sshfl [vmem:[%s380_s0] sm:$0x11 pattern:$0x75316420]  ;;  %v289_v17 = vld [vmem:[%s379_s1 + $0x8] sm:$0xff]  }
   0x4   :  { %v57_v13 = vcombine.high %v252_v12, %v252_v12  ;;  %v290_v18 = vld [vmem:[%s379_s1] sm:$0xff]   ;;  %v291_v19 = vld [vmem:[%s379_s1 + $0x48] sm:$0xff]  }
   0x5   :  { %v63_v10 = vsub.s32 %v60_v7, %v62_v8  ;;  %v292_v20 = vld [vmem:[%s379_s1 + $0x40] sm:$0xff]   ;;  %v293_v22 = vld [vmem:[%s381_s3 + $0x8] sm:$0xff]  }
   0x6   :  { %140 = vmatpush1.bf16.msra.mxu0 %v284_v6  ;;  %272 = vmatpush3.bf16.msra.mxu1 %v293_v22  ;;  %v294_v23 = vld [vmem:[%s381_s3] sm:$0xff]  }
   0x7   :  { %141 = vmatprep.subr.bf16.mxu0 %v295_v0  ;;  %v71_v14 = vrot.slane %v57_v13, %v63_v10  ;;  %v64_v21 = vrot.slane %v252_v12, %v63_v10  ;;  %273 = vmatprep.subr.bf16.mxu1 %v297_v5  ;;  %v251_v24 = vld [vmem:[%s382_s2] ss:$0 sm:$0xff] }
   0x8   :  { %v264_v32 = vld [vmem:[%s383_s4] ss:$0 sm:$0xff] }
   0x9   :  { %263 = vmatprep.mubr.msk.bf16.mxu0 %vm133_vm0, %v71_v14 }
   0xa   :  { %142 = vmatpush1.bf16.msra.mxu0 %v285_v9  ;;  %274 = vmatpush3.bf16.msra.mxu1 %v294_v23 }
   0xb   :  { %143 = vmatprep.subr.bf16.mxu0 %v295_v0 }
   0xe   :  { %144 = vmatpush1.bf16.msra.mxu0 %v286_v11 }
   0xf   :  { %145 = vmatprep.subr.bf16.mxu0 %v295_v0 }
  0x12   :  { %146 = vmatpush1.bf16.msra.mxu0 %v287_v15 }
  0x13   :  { %147 = vmatprep.subr.bf16.mxu0 %v295_v0 }
  0x16   :  { %148 = vmatpush1.bf16.msra.mxu0 %v288_v16 }
  0x17   :  { %149 = vmatprep.subr.bf16.mxu0 %v295_v0 }
  0x1a   :  { %150 = vmatpush1.bf16.msra.mxu0 %v289_v17 }
  0x1b   :  { %151 = vmatprep.subr.bf16.mxu0 %v295_v0 }
  0x1e   :  { %152 = vmatpush1.bf16.msra.mxu0 %v290_v18 }
  0x1f   :  { %165 = vmatprep.subr.bf16.mxu0 %v295_v0 }
  0x22   :  { %166 = vmatpush2.bf16.msra.mxu0 %v291_v19 }
  0x23   :  { %167 = vmatprep.subr.bf16.mxu0 %v295_v0 }
  0x26   :  { %168 = vmatpush2.bf16.msra.mxu0 %v292_v20 }
  0x29   :  { %170 = vmatmul.mubr.bf16.vlgmr.msra.gmra.mxu0 %v64_v21 }
  0xe9   :  { %v171_v25 = vpop.f32.mrf.mxu0 }
  0xea   :  { %v172_v26 = vadd.f32 %v251_v24, %v171_v25 }
  0xeb   :  { %v173_v27 = vpop.f32.mrf.mxu0 }
  0xec   :  { %v177_v28 = vmax.f32 %v172_v26, 0.0 }
  0xed   :  { %v174_v29 = vpop.f32.mrf.mxu0 }
  0xee   :  { %v178_v30 = vpack.c.bf16 %v177_v28, %v177_v28 }
  0xef   :  { %v175_v31 = vpop.f32.mrf.mxu0 }
  0xf0   :  { %276 = vmatmul.mubr.msk.bf16.vlgmr.msra.gmra.mxu1 %vm133_vm0, %v178_v30 }
 0x1b0   :  { %v239_v33 = vpop.f32.mrf.mxu1 }
 0x1b1   :  { %v240_v34 = vadd.f32 %v264_v32, %v239_v33 }
 0x1b2   :  { %v277_v35 = vpop.f32.mrf.mxu1 }
 0x1b3   :  { %246 = vst.msk [vmem:[%s384_s5] sm:$0x3] %vm245_vm2, %v240_v34 }
 0x1b4   :  { %v242_v36 = vpop.f32.mrf.mxu1 }
 0x1b6   :  { %v278_v37 = vpop.f32.mrf.mxu1 }

// kernel: _lambda_.10
= control target key start
LH: loop header
LB: loop body
LE: loop exit
PB: predicated region body
PF: predicated region fallthrough
CT: control target
= control target key end

     0   :  { %s2953_s12 = smov 0   ;;  %s3359_s0 = inlined_call_operand.vmem [shape: bf16[1568,75], index: 0, kind: input, shape index: {}]   ;;  %s3360_s1 = inlined_call_operand.vmem [shape: bf16[75,128], index: 1, kind: input, shape index: {}]   ;;  %s3361_s2 = inlined_call_operand.vmem [shape: f32[1,128], index: 2, kind: input, shape index: {}]   ;;  %s3362_s3 = inlined_call_operand.vmem [shape: bf16[1568,128], index: 3, kind: output, shape index: {}]  }
   0x1 LB: > { %s1984_s13 = sadd.s32 4294967295, %s2928_s12   ;;  %p1988_p0 = scmp.ge.s32.totalorder %s2928_s12, 1  ;;  %s2928_s12 = sphi %s2953_s12, %s13_s12  }
   0x2   : > { %p138_p1 = scmp.lt.s32.totalorder %s2928_s12, 3 }
   0x4   : > { %p139_p2 = pnand %p1988_p0, %p138_p1 }
   0x5   : > { %s162_s16 = smul.u32 (!%p139_p2), 98, %s1984_s13 }
   0x6   : > { %142 = sbr.rel (%p139_p2) target bundleno = 432 (0x1b0), region = 32 }
   0x7   : > { %p163_p3 = scmp.lt.s32.totalorder (!%p139_p2), %s162_s16, 195 }
   0xb   : > { %vm712_vm0 = vcmask 1044480   ;;  %v2930_v0 = vmov 0.0   ;;  %v2867_v1 = vld [vmem:[%s3360_s1 + $0x20] sm:$0x3f]   ;;  %vm713_vm1 = vcmask 1045504   ;;  %v2931_v2 = vmov 65535  }
   0xc   : > { %2640 = vmatprep.subr.bf16.mxu0 %v2930_v0  ;;  %2846 = vmatprep.subr.bf16.mxu1 %v2930_v0  ;;  %v714_v3 = vsel %vm712_vm0, 4294967295, %v2931_v2  ;;  %vm2932_vm2 = vmmov 0   ;;  %v2868_v6 = vld [vmem:[%s3360_s1 + $0x18] sm:$0xff]   ;;  %s3364_s16 = smov (!%p163_p3, %s162_s16), 195  ;;  %v2869_v7 = vld [vmem:[%s3360_s1 + $0x10] sm:$0xff]   ;;  %v2870_v8 = vld [vmem:[%s3360_s1 + $0x8] sm:$0xff]  }
   0xd   : > { %v715_v4 = vsel %vm713_vm1, %v714_v3, 0  ;;  %2650 = vmatprep.mubr.msk.bf16.mxu0 %vm2932_vm2, %v2930_v0  ;;  %2750 = vmatprep.mubr.msk.bf16.mxu1 %vm2932_vm2, %v2930_v0  ;;  %s1989_s21 = sshll.u32 %s3364_s16, 2  ;;  %v2871_v9 = vld [vmem:[%s3360_s1] sm:$0xff]   ;;  %vm564_vm3 = vcmask 613376  }
   0xe   : > { %v717_v5 = vand.u32 %v2867_v1, %v715_v4  ;;  %s2988_s24 = scalar_lea.vmem %s3359_s0, %s1989_s21  ;;  %v3194_v59 = vld [vmem:[%s3361_s2] ss:$0 sm:$0xff]  ;;  %s3206_s6 = scalar_lea.vmem %s3362_s3, %s1989_s21 }
   0xf   : > { %v2872_v10 = vld [vmem:[%s2988_s24] sm:$0xff]   ;;  %v2873_v11 = vld [vmem:[%s2988_s24 + $0xc8] sm:$0xff]   ;;  %v2875_v13 = vld [vmem:[%s2988_s24 + $0xd0] sm:$0xff]  }
  0x10   : > { %2641 = vmatpush3.bf16.msra.mxu0 %v717_v5  ;;  %2851 = vmatpush3.bf16.msra.mxu1 %v717_v5  ;;  %v2874_v12 = vld [vmem:[%s2988_s24 + $0x8] sm:$0xff]   ;;  %v2876_v14 = vld [vmem:[%s2988_s24 + $0x10] sm:$0xff]   ;;  %v2877_v15 = vld [vmem:[%s2988_s24 + $0xd8] sm:$0xff]  }
  0x11   : > { %2642 = vmatprep.subr.bf16.mxu0 %v2930_v0  ;;  %2847 = vmatprep.subr.bf16.mxu1 %v2930_v0  ;;  %v2878_v16 = vld [vmem:[%s2988_s24 + $0x18] sm:$0xff]   ;;  %v2879_v17 = vld [vmem:[%s2988_s24 + $0xe0] sm:$0xff]   ;;  %v2881_v19 = vld [vmem:[%s2988_s24 + $0xe8] sm:$0xff]  }
  0x12   : > { %v2880_v18 = vld [vmem:[%s2988_s24 + $0x20] sm:$0xff]   ;;  %v2882_v20 = vld [vmem:[%s2988_s24 + $0x28] sm:$0xff]   ;;  %v2883_v21 = vld [vmem:[%s2988_s24 + $0xf0] sm:$0xff]  }
  0x13   : > { %v2884_v22 = vld [vmem:[%s2988_s24 + $0x30] sm:$0xff]   ;;  %v2885_v23 = vld [vmem:[%s2988_s24 + $0xf8] sm:$0xff]   ;;  %v2887_v25 = vld [vmem:[%s2988_s24 + $0x100] sm:$0xff]  }
  0x14   : > { %2643 = vmatpush3.bf16.msra.mxu0 %v2868_v6  ;;  %2852 = vmatpush3.bf16.msra.mxu1 %v2868_v6  ;;  %v2886_v24 = vld [vmem:[%s2988_s24 + $0x38] sm:$0xff]   ;;  %v2888_v26 = vld [vmem:[%s2988_s24 + $0x40] sm:$0xff]   ;;  %v2889_v27 = vld [vmem:[%s2988_s24 + $0x108] sm:$0xff]  }
  0x15   : > { %2644 = vmatprep.subr.bf16.mxu0 %v2930_v0  ;;  %2848 = vmatprep.subr.bf16.mxu1 %v2930_v0  ;;  %v2890_v28 = vld [vmem:[%s2988_s24 + $0x48] sm:$0xff]   ;;  %v2891_v29 = vld [vmem:[%s2988_s24 + $0x110] sm:$0xff]   ;;  %v2893_v31 = vld [vmem:[%s2988_s24 + $0x118] sm:$0xff]  }
  0x16   : > { %v2892_v30 = vld [vmem:[%s2988_s24 + $0x50] sm:$0xff]   ;;  %v2894_v32 = vld [vmem:[%s2988_s24 + $0x58] sm:$0xff]   ;;  %v2895_v33 = vld [vmem:[%s2988_s24 + $0x120] sm:$0xff]  }
  0x17   : > { %v2896_v34 = vld [vmem:[%s2988_s24 + $0x60] sm:$0xff]   ;;  %v2897_v35 = vld [vmem:[%s2988_s24 + $0x128] sm:$0xff]   ;;  %v2899_v37 = vld [vmem:[%s2988_s24 + $0x130] sm:$0xff]  }
  0x18   : > { %2645 = vmatpush3.bf16.msra.mxu0 %v2869_v7  ;;  %2853 = vmatpush3.bf16.msra.mxu1 %v2869_v7  ;;  %v2898_v36 = vld [vmem:[%s2988_s24 + $0x68] sm:$0xff]   ;;  %v2900_v38 = vld [vmem:[%s2988_s24 + $0x70] sm:$0xff]   ;;  %v2901_v39 = vld [vmem:[%s2988_s24 + $0x138] sm:$0xff]  }
  0x19   : > { %2646 = vmatprep.subr.bf16.mxu0 %v2930_v0  ;;  %2849 = vmatprep.subr.bf16.mxu1 %v2930_v0  ;;  %v2902_v40 = vld [vmem:[%s2988_s24 + $0x78] sm:$0xff]   ;;  %v2903_v41 = vld [vmem:[%s2988_s24 + $0x140] sm:$0xff]   ;;  %v2905_v43 = vld [vmem:[%s2988_s24 + $0x148] sm:$0xff]  }
  0x1a   : > { %v2904_v42 = vld [vmem:[%s2988_s24 + $0x80] sm:$0xff]   ;;  %v2906_v44 = vld [vmem:[%s2988_s24 + $0x88] sm:$0xff]   ;;  %v2907_v45 = vld [vmem:[%s2988_s24 + $0x150] sm:$0xff]  }
  0x1b   : > { %v2908_v46 = vld [vmem:[%s2988_s24 + $0x90] sm:$0xff]   ;;  %v2909_v47 = vld [vmem:[%s2988_s24 + $0x158] sm:$0xff]   ;;  %v2911_v49 = vld [vmem:[%s2988_s24 + $0x160] sm:$0xff]  }
  0x1c   : > { %2647 = vmatpush3.bf16.msra.mxu0 %v2870_v8  ;;  %2854 = vmatpush3.bf16.msra.mxu1 %v2870_v8  ;;  %v2910_v48 = vld [vmem:[%s2988_s24 + $0x98] sm:$0xff]   ;;  %v2912_v50 = vld [vmem:[%s2988_s24 + $0xa0] sm:$0xff]   ;;  %v2913_v51 = vld [vmem:[%s2988_s24 + $0x168] sm:$0xff]  }
  0x1d   : > { %2648 = vmatprep.subr.bf16.mxu0 %v2930_v0  ;;  %2850 = vmatprep.subr.bf16.mxu1 %v2930_v0  ;;  %v2914_v52 = vld [vmem:[%s2988_s24 + $0xa8] sm:$0xff]   ;;  %v2915_v53 = vld [vmem:[%s2988_s24 + $0x170] sm:$0xff]   ;;  %v2917_v55 = vld [vmem:[%s2988_s24 + $0x178] sm:$0xff]  }
  0x1e   : > { %v2916_v54 = vld [vmem:[%s2988_s24 + $0xb0] sm:$0xff]   ;;  %v2918_v56 = vld [vmem:[%s2988_s24 + $0xb8] sm:$0xff]   ;;  %v2919_v57 = vld [vmem:[%s2988_s24 + $0x180] sm:$0xff]  }
  0x1f   : > { %v2920_v58 = vld [vmem:[%s2988_s24 + $0xc0] sm:$0xff]  }
  0x20   : > { %2649 = vmatpush3.bf16.msra.mxu0 %v2871_v9  ;;  %2855 = vmatpush3.bf16.msra.mxu1 %v2871_v9 }
  0x23   : > { %2651 = vmatmul.mubr.msk.bf16.vlgmr.msra.gmra.mxu0 %vm564_vm3, %v2872_v10  ;;  %2751 = vmatmul.mubr.msk.bf16.vlgmr.msra.gmra.mxu1 %vm564_vm3, %v2873_v11 }
  0x24   : > { %2654 = vmatprep.mubr.msk.bf16.mxu0 %vm2932_vm2, %v2930_v0  ;;  %2754 = vmatprep.mubr.msk.bf16.mxu1 %vm2932_vm2, %v2930_v0 }
  0x2b   : > { %2655 = vmatmul.mubr.msk.bf16.gmra.mxu0 %vm564_vm3, %v2874_v12  ;;  %2755 = vmatmul.mubr.msk.bf16.gmra.mxu1 %vm564_vm3, %v2875_v13 }
  0x2c   : > { %2658 = vmatprep.mubr.msk.bf16.mxu0 %vm2932_vm2, %v2930_v0  ;;  %2758 = vmatprep.mubr.msk.bf16.mxu1 %vm2932_vm2, %v2930_v0 }
  0x33   : > { %2659 = vmatmul.mubr.msk.bf16.gmra.mxu0 %vm564_vm3, %v2876_v14  ;;  %2759 = vmatmul.mubr.msk.bf16.gmra.mxu1 %vm564_vm3, %v2877_v15 }
  0x34   : > { %2662 = vmatprep.mubr.msk.bf16.mxu0 %vm2932_vm2, %v2930_v0  ;;  %2762 = vmatprep.mubr.msk.bf16.mxu1 %vm2932_vm2, %v2930_v0 }
  0x3b   : > { %2663 = vmatmul.mubr.msk.bf16.gmra.mxu0 %vm564_vm3, %v2878_v16  ;;  %2763 = vmatmul.mubr.msk.bf16.gmra.mxu1 %vm564_vm3, %v2879_v17 }
  0x3c   : > { %2666 = vmatprep.mubr.msk.bf16.mxu0 %vm2932_vm2, %v2930_v0  ;;  %2766 = vmatprep.mubr.msk.bf16.mxu1 %vm2932_vm2, %v2930_v0 }
  0x43   : > { %2667 = vmatmul.mubr.msk.bf16.gmra.mxu0 %vm564_vm3, %v2880_v18  ;;  %2767 = vmatmul.mubr.msk.bf16.gmra.mxu1 %vm564_vm3, %v2881_v19 }
  0x44   : > { %2670 = vmatprep.mubr.msk.bf16.mxu0 %vm2932_vm2, %v2930_v0  ;;  %2770 = vmatprep.mubr.msk.bf16.mxu1 %vm2932_vm2, %v2930_v0 }
  0x4b   : > { %2671 = vmatmul.mubr.msk.bf16.gmra.mxu0 %vm564_vm3, %v2882_v20  ;;  %2771 = vmatmul.mubr.msk.bf16.gmra.mxu1 %vm564_vm3, %v2883_v21 }
  0x4c   : > { %2674 = vmatprep.mubr.msk.bf16.mxu0 %vm2932_vm2, %v2930_v0  ;;  %2774 = vmatprep.mubr.msk.bf16.mxu1 %vm2932_vm2, %v2930_v0 }
  0x53   : > { %2675 = vmatmul.mubr.msk.bf16.gmra.mxu0 %vm564_vm3, %v2884_v22  ;;  %2775 = vmatmul.mubr.msk.bf16.gmra.mxu1 %vm564_vm3, %v2885_v23 }
  0x54   : > { %2678 = vmatprep.mubr.msk.bf16.mxu0 %vm2932_vm2, %v2930_v0  ;;  %2778 = vmatprep.mubr.msk.bf16.mxu1 %vm2932_vm2, %v2930_v0 }
  0x5b   : > { %2679 = vmatmul.mubr.msk.bf16.gmra.mxu0 %vm564_vm3, %v2886_v24  ;;  %2779 = vmatmul.mubr.msk.bf16.gmra.mxu1 %vm564_vm3, %v2887_v25 }
  0x5c   : > { %2682 = vmatprep.mubr.msk.bf16.mxu0 %vm2932_vm2, %v2930_v0  ;;  %2782 = vmatprep.mubr.msk.bf16.mxu1 %vm2932_vm2, %v2930_v0 }
  0x63   : > { %2683 = vmatmul.mubr.msk.bf16.gmra.mxu0 %vm564_vm3, %v2888_v26  ;;  %2783 = vmatmul.mubr.msk.bf16.gmra.mxu1 %vm564_vm3, %v2889_v27 }
  0x64   : > { %2686 = vmatprep.mubr.msk.bf16.mxu0 %vm2932_vm2, %v2930_v0  ;;  %2786 = vmatprep.mubr.msk.bf16.mxu1 %vm2932_vm2, %v2930_v0 }
  0x6b   : > { %2687 = vmatmul.mubr.msk.bf16.gmra.mxu0 %vm564_vm3, %v2890_v28  ;;  %2787 = vmatmul.mubr.msk.bf16.gmra.mxu1 %vm564_vm3, %v2891_v29 }
  0x6c   : > { %2690 = vmatprep.mubr.msk.bf16.mxu0 %vm2932_vm2, %v2930_v0  ;;  %2790 = vmatprep.mubr.msk.bf16.mxu1 %vm2932_vm2, %v2930_v0 }
  0x73   : > { %2691 = vmatmul.mubr.msk.bf16.gmra.mxu0 %vm564_vm3, %v2892_v30  ;;  %2791 = vmatmul.mubr.msk.bf16.gmra.mxu1 %vm564_vm3, %v2893_v31 }
  0x74   : > { %2694 = vmatprep.mubr.msk.bf16.mxu0 %vm2932_vm2, %v2930_v0  ;;  %2794 = vmatprep.mubr.msk.bf16.mxu1 %vm2932_vm2, %v2930_v0 }
  0x7b   : > { %2695 = vmatmul.mubr.msk.bf16.gmra.mxu0 %vm564_vm3, %v2894_v32  ;;  %2795 = vmatmul.mubr.msk.bf16.gmra.mxu1 %vm564_vm3, %v2895_v33 }
  0x7c   : > { %2698 = vmatprep.mubr.msk.bf16.mxu0 %vm2932_vm2, %v2930_v0  ;;  %2798 = vmatprep.mubr.msk.bf16.mxu1 %vm2932_vm2, %v2930_v0 }
  0x83   : > { %2699 = vmatmul.mubr.msk.bf16.gmra.mxu0 %vm564_vm3, %v2896_v34  ;;  %2799 = vmatmul.mubr.msk.bf16.gmra.mxu1 %vm564_vm3, %v2897_v35 }
  0x84   : > { %2702 = vmatprep.mubr.msk.bf16.mxu0 %vm2932_vm2, %v2930_v0  ;;  %2802 = vmatprep.mubr.msk.bf16.mxu1 %vm2932_vm2, %v2930_v0 }
  0x8b   : > { %2703 = vmatmul.mubr.msk.bf16.gmra.mxu0 %vm564_vm3, %v2898_v36  ;;  %2803 = vmatmul.mubr.msk.bf16.gmra.mxu1 %vm564_vm3, %v2899_v37 }
  0x8c   : > { %2706 = vmatprep.mubr.msk.bf16.mxu0 %vm2932_vm2, %v2930_v0  ;;  %2806 = vmatprep.mubr.msk.bf16.mxu1 %vm2932_vm2, %v2930_v0 }
  0x93   : > { %2707 = vmatmul.mubr.msk.bf16.gmra.mxu0 %vm564_vm3, %v2900_v38  ;;  %2807 = vmatmul.mubr.msk.bf16.gmra.mxu1 %vm564_vm3, %v2901_v39 }
  0x94   : > { %2710 = vmatprep.mubr.msk.bf16.mxu0 %vm2932_vm2, %v2930_v0  ;;  %2810 = vmatprep.mubr.msk.bf16.mxu1 %vm2932_vm2, %v2930_v0 }
  0x9b   : > { %2711 = vmatmul.mubr.msk.bf16.gmra.mxu0 %vm564_vm3, %v2902_v40  ;;  %2811 = vmatmul.mubr.msk.bf16.gmra.mxu1 %vm564_vm3, %v2903_v41 }
  0x9c   : > { %2714 = vmatprep.mubr.msk.bf16.mxu0 %vm2932_vm2, %v2930_v0  ;;  %2814 = vmatprep.mubr.msk.bf16.mxu1 %vm2932_vm2, %v2930_v0 }
  0xa3   : > { %2715 = vmatmul.mubr.msk.bf16.gmra.mxu0 %vm564_vm3, %v2904_v42  ;;  %2815 = vmatmul.mubr.msk.bf16.gmra.mxu1 %vm564_vm3, %v2905_v43 }
  0xa4   : > { %2718 = vmatprep.mubr.msk.bf16.mxu0 %vm2932_vm2, %v2930_v0  ;;  %2818 = vmatprep.mubr.msk.bf16.mxu1 %vm2932_vm2, %v2930_v0 }
  0xab   : > { %2719 = vmatmul.mubr.msk.bf16.gmra.mxu0 %vm564_vm3, %v2906_v44  ;;  %2819 = vmatmul.mubr.msk.bf16.gmra.mxu1 %vm564_vm3, %v2907_v45 }
  0xac   : > { %2722 = vmatprep.mubr.msk.bf16.mxu0 %vm2932_vm2, %v2930_v0  ;;  %2822 = vmatprep.mubr.msk.bf16.mxu1 %vm2932_vm2, %v2930_v0 }
  0xb3   : > { %2723 = vmatmul.mubr.msk.bf16.gmra.mxu0 %vm564_vm3, %v2908_v46  ;;  %2823 = vmatmul.mubr.msk.bf16.gmra.mxu1 %vm564_vm3, %v2909_v47 }
  0xb4   : > { %2726 = vmatprep.mubr.msk.bf16.mxu0 %vm2932_vm2, %v2930_v0  ;;  %2826 = vmatprep.mubr.msk.bf16.mxu1 %vm2932_vm2, %v2930_v0 }
  0xbb   : > { %2727 = vmatmul.mubr.msk.bf16.gmra.mxu0 %vm564_vm3, %v2910_v48  ;;  %2827 = vmatmul.mubr.msk.bf16.gmra.mxu1 %vm564_vm3, %v2911_v49 }
  0xbc   : > { %2730 = vmatprep.mubr.msk.bf16.mxu0 %vm2932_vm2, %v2930_v0  ;;  %2830 = vmatprep.mubr.msk.bf16.mxu1 %vm2932_vm2, %v2930_v0 }
  0xc3   : > { %2731 = vmatmul.mubr.msk.bf16.gmra.mxu0 %vm564_vm3, %v2912_v50  ;;  %2831 = vmatmul.mubr.msk.bf16.gmra.mxu1 %vm564_vm3, %v2913_v51 }
  0xc4   : > { %2734 = vmatprep.mubr.msk.bf16.mxu0 %vm2932_vm2, %v2930_v0  ;;  %2834 = vmatprep.mubr.msk.bf16.mxu1 %vm2932_vm2, %v2930_v0 }
  0xcb   : > { %2735 = vmatmul.mubr.msk.bf16.gmra.mxu0 %vm564_vm3, %v2914_v52  ;;  %2835 = vmatmul.mubr.msk.bf16.gmra.mxu1 %vm564_vm3, %v2915_v53 }
  0xcc   : > { %2738 = vmatprep.mubr.msk.bf16.mxu0 %vm2932_vm2, %v2930_v0  ;;  %2838 = vmatprep.mubr.msk.bf16.mxu1 %vm2932_vm2, %v2930_v0 }
  0xd3   : > { %2739 = vmatmul.mubr.msk.bf16.gmra.mxu0 %vm564_vm3, %v2916_v54  ;;  %2839 = vmatmul.mubr.msk.bf16.gmra.mxu1 %vm564_vm3, %v2917_v55 }
  0xd4   : > { %2742 = vmatprep.mubr.msk.bf16.mxu0 %vm2932_vm2, %v2930_v0  ;;  %2842 = vmatprep.mubr.msk.bf16.mxu1 %vm2932_vm2, %v2930_v0 }
  0xdb   : > { %2743 = vmatmul.mubr.msk.bf16.gmra.mxu0 %vm564_vm3, %v2918_v56  ;;  %2843 = vmatmul.mubr.msk.bf16.gmra.mxu1 %vm564_vm3, %v2919_v57 }
  0xdc   : > { %2746 = vmatprep.mubr.msk.bf16.mxu0 %vm2932_vm2, %v2930_v0 }
  0xe3   : > { %v753_v60 = vpop.f32.mrf.mxu0  ;;  %2747 = vmatmul.mubr.msk.bf16.gmra.mxu0 %vm564_vm3, %v2920_v58  ;;  %v953_v61 = vpop.f32.mrf.mxu1 }
  0xe4   : > { %v754_v62 = vadd.f32 %v3194_v59, %v753_v60  ;;  %v954_v63 = vadd.f32 %v3194_v59, %v953_v61 }
  0xe5   : > { %v2652_v1 = vpop.f32.mrf.mxu0  ;;  %v2752_v2 = vpop.f32.mrf.mxu1 }
  0xe6   : > { %vm1194_vm4 = vcmp.ge.f32.partialorder %v954_v63, 0.0  ;;  %v1292_v3 = vmul.f32 0.01, %v954_v63  ;;  %v1242_v4 = vmul.f32 0.01, %v754_v62  ;;  %vm1144_vm5 = vcmp.ge.f32.partialorder %v754_v62, 0.0 }
  0xe7   : > { %v756_v0 = vpop.f32.mrf.mxu0  ;;  %v956_v5 = vpop.f32.mrf.mxu1 }
  0xe8   : > { %v757_v6 = vadd.f32 %v3194_v59, %v756_v0  ;;  %v957_v7 = vadd.f32 %v3194_v59, %v956_v5  ;;  %v1390_v8 = vsel %vm1194_vm4, %v954_v63, %v1292_v3  ;;  %v1340_v13 = vsel %vm1144_vm5, %v754_v62, %v1242_v4 }
  0xe9   : > { %v2653_v9 = vpop.f32.mrf.mxu0  ;;  %v2753_v10 = vpop.f32.mrf.mxu1 }
  0xea   : > { %vm1145_vm6 = vcmp.ge.f32.partialorder %v757_v6, 0.0  ;;  %v1243_v11 = vmul.f32 0.01, %v757_v6  ;;  %vm1195_vm7 = vcmp.ge.f32.partialorder %v957_v7, 0.0  ;;  %v1293_v12 = vmul.f32 0.01, %v957_v7 }
  0xeb   : > { %v761_v14 = vpop.f32.mrf.mxu0  ;;  %v961_v15 = vpop.f32.mrf.mxu1 }
  0xec   : > { %v1341_v16 = vsel %vm1145_vm6, %v757_v6, %v1243_v11  ;;  %v1391_v17 = vsel %vm1195_vm7, %v957_v7, %v1293_v12  ;;  %v762_v18 = vadd.f32 %v3194_v59, %v761_v14  ;;  %v962_v19 = vadd.f32 %v3194_v59, %v961_v15 }
  0xed   : > { %v2296_v20 = vpack.c.bf16 %v1341_v16, %v1340_v13  ;;  %v2421_v21 = vpack.c.bf16 %v1391_v17, %v1390_v8  ;;  %v2656_v22 = vpop.f32.mrf.mxu0  ;;  %v2756_v23 = vpop.f32.mrf.mxu1 }
  0xee   : > { %vm1196_vm8 = vcmp.ge.f32.partialorder %v962_v19, 0.0  ;;  %v1294_v24 = vmul.f32 0.01, %v962_v19  ;;  %v1244_v25 = vmul.f32 0.01, %v762_v18  ;;  %vm1146_vm9 = vcmp.ge.f32.partialorder %v762_v18, 0.0 }
  0xef   : > { %2297 = vst [vmem:[%s3206_s6] sm:$0xff] %v2296_v20   ;;  %2562 = vst [vmem:[%s3206_s6 + $0xc8] sm:$0xff] %v2421_v21   ;;  %v764_v26 = vpop.f32.mrf.mxu0  ;;  %v964_v27 = vpop.f32.mrf.mxu1 }
  0xf0   : > { %v765_v28 = vadd.f32 %v3194_v59, %v764_v26  ;;  %v965_v29 = vadd.f32 %v3194_v59, %v964_v27  ;;  %v1392_v30 = vsel %vm1196_vm8, %v962_v19, %v1294_v24  ;;  %v1342_v35 = vsel %vm1146_vm9, %v762_v18, %v1244_v25 }
  0xf1   : > { %v2657_v31 = vpop.f32.mrf.mxu0  ;;  %v2757_v32 = vpop.f32.mrf.mxu1 }
  0xf2   : > { %vm1147_vm10 = vcmp.ge.f32.partialorder %v765_v28, 0.0  ;;  %v1245_v33 = vmul.f32 0.01, %v765_v28  ;;  %vm1197_vm11 = vcmp.ge.f32.partialorder %v965_v29, 0.0  ;;  %v1295_v34 = vmul.f32 0.01, %v965_v29 }
  0xf3   : > { %v769_v36 = vpop.f32.mrf.mxu0  ;;  %v969_v37 = vpop.f32.mrf.mxu1 }
  0xf4   : > { %v1343_v38 = vsel %vm1147_vm10, %v765_v28, %v1245_v33  ;;  %v1393_v39 = vsel %vm1197_vm11, %v965_v29, %v1295_v34  ;;  %v770_v40 = vadd.f32 %v3194_v59, %v769_v36  ;;  %v970_v41 = vadd.f32 %v3194_v59, %v969_v37 }
  0xf5   : > { %v2301_v42 = vpack.c.bf16 %v1343_v38, %v1342_v35  ;;  %v2426_v43 = vpack.c.bf16 %v1393_v39, %v1392_v30  ;;  %v2660_v44 = vpop.f32.mrf.mxu0  ;;  %v2760_v45 = vpop.f32.mrf.mxu1 }
  0xf6   : > { %vm1198_vm12 = vcmp.ge.f32.partialorder %v970_v41, 0.0  ;;  %v1296_v46 = vmul.f32 0.01, %v970_v41  ;;  %v1246_v47 = vmul.f32 0.01, %v770_v40  ;;  %vm1148_vm13 = vcmp.ge.f32.partialorder %v770_v40, 0.0 }
  0xf7   : > { %2538 = vst [vmem:[%s3206_s6 + $0x8] sm:$0xff] %v2301_v42   ;;  %2563 = vst [vmem:[%s3206_s6 + $0xd0] sm:$0xff] %v2426_v43   ;;  %v772_v48 = vpop.f32.mrf.mxu0  ;;  %v972_v49 = vpop.f32.mrf.mxu1 }
  0xf8   : > { %v773_v50 = vadd.f32 %v3194_v59, %v772_v48  ;;  %v973_v51 = vadd.f32 %v3194_v59, %v972_v49  ;;  %v1394_v52 = vsel %vm1198_vm12, %v970_v41, %v1296_v46  ;;  %v1344_v57 = vsel %vm1148_vm13, %v770_v40, %v1246_v47 }
  0xf9   : > { %v2661_v53 = vpop.f32.mrf.mxu0  ;;  %v2761_v54 = vpop.f32.mrf.mxu1 }
  0xfa   : > { %vm1149_vm14 = vcmp.ge.f32.partialorder %v773_v50, 0.0  ;;  %v1247_v55 = vmul.f32 0.01, %v773_v50  ;;  %vm1199_vm15 = vcmp.ge.f32.partialorder %v973_v51, 0.0  ;;  %v1297_v56 = vmul.f32 0.01, %v973_v51 }
  0xfb   : > { %v777_v58 = vpop.f32.mrf.mxu0  ;;  %v977_v60 = vpop.f32.mrf.mxu1 }
  0xfc   : > { %v1345_v61 = vsel %vm1149_vm14, %v773_v50, %v1247_v55  ;;  %v1395_v62 = vsel %vm1199_vm15, %v973_v51, %v1297_v56  ;;  %v778_v63 = vadd.f32 %v3194_v59, %v777_v58  ;;  %v978_v1 = vadd.f32 %v3194_v59, %v977_v60 }
  0xfd   : > { %v2306_v2 = vpack.c.bf16 %v1345_v61, %v1344_v57  ;;  %v2431_v3 = vpack.c.bf16 %v1395_v62, %v1394_v52  ;;  %v2664_v4 = vpop.f32.mrf.mxu0  ;;  %v2764_v0 = vpop.f32.mrf.mxu1 }
  0xfe   : > { %vm1200_vm0 = vcmp.ge.f32.partialorder %v978_v1, 0.0  ;;  %v1298_v5 = vmul.f32 0.01, %v978_v1  ;;  %v1248_v6 = vmul.f32 0.01, %v778_v63  ;;  %vm1150_vm1 = vcmp.ge.f32.partialorder %v778_v63, 0.0 }
  0xff   : > { %2539 = vst [vmem:[%s3206_s6 + $0x10] sm:$0xff] %v2306_v2   ;;  %2564 = vst [vmem:[%s3206_s6 + $0xd8] sm:$0xff] %v2431_v3   ;;  %v780_v7 = vpop.f32.mrf.mxu0  ;;  %v980_v8 = vpop.f32.mrf.mxu1 }
 0x100   : > { %v781_v9 = vadd.f32 %v3194_v59, %v780_v7  ;;  %v981_v10 = vadd.f32 %v3194_v59, %v980_v8  ;;  %v1396_v11 = vsel %vm1200_vm0, %v978_v1, %v1298_v5  ;;  %v1346_v16 = vsel %vm1150_vm1, %v778_v63, %v1248_v6 }
 0x101   : > { %v2665_v12 = vpop.f32.mrf.mxu0  ;;  %v2765_v13 = vpop.f32.mrf.mxu1 }
 0x102   : > { %vm1151_vm2 = vcmp.ge.f32.partialorder %v781_v9, 0.0  ;;  %v1249_v14 = vmul.f32 0.01, %v781_v9  ;;  %vm1201_vm3 = vcmp.ge.f32.partialorder %v981_v10, 0.0  ;;  %v1299_v15 = vmul.f32 0.01, %v981_v10 }
 0x103   : > { %v785_v17 = vpop.f32.mrf.mxu0  ;;  %v985_v18 = vpop.f32.mrf.mxu1 }
 0x104   : > { %v1347_v19 = vsel %vm1151_vm2, %v781_v9, %v1249_v14  ;;  %v1397_v20 = vsel %vm1201_vm3, %v981_v10, %v1299_v15  ;;  %v786_v21 = vadd.f32 %v3194_v59, %v785_v17  ;;  %v986_v22 = vadd.f32 %v3194_v59, %v985_v18 }
 0x105   : > { %v2311_v23 = vpack.c.bf16 %v1347_v19, %v1346_v16  ;;  %v2436_v24 = vpack.c.bf16 %v1397_v20, %v1396_v11  ;;  %v2668_v25 = vpop.f32.mrf.mxu0  ;;  %v2768_v26 = vpop.f32.mrf.mxu1 }
 0x106   : > { %vm1202_vm4 = vcmp.ge.f32.partialorder %v986_v22, 0.0  ;;  %v1300_v27 = vmul.f32 0.01, %v986_v22  ;;  %v1250_v28 = vmul.f32 0.01, %v786_v21  ;;  %vm1152_vm5 = vcmp.ge.f32.partialorder %v786_v21, 0.0 }
 0x107   : > { %2540 = vst [vmem:[%s3206_s6 + $0x18] sm:$0xff] %v2311_v23   ;;  %2565 = vst [vmem:[%s3206_s6 + $0xe0] sm:$0xff] %v2436_v24   ;;  %v788_v29 = vpop.f32.mrf.mxu0  ;;  %v988_v30 = vpop.f32.mrf.mxu1 }
 0x108   : > { %v789_v31 = vadd.f32 %v3194_v59, %v788_v29  ;;  %v989_v32 = vadd.f32 %v3194_v59, %v988_v30  ;;  %v1398_v33 = vsel %vm1202_vm4, %v986_v22, %v1300_v27  ;;  %v1348_v38 = vsel %vm1152_vm5, %v786_v21, %v1250_v28 }
 0x109   : > { %v2669_v34 = vpop.f32.mrf.mxu0  ;;  %v2769_v35 = vpop.f32.mrf.mxu1 }
 0x10a   : > { %vm1153_vm6 = vcmp.ge.f32.partialorder %v789_v31, 0.0  ;;  %v1251_v36 = vmul.f32 0.01, %v789_v31  ;;  %vm1203_vm7 = vcmp.ge.f32.partialorder %v989_v32, 0.0  ;;  %v1301_v37 = vmul.f32 0.01, %v989_v32 }
 0x10b   : > { %v793_v39 = vpop.f32.mrf.mxu0  ;;  %v993_v40 = vpop.f32.mrf.mxu1 }
 0x10c   : > { %v1349_v41 = vsel %vm1153_vm6, %v789_v31, %v1251_v36  ;;  %v1399_v42 = vsel %vm1203_vm7, %v989_v32, %v1301_v37  ;;  %v794_v43 = vadd.f32 %v3194_v59, %v793_v39  ;;  %v994_v44 = vadd.f32 %v3194_v59, %v993_v40 }
 0x10d   : > { %v2316_v45 = vpack.c.bf16 %v1349_v41, %v1348_v38  ;;  %v2441_v46 = vpack.c.bf16 %v1399_v42, %v1398_v33  ;;  %v2672_v47 = vpop.f32.mrf.mxu0  ;;  %v2772_v48 = vpop.f32.mrf.mxu1 }
 0x10e   : > { %vm1204_vm8 = vcmp.ge.f32.partialorder %v994_v44, 0.0  ;;  %v1302_v49 = vmul.f32 0.01, %v994_v44  ;;  %v1252_v50 = vmul.f32 0.01, %v794_v43  ;;  %vm1154_vm9 = vcmp.ge.f32.partialorder %v794_v43, 0.0 }
 0x10f   : > { %2541 = vst [vmem:[%s3206_s6 + $0x20] sm:$0xff] %v2316_v45   ;;  %2566 = vst [vmem:[%s3206_s6 + $0xe8] sm:$0xff] %v2441_v46   ;;  %v796_v51 = vpop.f32.mrf.mxu0  ;;  %v996_v52 = vpop.f32.mrf.mxu1 }
 0x110   : > { %v797_v53 = vadd.f32 %v3194_v59, %v796_v51  ;;  %v997_v54 = vadd.f32 %v3194_v59, %v996_v52  ;;  %v1400_v55 = vsel %vm1204_vm8, %v994_v44, %v1302_v49  ;;  %v1350_v61 = vsel %vm1154_vm9, %v794_v43, %v1252_v50 }
 0x111   : > { %v2673_v56 = vpop.f32.mrf.mxu0  ;;  %v2773_v57 = vpop.f32.mrf.mxu1 }
 0x112   : > { %vm1155_vm10 = vcmp.ge.f32.partialorder %v797_v53, 0.0  ;;  %v1253_v58 = vmul.f32 0.01, %v797_v53  ;;  %vm1205_vm11 = vcmp.ge.f32.partialorder %v997_v54, 0.0  ;;  %v1303_v60 = vmul.f32 0.01, %v997_v54 }
 0x113   : > { %v801_v62 = vpop.f32.mrf.mxu0  ;;  %v1001_v63 = vpop.f32.mrf.mxu1 }
 0x114   : > { %v1351_v1 = vsel %vm1155_vm10, %v797_v53, %v1253_v58  ;;  %v1401_v2 = vsel %vm1205_vm11, %v997_v54, %v1303_v60  ;;  %v802_v3 = vadd.f32 %v3194_v59, %v801_v62  ;;  %v1002_v4 = vadd.f32 %v3194_v59, %v1001_v63 }
 0x115   : > { %v2321_v0 = vpack.c.bf16 %v1351_v1, %v1350_v61  ;;  %v2446_v5 = vpack.c.bf16 %v1401_v2, %v1400_v55  ;;  %v2676_v6 = vpop.f32.mrf.mxu0  ;;  %v2776_v7 = vpop.f32.mrf.mxu1 }
 0x116   : > { %vm1206_vm12 = vcmp.ge.f32.partialorder %v1002_v4, 0.0  ;;  %v1304_v8 = vmul.f32 0.01, %v1002_v4  ;;  %v1254_v9 = vmul.f32 0.01, %v802_v3  ;;  %vm1156_vm13 = vcmp.ge.f32.partialorder %v802_v3, 0.0 }
 0x117   : > { %2542 = vst [vmem:[%s3206_s6 + $0x28] sm:$0xff] %v2321_v0   ;;  %2567 = vst [vmem:[%s3206_s6 + $0xf0] sm:$0xff] %v2446_v5   ;;  %v804_v10 = vpop.f32.mrf.mxu0  ;;  %v1004_v11 = vpop.f32.mrf.mxu1 }
 0x118   : > { %v805_v12 = vadd.f32 %v3194_v59, %v804_v10  ;;  %v1005_v13 = vadd.f32 %v3194_v59, %v1004_v11  ;;  %v1402_v14 = vsel %vm1206_vm12, %v1002_v4, %v1304_v8  ;;  %v1352_v19 = vsel %vm1156_vm13, %v802_v3, %v1254_v9 }
 0x119   : > { %v2677_v15 = vpop.f32.mrf.mxu0  ;;  %v2777_v16 = vpop.f32.mrf.mxu1 }
 0x11a   : > { %vm1157_vm14 = vcmp.ge.f32.partialorder %v805_v12, 0.0  ;;  %v1255_v17 = vmul.f32 0.01, %v805_v12  ;;  %vm1207_vm15 = vcmp.ge.f32.partialorder %v1005_v13, 0.0  ;;  %v1305_v18 = vmul.f32 0.01, %v1005_v13 }
 0x11b   : > { %v809_v20 = vpop.f32.mrf.mxu0  ;;  %v1009_v21 = vpop.f32.mrf.mxu1 }
 0x11c   : > { %v1353_v22 = vsel %vm1157_vm14, %v805_v12, %v1255_v17  ;;  %v1403_v23 = vsel %vm1207_vm15, %v1005_v13, %v1305_v18  ;;  %v810_v24 = vadd.f32 %v3194_v59, %v809_v20  ;;  %v1010_v25 = vadd.f32 %v3194_v59, %v1009_v21 }
 0x11d   : > { %v2326_v26 = vpack.c.bf16 %v1353_v22, %v1352_v19  ;;  %v2451_v27 = vpack.c.bf16 %v1403_v23, %v1402_v14  ;;  %v2680_v28 = vpop.f32.mrf.mxu0  ;;  %v2780_v29 = vpop.f32.mrf.mxu1 }
 0x11e   : > { %vm1208_vm0 = vcmp.ge.f32.partialorder %v1010_v25, 0.0  ;;  %v1306_v30 = vmul.f32 0.01, %v1010_v25  ;;  %v1256_v31 = vmul.f32 0.01, %v810_v24  ;;  %vm1158_vm1 = vcmp.ge.f32.partialorder %v810_v24, 0.0 }
 0x11f   : > { %2543 = vst [vmem:[%s3206_s6 + $0x30] sm:$0xff] %v2326_v26   ;;  %2568 = vst [vmem:[%s3206_s6 + $0xf8] sm:$0xff] %v2451_v27   ;;  %v812_v32 = vpop.f32.mrf.mxu0  ;;  %v1012_v33 = vpop.f32.mrf.mxu1 }
 0x120   : > { %v813_v34 = vadd.f32 %v3194_v59, %v812_v32  ;;  %v1013_v35 = vadd.f32 %v3194_v59, %v1012_v33  ;;  %v1404_v36 = vsel %vm1208_vm0, %v1010_v25, %v1306_v30  ;;  %v1354_v41 = vsel %vm1158_vm1, %v810_v24, %v1256_v31 }
 0x121   : > { %v2681_v37 = vpop.f32.mrf.mxu0  ;;  %v2781_v38 = vpop.f32.mrf.mxu1 }
 0x122   : > { %vm1159_vm2 = vcmp.ge.f32.partialorder %v813_v34, 0.0  ;;  %v1257_v39 = vmul.f32 0.01, %v813_v34  ;;  %vm1209_vm3 = vcmp.ge.f32.partialorder %v1013_v35, 0.0  ;;  %v1307_v40 = vmul.f32 0.01, %v1013_v35 }
 0x123   : > { %v817_v42 = vpop.f32.mrf.mxu0  ;;  %v1017_v43 = vpop.f32.mrf.mxu1 }
 0x124   : > { %v1355_v44 = vsel %vm1159_vm2, %v813_v34, %v1257_v39  ;;  %v1405_v45 = vsel %vm1209_vm3, %v1013_v35, %v1307_v40  ;;  %v818_v46 = vadd.f32 %v3194_v59, %v817_v42  ;;  %v1018_v47 = vadd.f32 %v3194_v59, %v1017_v43 }
 0x125   : > { %v2331_v48 = vpack.c.bf16 %v1355_v44, %v1354_v41  ;;  %v2456_v49 = vpack.c.bf16 %v1405_v45, %v1404_v36  ;;  %v2684_v50 = vpop.f32.mrf.mxu0  ;;  %v2784_v51 = vpop.f32.mrf.mxu1 }
 0x126   : > { %vm1210_vm4 = vcmp.ge.f32.partialorder %v1018_v47, 0.0  ;;  %v1308_v52 = vmul.f32 0.01, %v1018_v47  ;;  %v1258_v53 = vmul.f32 0.01, %v818_v46  ;;  %vm1160_vm5 = vcmp.ge.f32.partialorder %v818_v46, 0.0 }
 0x127   : > { %2544 = vst [vmem:[%s3206_s6 + $0x38] sm:$0xff] %v2331_v48   ;;  %2569 = vst [vmem:[%s3206_s6 + $0x100] sm:$0xff] %v2456_v49   ;;  %v820_v54 = vpop.f32.mrf.mxu0  ;;  %v1020_v55 = vpop.f32.mrf.mxu1 }
 0x128   : > { %v821_v56 = vadd.f32 %v3194_v59, %v820_v54  ;;  %v1021_v57 = vadd.f32 %v3194_v59, %v1020_v55  ;;  %v1406_v58 = vsel %vm1210_vm4, %v1018_v47, %v1308_v52  ;;  %v1356_v1 = vsel %vm1160_vm5, %v818_v46, %v1258_v53 }
 0x129   : > { %v2685_v60 = vpop.f32.mrf.mxu0  ;;  %v2785_v61 = vpop.f32.mrf.mxu1 }
 0x12a   : > { %vm1161_vm6 = vcmp.ge.f32.partialorder %v821_v56, 0.0  ;;  %v1259_v62 = vmul.f32 0.01, %v821_v56  ;;  %vm1211_vm7 = vcmp.ge.f32.partialorder %v1021_v57, 0.0  ;;  %v1309_v63 = vmul.f32 0.01, %v1021_v57 }
 0x12b   : > { %v825_v2 = vpop.f32.mrf.mxu0  ;;  %v1025_v3 = vpop.f32.mrf.mxu1 }
 0x12c   : > { %v1357_v4 = vsel %vm1161_vm6, %v821_v56, %v1259_v62  ;;  %v1407_v0 = vsel %vm1211_vm7, %v1021_v57, %v1309_v63  ;;  %v826_v5 = vadd.f32 %v3194_v59, %v825_v2  ;;  %v1026_v6 = vadd.f32 %v3194_v59, %v1025_v3 }
 0x12d   : > { %v2336_v7 = vpack.c.bf16 %v1357_v4, %v1356_v1  ;;  %v2461_v8 = vpack.c.bf16 %v1407_v0, %v1406_v58  ;;  %v2688_v9 = vpop.f32.mrf.mxu0  ;;  %v2788_v10 = vpop.f32.mrf.mxu1 }
 0x12e   : > { %vm1212_vm8 = vcmp.ge.f32.partialorder %v1026_v6, 0.0  ;;  %v1310_v11 = vmul.f32 0.01, %v1026_v6  ;;  %v1260_v12 = vmul.f32 0.01, %v826_v5  ;;  %vm1162_vm9 = vcmp.ge.f32.partialorder %v826_v5, 0.0 }
 0x12f   : > { %2545 = vst [vmem:[%s3206_s6 + $0x40] sm:$0xff] %v2336_v7   ;;  %2570 = vst [vmem:[%s3206_s6 + $0x108] sm:$0xff] %v2461_v8   ;;  %v828_v13 = vpop.f32.mrf.mxu0  ;;  %v1028_v14 = vpop.f32.mrf.mxu1 }
 0x130   : > { %v829_v15 = vadd.f32 %v3194_v59, %v828_v13  ;;  %v1029_v16 = vadd.f32 %v3194_v59, %v1028_v14  ;;  %v1408_v17 = vsel %vm1212_vm8, %v1026_v6, %v1310_v11  ;;  %v1358_v22 = vsel %vm1162_vm9, %v826_v5, %v1260_v12 }
 0x131   : > { %v2689_v18 = vpop.f32.mrf.mxu0  ;;  %v2789_v19 = vpop.f32.mrf.mxu1 }
 0x132   : > { %vm1163_vm10 = vcmp.ge.f32.partialorder %v829_v15, 0.0  ;;  %v1261_v20 = vmul.f32 0.01, %v829_v15  ;;  %vm1213_vm11 = vcmp.ge.f32.partialorder %v1029_v16, 0.0  ;;  %v1311_v21 = vmul.f32 0.01, %v1029_v16 }
 0x133   : > { %v833_v23 = vpop.f32.mrf.mxu0  ;;  %v1033_v24 = vpop.f32.mrf.mxu1 }
 0x134   : > { %v1359_v25 = vsel %vm1163_vm10, %v829_v15, %v1261_v20  ;;  %v1409_v26 = vsel %vm1213_vm11, %v1029_v16, %v1311_v21  ;;  %v834_v27 = vadd.f32 %v3194_v59, %v833_v23  ;;  %v1034_v28 = vadd.f32 %v3194_v59, %v1033_v24 }
 0x135   : > { %v2341_v29 = vpack.c.bf16 %v1359_v25, %v1358_v22  ;;  %v2466_v30 = vpack.c.bf16 %v1409_v26, %v1408_v17  ;;  %v2692_v31 = vpop.f32.mrf.mxu0  ;;  %v2792_v32 = vpop.f32.mrf.mxu1 }
 0x136   : > { %vm1214_vm12 = vcmp.ge.f32.partialorder %v1034_v28, 0.0  ;;  %v1312_v33 = vmul.f32 0.01, %v1034_v28  ;;  %v1262_v34 = vmul.f32 0.01, %v834_v27  ;;  %vm1164_vm13 = vcmp.ge.f32.partialorder %v834_v27, 0.0 }
 0x137   : > { %2546 = vst [vmem:[%s3206_s6 + $0x48] sm:$0xff] %v2341_v29   ;;  %2571 = vst [vmem:[%s3206_s6 + $0x110] sm:$0xff] %v2466_v30   ;;  %v836_v35 = vpop.f32.mrf.mxu0  ;;  %v1036_v36 = vpop.f32.mrf.mxu1 }
 0x138   : > { %v837_v37 = vadd.f32 %v3194_v59, %v836_v35  ;;  %v1037_v38 = vadd.f32 %v3194_v59, %v1036_v36  ;;  %v1410_v39 = vsel %vm1214_vm12, %v1034_v28, %v1312_v33  ;;  %v1360_v44 = vsel %vm1164_vm13, %v834_v27, %v1262_v34 }
 0x139   : > { %v2693_v40 = vpop.f32.mrf.mxu0  ;;  %v2793_v41 = vpop.f32.mrf.mxu1 }
 0x13a   : > { %vm1165_vm14 = vcmp.ge.f32.partialorder %v837_v37, 0.0  ;;  %v1263_v42 = vmul.f32 0.01, %v837_v37  ;;  %vm1215_vm15 = vcmp.ge.f32.partialorder %v1037_v38, 0.0  ;;  %v1313_v43 = vmul.f32 0.01, %v1037_v38 }
 0x13b   : > { %v841_v45 = vpop.f32.mrf.mxu0  ;;  %v1041_v46 = vpop.f32.mrf.mxu1 }
 0x13c   : > { %v1361_v47 = vsel %vm1165_vm14, %v837_v37, %v1263_v42  ;;  %v1411_v48 = vsel %vm1215_vm15, %v1037_v38, %v1313_v43  ;;  %v842_v49 = vadd.f32 %v3194_v59, %v841_v45  ;;  %v1042_v50 = vadd.f32 %v3194_v59, %v1041_v46 }
 0x13d   : > { %v2346_v51 = vpack.c.bf16 %v1361_v47, %v1360_v44  ;;  %v2471_v52 = vpack.c.bf16 %v1411_v48, %v1410_v39  ;;  %v2696_v53 = vpop.f32.mrf.mxu0  ;;  %v2796_v54 = vpop.f32.mrf.mxu1 }
 0x13e   : > { %vm1216_vm0 = vcmp.ge.f32.partialorder %v1042_v50, 0.0  ;;  %v1314_v55 = vmul.f32 0.01, %v1042_v50  ;;  %v1264_v56 = vmul.f32 0.01, %v842_v49  ;;  %vm1166_vm1 = vcmp.ge.f32.partialorder %v842_v49, 0.0 }
 0x13f   : > { %2547 = vst [vmem:[%s3206_s6 + $0x50] sm:$0xff] %v2346_v51   ;;  %2572 = vst [vmem:[%s3206_s6 + $0x118] sm:$0xff] %v2471_v52   ;;  %v844_v57 = vpop.f32.mrf.mxu0  ;;  %v1044_v58 = vpop.f32.mrf.mxu1 }
 0x140   : > { %v845_v60 = vadd.f32 %v3194_v59, %v844_v57  ;;  %v1045_v61 = vadd.f32 %v3194_v59, %v1044_v58  ;;  %v1412_v62 = vsel %vm1216_vm0, %v1042_v50, %v1314_v55  ;;  %v1362_v4 = vsel %vm1166_vm1, %v842_v49, %v1264_v56 }
 0x141   : > { %v2697_v63 = vpop.f32.mrf.mxu0  ;;  %v2797_v1 = vpop.f32.mrf.mxu1 }
 0x142   : > { %vm1167_vm2 = vcmp.ge.f32.partialorder %v845_v60, 0.0  ;;  %v1265_v2 = vmul.f32 0.01, %v845_v60  ;;  %vm1217_vm3 = vcmp.ge.f32.partialorder %v1045_v61, 0.0  ;;  %v1315_v3 = vmul.f32 0.01, %v1045_v61 }
 0x143   : > { %v849_v0 = vpop.f32.mrf.mxu0  ;;  %v1049_v5 = vpop.f32.mrf.mxu1 }
 0x144   : > { %v1363_v6 = vsel %vm1167_vm2, %v845_v60, %v1265_v2  ;;  %v1413_v7 = vsel %vm1217_vm3, %v1045_v61, %v1315_v3  ;;  %v850_v8 = vadd.f32 %v3194_v59, %v849_v0  ;;  %v1050_v9 = vadd.f32 %v3194_v59, %v1049_v5 }
 0x145   : > { %v2351_v10 = vpack.c.bf16 %v1363_v6, %v1362_v4  ;;  %v2476_v11 = vpack.c.bf16 %v1413_v7, %v1412_v62  ;;  %v2700_v12 = vpop.f32.mrf.mxu0  ;;  %v2800_v13 = vpop.f32.mrf.mxu1 }
 0x146   : > { %vm1218_vm4 = vcmp.ge.f32.partialorder %v1050_v9, 0.0  ;;  %v1316_v14 = vmul.f32 0.01, %v1050_v9  ;;  %v1266_v15 = vmul.f32 0.01, %v850_v8  ;;  %vm1168_vm5 = vcmp.ge.f32.partialorder %v850_v8, 0.0 }
 0x147   : > { %2548 = vst [vmem:[%s3206_s6 + $0x58] sm:$0xff] %v2351_v10   ;;  %2573 = vst [vmem:[%s3206_s6 + $0x120] sm:$0xff] %v2476_v11   ;;  %v852_v16 = vpop.f32.mrf.mxu0  ;;  %v1052_v17 = vpop.f32.mrf.mxu1 }
 0x148   : > { %v853_v18 = vadd.f32 %v3194_v59, %v852_v16  ;;  %v1053_v19 = vadd.f32 %v3194_v59, %v1052_v17  ;;  %v1414_v20 = vsel %vm1218_vm4, %v1050_v9, %v1316_v14  ;;  %v1364_v25 = vsel %vm1168_vm5, %v850_v8, %v1266_v15 }
 0x149   : > { %v2701_v21 = vpop.f32.mrf.mxu0  ;;  %v2801_v22 = vpop.f32.mrf.mxu1 }
 0x14a   : > { %vm1169_vm6 = vcmp.ge.f32.partialorder %v853_v18, 0.0  ;;  %v1267_v23 = vmul.f32 0.01, %v853_v18  ;;  %vm1219_vm7 = vcmp.ge.f32.partialorder %v1053_v19, 0.0  ;;  %v1317_v24 = vmul.f32 0.01, %v1053_v19 }
 0x14b   : > { %v857_v26 = vpop.f32.mrf.mxu0  ;;  %v1057_v27 = vpop.f32.mrf.mxu1 }
 0x14c   : > { %v1365_v28 = vsel %vm1169_vm6, %v853_v18, %v1267_v23  ;;  %v1415_v29 = vsel %vm1219_vm7, %v1053_v19, %v1317_v24  ;;  %v858_v30 = vadd.f32 %v3194_v59, %v857_v26  ;;  %v1058_v31 = vadd.f32 %v3194_v59, %v1057_v27 }
 0x14d   : > { %v2356_v32 = vpack.c.bf16 %v1365_v28, %v1364_v25  ;;  %v2481_v33 = vpack.c.bf16 %v1415_v29, %v1414_v20  ;;  %v2704_v34 = vpop.f32.mrf.mxu0  ;;  %v2804_v35 = vpop.f32.mrf.mxu1 }
 0x14e   : > { %vm1220_vm8 = vcmp.ge.f32.partialorder %v1058_v31, 0.0  ;;  %v1318_v36 = vmul.f32 0.01, %v1058_v31  ;;  %v1268_v37 = vmul.f32 0.01, %v858_v30  ;;  %vm1170_vm9 = vcmp.ge.f32.partialorder %v858_v30, 0.0 }
 0x14f   : > { %2549 = vst [vmem:[%s3206_s6 + $0x60] sm:$0xff] %v2356_v32   ;;  %2574 = vst [vmem:[%s3206_s6 + $0x128] sm:$0xff] %v2481_v33   ;;  %v860_v38 = vpop.f32.mrf.mxu0  ;;  %v1060_v39 = vpop.f32.mrf.mxu1 }
 0x150   : > { %v861_v40 = vadd.f32 %v3194_v59, %v860_v38  ;;  %v1061_v41 = vadd.f32 %v3194_v59, %v1060_v39  ;;  %v1416_v42 = vsel %vm1220_vm8, %v1058_v31, %v1318_v36  ;;  %v1366_v47 = vsel %vm1170_vm9, %v858_v30, %v1268_v37 }
 0x151   : > { %v2705_v43 = vpop.f32.mrf.mxu0  ;;  %v2805_v44 = vpop.f32.mrf.mxu1 }
 0x152   : > { %vm1171_vm10 = vcmp.ge.f32.partialorder %v861_v40, 0.0  ;;  %v1269_v45 = vmul.f32 0.01, %v861_v40  ;;  %vm1221_vm11 = vcmp.ge.f32.partialorder %v1061_v41, 0.0  ;;  %v1319_v46 = vmul.f32 0.01, %v1061_v41 }
 0x153   : > { %v865_v48 = vpop.f32.mrf.mxu0  ;;  %v1065_v49 = vpop.f32.mrf.mxu1 }
 0x154   : > { %v1367_v50 = vsel %vm1171_vm10, %v861_v40, %v1269_v45  ;;  %v1417_v51 = vsel %vm1221_vm11, %v1061_v41, %v1319_v46  ;;  %v866_v52 = vadd.f32 %v3194_v59, %v865_v48  ;;  %v1066_v53 = vadd.f32 %v3194_v59, %v1065_v49 }
 0x155   : > { %v2361_v54 = vpack.c.bf16 %v1367_v50, %v1366_v47  ;;  %v2486_v55 = vpack.c.bf16 %v1417_v51, %v1416_v42  ;;  %v2708_v56 = vpop.f32.mrf.mxu0  ;;  %v2808_v57 = vpop.f32.mrf.mxu1 }
 0x156   : > { %vm1222_vm12 = vcmp.ge.f32.partialorder %v1066_v53, 0.0  ;;  %v1320_v58 = vmul.f32 0.01, %v1066_v53  ;;  %v1270_v60 = vmul.f32 0.01, %v866_v52  ;;  %vm1172_vm13 = vcmp.ge.f32.partialorder %v866_v52, 0.0 }
 0x157   : > { %2550 = vst [vmem:[%s3206_s6 + $0x68] sm:$0xff] %v2361_v54   ;;  %2575 = vst [vmem:[%s3206_s6 + $0x130] sm:$0xff] %v2486_v55   ;;  %v868_v61 = vpop.f32.mrf.mxu0  ;;  %v1068_v62 = vpop.f32.mrf.mxu1 }
 0x158   : > { %v869_v63 = vadd.f32 %v3194_v59, %v868_v61  ;;  %v1069_v1 = vadd.f32 %v3194_v59, %v1068_v62  ;;  %v1418_v2 = vsel %vm1222_vm12, %v1066_v53, %v1320_v58  ;;  %v1368_v6 = vsel %vm1172_vm13, %v866_v52, %v1270_v60 }
 0x159   : > { %v2709_v3 = vpop.f32.mrf.mxu0  ;;  %v2809_v4 = vpop.f32.mrf.mxu1 }
 0x15a   : > { %vm1173_vm14 = vcmp.ge.f32.partialorder %v869_v63, 0.0  ;;  %v1271_v0 = vmul.f32 0.01, %v869_v63  ;;  %vm1223_vm15 = vcmp.ge.f32.partialorder %v1069_v1, 0.0  ;;  %v1321_v5 = vmul.f32 0.01, %v1069_v1 }
 0x15b   : > { %v873_v7 = vpop.f32.mrf.mxu0  ;;  %v1073_v8 = vpop.f32.mrf.mxu1 }
 0x15c   : > { %v1369_v9 = vsel %vm1173_vm14, %v869_v63, %v1271_v0  ;;  %v1419_v10 = vsel %vm1223_vm15, %v1069_v1, %v1321_v5  ;;  %v874_v11 = vadd.f32 %v3194_v59, %v873_v7  ;;  %v1074_v12 = vadd.f32 %v3194_v59, %v1073_v8 }
 0x15d   : > { %v2366_v13 = vpack.c.bf16 %v1369_v9, %v1368_v6  ;;  %v2491_v14 = vpack.c.bf16 %v1419_v10, %v1418_v2  ;;  %v2712_v15 = vpop.f32.mrf.mxu0  ;;  %v2812_v16 = vpop.f32.mrf.mxu1 }
 0x15e   : > { %vm1224_vm0 = vcmp.ge.f32.partialorder %v1074_v12, 0.0  ;;  %v1322_v17 = vmul.f32 0.01, %v1074_v12  ;;  %v1272_v18 = vmul.f32 0.01, %v874_v11  ;;  %vm1174_vm1 = vcmp.ge.f32.partialorder %v874_v11, 0.0 }
 0x15f   : > { %2551 = vst [vmem:[%s3206_s6 + $0x70] sm:$0xff] %v2366_v13   ;;  %2576 = vst [vmem:[%s3206_s6 + $0x138] sm:$0xff] %v2491_v14   ;;  %v876_v19 = vpop.f32.mrf.mxu0  ;;  %v1076_v20 = vpop.f32.mrf.mxu1 }
 0x160   : > { %v877_v21 = vadd.f32 %v3194_v59, %v876_v19  ;;  %v1077_v22 = vadd.f32 %v3194_v59, %v1076_v20  ;;  %v1420_v23 = vsel %vm1224_vm0, %v1074_v12, %v1322_v17  ;;  %v1370_v28 = vsel %vm1174_vm1, %v874_v11, %v1272_v18 }
 0x161   : > { %v2713_v24 = vpop.f32.mrf.mxu0  ;;  %v2813_v25 = vpop.f32.mrf.mxu1 }
 0x162   : > { %vm1175_vm2 = vcmp.ge.f32.partialorder %v877_v21, 0.0  ;;  %v1273_v26 = vmul.f32 0.01, %v877_v21  ;;  %vm1225_vm3 = vcmp.ge.f32.partialorder %v1077_v22, 0.0  ;;  %v1323_v27 = vmul.f32 0.01, %v1077_v22 }
 0x163   : > { %v881_v29 = vpop.f32.mrf.mxu0  ;;  %v1081_v30 = vpop.f32.mrf.mxu1  ;;  %v3317_v24 = vld [vmem:[%s3361_s2] ss:$0 sm:$0xff] }
 0x164   : > { %v1371_v31 = vsel %vm1175_vm2, %v877_v21, %v1273_v26  ;;  %v1421_v32 = vsel %vm1225_vm3, %v1077_v22, %v1323_v27  ;;  %v882_v33 = vadd.f32 %v3194_v59, %v881_v29  ;;  %v1082_v34 = vadd.f32 %v3194_v59, %v1081_v30 }
 0x165   : > { %v2371_v35 = vpack.c.bf16 %v1371_v31, %v1370_v28  ;;  %v2496_v36 = vpack.c.bf16 %v1421_v32, %v1420_v23  ;;  %v2716_v37 = vpop.f32.mrf.mxu0  ;;  %v2816_v38 = vpop.f32.mrf.mxu1 }
 0x166   : > { %vm1226_vm4 = vcmp.ge.f32.partialorder %v1082_v34, 0.0  ;;  %v1324_v39 = vmul.f32 0.01, %v1082_v34  ;;  %v1274_v40 = vmul.f32 0.01, %v882_v33  ;;  %vm1176_vm5 = vcmp.ge.f32.partialorder %v882_v33, 0.0 }
 0x167   : > { %2552 = vst [vmem:[%s3206_s6 + $0x78] sm:$0xff] %v2371_v35   ;;  %2577 = vst [vmem:[%s3206_s6 + $0x140] sm:$0xff] %v2496_v36   ;;  %v884_v41 = vpop.f32.mrf.mxu0  ;;  %v1084_v42 = vpop.f32.mrf.mxu1 }
 0x168   : > { %v885_v43 = vadd.f32 %v3194_v59, %v884_v41  ;;  %v1085_v44 = vadd.f32 %v3194_v59, %v1084_v42  ;;  %v1422_v45 = vsel %vm1226_vm4, %v1082_v34, %v1324_v39  ;;  %v1372_v50 = vsel %vm1176_vm5, %v882_v33, %v1274_v40 }
 0x169   : > { %v2717_v46 = vpop.f32.mrf.mxu0  ;;  %v2817_v47 = vpop.f32.mrf.mxu1 }
 0x16a   : > { %vm1177_vm6 = vcmp.ge.f32.partialorder %v885_v43, 0.0  ;;  %v1275_v48 = vmul.f32 0.01, %v885_v43  ;;  %vm1227_vm7 = vcmp.ge.f32.partialorder %v1085_v44, 0.0  ;;  %v1325_v49 = vmul.f32 0.01, %v1085_v44 }
 0x16b   : > { %v889_v51 = vpop.f32.mrf.mxu0  ;;  %v1089_v52 = vpop.f32.mrf.mxu1 }
 0x16c   : > { %v1373_v53 = vsel %vm1177_vm6, %v885_v43, %v1275_v48  ;;  %v1423_v54 = vsel %vm1227_vm7, %v1085_v44, %v1325_v49  ;;  %v890_v55 = vadd.f32 %v3194_v59, %v889_v51  ;;  %v1090_v56 = vadd.f32 %v3194_v59, %v1089_v52 }
 0x16d   : > { %v2376_v57 = vpack.c.bf16 %v1373_v53, %v1372_v50  ;;  %v2501_v58 = vpack.c.bf16 %v1423_v54, %v1422_v45  ;;  %v2720_v60 = vpop.f32.mrf.mxu0  ;;  %v2820_v61 = vpop.f32.mrf.mxu1 }
 0x16e   : > { %vm1228_vm8 = vcmp.ge.f32.partialorder %v1090_v56, 0.0  ;;  %v1326_v62 = vmul.f32 0.01, %v1090_v56  ;;  %v1276_v63 = vmul.f32 0.01, %v890_v55  ;;  %vm1178_vm9 = vcmp.ge.f32.partialorder %v890_v55, 0.0 }
 0x16f   : > { %2553 = vst [vmem:[%s3206_s6 + $0x80] sm:$0xff] %v2376_v57   ;;  %2578 = vst [vmem:[%s3206_s6 + $0x148] sm:$0xff] %v2501_v58   ;;  %v892_v1 = vpop.f32.mrf.mxu0  ;;  %v1092_v2 = vpop.f32.mrf.mxu1 }
 0x170   : > { %v893_v3 = vadd.f32 %v3194_v59, %v892_v1  ;;  %v1093_v4 = vadd.f32 %v3194_v59, %v1092_v2  ;;  %v1424_v0 = vsel %vm1228_vm8, %v1090_v56, %v1326_v62  ;;  %v1374_v9 = vsel %vm1178_vm9, %v890_v55, %v1276_v63 }
 0x171   : > { %v2721_v5 = vpop.f32.mrf.mxu0  ;;  %v2821_v6 = vpop.f32.mrf.mxu1 }
 0x172   : > { %vm1179_vm10 = vcmp.ge.f32.partialorder %v893_v3, 0.0  ;;  %v1277_v7 = vmul.f32 0.01, %v893_v3  ;;  %vm1229_vm11 = vcmp.ge.f32.partialorder %v1093_v4, 0.0  ;;  %v1327_v8 = vmul.f32 0.01, %v1093_v4 }
 0x173   : > { %v897_v10 = vpop.f32.mrf.mxu0  ;;  %v1097_v11 = vpop.f32.mrf.mxu1 }
 0x174   : > { %v1375_v12 = vsel %vm1179_vm10, %v893_v3, %v1277_v7  ;;  %v1425_v13 = vsel %vm1229_vm11, %v1093_v4, %v1327_v8  ;;  %v898_v14 = vadd.f32 %v3194_v59, %v897_v10  ;;  %v1098_v15 = vadd.f32 %v3194_v59, %v1097_v11 }
 0x175   : > { %v2381_v16 = vpack.c.bf16 %v1375_v12, %v1374_v9  ;;  %v2506_v17 = vpack.c.bf16 %v1425_v13, %v1424_v0  ;;  %v2724_v18 = vpop.f32.mrf.mxu0  ;;  %v2824_v19 = vpop.f32.mrf.mxu1 }
 0x176   : > { %vm1230_vm12 = vcmp.ge.f32.partialorder %v1098_v15, 0.0  ;;  %v1328_v20 = vmul.f32 0.01, %v1098_v15  ;;  %v1278_v21 = vmul.f32 0.01, %v898_v14  ;;  %vm1180_vm13 = vcmp.ge.f32.partialorder %v898_v14, 0.0 }
 0x177   : > { %2554 = vst [vmem:[%s3206_s6 + $0x88] sm:$0xff] %v2381_v16   ;;  %2579 = vst [vmem:[%s3206_s6 + $0x150] sm:$0xff] %v2506_v17   ;;  %v900_v22 = vpop.f32.mrf.mxu0  ;;  %v1100_v23 = vpop.f32.mrf.mxu1 }
 0x178   : > { %v901_v25 = vadd.f32 %v3317_v24, %v900_v22  ;;  %v1101_v59 = vadd.f32 %v3317_v24, %v1100_v23  ;;  %v1426_v26 = vsel %vm1230_vm12, %v1098_v15, %v1328_v20  ;;  %v1376_v31 = vsel %vm1180_vm13, %v898_v14, %v1278_v21 }
 0x179   : > { %v2725_v27 = vpop.f32.mrf.mxu0  ;;  %v2825_v28 = vpop.f32.mrf.mxu1 }
 0x17a   : > { %vm1181_vm14 = vcmp.ge.f32.partialorder %v901_v25, 0.0  ;;  %v1279_v29 = vmul.f32 0.01, %v901_v25  ;;  %vm1231_vm15 = vcmp.ge.f32.partialorder %v1101_v59, 0.0  ;;  %v1329_v30 = vmul.f32 0.01, %v1101_v59 }
 0x17b   : > { %v905_v32 = vpop.f32.mrf.mxu0  ;;  %v1105_v33 = vpop.f32.mrf.mxu1 }
 0x17c   : > { %v1377_v34 = vsel %vm1181_vm14, %v901_v25, %v1279_v29  ;;  %v1427_v35 = vsel %vm1231_vm15, %v1101_v59, %v1329_v30  ;;  %v906_v36 = vadd.f32 %v3317_v24, %v905_v32  ;;  %v1106_v37 = vadd.f32 %v3317_v24, %v1105_v33 }
 0x17d   : > { %v2386_v38 = vpack.c.bf16 %v1377_v34, %v1376_v31  ;;  %v2511_v39 = vpack.c.bf16 %v1427_v35, %v1426_v26  ;;  %v2728_v40 = vpop.f32.mrf.mxu0  ;;  %v2828_v41 = vpop.f32.mrf.mxu1 }
 0x17e   : > { %vm1232_vm0 = vcmp.ge.f32.partialorder %v1106_v37, 0.0  ;;  %v1330_v42 = vmul.f32 0.01, %v1106_v37  ;;  %v1280_v43 = vmul.f32 0.01, %v906_v36  ;;  %vm1182_vm1 = vcmp.ge.f32.partialorder %v906_v36, 0.0 }
 0x17f   : > { %2555 = vst [vmem:[%s3206_s6 + $0x90] sm:$0xff] %v2386_v38   ;;  %2580 = vst [vmem:[%s3206_s6 + $0x158] sm:$0xff] %v2511_v39   ;;  %v908_v44 = vpop.f32.mrf.mxu0  ;;  %v1108_v45 = vpop.f32.mrf.mxu1 }
 0x180   : > { %v909_v46 = vadd.f32 %v3317_v24, %v908_v44  ;;  %v1109_v47 = vadd.f32 %v3317_v24, %v1108_v45  ;;  %v1428_v48 = vsel %vm1232_vm0, %v1106_v37, %v1330_v42  ;;  %v1378_v53 = vsel %vm1182_vm1, %v906_v36, %v1280_v43 }
 0x181   : > { %v2729_v49 = vpop.f32.mrf.mxu0  ;;  %v2829_v50 = vpop.f32.mrf.mxu1 }
 0x182   : > { %vm1183_vm2 = vcmp.ge.f32.partialorder %v909_v46, 0.0  ;;  %v1281_v51 = vmul.f32 0.01, %v909_v46  ;;  %vm1233_vm3 = vcmp.ge.f32.partialorder %v1109_v47, 0.0  ;;  %v1331_v52 = vmul.f32 0.01, %v1109_v47 }
 0x183   : > { %v913_v54 = vpop.f32.mrf.mxu0  ;;  %v1113_v55 = vpop.f32.mrf.mxu1 }
 0x184   : > { %v1379_v56 = vsel %vm1183_vm2, %v909_v46, %v1281_v51  ;;  %v1429_v57 = vsel %vm1233_vm3, %v1109_v47, %v1331_v52  ;;  %v914_v58 = vadd.f32 %v3317_v24, %v913_v54  ;;  %v1114_v60 = vadd.f32 %v3317_v24, %v1113_v55 }
 0x185   : > { %v2391_v61 = vpack.c.bf16 %v1379_v56, %v1378_v53  ;;  %v2516_v62 = vpack.c.bf16 %v1429_v57, %v1428_v48  ;;  %v2732_v63 = vpop.f32.mrf.mxu0  ;;  %v2832_v1 = vpop.f32.mrf.mxu1 }
 0x186   : > { %vm1234_vm4 = vcmp.ge.f32.partialorder %v1114_v60, 0.0  ;;  %v1332_v2 = vmul.f32 0.01, %v1114_v60  ;;  %v1282_v3 = vmul.f32 0.01, %v914_v58  ;;  %vm1184_vm5 = vcmp.ge.f32.partialorder %v914_v58, 0.0 }
 0x187   : > { %2556 = vst [vmem:[%s3206_s6 + $0x98] sm:$0xff] %v2391_v61   ;;  %2581 = vst [vmem:[%s3206_s6 + $0x160] sm:$0xff] %v2516_v62   ;;  %v916_v4 = vpop.f32.mrf.mxu0  ;;  %v1116_v0 = vpop.f32.mrf.mxu1 }
 0x188   : > { %v917_v5 = vadd.f32 %v3317_v24, %v916_v4  ;;  %v1117_v6 = vadd.f32 %v3317_v24, %v1116_v0  ;;  %v1430_v7 = vsel %vm1234_vm4, %v1114_v60, %v1332_v2  ;;  %v1380_v12 = vsel %vm1184_vm5, %v914_v58, %v1282_v3 }
 0x189   : > { %v2733_v8 = vpop.f32.mrf.mxu0  ;;  %v2833_v9 = vpop.f32.mrf.mxu1 }
 0x18a   : > { %vm1185_vm6 = vcmp.ge.f32.partialorder %v917_v5, 0.0  ;;  %v1283_v10 = vmul.f32 0.01, %v917_v5  ;;  %vm1235_vm7 = vcmp.ge.f32.partialorder %v1117_v6, 0.0  ;;  %v1333_v11 = vmul.f32 0.01, %v1117_v6 }
 0x18b   : > { %v921_v13 = vpop.f32.mrf.mxu0  ;;  %v1121_v14 = vpop.f32.mrf.mxu1 }
 0x18c   : > { %v1381_v15 = vsel %vm1185_vm6, %v917_v5, %v1283_v10  ;;  %v1431_v16 = vsel %vm1235_vm7, %v1117_v6, %v1333_v11  ;;  %v922_v17 = vadd.f32 %v3317_v24, %v921_v13  ;;  %v1122_v18 = vadd.f32 %v3317_v24, %v1121_v14 }
 0x18d   : > { %v2396_v19 = vpack.c.bf16 %v1381_v15, %v1380_v12  ;;  %v2521_v20 = vpack.c.bf16 %v1431_v16, %v1430_v7  ;;  %v2736_v21 = vpop.f32.mrf.mxu0  ;;  %v2836_v22 = vpop.f32.mrf.mxu1 }
 0x18e   : > { %vm1236_vm8 = vcmp.ge.f32.partialorder %v1122_v18, 0.0  ;;  %v1334_v23 = vmul.f32 0.01, %v1122_v18  ;;  %v1284_v25 = vmul.f32 0.01, %v922_v17  ;;  %vm1186_vm9 = vcmp.ge.f32.partialorder %v922_v17, 0.0 }
 0x18f   : > { %2557 = vst [vmem:[%s3206_s6 + $0xa0] sm:$0xff] %v2396_v19   ;;  %2582 = vst [vmem:[%s3206_s6 + $0x168] sm:$0xff] %v2521_v20   ;;  %v924_v59 = vpop.f32.mrf.mxu0  ;;  %v1124_v26 = vpop.f32.mrf.mxu1 }
 0x190   : > { %v925_v27 = vadd.f32 %v3317_v24, %v924_v59  ;;  %v1125_v28 = vadd.f32 %v3317_v24, %v1124_v26  ;;  %v1432_v29 = vsel %vm1236_vm8, %v1122_v18, %v1334_v23  ;;  %v1382_v34 = vsel %vm1186_vm9, %v922_v17, %v1284_v25 }
 0x191   : > { %v2737_v30 = vpop.f32.mrf.mxu0  ;;  %v2837_v31 = vpop.f32.mrf.mxu1 }
 0x192   : > { %vm1187_vm10 = vcmp.ge.f32.partialorder %v925_v27, 0.0  ;;  %v1285_v32 = vmul.f32 0.01, %v925_v27  ;;  %vm1237_vm11 = vcmp.ge.f32.partialorder %v1125_v28, 0.0  ;;  %v1335_v33 = vmul.f32 0.01, %v1125_v28 }
 0x193   : > { %v929_v35 = vpop.f32.mrf.mxu0  ;;  %v1129_v36 = vpop.f32.mrf.mxu1 }
 0x194   : > { %v1383_v37 = vsel %vm1187_vm10, %v925_v27, %v1285_v32  ;;  %v1433_v38 = vsel %vm1237_vm11, %v1125_v28, %v1335_v33  ;;  %v930_v39 = vadd.f32 %v3317_v24, %v929_v35  ;;  %v1130_v40 = vadd.f32 %v3317_v24, %v1129_v36 }
 0x195   : > { %v2401_v41 = vpack.c.bf16 %v1383_v37, %v1382_v34  ;;  %v2526_v42 = vpack.c.bf16 %v1433_v38, %v1432_v29  ;;  %v2740_v43 = vpop.f32.mrf.mxu0  ;;  %v2840_v44 = vpop.f32.mrf.mxu1 }
 0x196   : > { %vm1238_vm12 = vcmp.ge.f32.partialorder %v1130_v40, 0.0  ;;  %v1336_v45 = vmul.f32 0.01, %v1130_v40  ;;  %v1286_v46 = vmul.f32 0.01, %v930_v39  ;;  %vm1188_vm13 = vcmp.ge.f32.partialorder %v930_v39, 0.0 }
 0x197   : > { %2558 = vst [vmem:[%s3206_s6 + $0xa8] sm:$0xff] %v2401_v41   ;;  %2583 = vst [vmem:[%s3206_s6 + $0x170] sm:$0xff] %v2526_v42   ;;  %v932_v47 = vpop.f32.mrf.mxu0  ;;  %v1132_v48 = vpop.f32.mrf.mxu1 }
 0x198   : > { %v933_v49 = vadd.f32 %v3317_v24, %v932_v47  ;;  %v1133_v50 = vadd.f32 %v3317_v24, %v1132_v48  ;;  %v1434_v51 = vsel %vm1238_vm12, %v1130_v40, %v1336_v45  ;;  %v1384_v56 = vsel %vm1188_vm13, %v930_v39, %v1286_v46 }
 0x199   : > { %v2741_v52 = vpop.f32.mrf.mxu0  ;;  %v2841_v53 = vpop.f32.mrf.mxu1 }
 0x19a   : > { %vm1189_vm14 = vcmp.ge.f32.partialorder %v933_v49, 0.0  ;;  %v1287_v54 = vmul.f32 0.01, %v933_v49  ;;  %vm1239_vm15 = vcmp.ge.f32.partialorder %v1133_v50, 0.0  ;;  %v1337_v55 = vmul.f32 0.01, %v1133_v50 }
 0x19b   : > { %v937_v57 = vpop.f32.mrf.mxu0  ;;  %v1137_v58 = vpop.f32.mrf.mxu1 }
 0x19c   : > { %v1385_v60 = vsel %vm1189_vm14, %v933_v49, %v1287_v54  ;;  %v1435_v61 = vsel %vm1239_vm15, %v1133_v50, %v1337_v55  ;;  %v938_v62 = vadd.f32 %v3317_v24, %v937_v57  ;;  %v1138_v63 = vadd.f32 %v3317_v24, %v1137_v58 }
 0x19d   : > { %v2406_v1 = vpack.c.bf16 %v1385_v60, %v1384_v56  ;;  %v2531_v2 = vpack.c.bf16 %v1435_v61, %v1434_v51  ;;  %v2744_v3 = vpop.f32.mrf.mxu0  ;;  %v2844_v4 = vpop.f32.mrf.mxu1 }
 0x19e   : > { %vm1240_vm0 = vcmp.ge.f32.partialorder %v1138_v63, 0.0  ;;  %v1338_v0 = vmul.f32 0.01, %v1138_v63  ;;  %v1288_v7 = vmul.f32 0.01, %v938_v62  ;;  %vm1190_vm1 = vcmp.ge.f32.partialorder %v938_v62, 0.0 }
 0x19f   : > { %2559 = vst [vmem:[%s3206_s6 + $0xb0] sm:$0xff] %v2406_v1   ;;  %2584 = vst [vmem:[%s3206_s6 + $0x178] sm:$0xff] %v2531_v2   ;;  %v940_v5 = vpop.f32.mrf.mxu0  ;;  %v1140_v6 = vpop.f32.mrf.mxu1 }
 0x1a0   : > { %v941_v8 = vadd.f32 %v3317_v24, %v940_v5  ;;  %v1141_v9 = vadd.f32 %v3317_v24, %v1140_v6  ;;  %v1436_v10 = vsel %vm1240_vm0, %v1138_v63, %v1338_v0  ;;  %v1386_v16 = vsel %vm1190_vm1, %v938_v62, %v1288_v7 }
 0x1a1   : > { %v2745_v11 = vpop.f32.mrf.mxu0  ;;  %v2845_v12 = vpop.f32.mrf.mxu1 }
 0x1a2   : > { %vm1191_vm2 = vcmp.ge.f32.partialorder %v941_v8, 0.0  ;;  %v1289_v13 = vmul.f32 0.01, %v941_v8  ;;  %vm1241_vm3 = vcmp.ge.f32.partialorder %v1141_v9, 0.0  ;;  %v1339_v14 = vmul.f32 0.01, %v1141_v9 }
 0x1a3   : > { %v945_v15 = vpop.f32.mrf.mxu0 }
 0x1a4   : > { %v1387_v17 = vsel %vm1191_vm2, %v941_v8, %v1289_v13  ;;  %v1437_v18 = vsel %vm1241_vm3, %v1141_v9, %v1339_v14  ;;  %v946_v19 = vadd.f32 %v3317_v24, %v945_v15 }
 0x1a5   : > { %v2411_v20 = vpack.c.bf16 %v1387_v17, %v1386_v16  ;;  %v2536_v21 = vpack.c.bf16 %v1437_v18, %v1436_v10  ;;  %v2748_v22 = vpop.f32.mrf.mxu0 }
 0x1a6   : > { %v1290_v25 = vmul.f32 0.01, %v946_v19  ;;  %vm1192_vm4 = vcmp.ge.f32.partialorder %v946_v19, 0.0 }
 0x1a7   : > { %2560 = vst [vmem:[%s3206_s6 + $0xb8] sm:$0xff] %v2411_v20   ;;  %2585 = vst [vmem:[%s3206_s6 + $0x180] sm:$0xff] %v2536_v21   ;;  %v948_v23 = vpop.f32.mrf.mxu0 }
 0x1a8   : > { %v949_v59 = vadd.f32 %v3317_v24, %v948_v23  ;;  %v1388_v28 = vsel %vm1192_vm4, %v946_v19, %v1290_v25 }
 0x1a9   : > { %v2749_v26 = vpop.f32.mrf.mxu0 }
 0x1aa   : > { %vm1193_vm5 = vcmp.ge.f32.partialorder %v949_v59, 0.0  ;;  %v1291_v27 = vmul.f32 0.01, %v949_v59 }
 0x1ac   : > { %v1389_v29 = vsel %vm1193_vm5, %v949_v59, %v1291_v27 }
 0x1ad   : > { %v2416_v30 = vpack.c.bf16 %v1389_v29, %v1388_v28 }
 0x1af   : > { %2561 = vst [vmem:[%s3206_s6 + $0xc0] sm:$0xff] %v2416_v30  }
 0x1b0 PF: > { %s13_s12 = sadd.s32 1, %s2928_s12  }
 0x1b1   : > { %p10_p4 = scmp.ge.s32.totalorder %s13_s12, 4  }
 0x1b3   :  { %12 = sbr.rel (!%p10_p4) target bundleno = 1 (0x1), region = 62 }

// kernel: _lambda_.11
= control target key start
LH: loop header
LB: loop body
LE: loop exit
PB: predicated region body
PF: predicated region fallthrough
CT: control target
= control target key end

     0   :  { %s5873_s1 = inlined_call_operand.vmem [shape: bf16[1152,256], index: 1, kind: input, shape index: {}]   ;;  %s5874_s0 = inlined_call_operand.vmem [shape: bf16[288,1152], index: 0, kind: input, shape index: {}]   ;;  %s5875_s2 = inlined_call_operand.vmem [shape: f32[1,256], index: 2, kind: input, shape index: {}]   ;;  %s5876_s3 = inlined_call_operand.vmem [shape: bf16[288,256], index: 3, kind: output, shape index: {}]  }
   0x1   :  { %v3847_v0 = vld [vmem:[%s5873_s1 + $0x74] ss:$8 sps:$4 sm:$0xff]   ;;  %v3849_v1 = vld [vmem:[%s5873_s1 + $0x70] ss:$8 sps:$4 sm:$0xff]   ;;  %v3850_v2 = vld [vmem:[%s5873_s1 + $0x64] ss:$8 sps:$4 sm:$0xff]  }
   0x2   :  { %1899 = vmatprep.subr.bf16.mxu0 %v3847_v0  ;;  %3814 = vmatprep.subr.bf16.mxu1 %v3847_v0  ;;  %v3852_v3 = vld [vmem:[%s5873_s1 + $0x60] ss:$8 sps:$4 sm:$0xff]   ;;  %v3853_v4 = vld [vmem:[%s5873_s1 + $0x54] ss:$8 sps:$4 sm:$0xff]   ;;  %v3855_v5 = vld [vmem:[%s5873_s1 + $0x50] ss:$8 sps:$4 sm:$0xff]  }
   0x3   :  { %1900 = vmatpush1.bf16.msra.mxu0 %v3849_v1  ;;  %3830 = vmatpush1.bf16.msra.mxu1 %v3849_v1  ;;  %v3856_v6 = vld [vmem:[%s5873_s1 + $0x44] ss:$8 sps:$4 sm:$0xff]   ;;  %v3858_v7 = vld [vmem:[%s5873_s1 + $0x40] ss:$8 sps:$4 sm:$0xff]   ;;  %v3859_v8 = vld [vmem:[%s5873_s1 + $0x34] ss:$8 sps:$4 sm:$0xff]  }
   0x4   :  { %1901 = vmatprep.subr.bf16.mxu0 %v3850_v2  ;;  %3815 = vmatprep.subr.bf16.mxu1 %v3850_v2  ;;  %v3861_v9 = vld [vmem:[%s5873_s1 + $0x30] ss:$8 sps:$4 sm:$0xff]   ;;  %v3862_v10 = vld [vmem:[%s5873_s1 + $0x24] ss:$8 sps:$4 sm:$0xff]   ;;  %v3864_v11 = vld [vmem:[%s5873_s1 + $0x20] ss:$8 sps:$4 sm:$0xff]  }
   0x5   :  { %v3865_v12 = vld [vmem:[%s5873_s1 + $0x14] ss:$8 sps:$4 sm:$0xff]   ;;  %v3897_v13 = vld [vmem:[%s5874_s0 + $0x4] ss:$36 sps:$4 sm:$0xff]   ;;  %v3867_v14 = vld [vmem:[%s5873_s1 + $0x10] ss:$8 sps:$4 sm:$0xff]  }
   0x6   :  { %v3900_v15 = vld [vmem:[%s5874_s0 + $0x28c] ss:$36 sps:$4 sm:$0xff]   ;;  %1931 = vmatprep.mubr.bf16.mxu0 %v3897_v13  ;;  %v3870_v17 = vld [vmem:[%s5873_s1] ss:$8 sps:$4 sm:$0xff]   ;;  %v3871_v18 = vld [vmem:[%s5873_s1 + $0xf4] ss:$8 sps:$4 sm:$0xff]  }
   0x7   :  { %1902 = vmatpush1.bf16.msra.mxu0 %v3852_v3  ;;  %3831 = vmatpush1.bf16.msra.mxu1 %v3852_v3  ;;  %v3868_v16 = vld [vmem:[%s5873_s1 + $0x4] ss:$8 sps:$4 sm:$0xff]   ;;  %v3873_v19 = vld [vmem:[%s5873_s1 + $0xf0] ss:$8 sps:$4 sm:$0xff]   ;;  %v3876_v21 = vld [vmem:[%s5873_s1 + $0xe0] ss:$8 sps:$4 sm:$0xff]  }
   0x8   :  { %1903 = vmatprep.subr.bf16.mxu0 %v3853_v4  ;;  %3816 = vmatprep.subr.bf16.mxu1 %v3853_v4  ;;  %v3874_v20 = vld [vmem:[%s5873_s1 + $0xe4] ss:$8 sps:$4 sm:$0xff]   ;;  %v3877_v22 = vld [vmem:[%s5873_s1 + $0xd4] ss:$8 sps:$4 sm:$0xff]   ;;  %v3879_v23 = vld [vmem:[%s5873_s1 + $0xd0] ss:$8 sps:$4 sm:$0xff]  }
   0x9   :  { %2021 = vmatprep.mubr.bf16.mxu1 %v3900_v15  ;;  %v3880_v24 = vld [vmem:[%s5873_s1 + $0xc4] ss:$8 sps:$4 sm:$0xff]   ;;  %v3882_v25 = vld [vmem:[%s5873_s1 + $0xc0] ss:$8 sps:$4 sm:$0xff]   ;;  %v3883_v26 = vld [vmem:[%s5873_s1 + $0xb4] ss:$8 sps:$4 sm:$0xff]  }
   0xa   :  { %v3885_v27 = vld [vmem:[%s5873_s1 + $0xb0] ss:$8 sps:$4 sm:$0xff]   ;;  %v3886_v28 = vld [vmem:[%s5873_s1 + $0xa4] ss:$8 sps:$4 sm:$0xff]   ;;  %v3888_v29 = vld [vmem:[%s5873_s1 + $0xa0] ss:$8 sps:$4 sm:$0xff]  }
   0xb   :  { %1904 = vmatpush1.bf16.msra.mxu0 %v3855_v5  ;;  %3832 = vmatpush1.bf16.msra.mxu1 %v3855_v5  ;;  %v3889_v30 = vld [vmem:[%s5873_s1 + $0x94] ss:$8 sps:$4 sm:$0xff]   ;;  %v3891_v31 = vld [vmem:[%s5873_s1 + $0x90] ss:$8 sps:$4 sm:$0xff]   ;;  %v3892_v32 = vld [vmem:[%s5873_s1 + $0x84] ss:$8 sps:$4 sm:$0xff]  }
   0xc   :  { %1905 = vmatprep.subr.bf16.mxu0 %v3856_v6  ;;  %3817 = vmatprep.subr.bf16.mxu1 %v3856_v6  ;;  %v3894_v33 = vld [vmem:[%s5873_s1 + $0x80] ss:$8 sps:$4 sm:$0xff]   ;;  %v3903_v35 = vld [vmem:[%s5873_s1 + $0x174] ss:$8 sps:$4 sm:$0xff]   ;;  %v3901_v38 = vld [vmem:[%s5873_s1 + $0x170] ss:$8 sps:$4 sm:$0xff]  }
   0xd   :  { %v3895_v34 = vld [vmem:[%s5874_s0] ss:$36 sps:$4 sm:$0xff]   ;;  %v3906_v36 = vld [vmem:[%s5873_s1 + $0x274] ss:$8 sps:$4 sm:$0xff]   ;;  %v3898_v37 = vld [vmem:[%s5874_s0 + $0x288] ss:$36 sps:$4 sm:$0xff]  }
   0xe   :  { %v3904_v39 = vld [vmem:[%s5873_s1 + $0x270] ss:$8 sps:$4 sm:$0xff]   ;;  %v3909_v40 = vld [vmem:[%s5873_s1 + $0x164] ss:$8 sps:$4 sm:$0xff]   ;;  %v3907_v44 = vld [vmem:[%s5873_s1 + $0x160] ss:$8 sps:$4 sm:$0xff]  }
   0xf   :  { %1906 = vmatpush1.bf16.msra.mxu0 %v3858_v7  ;;  %3833 = vmatpush1.bf16.msra.mxu1 %v3858_v7  ;;  %v3910_v41 = vld [vmem:[%s5874_s0 + $0x4c] ss:$36 sps:$4 sm:$0xff]   ;;  %v3912_v42 = vld [vmem:[%s5874_s0 + $0x2d4] ss:$36 sps:$4 sm:$0xff]   ;;  %v3914_v45 = vld [vmem:[%s5873_s1 + $0x260] ss:$8 sps:$4 sm:$0xff]  }
  0x10   :  { %1907 = vmatprep.subr.bf16.mxu0 %v3859_v8  ;;  %3818 = vmatprep.subr.bf16.mxu1 %v3859_v8  ;;  %v3916_v43 = vld [vmem:[%s5873_s1 + $0x264] ss:$8 sps:$4 sm:$0xff]   ;;  %v3921_v47 = vld [vmem:[%s5873_s1 + $0x154] ss:$8 sps:$4 sm:$0xff]   ;;  %v3919_v50 = vld [vmem:[%s5873_s1 + $0x150] ss:$8 sps:$4 sm:$0xff]  }
  0x11   :  { %v3917_v46 = vld [vmem:[%s5874_s0 + $0x48] ss:$36 sps:$4 sm:$0xff]   ;;  %v3924_v48 = vld [vmem:[%s5873_s1 + $0x254] ss:$8 sps:$4 sm:$0xff]   ;;  %v3922_v51 = vld [vmem:[%s5873_s1 + $0x250] ss:$8 sps:$4 sm:$0xff]  }
  0x12   :  { %v3918_v49 = vld [vmem:[%s5874_s0 + $0x2d0] ss:$36 sps:$4 sm:$0xff]   ;;  %v3927_v52 = vld [vmem:[%s5873_s1 + $0x144] ss:$8 sps:$4 sm:$0xff]   ;;  %v3930_v54 = vld [vmem:[%s5874_s0 + $0x31c] ss:$36 sps:$4 sm:$0xff]  }
  0x13   :  { %1908 = vmatpush1.bf16.msra.mxu0 %v3861_v9  ;;  %3834 = vmatpush1.bf16.msra.mxu1 %v3861_v9  ;;  %v3928_v53 = vld [vmem:[%s5874_s0 + $0x94] ss:$36 sps:$4 sm:$0xff]   ;;  %v3936_v55 = vld [vmem:[%s5873_s1 + $0x244] ss:$8 sps:$4 sm:$0xff]   ;;  %v3925_v56 = vld [vmem:[%s5873_s1 + $0x140] ss:$8 sps:$4 sm:$0xff]  }
  0x14   :  { %1909 = vmatprep.subr.bf16.mxu0 %v3862_v10  ;;  %3819 = vmatprep.subr.bf16.mxu1 %v3862_v10  ;;  %v3934_v57 = vld [vmem:[%s5873_s1 + $0x240] ss:$8 sps:$4 sm:$0xff]   ;;  %v3939_v58 = vld [vmem:[%s5873_s1 + $0x134] ss:$8 sps:$4 sm:$0xff]   ;;  %v3937_v62 = vld [vmem:[%s5873_s1 + $0x130] ss:$8 sps:$4 sm:$0xff]  }
  0x15   :  { %v3932_v59 = vld [vmem:[%s5874_s0 + $0x90] ss:$36 sps:$4 sm:$0xff]   ;;  %v3933_v61 = vld [vmem:[%s5874_s0 + $0x318] ss:$36 sps:$4 sm:$0xff]   ;;  %v3945_v1 = vld [vmem:[%s5874_s0 + $0x364] ss:$36 sps:$4 sm:$0xff]  }
  0x16   :  { %v3942_v60 = vld [vmem:[%s5873_s1 + $0x234] ss:$8 sps:$4 sm:$0xff]   ;;  %v3940_v63 = vld [vmem:[%s5873_s1 + $0x230] ss:$8 sps:$4 sm:$0xff]   ;;  %v3949_v2 = vld [vmem:[%s5873_s1 + $0x124] ss:$8 sps:$4 sm:$0xff]  }
  0x17   :  { %1910 = vmatpush1.bf16.msra.mxu0 %v3864_v11  ;;  %3835 = vmatpush1.bf16.msra.mxu1 %v3864_v11  ;;  %v3943_v0 = vld [vmem:[%s5874_s0 + $0xdc] ss:$36 sps:$4 sm:$0xff]   ;;  %v3954_v3 = vld [vmem:[%s5873_s1 + $0x224] ss:$8 sps:$4 sm:$0xff]   ;;  %v3955_v10 = vld [vmem:[%s5873_s1 + $0x110] ss:$8 sps:$4 sm:$0xff]  }
  0x18   :  { %1911 = vmatprep.subr.bf16.mxu0 %v3865_v12  ;;  %3820 = vmatprep.subr.bf16.mxu1 %v3865_v12  ;;  %v3947_v4 = vld [vmem:[%s5873_s1 + $0x120] ss:$8 sps:$4 sm:$0xff]   ;;  %v3957_v6 = vld [vmem:[%s5873_s1 + $0x114] ss:$8 sps:$4 sm:$0xff]   ;;  %v3958_v11 = vld [vmem:[%s5873_s1 + $0x210] ss:$8 sps:$4 sm:$0xff]  }
  0x19   :  { %v3952_v5 = vld [vmem:[%s5873_s1 + $0x220] ss:$8 sps:$4 sm:$0xff]   ;;  %v3950_v7 = vld [vmem:[%s5874_s0 + $0xd8] ss:$36 sps:$4 sm:$0xff]   ;;  %v3963_v13 = vld [vmem:[%s5874_s0 + $0x3ac] ss:$36 sps:$4 sm:$0xff]  }
  0x1a   :  { %v3960_v8 = vld [vmem:[%s5873_s1 + $0x214] ss:$8 sps:$4 sm:$0xff]   ;;  %v3951_v9 = vld [vmem:[%s5874_s0 + $0x360] ss:$36 sps:$4 sm:$0xff]  }
  0x1b   :  { %1912 = vmatpush1.bf16.msra.mxu0 %v3867_v14  ;;  %3836 = vmatpush1.bf16.msra.mxu1 %v3867_v14  ;;  %v3961_v12 = vld [vmem:[%s5874_s0 + $0x124] ss:$36 sps:$4 sm:$0xff]  }
  0x1c   :  { %1913 = vmatprep.subr.bf16.mxu0 %v3868_v16  ;;  %3821 = vmatprep.subr.bf16.mxu1 %v3868_v16  ;;  %v3969_v14 = vld [vmem:[%s5873_s1 + $0x104] ss:$8 sps:$4 sm:$0xff]   ;;  %v3967_v16 = vld [vmem:[%s5873_s1 + $0x100] ss:$8 sps:$4 sm:$0xff]  }
  0x1d   :  { %v3972_v15 = vld [vmem:[%s5873_s1 + $0x204] ss:$8 sps:$4 sm:$0xff]  }
  0x1f   :  { %1914 = vmatpush1.bf16.msra.mxu0 %v3870_v17  ;;  %3837 = vmatpush1.bf16.msra.mxu1 %v3870_v17  ;;  %v3970_v17 = vld [vmem:[%s5873_s1 + $0x200] ss:$8 sps:$4 sm:$0xff]  }
  0x20   :  { %1915 = vmatprep.subr.bf16.mxu0 %v3871_v18  ;;  %3822 = vmatprep.subr.bf16.mxu1 %v3871_v18  ;;  %v3975_v18 = vld [vmem:[%s5873_s1 + $0x1f4] ss:$8 sps:$4 sm:$0xff]  }
  0x23   :  { %1916 = vmatpush2.bf16.msra.mxu0 %v3873_v19  ;;  %3838 = vmatpush2.bf16.msra.mxu1 %v3873_v19  ;;  %v3965_v19 = vld [vmem:[%s5874_s0 + $0x120] ss:$36 sps:$4 sm:$0xff]  }
  0x24   :  { %1917 = vmatprep.subr.bf16.mxu0 %v3874_v20  ;;  %3823 = vmatprep.subr.bf16.mxu1 %v3874_v20  ;;  %v3978_v20 = vld [vmem:[%s5873_s1 + $0x2f4] ss:$8 sps:$4 sm:$0xff]  }
  0x27   :  { %1918 = vmatpush2.bf16.msra.mxu0 %v3876_v21  ;;  %3839 = vmatpush2.bf16.msra.mxu1 %v3876_v21  ;;  %v3966_v21 = vld [vmem:[%s5874_s0 + $0x3a8] ss:$36 sps:$4 sm:$0xff]  }
  0x28   :  { %1919 = vmatprep.subr.bf16.mxu0 %v3877_v22  ;;  %3824 = vmatprep.subr.bf16.mxu1 %v3877_v22  ;;  %v3973_v22 = vld [vmem:[%s5873_s1 + $0x1f0] ss:$8 sps:$4 sm:$0xff]  }
  0x2b   :  { %1920 = vmatpush2.bf16.msra.mxu0 %v3879_v23  ;;  %3840 = vmatpush2.bf16.msra.mxu1 %v3879_v23  ;;  %v3976_v23 = vld [vmem:[%s5873_s1 + $0x2f0] ss:$8 sps:$4 sm:$0xff]  }
  0x2c   :  { %1921 = vmatprep.subr.bf16.mxu0 %v3880_v24  ;;  %3825 = vmatprep.subr.bf16.mxu1 %v3880_v24  ;;  %v3979_v24 = vld [vmem:[%s5874_s0 + $0x16c] ss:$36 sps:$4 sm:$0xff]  }
  0x2f   :  { %1922 = vmatpush2.bf16.msra.mxu0 %v3882_v25  ;;  %3841 = vmatpush2.bf16.msra.mxu1 %v3882_v25  ;;  %v3981_v25 = vld [vmem:[%s5874_s0 + $0x3f4] ss:$36 sps:$4 sm:$0xff]  }
  0x30   :  { %1923 = vmatprep.subr.bf16.mxu0 %v3883_v26  ;;  %3826 = vmatprep.subr.bf16.mxu1 %v3883_v26  ;;  %v3987_v26 = vld [vmem:[%s5873_s1 + $0x1e4] ss:$8 sps:$4 sm:$0xff]  }
  0x33   :  { %1924 = vmatpush2.bf16.msra.mxu0 %v3885_v27  ;;  %3842 = vmatpush2.bf16.msra.mxu1 %v3885_v27  ;;  %v3990_v27 = vld [vmem:[%s5873_s1 + $0x2e4] ss:$8 sps:$4 sm:$0xff]  }
  0x34   :  { %1925 = vmatprep.subr.bf16.mxu0 %v3886_v28  ;;  %3827 = vmatprep.subr.bf16.mxu1 %v3886_v28  ;;  %v3985_v28 = vld [vmem:[%s5873_s1 + $0x1e0] ss:$8 sps:$4 sm:$0xff]  }
  0x37   :  { %1926 = vmatpush2.bf16.msra.mxu0 %v3888_v29  ;;  %3843 = vmatpush2.bf16.msra.mxu1 %v3888_v29  ;;  %v3988_v29 = vld [vmem:[%s5873_s1 + $0x2e0] ss:$8 sps:$4 sm:$0xff]  }
  0x38   :  { %1927 = vmatprep.subr.bf16.mxu0 %v3889_v30  ;;  %3828 = vmatprep.subr.bf16.mxu1 %v3889_v30  ;;  %v3983_v30 = vld [vmem:[%s5874_s0 + $0x168] ss:$36 sps:$4 sm:$0xff]  }
  0x3b   :  { %1928 = vmatpush2.bf16.msra.mxu0 %v3891_v31  ;;  %3844 = vmatpush2.bf16.msra.mxu1 %v3891_v31  ;;  %v3984_v31 = vld [vmem:[%s5874_s0 + $0x3f0] ss:$36 sps:$4 sm:$0xff]  }
  0x3c   :  { %1929 = vmatprep.subr.bf16.mxu0 %v3892_v32  ;;  %3829 = vmatprep.subr.bf16.mxu1 %v3892_v32  ;;  %v3993_v32 = vld [vmem:[%s5873_s1 + $0x1d4] ss:$8 sps:$4 sm:$0xff]  }
  0x3f   :  { %1930 = vmatpush2.bf16.msra.mxu0 %v3894_v33  ;;  %3845 = vmatpush2.bf16.msra.mxu1 %v3894_v33  ;;  %v4000_v33 = vld [vmem:[%s5873_s1 + $0x2d4] ss:$8 sps:$4 sm:$0xff]  }
  0x40   :  { %2112 = vmatprep.subr.bf16.mxu1 %v3903_v35  ;;  %2325 = vmatprep.subr.bf16.mxu0 %v3906_v36  ;;  %v3994_v35 = vld [vmem:[%s5874_s0 + $0x1b4] ss:$36 sps:$4 sm:$0xff]   ;;  %v3996_v36 = vld [vmem:[%s5874_s0 + $0x43c] ss:$36 sps:$4 sm:$0xff]  }
  0x42   :  { %1932 = vmatmul.mubr.bf16.vlgmr.msra.gmra.mxu0 %v3895_v34  ;;  %2022 = vmatmul.mubr.bf16.vlgmr.msra.gmra.mxu1 %v3898_v37  ;;  %v3991_v34 = vld [vmem:[%s5873_s1 + $0x1d0] ss:$8 sps:$4 sm:$0xff]  }
  0x43   :  { %2113 = vmatpush1.bf16.msra.mxu1 %v3901_v38  ;;  %2326 = vmatpush1.bf16.msra.mxu0 %v3904_v39  ;;  %v3998_v37 = vld [vmem:[%s5873_s1 + $0x2d0] ss:$8 sps:$4 sm:$0xff]   ;;  %v4005_v38 = vld [vmem:[%s5873_s1 + $0x1c4] ss:$8 sps:$4 sm:$0xff]  }
  0x44   :  { %2114 = vmatprep.subr.bf16.mxu1 %v3909_v40  ;;  %1941 = vmatprep.mubr.bf16.mxu0 %v3910_v41  ;;  %v4008_v39 = vld [vmem:[%s5873_s1 + $0x2c4] ss:$8 sps:$4 sm:$0xff]   ;;  %v4003_v40 = vld [vmem:[%s5873_s1 + $0x1c0] ss:$8 sps:$4 sm:$0xff]   ;;  %v4001_v41 = vld [vmem:[%s5874_s0 + $0x1b0] ss:$36 sps:$4 sm:$0xff]  }
  0x45   :  { %2031 = vmatprep.mubr.bf16.mxu1 %v3912_v42  ;;  %2327 = vmatprep.subr.bf16.mxu0 %v3916_v43  ;;  %v4002_v42 = vld [vmem:[%s5874_s0 + $0x438] ss:$36 sps:$4 sm:$0xff]   ;;  %v4006_v43 = vld [vmem:[%s5873_s1 + $0x2c0] ss:$8 sps:$4 sm:$0xff]  }
  0x47   :  { %2115 = vmatpush1.bf16.msra.mxu1 %v3907_v44  ;;  %2328 = vmatpush1.bf16.msra.mxu0 %v3914_v45  ;;  %v4011_v44 = vld [vmem:[%s5873_s1 + $0x1b4] ss:$8 sps:$4 sm:$0xff]  }
  0x48   :  { %2116 = vmatprep.subr.bf16.mxu1 %v3921_v47  ;;  %2329 = vmatprep.subr.bf16.mxu0 %v3924_v48  ;;  %v4020_v45 = vld [vmem:[%s5873_s1 + $0x2b4] ss:$8 sps:$4 sm:$0xff]   ;;  %v4014_v48 = vld [vmem:[%s5874_s0 + $0x484] ss:$36 sps:$4 sm:$0xff]  }
  0x49   :  { %v4012_v47 = vld [vmem:[%s5874_s0 + $0x1fc] ss:$36 sps:$4 sm:$0xff]  }
  0x4a   :  { %1942 = vmatmul.mubr.bf16.gmra.mxu0 %v3917_v46  ;;  %2032 = vmatmul.mubr.bf16.gmra.mxu1 %v3918_v49  ;;  %v4009_v46 = vld [vmem:[%s5873_s1 + $0x1b0] ss:$8 sps:$4 sm:$0xff]  }
  0x4b   :  { %2117 = vmatpush1.bf16.msra.mxu1 %v3919_v50  ;;  %2330 = vmatpush1.bf16.msra.mxu0 %v3922_v51  ;;  %v4018_v49 = vld [vmem:[%s5873_s1 + $0x2b0] ss:$8 sps:$4 sm:$0xff]   ;;  %v4023_v50 = vld [vmem:[%s5873_s1 + $0x1a4] ss:$8 sps:$4 sm:$0xff]  }
  0x4c   :  { %2118 = vmatprep.subr.bf16.mxu1 %v3927_v52  ;;  %1951 = vmatprep.mubr.bf16.mxu0 %v3928_v53  ;;  %v4026_v51 = vld [vmem:[%s5873_s1 + $0x2a4] ss:$8 sps:$4 sm:$0xff]   ;;  %v4021_v52 = vld [vmem:[%s5873_s1 + $0x1a0] ss:$8 sps:$4 sm:$0xff]  }
  0x4d   :  { %2041 = vmatprep.mubr.bf16.mxu1 %v3930_v54  ;;  %2331 = vmatprep.subr.bf16.mxu0 %v3936_v55  ;;  %v4024_v53 = vld [vmem:[%s5873_s1 + $0x2a0] ss:$8 sps:$4 sm:$0xff]   ;;  %v4016_v54 = vld [vmem:[%s5874_s0 + $0x1f8] ss:$36 sps:$4 sm:$0xff]  }
  0x4e   :  { %v4017_v55 = vld [vmem:[%s5874_s0 + $0x480] ss:$36 sps:$4 sm:$0xff]  }
  0x4f   :  { %2119 = vmatpush1.bf16.msra.mxu1 %v3925_v56  ;;  %2332 = vmatpush1.bf16.msra.mxu0 %v3934_v57  ;;  %v4033_v56 = vld [vmem:[%s5873_s1 + $0x194] ss:$8 sps:$4 sm:$0xff]  }
  0x50   :  { %2120 = vmatprep.subr.bf16.mxu1 %v3939_v58  ;;  %2333 = vmatprep.subr.bf16.mxu0 %v3942_v60  ;;  %v4038_v57 = vld [vmem:[%s5873_s1 + $0x294] ss:$8 sps:$4 sm:$0xff]   ;;  %v4027_v58 = vld [vmem:[%s5874_s0 + $0x244] ss:$36 sps:$4 sm:$0xff]   ;;  %v4031_v60 = vld [vmem:[%s5873_s1 + $0x190] ss:$8 sps:$4 sm:$0xff]  }
  0x52   :  { %1952 = vmatmul.mubr.bf16.gmra.mxu0 %v3932_v59  ;;  %2042 = vmatmul.mubr.bf16.gmra.mxu1 %v3933_v61  ;;  %v4029_v59 = vld [vmem:[%s5874_s0 + $0x4cc] ss:$36 sps:$4 sm:$0xff]  }
  0x53   :  { %2121 = vmatpush1.bf16.msra.mxu1 %v3937_v62  ;;  %2334 = vmatpush1.bf16.msra.mxu0 %v3940_v63  ;;  %v4036_v61 = vld [vmem:[%s5873_s1 + $0x290] ss:$8 sps:$4 sm:$0xff]   ;;  %v4041_v62 = vld [vmem:[%s5873_s1 + $0x184] ss:$8 sps:$4 sm:$0xff]  }
  0x54   :  { %1961 = vmatprep.mubr.bf16.mxu0 %v3943_v0  ;;  %2051 = vmatprep.mubr.bf16.mxu1 %v3945_v1  ;;  %v4044_v63 = vld [vmem:[%s5873_s1 + $0x284] ss:$8 sps:$4 sm:$0xff]   ;;  %v4039_v0 = vld [vmem:[%s5873_s1 + $0x180] ss:$8 sps:$4 sm:$0xff]  }
  0x55   :  { %2122 = vmatprep.subr.bf16.mxu1 %v3949_v2  ;;  %2335 = vmatprep.subr.bf16.mxu0 %v3954_v3  ;;  %v4042_v1 = vld [vmem:[%s5873_s1 + $0x280] ss:$8 sps:$4 sm:$0xff]   ;;  %v4053_v3 = vld [vmem:[%s5873_s1 + $0x374] ss:$8 sps:$4 sm:$0xff]  }
  0x56   :  { %v4034_v2 = vld [vmem:[%s5874_s0 + $0x240] ss:$36 sps:$4 sm:$0xff]  }
  0x57   :  { %2123 = vmatpush1.bf16.msra.mxu1 %v3947_v4  ;;  %2336 = vmatpush1.bf16.msra.mxu0 %v3952_v5  ;;  %v4056_v4 = vld [vmem:[%s5873_s1 + $0x474] ss:$8 sps:$4 sm:$0xff]   ;;  %v4035_v5 = vld [vmem:[%s5874_s0 + $0x4c8] ss:$36 sps:$4 sm:$0xff]  }
  0x58   :  { %2124 = vmatprep.subr.bf16.mxu1 %v3957_v6  ;;  %2337 = vmatprep.subr.bf16.mxu0 %v3960_v8  ;;  %v4047_v6 = vld [vmem:[%s5874_s0 + $0xc] ss:$36 sps:$4 sm:$0xff]  }
  0x59   :  { %v4045_v8 = vld [vmem:[%s5874_s0 + $0x8] ss:$36 sps:$4 sm:$0xff]  }
  0x5a   :  { %1962 = vmatmul.mubr.bf16.gmra.mxu0 %v3950_v7  ;;  %2052 = vmatmul.mubr.bf16.gmra.mxu1 %v3951_v9  ;;  %v4050_v7 = vld [vmem:[%s5874_s0 + $0x14] ss:$36 sps:$4 sm:$0xff]  }
  0x5b   :  { %2125 = vmatpush1.bf16.msra.mxu1 %v3955_v10  ;;  %2338 = vmatpush1.bf16.msra.mxu0 %v3958_v11  ;;  %v4048_v9 = vld [vmem:[%s5874_s0 + $0x10] ss:$36 sps:$4 sm:$0xff]  }
  0x5c   :  { %1971 = vmatprep.mubr.bf16.mxu0 %v3961_v12  ;;  %2061 = vmatprep.mubr.bf16.mxu1 %v3963_v13  ;;  %v4051_v10 = vld [vmem:[%s5873_s1 + $0x370] ss:$8 sps:$4 sm:$0xff]   ;;  %v4059_v13 = vld [vmem:[%s5874_s0 + $0x5c] ss:$36 sps:$4 sm:$0xff]  }
  0x5d   :  { %2126 = vmatprep.subr.bf16.mxu1 %v3969_v14  ;;  %2339 = vmatprep.subr.bf16.mxu0 %v3972_v15  ;;  %v4054_v11 = vld [vmem:[%s5873_s1 + $0x470] ss:$8 sps:$4 sm:$0xff]   ;;  %v4065_v14 = vld [vmem:[%s5873_s1 + $0x364] ss:$8 sps:$4 sm:$0xff]  }
  0x5e   :  { %v4057_v12 = vld [vmem:[%s5874_s0 + $0x54] ss:$36 sps:$4 sm:$0xff]   ;;  %v4077_v15 = vld [vmem:[%s5873_s1 + $0x464] ss:$8 sps:$4 sm:$0xff]  }
  0x5f   :  { %2127 = vmatpush1.bf16.msra.mxu1 %v3967_v16  ;;  %2340 = vmatpush1.bf16.msra.mxu0 %v3970_v17  ;;  %v4063_v16 = vld [vmem:[%s5873_s1 + $0x360] ss:$8 sps:$4 sm:$0xff]   ;;  %v4074_v17 = vld [vmem:[%s5873_s1 + $0x354] ss:$8 sps:$4 sm:$0xff]  }
  0x60   :  { %2128 = vmatprep.subr.bf16.mxu1 %v3975_v18  ;;  %2341 = vmatprep.subr.bf16.mxu0 %v3978_v20  ;;  %v4075_v18 = vld [vmem:[%s5873_s1 + $0x460] ss:$8 sps:$4 sm:$0xff]   ;;  %v4098_v20 = vld [vmem:[%s5873_s1 + $0x454] ss:$8 sps:$4 sm:$0xff]  }
  0x62   :  { %1972 = vmatmul.mubr.bf16.gmra.mxu0 %v3965_v19  ;;  %2062 = vmatmul.mubr.bf16.gmra.mxu1 %v3966_v21  ;;  %v4061_v19 = vld [vmem:[%s5874_s0 + $0x50] ss:$36 sps:$4 sm:$0xff]   ;;  %v4062_v21 = vld [vmem:[%s5874_s0 + $0x58] ss:$36 sps:$4 sm:$0xff]  }
  0x63   :  { %2129 = vmatpush2.bf16.msra.mxu1 %v3973_v22  ;;  %1981 = vmatprep.mubr.bf16.mxu0 %v3979_v24  ;;  %v4066_v22 = vld [vmem:[%s5874_s0 + $0x9c] ss:$36 sps:$4 sm:$0xff]   ;;  %v4072_v24 = vld [vmem:[%s5873_s1 + $0x350] ss:$8 sps:$4 sm:$0xff]  }
  0x64   :  { %2071 = vmatprep.mubr.bf16.mxu1 %v3981_v25  ;;  %2342 = vmatpush2.bf16.msra.mxu0 %v3976_v23  ;;  %v4068_v23 = vld [vmem:[%s5874_s0 + $0xa4] ss:$36 sps:$4 sm:$0xff]  }
  0x65   :  { %2130 = vmatprep.subr.bf16.mxu1 %v3987_v26  ;;  %2343 = vmatprep.subr.bf16.mxu0 %v3990_v27  ;;  %v4086_v25 = vld [vmem:[%s5873_s1 + $0x344] ss:$8 sps:$4 sm:$0xff]   ;;  %v4096_v26 = vld [vmem:[%s5873_s1 + $0x450] ss:$8 sps:$4 sm:$0xff]  }
  0x66   :  { %v4125_v27 = vld [vmem:[%s5873_s1 + $0x444] ss:$8 sps:$4 sm:$0xff]  }
  0x67   :  { %2131 = vmatpush2.bf16.msra.mxu1 %v3985_v28  ;;  %v4084_v28 = vld [vmem:[%s5873_s1 + $0x340] ss:$8 sps:$4 sm:$0xff]  }
  0x68   :  { %2344 = vmatpush2.bf16.msra.mxu0 %v3988_v29  ;;  %2132 = vmatprep.subr.bf16.mxu1 %v3993_v32  ;;  %v4070_v29 = vld [vmem:[%s5874_s0 + $0x98] ss:$36 sps:$4 sm:$0xff]   ;;  %v4123_v32 = vld [vmem:[%s5873_s1 + $0x440] ss:$8 sps:$4 sm:$0xff]  }
  0x69   :  { %2345 = vmatprep.subr.bf16.mxu0 %v4000_v33  ;;  %v4146_v33 = vld [vmem:[%s5873_s1 + $0x434] ss:$8 sps:$4 sm:$0xff]  }
  0x6a   :  { %1982 = vmatmul.mubr.bf16.gmra.mxu0 %v3983_v30  ;;  %2072 = vmatmul.mubr.bf16.gmra.mxu1 %v3984_v31  ;;  %v4071_v30 = vld [vmem:[%s5874_s0 + $0xa0] ss:$36 sps:$4 sm:$0xff]   ;;  %v4095_v31 = vld [vmem:[%s5873_s1 + $0x334] ss:$8 sps:$4 sm:$0xff]  }
  0x6b   :  { %2133 = vmatpush2.bf16.msra.mxu1 %v3991_v34  ;;  %1991 = vmatprep.mubr.bf16.mxu0 %v3994_v35  ;;  %v4078_v34 = vld [vmem:[%s5874_s0 + $0xe4] ss:$36 sps:$4 sm:$0xff]   ;;  %v4080_v35 = vld [vmem:[%s5874_s0 + $0xec] ss:$36 sps:$4 sm:$0xff]  }
  0x6c   :  { %2081 = vmatprep.mubr.bf16.mxu1 %v3996_v36  ;;  %2346 = vmatpush2.bf16.msra.mxu0 %v3998_v37  ;;  %v4093_v36 = vld [vmem:[%s5873_s1 + $0x330] ss:$8 sps:$4 sm:$0xff]   ;;  %v4107_v37 = vld [vmem:[%s5873_s1 + $0x324] ss:$8 sps:$4 sm:$0xff]  }
  0x6d   :  { %2134 = vmatprep.subr.bf16.mxu1 %v4005_v38  ;;  %2347 = vmatprep.subr.bf16.mxu0 %v4008_v39  ;;  %v4144_v38 = vld [vmem:[%s5873_s1 + $0x430] ss:$8 sps:$4 sm:$0xff]   ;;  %v4167_v39 = vld [vmem:[%s5873_s1 + $0x424] ss:$8 sps:$4 sm:$0xff]  }
  0x6f   :  { %2135 = vmatpush2.bf16.msra.mxu1 %v4003_v40  ;;  %v4105_v40 = vld [vmem:[%s5873_s1 + $0x320] ss:$8 sps:$4 sm:$0xff]  }
  0x70   :  { %2348 = vmatpush2.bf16.msra.mxu0 %v4006_v43  ;;  %2136 = vmatprep.subr.bf16.mxu1 %v4011_v44  ;;  %v4165_v43 = vld [vmem:[%s5873_s1 + $0x420] ss:$8 sps:$4 sm:$0xff]   ;;  %v4188_v44 = vld [vmem:[%s5873_s1 + $0x414] ss:$8 sps:$4 sm:$0xff]  }
  0x71   :  { %2349 = vmatprep.subr.bf16.mxu0 %v4020_v45  ;;  %v4083_v45 = vld [vmem:[%s5874_s0 + $0xe8] ss:$36 sps:$4 sm:$0xff]  }
  0x72   :  { %1992 = vmatmul.mubr.bf16.gmra.mxu0 %v4001_v41  ;;  %2082 = vmatmul.mubr.bf16.gmra.mxu1 %v4002_v42  ;;  %v4116_v41 = vld [vmem:[%s5873_s1 + $0x314] ss:$8 sps:$4 sm:$0xff]   ;;  %v4082_v42 = vld [vmem:[%s5874_s0 + $0xe0] ss:$36 sps:$4 sm:$0xff]  }
  0x73   :  { %2001 = vmatprep.mubr.bf16.mxu0 %v4012_v47  ;;  %2091 = vmatprep.mubr.bf16.mxu1 %v4014_v48  ;;  %v4089_v47 = vld [vmem:[%s5874_s0 + $0x134] ss:$36 sps:$4 sm:$0xff]  }
  0x74   :  { %2137 = vmatpush2.bf16.msra.mxu1 %v4009_v46  ;;  %2350 = vmatpush2.bf16.msra.mxu0 %v4018_v49  ;;  %v4087_v46 = vld [vmem:[%s5874_s0 + $0x12c] ss:$36 sps:$4 sm:$0xff]  }
  0x75   :  { %2138 = vmatprep.subr.bf16.mxu1 %v4023_v50  ;;  %2351 = vmatprep.subr.bf16.mxu0 %v4026_v51  ;;  %v4114_v48 = vld [vmem:[%s5873_s1 + $0x310] ss:$8 sps:$4 sm:$0xff]   ;;  %v4132_v50 = vld [vmem:[%s5873_s1 + $0x304] ss:$8 sps:$4 sm:$0xff]   ;;  %v4130_v51 = vld [vmem:[%s5873_s1 + $0x300] ss:$8 sps:$4 sm:$0xff]  }
  0x76   :  { %v4186_v49 = vld [vmem:[%s5873_s1 + $0x410] ss:$8 sps:$4 sm:$0xff]  }
  0x78   :  { %2139 = vmatpush2.bf16.msra.mxu1 %v4021_v52  ;;  %2352 = vmatpush2.bf16.msra.mxu0 %v4024_v53  ;;  %v4213_v52 = vld [vmem:[%s5873_s1 + $0x400] ss:$8 sps:$4 sm:$0xff]  }
  0x79   :  { %2140 = vmatprep.subr.bf16.mxu1 %v4033_v56  ;;  %2353 = vmatprep.subr.bf16.mxu0 %v4038_v57  ;;  %v4091_v53 = vld [vmem:[%s5874_s0 + $0x128] ss:$36 sps:$4 sm:$0xff]   ;;  %v4092_v56 = vld [vmem:[%s5874_s0 + $0x130] ss:$36 sps:$4 sm:$0xff]  }
  0x7a   :  { %2002 = vmatmul.mubr.bf16.gmra.mxu0 %v4016_v54  ;;  %2092 = vmatmul.mubr.bf16.gmra.mxu1 %v4017_v55  ;;  %v4215_v54 = vld [vmem:[%s5873_s1 + $0x404] ss:$8 sps:$4 sm:$0xff]   ;;  %v4143_v55 = vld [vmem:[%s5873_s1 + $0x3f4] ss:$8 sps:$4 sm:$0xff]  }
  0x7b   :  { %2011 = vmatprep.mubr.bf16.mxu0 %v4027_v58  ;;  %2101 = vmatprep.mubr.bf16.mxu1 %v4029_v59  ;;  %v4099_v57 = vld [vmem:[%s5874_s0 + $0x174] ss:$36 sps:$4 sm:$0xff]   ;;  %v4101_v58 = vld [vmem:[%s5874_s0 + $0x17c] ss:$36 sps:$4 sm:$0xff]  }
  0x7c   :  { %2141 = vmatpush2.bf16.msra.mxu1 %v4031_v60  ;;  %2354 = vmatpush2.bf16.msra.mxu0 %v4036_v61  ;;  %v4141_v59 = vld [vmem:[%s5873_s1 + $0x3f0] ss:$8 sps:$4 sm:$0xff]   ;;  %v4155_v60 = vld [vmem:[%s5873_s1 + $0x3e4] ss:$8 sps:$4 sm:$0xff]  }
  0x7d   :  { %2142 = vmatprep.subr.bf16.mxu1 %v4041_v62  ;;  %2355 = vmatprep.subr.bf16.mxu0 %v4044_v63  ;;  %v4103_v61 = vld [vmem:[%s5874_s0 + $0x170] ss:$36 sps:$4 sm:$0xff]   ;;  %v4104_v62 = vld [vmem:[%s5874_s0 + $0x178] ss:$36 sps:$4 sm:$0xff]   ;;  %v4153_v63 = vld [vmem:[%s5873_s1 + $0x3e0] ss:$8 sps:$4 sm:$0xff]  }
  0x80   :  { %2143 = vmatpush2.bf16.msra.mxu1 %v4039_v0  ;;  %2356 = vmatpush2.bf16.msra.mxu0 %v4042_v1  ;;  %v4164_v0 = vld [vmem:[%s5873_s1 + $0x3d4] ss:$8 sps:$4 sm:$0xff]  }
  0x81   :  { %2538 = vmatprep.subr.bf16.mxu1 %v4053_v3  ;;  %2751 = vmatprep.subr.bf16.mxu0 %v4056_v4  ;;  %v4108_v1 = vld [vmem:[%s5874_s0 + $0x1bc] ss:$36 sps:$4 sm:$0xff]   ;;  %v4162_v3 = vld [vmem:[%s5873_s1 + $0x3d0] ss:$8 sps:$4 sm:$0xff]   ;;  %v4176_v4 = vld [vmem:[%s5873_s1 + $0x3c4] ss:$8 sps:$4 sm:$0xff]  }
  0x82   :  { %2012 = vmatmul.mubr.bf16.gmra.mxu0 %v4034_v2  ;;  %2102 = vmatmul.mubr.bf16.gmra.mxu1 %v4035_v5  ;;  %v4110_v2 = vld [vmem:[%s5874_s0 + $0x1c4] ss:$36 sps:$4 sm:$0xff]  }
  0x83   :  { %2144 = vmatprep.mubr.bf16.mxu1 %v4047_v6  ;;  %2357 = vmatprep.mubr.bf16.mxu0 %v4050_v7  ;;  %v4174_v5 = vld [vmem:[%s5873_s1 + $0x3c0] ss:$8 sps:$4 sm:$0xff]   ;;  %v4185_v6 = vld [vmem:[%s5873_s1 + $0x3b4] ss:$8 sps:$4 sm:$0xff]  }
  0x84   :  { %v4112_v7 = vld [vmem:[%s5874_s0 + $0x1b8] ss:$36 sps:$4 sm:$0xff]  }
  0x8a   :  { %2145 = vmatmul.mubr.bf16.vlgmr.msra.gmra.mxu1 %v4045_v8  ;;  %2358 = vmatmul.mubr.bf16.vlgmr.msra.gmra.mxu0 %v4048_v9  ;;  %v4113_v8 = vld [vmem:[%s5874_s0 + $0x1c0] ss:$36 sps:$4 sm:$0xff]  }
  0x8b   :  { %2539 = vmatpush1.bf16.msra.mxu1 %v4051_v10  ;;  %2752 = vmatpush1.bf16.msra.mxu0 %v4054_v11  ;;  %v4117_v9 = vld [vmem:[%s5874_s0 + $0x204] ss:$36 sps:$4 sm:$0xff]   ;;  %v4119_v10 = vld [vmem:[%s5874_s0 + $0x20c] ss:$36 sps:$4 sm:$0xff]  }
  0x8c   :  { %2154 = vmatprep.mubr.bf16.mxu1 %v4057_v12  ;;  %2367 = vmatprep.mubr.bf16.mxu0 %v4059_v13  ;;  %v4183_v11 = vld [vmem:[%s5873_s1 + $0x3b0] ss:$8 sps:$4 sm:$0xff]   ;;  %v4197_v12 = vld [vmem:[%s5873_s1 + $0x3a4] ss:$8 sps:$4 sm:$0xff]   ;;  %v4195_v13 = vld [vmem:[%s5873_s1 + $0x3a0] ss:$8 sps:$4 sm:$0xff]  }
  0x8d   :  { %2540 = vmatprep.subr.bf16.mxu1 %v4065_v14  ;;  %2753 = vmatprep.subr.bf16.mxu0 %v4077_v15  ;;  %v4206_v14 = vld [vmem:[%s5873_s1 + $0x394] ss:$8 sps:$4 sm:$0xff]   ;;  %v4121_v15 = vld [vmem:[%s5874_s0 + $0x200] ss:$36 sps:$4 sm:$0xff]  }
  0x8f   :  { %2541 = vmatpush1.bf16.msra.mxu1 %v4063_v16  ;;  %2754 = vmatpush1.bf16.msra.mxu0 %v4075_v18  ;;  %v4122_v16 = vld [vmem:[%s5874_s0 + $0x208] ss:$36 sps:$4 sm:$0xff]   ;;  %v4128_v18 = vld [vmem:[%s5874_s0 + $0x254] ss:$36 sps:$4 sm:$0xff]  }
  0x90   :  { %2542 = vmatprep.subr.bf16.mxu1 %v4074_v17  ;;  %2755 = vmatprep.subr.bf16.mxu0 %v4098_v20  ;;  %v4126_v17 = vld [vmem:[%s5874_s0 + $0x24c] ss:$36 sps:$4 sm:$0xff]  }
  0x91   :  { %v4222_v20 = vld [vmem:[%s5873_s1 + $0x384] ss:$8 sps:$4 sm:$0xff]  }
  0x92   :  { %2155 = vmatmul.mubr.bf16.gmra.mxu1 %v4061_v19  ;;  %2368 = vmatmul.mubr.bf16.gmra.mxu0 %v4062_v21  ;;  %v4204_v19 = vld [vmem:[%s5873_s1 + $0x390] ss:$8 sps:$4 sm:$0xff]   ;;  %v4220_v21 = vld [vmem:[%s5873_s1 + $0x380] ss:$8 sps:$4 sm:$0xff]  }
  0x93   :  { %2164 = vmatprep.mubr.bf16.mxu1 %v4066_v22  ;;  %2377 = vmatprep.mubr.bf16.mxu0 %v4068_v23  ;;  %v4133_v22 = vld [vmem:[%s5874_s0 + $0x248] ss:$36 sps:$4 sm:$0xff]   ;;  %v4134_v23 = vld [vmem:[%s5874_s0 + $0x250] ss:$36 sps:$4 sm:$0xff]  }
  0x94   :  { %2543 = vmatpush1.bf16.msra.mxu1 %v4072_v24  ;;  %2756 = vmatpush1.bf16.msra.mxu0 %v4096_v26  ;;  %v4135_v24 = vld [vmem:[%s5874_s0 + $0x294] ss:$36 sps:$4 sm:$0xff]  }
  0x95   :  { %2544 = vmatprep.subr.bf16.mxu1 %v4086_v25  ;;  %2757 = vmatprep.subr.bf16.mxu0 %v4125_v27  ;;  %v4137_v25 = vld [vmem:[%s5874_s0 + $0x29c] ss:$36 sps:$4 sm:$0xff]   ;;  %v4139_v26 = vld [vmem:[%s5874_s0 + $0x290] ss:$36 sps:$4 sm:$0xff]  }
  0x96   :  { %v4140_v27 = vld [vmem:[%s5874_s0 + $0x298] ss:$36 sps:$4 sm:$0xff]  }
  0x98   :  { %2545 = vmatpush1.bf16.msra.mxu1 %v4084_v28  ;;  %2758 = vmatpush1.bf16.msra.mxu0 %v4123_v32  ;;  %v4147_v28 = vld [vmem:[%s5874_s0 + $0x2dc] ss:$36 sps:$4 sm:$0xff]   ;;  %v4156_v32 = vld [vmem:[%s5874_s0 + $0x324] ss:$36 sps:$4 sm:$0xff]  }
  0x99   :  { %2546 = vmatprep.subr.bf16.mxu1 %v4095_v31  ;;  %2759 = vmatprep.subr.bf16.mxu0 %v4146_v33  ;;  %v4152_v31 = vld [vmem:[%s5874_s0 + $0x2e0] ss:$36 sps:$4 sm:$0xff]   ;;  %v4158_v33 = vld [vmem:[%s5874_s0 + $0x32c] ss:$36 sps:$4 sm:$0xff]  }
  0x9a   :  { %2165 = vmatmul.mubr.bf16.gmra.mxu1 %v4070_v29  ;;  %2378 = vmatmul.mubr.bf16.gmra.mxu0 %v4071_v30  ;;  %v4149_v29 = vld [vmem:[%s5874_s0 + $0x2e4] ss:$36 sps:$4 sm:$0xff]   ;;  %v4151_v30 = vld [vmem:[%s5874_s0 + $0x2d8] ss:$36 sps:$4 sm:$0xff]  }
  0x9b   :  { %2174 = vmatprep.mubr.bf16.mxu1 %v4078_v34  ;;  %2387 = vmatprep.mubr.bf16.mxu0 %v4080_v35  ;;  %v4160_v34 = vld [vmem:[%s5874_s0 + $0x320] ss:$36 sps:$4 sm:$0xff]   ;;  %v4161_v35 = vld [vmem:[%s5874_s0 + $0x328] ss:$36 sps:$4 sm:$0xff]  }
  0x9c   :  { %2547 = vmatpush1.bf16.msra.mxu1 %v4093_v36  ;;  %2760 = vmatpush1.bf16.msra.mxu0 %v4144_v38  ;;  %v4168_v36 = vld [vmem:[%s5874_s0 + $0x36c] ss:$36 sps:$4 sm:$0xff]  }
  0x9d   :  { %2548 = vmatprep.subr.bf16.mxu1 %v4107_v37  ;;  %2761 = vmatprep.subr.bf16.mxu0 %v4167_v39  ;;  %v4170_v37 = vld [vmem:[%s5874_s0 + $0x374] ss:$36 sps:$4 sm:$0xff]   ;;  %v4172_v38 = vld [vmem:[%s5874_s0 + $0x368] ss:$36 sps:$4 sm:$0xff]  }
  0x9e   :  { %v4173_v39 = vld [vmem:[%s5874_s0 + $0x370] ss:$36 sps:$4 sm:$0xff]  }
  0xa0   :  { %2549 = vmatpush1.bf16.msra.mxu1 %v4105_v40  ;;  %2762 = vmatpush1.bf16.msra.mxu0 %v4165_v43  ;;  %v4177_v40 = vld [vmem:[%s5874_s0 + $0x3b4] ss:$36 sps:$4 sm:$0xff]  }
  0xa1   :  { %2550 = vmatprep.subr.bf16.mxu1 %v4116_v41  ;;  %2763 = vmatprep.subr.bf16.mxu0 %v4188_v44  ;;  %v4179_v41 = vld [vmem:[%s5874_s0 + $0x3bc] ss:$36 sps:$4 sm:$0xff]  }
  0xa2   :  { %2175 = vmatmul.mubr.bf16.gmra.mxu1 %v4082_v42  ;;  %2388 = vmatmul.mubr.bf16.gmra.mxu0 %v4083_v45  ;;  %v4181_v42 = vld [vmem:[%s5874_s0 + $0x3b0] ss:$36 sps:$4 sm:$0xff]   ;;  %v4182_v43 = vld [vmem:[%s5874_s0 + $0x3b8] ss:$36 sps:$4 sm:$0xff]   ;;  %v4191_v45 = vld [vmem:[%s5874_s0 + $0x404] ss:$36 sps:$4 sm:$0xff]  }
  0xa3   :  { %2184 = vmatprep.mubr.bf16.mxu1 %v4087_v46  ;;  %2397 = vmatprep.mubr.bf16.mxu0 %v4089_v47  ;;  %v4189_v44 = vld [vmem:[%s5874_s0 + $0x3fc] ss:$36 sps:$4 sm:$0xff]  }
  0xa4   :  { %2551 = vmatpush1.bf16.msra.mxu1 %v4114_v48  ;;  %2764 = vmatpush1.bf16.msra.mxu0 %v4186_v49  ;;  %v4193_v46 = vld [vmem:[%s5874_s0 + $0x3f8] ss:$36 sps:$4 sm:$0xff]   ;;  %v4194_v47 = vld [vmem:[%s5874_s0 + $0x400] ss:$36 sps:$4 sm:$0xff]   ;;  %v4200_v49 = vld [vmem:[%s5874_s0 + $0x44c] ss:$36 sps:$4 sm:$0xff]  }
  0xa5   :  { %2552 = vmatprep.subr.bf16.mxu1 %v4132_v50  ;;  %2765 = vmatprep.subr.bf16.mxu0 %v4215_v54  ;;  %v4198_v48 = vld [vmem:[%s5874_s0 + $0x444] ss:$36 sps:$4 sm:$0xff]  }
  0xa6   :  { %v4202_v50 = vld [vmem:[%s5874_s0 + $0x440] ss:$36 sps:$4 sm:$0xff]  }
  0xa8   :  { %2553 = vmatpush1.bf16.msra.mxu1 %v4130_v51  ;;  %2766 = vmatpush1.bf16.msra.mxu0 %v4213_v52  ;;  %v4203_v51 = vld [vmem:[%s5874_s0 + $0x448] ss:$36 sps:$4 sm:$0xff]  }
  0xa9   :  { %2554 = vmatprep.subr.bf16.mxu1 %v4143_v55  ;;  %v4207_v52 = vld [vmem:[%s5874_s0 + $0x48c] ss:$36 sps:$4 sm:$0xff]  }
  0xaa   :  { %2185 = vmatmul.mubr.bf16.gmra.mxu1 %v4091_v53  ;;  %2398 = vmatmul.mubr.bf16.gmra.mxu0 %v4092_v56  ;;  %v4209_v53 = vld [vmem:[%s5874_s0 + $0x494] ss:$36 sps:$4 sm:$0xff]  }
  0xab   :  { %2194 = vmatprep.mubr.bf16.mxu1 %v4099_v57  ;;  %2407 = vmatprep.mubr.bf16.mxu0 %v4101_v58 }
  0xac   :  { %2555 = vmatpush2.bf16.msra.mxu1 %v4141_v59 }
  0xad   :  { %2556 = vmatprep.subr.bf16.mxu1 %v4155_v60  ;;  %v4211_v60 = vld [vmem:[%s5874_s0 + $0x488] ss:$36 sps:$4 sm:$0xff]  }
  0xb0   :  { %2557 = vmatpush2.bf16.msra.mxu1 %v4153_v63  ;;  %v4218_v63 = vld [vmem:[%s5874_s0 + $0x4dc] ss:$36 sps:$4 sm:$0xff]  }
  0xb1   :  { %2558 = vmatprep.subr.bf16.mxu1 %v4164_v0 }
  0xb2   :  { %2195 = vmatmul.mubr.bf16.gmra.mxu1 %v4103_v61  ;;  %2408 = vmatmul.mubr.bf16.gmra.mxu0 %v4104_v62  ;;  %v4212_v61 = vld [vmem:[%s5874_s0 + $0x490] ss:$36 sps:$4 sm:$0xff]  }
  0xb3   :  { %2204 = vmatprep.mubr.bf16.mxu1 %v4108_v1  ;;  %2417 = vmatprep.mubr.bf16.mxu0 %v4110_v2  ;;  %v4216_v62 = vld [vmem:[%s5874_s0 + $0x4d4] ss:$36 sps:$4 sm:$0xff]  }
  0xb4   :  { %2559 = vmatpush2.bf16.msra.mxu1 %v4162_v3 }
  0xb5   :  { %2560 = vmatprep.subr.bf16.mxu1 %v4176_v4 }
  0xb8   :  { %2561 = vmatpush2.bf16.msra.mxu1 %v4174_v5 }
  0xb9   :  { %2562 = vmatprep.subr.bf16.mxu1 %v4185_v6 }
  0xba   :  { %2205 = vmatmul.mubr.bf16.gmra.mxu1 %v4112_v7  ;;  %2418 = vmatmul.mubr.bf16.gmra.mxu0 %v4113_v8  ;;  %v4223_v8 = vld [vmem:[%s5874_s0 + $0x4d0] ss:$36 sps:$4 sm:$0xff]  }
  0xbb   :  { %2214 = vmatprep.mubr.bf16.mxu1 %v4117_v9  ;;  %2427 = vmatprep.mubr.bf16.mxu0 %v4119_v10  ;;  %v4224_v9 = vld [vmem:[%s5874_s0 + $0x4d8] ss:$36 sps:$4 sm:$0xff]  }
  0xbc   :  { %2563 = vmatpush2.bf16.msra.mxu1 %v4183_v11  ;;  %v4227_v10 = vld [vmem:[%s5874_s0 + $0x1c] ss:$36 sps:$4 sm:$0xff]  }
  0xbd   :  { %2564 = vmatprep.subr.bf16.mxu1 %v4197_v12 }
  0xc0   :  { %2565 = vmatpush2.bf16.msra.mxu1 %v4195_v13 }
  0xc1   :  { %2566 = vmatprep.subr.bf16.mxu1 %v4206_v14 }
  0xc2   :  { %2215 = vmatmul.mubr.bf16.gmra.mxu1 %v4121_v15  ;;  %2428 = vmatmul.mubr.bf16.gmra.mxu0 %v4122_v16  ;;  %v5877_v15 = vmov 0  }
  0xc3   :  { %2224 = vmatprep.mubr.bf16.mxu1 %v4126_v17  ;;  %2437 = vmatprep.mubr.bf16.mxu0 %v4128_v18 }
  0xc4   :  { %2567 = vmatpush2.bf16.msra.mxu1 %v4204_v19 }
  0xc5   :  { %2568 = vmatprep.subr.bf16.mxu1 %v4222_v20  ;;  %v4225_v20 = vld [vmem:[%s5874_s0 + $0x18] ss:$36 sps:$4 sm:$0xff]  }
  0xc8   :  { %2569 = vmatpush2.bf16.msra.mxu1 %v4220_v21  ;;  %v4228_v21 = vld [vmem:[%s5874_s0 + $0x20] ss:$36 sps:$4 sm:$0xff]  }
  0xca   :  { %2225 = vmatmul.mubr.bf16.gmra.mxu1 %v4133_v22  ;;  %2438 = vmatmul.mubr.bf16.gmra.mxu0 %v4134_v23  ;;  %v4231_v22 = vld [vmem:[%s5874_s0 + $0x64] ss:$36 sps:$4 sm:$0xff]  }
  0xcb   :  { %2234 = vmatprep.mubr.bf16.mxu1 %v4135_v24  ;;  %2447 = vmatprep.mubr.bf16.mxu0 %v4137_v25 }
  0xd2   :  { %2235 = vmatmul.mubr.bf16.gmra.mxu1 %v4139_v26  ;;  %2448 = vmatmul.mubr.bf16.gmra.mxu0 %v4140_v27 }
  0xd3   :  { %2244 = vmatprep.mubr.bf16.mxu1 %v4147_v28  ;;  %2457 = vmatprep.mubr.bf16.mxu0 %v4149_v29 }
  0xda   :  { %2245 = vmatmul.mubr.bf16.gmra.mxu1 %v4151_v30  ;;  %2458 = vmatmul.mubr.bf16.gmra.mxu0 %v4152_v31  ;;  %v4229_v31 = vld [vmem:[%s5874_s0 + $0x60] ss:$36 sps:$4 sm:$0xff]  }
  0xdb   :  { %2254 = vmatprep.mubr.bf16.mxu1 %v4156_v32  ;;  %2467 = vmatprep.mubr.bf16.mxu0 %v4158_v33  ;;  %v4232_v32 = vld [vmem:[%s5874_s0 + $0x68] ss:$36 sps:$4 sm:$0xff]  }
  0xdc   :  { %v4235_v33 = vld [vmem:[%s5874_s0 + $0xac] ss:$36 sps:$4 sm:$0xff]  }
  0xe2   :  { %2255 = vmatmul.mubr.bf16.gmra.mxu1 %v4160_v34  ;;  %2468 = vmatmul.mubr.bf16.gmra.mxu0 %v4161_v35 }
  0xe3   :  { %2264 = vmatprep.mubr.bf16.mxu1 %v4168_v36  ;;  %2477 = vmatprep.mubr.bf16.mxu0 %v4170_v37 }
  0xea   :  { %2265 = vmatmul.mubr.bf16.gmra.mxu1 %v4172_v38  ;;  %2478 = vmatmul.mubr.bf16.gmra.mxu0 %v4173_v39 }
  0xeb   :  { %2274 = vmatprep.mubr.bf16.mxu1 %v4177_v40  ;;  %2487 = vmatprep.mubr.bf16.mxu0 %v4179_v41 }
  0xf2   :  { %2275 = vmatmul.mubr.bf16.gmra.mxu1 %v4181_v42  ;;  %2488 = vmatmul.mubr.bf16.gmra.mxu0 %v4182_v43  ;;  %v4233_v42 = vld [vmem:[%s5874_s0 + $0xa8] ss:$36 sps:$4 sm:$0xff]   ;;  %v4236_v43 = vld [vmem:[%s5874_s0 + $0xb0] ss:$36 sps:$4 sm:$0xff]  }
  0xf3   :  { %2284 = vmatprep.mubr.bf16.mxu1 %v4189_v44  ;;  %2497 = vmatprep.mubr.bf16.mxu0 %v4191_v45  ;;  %v4239_v44 = vld [vmem:[%s5874_s0 + $0xf4] ss:$36 sps:$4 sm:$0xff]  }
  0xfa   :  { %2285 = vmatmul.mubr.bf16.gmra.mxu1 %v4193_v46  ;;  %2498 = vmatmul.mubr.bf16.gmra.mxu0 %v4194_v47 }
  0xfb   :  { %2294 = vmatprep.mubr.bf16.mxu1 %v4198_v48  ;;  %2507 = vmatprep.mubr.bf16.mxu0 %v4200_v49 }
 0x102   :  { %v5056_v54 = vpop.f32.mrf.mxu0  ;;  %v5058_v55 = vpop.f32.mrf.mxu1  ;;  %2295 = vmatmul.mubr.bf16.gmra.mxu1 %v4202_v50  ;;  %2508 = vmatmul.mubr.bf16.gmra.mxu0 %v4203_v51 }
 0x103   :  { %2304 = vmatprep.mubr.bf16.mxu1 %v4207_v52  ;;  %2517 = vmatprep.mubr.bf16.mxu0 %v4209_v53  ;;  %v4237_v53 = vld [vmem:[%s5874_s0 + $0xf0] ss:$36 sps:$4 sm:$0xff]  }
 0x104   :  { %v5060_v56 = vpop.f32.mrf.mxu0  ;;  %v5062_v57 = vpop.f32.mrf.mxu1 }
 0x106   :  { %v5064_v58 = vpop.f32.mrf.mxu0  ;;  %v5066_v59 = vpop.f32.mrf.mxu1 }
 0x108   :  { %v5080_v0 = vpop.f32.mrf.mxu0  ;;  %v5082_v1 = vpop.f32.mrf.mxu1 }
 0x10a   :  { %v5084_v2 = vpop.f32.mrf.mxu0  ;;  %v5086_v3 = vpop.f32.mrf.mxu1  ;;  %2305 = vmatmul.mubr.bf16.gmra.mxu1 %v4211_v60  ;;  %2518 = vmatmul.mubr.bf16.gmra.mxu0 %v4212_v61  ;;  %v4240_v60 = vld [vmem:[%s5874_s0 + $0xf8] ss:$36 sps:$4 sm:$0xff]  }
 0x10b   :  { %2314 = vmatprep.mubr.bf16.mxu1 %v4216_v62  ;;  %2527 = vmatprep.mubr.bf16.mxu0 %v4218_v63  ;;  %v4243_v61 = vld [vmem:[%s5874_s0 + $0x13c] ss:$36 sps:$4 sm:$0xff]  }
 0x10c   :  { %v5088_v4 = vpop.f32.mrf.mxu0  ;;  %v5090_v5 = vpop.f32.mrf.mxu1 }
 0x10e   :  { %v5092_v6 = vpop.f32.mrf.mxu0  ;;  %v5094_v7 = vpop.f32.mrf.mxu1 }
 0x110   :  { %v5105_v11 = vpop.f32.mrf.mxu0  ;;  %v5107_v12 = vpop.f32.mrf.mxu1 }
 0x112   :  { %v5109_v13 = vpop.f32.mrf.mxu0  ;;  %v5111_v14 = vpop.f32.mrf.mxu1  ;;  %2315 = vmatmul.mubr.bf16.gmra.mxu1 %v4223_v8  ;;  %2528 = vmatmul.mubr.bf16.gmra.mxu0 %v4224_v9 }
 0x113   :  { %2570 = vmatprep.mubr.bf16.mxu1 %v4227_v10  ;;  %2783 = vmatprep.mubr.bf16.mxu0 %v5877_v15 }
 0x114   :  { %v5114_v16 = vpop.f32.mrf.mxu0  ;;  %v5116_v17 = vpop.f32.mrf.mxu1 }
 0x116   :  { %v5118_v18 = vpop.f32.mrf.mxu0  ;;  %v5120_v19 = vpop.f32.mrf.mxu1 }
 0x117   :  { %5879 = vst [vmem:[#allocation2_spill] sm:$0xff] %v5120_v19 }
 0x118   :  { %v5131_v23 = vpop.f32.mrf.mxu0  ;;  %v5133_v24 = vpop.f32.mrf.mxu1 }
 0x119   :  { %5880 = vst [vmem:[#allocation3_spill] sm:$0xff] %v5133_v24 }
 0x11a   :  { %v5135_v25 = vpop.f32.mrf.mxu0  ;;  %v5137_v26 = vpop.f32.mrf.mxu1  ;;  %2571 = vmatmul.mubr.bf16.vlgmr.msra.gmra.mxu1 %v4225_v20  ;;  %2784 = vmatmul.mubr.bf16.vlgmr.msra.gmra.mxu0 %v4228_v21 }
 0x11b   :  { %5881 = vst [vmem:[#allocation4_spill] sm:$0xff] %v5137_v26  ;;  %2580 = vmatprep.mubr.bf16.mxu1 %v4231_v22  ;;  %2793 = vmatprep.mubr.bf16.mxu0 %v5877_v15 }
 0x11c   :  { %v5140_v27 = vpop.f32.mrf.mxu0  ;;  %v5142_v28 = vpop.f32.mrf.mxu1 }
 0x11d   :  { %5882 = vst [vmem:[#allocation5_spill] sm:$0xff] %v5142_v28 }
 0x11e   :  { %v5144_v29 = vpop.f32.mrf.mxu0  ;;  %v5146_v30 = vpop.f32.mrf.mxu1 }
 0x11f   :  { %5883 = vst [vmem:[#allocation6_spill] sm:$0xff] %v5146_v30 }
 0x120   :  { %v5157_v34 = vpop.f32.mrf.mxu0  ;;  %v5159_v35 = vpop.f32.mrf.mxu1 }
 0x121   :  { %5884 = vst [vmem:[#allocation7_spill] sm:$0xff] %v5159_v35 }
 0x122   :  { %v5161_v36 = vpop.f32.mrf.mxu0  ;;  %v5163_v37 = vpop.f32.mrf.mxu1  ;;  %2581 = vmatmul.mubr.bf16.gmra.mxu1 %v4229_v31  ;;  %2794 = vmatmul.mubr.bf16.gmra.mxu0 %v4232_v32  ;;  %v4241_v31 = vld [vmem:[%s5874_s0 + $0x138] ss:$36 sps:$4 sm:$0xff]   ;;  %v4244_v32 = vld [vmem:[%s5874_s0 + $0x140] ss:$36 sps:$4 sm:$0xff]  }
 0x123   :  { %5885 = vst [vmem:[#allocation8_spill] sm:$0xff] %v5163_v37  ;;  %2590 = vmatprep.mubr.bf16.mxu1 %v4235_v33  ;;  %2803 = vmatprep.mubr.bf16.mxu0 %v5877_v15  ;;  %v4247_v33 = vld [vmem:[%s5874_s0 + $0x184] ss:$36 sps:$4 sm:$0xff]  }
 0x124   :  { %v5166_v38 = vpop.f32.mrf.mxu0  ;;  %v5168_v39 = vpop.f32.mrf.mxu1 }
 0x125   :  { %5886 = vst [vmem:[#allocation9_spill] sm:$0xff] %v5168_v39 }
 0x126   :  { %v5170_v40 = vpop.f32.mrf.mxu0  ;;  %v5172_v41 = vpop.f32.mrf.mxu1 }
 0x127   :  { %5887 = vst [vmem:[#allocation10_spill] sm:$0xff] %v5172_v41 }
 0x128   :  { %v5183_v45 = vpop.f32.mrf.mxu0  ;;  %v5185_v46 = vpop.f32.mrf.mxu1 }
 0x129   :  { %5888 = vst [vmem:[#allocation11_spill] sm:$0xff] %v5185_v46 }
 0x12a   :  { %v5187_v47 = vpop.f32.mrf.mxu0  ;;  %v5189_v48 = vpop.f32.mrf.mxu1  ;;  %2591 = vmatmul.mubr.bf16.gmra.mxu1 %v4233_v42  ;;  %2804 = vmatmul.mubr.bf16.gmra.mxu0 %v4236_v43 }
 0x12b   :  { %5889 = vst [vmem:[#allocation12_spill] sm:$0xff] %v5189_v48  ;;  %2600 = vmatprep.mubr.bf16.mxu1 %v4239_v44  ;;  %2813 = vmatprep.mubr.bf16.mxu0 %v5877_v15 }
 0x12c   :  { %v5192_v49 = vpop.f32.mrf.mxu0  ;;  %v5194_v50 = vpop.f32.mrf.mxu1 }
 0x12d   :  { %5890 = vst [vmem:[#allocation13_spill] sm:$0xff] %v5194_v50  ;;  %v5902_v50 = vmov 0  }
 0x12e   :  { %v5196_v51 = vpop.f32.mrf.mxu0  ;;  %v5198_v52 = vpop.f32.mrf.mxu1 }
 0x12f   :  { %5891 = vst [vmem:[#allocation14_spill] sm:$0xff] %v5198_v52 }
 0x130   :  { %v5209_v62 = vpop.f32.mrf.mxu0  ;;  %v5211_v63 = vpop.f32.mrf.mxu1 }
 0x131   :  { %5892 = vst [vmem:[#allocation15_spill] sm:$0xff] %v5211_v63 }
 0x132   :  { %v5213_v8 = vpop.f32.mrf.mxu0  ;;  %v5215_v9 = vpop.f32.mrf.mxu1  ;;  %2601 = vmatmul.mubr.bf16.gmra.mxu1 %v4237_v53  ;;  %2814 = vmatmul.mubr.bf16.gmra.mxu0 %v4240_v60  ;;  %v341_v60 = vlaneseq }
 0x133   :  { %5893 = vst [vmem:[#allocation16_spill] sm:$0xff] %v5215_v9  ;;  %2610 = vmatprep.mubr.bf16.mxu1 %v4243_v61  ;;  %2823 = vmatprep.mubr.bf16.mxu0 %v5877_v15 }
 0x134   :  { %v5218_v10 = vpop.f32.mrf.mxu0  ;;  %v5220_v20 = vpop.f32.mrf.mxu1 }
 0x135   :  { %5894 = vst [vmem:[#allocation17_spill] sm:$0xff] %v5220_v20 }
 0x136   :  { %v5222_v21 = vpop.f32.mrf.mxu0  ;;  %v5224_v22 = vpop.f32.mrf.mxu1 }
 0x137   :  { %5895 = vst [vmem:[#allocation18_spill] sm:$0xff] %v5224_v22 }
 0x138   :  { %v5235_v42 = vpop.f32.mrf.mxu0  ;;  %v5237_v43 = vpop.f32.mrf.mxu1 }
 0x139   :  { %5896 = vst [vmem:[#allocation19_spill] sm:$0xff] %v5237_v43  ;;  %v4245_v43 = vld [vmem:[%s5874_s0 + $0x180] ss:$36 sps:$4 sm:$0xff]  }
 0x13a   :  { %v5239_v44 = vpop.f32.mrf.mxu0  ;;  %v5241_v53 = vpop.f32.mrf.mxu1  ;;  %2611 = vmatmul.mubr.bf16.gmra.mxu1 %v4241_v31  ;;  %2824 = vmatmul.mubr.bf16.gmra.mxu0 %v4244_v32  ;;  %v4248_v31 = vld [vmem:[%s5874_s0 + $0x188] ss:$36 sps:$4 sm:$0xff]   ;;  %v342_v32 = vshrl.u32 %v341_v60, 7  ;;  %v339_v60 = vld [vmem:[%s5875_s2] sm:$0x3] }
 0x13b   :  { %5897 = vst [vmem:[#allocation20_spill] sm:$0xff] %v5241_v53  ;;  %2620 = vmatprep.mubr.bf16.mxu1 %v4247_v33  ;;  %2833 = vmatprep.mubr.bf16.mxu0 %v5877_v15  ;;  %v4251_v33 = vld [vmem:[%s5874_s0 + $0x1cc] ss:$36 sps:$4 sm:$0xff]  }
 0x13c   :  { %v5244_v61 = vpop.f32.mrf.mxu0  ;;  %v5246_v22 = vpop.f32.mrf.mxu1  ;;  %v343_v63 = vsub.s32 0, %v342_v32  ;;  %v347_v52 = vsub.s32 1, %v342_v32 }
 0x13d   :  { %5898 = vst [vmem:[#allocation21_spill] sm:$0xff] %v5246_v22 }
 0x13e   :  { %v5248_v20 = vpop.f32.mrf.mxu0  ;;  %v5250_v9 = vpop.f32.mrf.mxu1  ;;  %v5287_v32 = vrot.slane %v339_v60, %v343_v63 }
 0x13f   :  { %5899 = vst [vmem:[#allocation22_spill] sm:$0xff] %v5250_v9 }
 0x140   :  { %v5261_v15 = vpop.f32.mrf.mxu0  ;;  %v5263_v22 = vpop.f32.mrf.mxu1  ;;  %v1938_v28 = vadd.f32 %v5064_v58, %v5287_v32  ;;  %v4259_v58 = vld [vmem:[%s5874_s0 + $0x25c] ss:$36 sps:$4 sm:$0xff]  }
 0x141   :  { %5900 = vst [vmem:[#allocation23_spill] sm:$0xff] %v5263_v22 }
 0x142   :  { %v5265_v53 = vpop.f32.mrf.mxu0  ;;  %v5267_v9 = vpop.f32.mrf.mxu1  ;;  %2621 = vmatmul.mubr.bf16.gmra.mxu1 %v4245_v43  ;;  %2834 = vmatmul.mubr.bf16.gmra.mxu0 %v4248_v31  ;;  %v4249_v43 = vld [vmem:[%s5874_s0 + $0x1c8] ss:$36 sps:$4 sm:$0xff]   ;;  %v4252_v31 = vld [vmem:[%s5874_s0 + $0x1d0] ss:$36 sps:$4 sm:$0xff]  }
 0x143   :  { %5901 = vst [vmem:[#allocation24_spill] sm:$0xff] %v5267_v9  ;;  %2630 = vmatprep.mubr.bf16.mxu1 %v4251_v33  ;;  %2843 = vmatprep.mubr.bf16.mxu0 %v5902_v50  ;;  %v5289_v33 = vrot.slane %v339_v60, %v347_v52 }
 0x144   :  { %v5273_v48 = vpop.f32.mrf.mxu0  ;;  %v5275_v46 = vpop.f32.mrf.mxu1 }
 0x145   :  { %5903 = vst [vmem:[#allocation25_spill] sm:$0xff] %v5275_v46  ;;  %v4255_v46 = vld [vmem:[%s5874_s0 + $0x214] ss:$36 sps:$4 sm:$0xff]   ;;  %v1936_v63 = vadd.f32 %v5060_v56, %v5289_v33 }
 0x146   :  { %v5277_v22 = vpop.f32.mrf.mxu0  ;;  %v5279_v41 = vpop.f32.mrf.mxu1  ;;  %v4256_v56 = vld [vmem:[%s5874_s0 + $0x218] ss:$36 sps:$4 sm:$0xff]  }
 0x147   :  { %5904 = vst [vmem:[#allocation26_spill] sm:$0xff] %v5279_v41  ;;  %v1934_v41 = vadd.f32 %v5056_v54, %v5287_v32 }
 0x148   :  { %v5294_v9 = vpop.f32.mrf.mxu0  ;;  %v5296_v39 = vpop.f32.mrf.mxu1 }
 0x149   :  { %5905 = vst [vmem:[#allocation27_spill] sm:$0xff] %v5296_v39 }
 0x14a   :  { %v2146_v37 = vpop.f32.mrf.mxu1  ;;  %v2359_v35 = vpop.f32.mrf.mxu0  ;;  %2631 = vmatmul.mubr.bf16.gmra.mxu1 %v4249_v43  ;;  %2844 = vmatmul.mubr.bf16.gmra.mxu0 %v4252_v31  ;;  %v4253_v43 = vld [vmem:[%s5874_s0 + $0x210] ss:$36 sps:$4 sm:$0xff]  }
 0x14b   :  { %v2147_v52 = vadd.f32 %v2146_v37, %v1934_v41  ;;  %2640 = vmatprep.mubr.bf16.mxu1 %v4255_v46  ;;  %2853 = vmatprep.mubr.bf16.mxu0 %v5902_v50  ;;  %v1940_v37 = vadd.f32 %v5080_v0, %v5289_v33  ;;  %v1946_v0 = vadd.f32 %v5088_v4, %v5289_v33  ;;  %v4257_v4 = vld [vmem:[%s5874_s0 + $0x258] ss:$36 sps:$4 sm:$0xff]  }
 0x14c   :  { %v2148_v60 = vpop.f32.mrf.mxu1  ;;  %v2361_v30 = vpop.f32.mrf.mxu0 }
 0x14d   :  { %v5305_v39 = vadd.f32 %v2359_v35, %v2147_v52  ;;  %v2149_v26 = vadd.f32 %v2148_v60, %v1936_v63  ;;  %v1944_v63 = vadd.f32 %v5084_v2, %v5287_v32  ;;  %v1948_v2 = vadd.f32 %v5092_v6, %v5287_v32  ;;  %v4263_v6 = vld [vmem:[%s5874_s0 + $0x2a4] ss:$36 sps:$4 sm:$0xff]  }
 0x14e   :  { %v2150_v54 = vpop.f32.mrf.mxu1  ;;  %v2363_v24 = vpop.f32.mrf.mxu0 }
 0x14f   :  { %5906 = vst [vmem:[#allocation28_spill] sm:$0xff] %v5305_v39  ;;  %v5315_v41 = vadd.f32 %v2361_v30, %v2149_v26  ;;  %v2151_v46 = vadd.f32 %v2150_v54, %v1938_v28 }
 0x150   :  { %v2152_v35 = vpop.f32.mrf.mxu1  ;;  %v2365_v31 = vpop.f32.mrf.mxu0 }
 0x151   :  { %v5322_v52 = vadd.f32 %v2363_v24, %v2151_v46  ;;  %v2153_v60 = vadd.f32 %v2152_v35, %v1940_v37 }
 0x152   :  { %v2156_v39 = vpop.f32.mrf.mxu1  ;;  %v2369_v19 = vpop.f32.mrf.mxu0  ;;  %2641 = vmatmul.mubr.bf16.gmra.mxu1 %v4253_v43  ;;  %2854 = vmatmul.mubr.bf16.gmra.mxu0 %v4256_v56  ;;  %v1950_v56 = vadd.f32 %v5105_v11, %v5289_v33  ;;  %v1956_v11 = vadd.f32 %v5114_v16, %v5289_v33  ;;  %v4261_v16 = vld [vmem:[%s5874_s0 + $0x2a0] ss:$36 sps:$4 sm:$0xff]  }
 0x153   :  { %v5326_v26 = vadd.f32 %v2365_v31, %v2153_v60  ;;  %v2157_v28 = vadd.f32 %v2156_v39, %v1944_v63  ;;  %2650 = vmatprep.mubr.bf16.mxu1 %v4259_v58  ;;  %2863 = vmatprep.mubr.bf16.mxu0 %v5902_v50  ;;  %v4260_v39 = vld [vmem:[%s5874_s0 + $0x260] ss:$36 sps:$4 sm:$0xff]   ;;  %v1954_v63 = vadd.f32 %v5109_v13, %v5287_v32 }
 0x154   :  { %v2158_v30 = vpop.f32.mrf.mxu1  ;;  %v2371_v54 = vpop.f32.mrf.mxu0  ;;  %v1958_v13 = vadd.f32 %v5118_v18, %v5287_v32  ;;  %v4267_v18 = vld [vmem:[%s5874_s0 + $0x2ec] ss:$36 sps:$4 sm:$0xff]  }
 0x155   :  { %v5331_v24 = vadd.f32 %v2369_v19, %v2157_v28  ;;  %v2159_v37 = vadd.f32 %v2158_v30, %v1946_v0 }
 0x156   :  { %v2160_v46 = vpop.f32.mrf.mxu1  ;;  %v2373_v43 = vpop.f32.mrf.mxu0 }
 0x157   :  { %v5341_v58 = vadd.f32 %v2371_v54, %v2159_v37  ;;  %v2161_v35 = vadd.f32 %v2160_v46, %v1948_v2 }
 0x158   :  { %v2162_v19 = vpop.f32.mrf.mxu1  ;;  %v2375_v31 = vpop.f32.mrf.mxu0 }
 0x159   :  { %v5348_v60 = vadd.f32 %v2373_v43, %v2161_v35  ;;  %v2163_v0 = vadd.f32 %v2162_v19, %v1950_v56 }
 0x15a   :  { %v2166_v28 = vpop.f32.mrf.mxu1  ;;  %v2379_v30 = vpop.f32.mrf.mxu0  ;;  %2651 = vmatmul.mubr.bf16.gmra.mxu1 %v4257_v4  ;;  %2864 = vmatmul.mubr.bf16.gmra.mxu0 %v4260_v39  ;;  %v4264_v39 = vld [vmem:[%s5874_s0 + $0x2a8] ss:$36 sps:$4 sm:$0xff]  }
 0x15b   :  { %v5352_v54 = vadd.f32 %v2375_v31, %v2163_v0  ;;  %v2167_v2 = vadd.f32 %v2166_v28, %v1954_v63  ;;  %2660 = vmatprep.mubr.bf16.mxu1 %v4263_v6  ;;  %2873 = vmatprep.mubr.bf16.mxu0 %v5902_v50  ;;  %v1960_v6 = vadd.f32 %v5131_v23, %v5289_v33 }
 0x15c   :  { %v2168_v37 = vpop.f32.mrf.mxu1  ;;  %v2381_v46 = vpop.f32.mrf.mxu0  ;;  %v1964_v28 = vadd.f32 %v5135_v25, %v5287_v32  ;;  %v1966_v23 = vadd.f32 %v5140_v27, %v5289_v33  ;;  %v1968_v25 = vadd.f32 %v5144_v29, %v5287_v32  ;;  %v4265_v27 = vld [vmem:[%s5874_s0 + $0x2e8] ss:$36 sps:$4 sm:$0xff]   ;;  %v4271_v29 = vld [vmem:[%s5874_s0 + $0x334] ss:$36 sps:$4 sm:$0xff]  }
 0x15d   :  { %v5357_v43 = vadd.f32 %v2379_v30, %v2167_v2  ;;  %v2169_v56 = vadd.f32 %v2168_v37, %v1956_v11 }
 0x15e   :  { %v2170_v35 = vpop.f32.mrf.mxu1  ;;  %v2383_v4 = vpop.f32.mrf.mxu0 }
 0x15f   :  { %v5367_v19 = vadd.f32 %v2381_v46, %v2169_v56  ;;  %v2171_v31 = vadd.f32 %v2170_v35, %v1958_v13 }
 0x160   :  { %v2172_v63 = vpop.f32.mrf.mxu1  ;;  %v2385_v0 = vpop.f32.mrf.mxu0 }
 0x161   :  { %v5374_v30 = vadd.f32 %v2383_v4, %v2171_v31  ;;  %v2173_v11 = vadd.f32 %v2172_v63, %v1960_v6 }
 0x162   :  { %v2176_v2 = vpop.f32.mrf.mxu1  ;;  %v2389_v37 = vpop.f32.mrf.mxu0  ;;  %2661 = vmatmul.mubr.bf16.gmra.mxu1 %v4261_v16  ;;  %2874 = vmatmul.mubr.bf16.gmra.mxu0 %v4264_v39  ;;  %v4268_v39 = vld [vmem:[%s5874_s0 + $0x2f0] ss:$36 sps:$4 sm:$0xff]  }
 0x163   :  { %v5378_v46 = vadd.f32 %v2385_v0, %v2173_v11  ;;  %v2177_v13 = vadd.f32 %v2176_v2, %v1964_v28  ;;  %2670 = vmatprep.mubr.bf16.mxu1 %v4267_v18  ;;  %2883 = vmatprep.mubr.bf16.mxu0 %v5902_v50  ;;  %v1970_v18 = vadd.f32 %v5157_v34, %v5289_v33 }
 0x164   :  { %v2178_v56 = vpop.f32.mrf.mxu1  ;;  %v2391_v35 = vpop.f32.mrf.mxu0  ;;  %v1974_v2 = vadd.f32 %v5161_v36, %v5287_v32  ;;  %v1976_v34 = vadd.f32 %v5166_v38, %v5289_v33  ;;  %v1978_v36 = vadd.f32 %v5170_v40, %v5287_v32  ;;  %v4269_v38 = vld [vmem:[%s5874_s0 + $0x330] ss:$36 sps:$4 sm:$0xff]   ;;  %v4275_v40 = vld [vmem:[%s5874_s0 + $0x37c] ss:$36 sps:$4 sm:$0xff]  }
 0x165   :  { %v5383_v4 = vadd.f32 %v2389_v37, %v2177_v13  ;;  %v2179_v6 = vadd.f32 %v2178_v56, %v1966_v23 }
 0x166   :  { %v2180_v31 = vpop.f32.mrf.mxu1  ;;  %v2393_v16 = vpop.f32.mrf.mxu0 }
 0x167   :  { %v5393_v63 = vadd.f32 %v2391_v35, %v2179_v6  ;;  %v2181_v0 = vadd.f32 %v2180_v31, %v1968_v25 }
 0x168   :  { %v2182_v28 = vpop.f32.mrf.mxu1  ;;  %v2395_v11 = vpop.f32.mrf.mxu0 }
 0x169   :  { %v5400_v37 = vadd.f32 %v2393_v16, %v2181_v0  ;;  %v2183_v23 = vadd.f32 %v2182_v28, %v1970_v18 }
 0x16a   :  { %v2186_v13 = vpop.f32.mrf.mxu1  ;;  %v2399_v56 = vpop.f32.mrf.mxu0  ;;  %2671 = vmatmul.mubr.bf16.gmra.mxu1 %v4265_v27  ;;  %2884 = vmatmul.mubr.bf16.gmra.mxu0 %v4268_v39  ;;  %v4272_v39 = vld [vmem:[%s5874_s0 + $0x338] ss:$36 sps:$4 sm:$0xff]  }
 0x16b   :  { %v5404_v35 = vadd.f32 %v2395_v11, %v2183_v23  ;;  %v2187_v25 = vadd.f32 %v2186_v13, %v1974_v2  ;;  %2680 = vmatprep.mubr.bf16.mxu1 %v4271_v29  ;;  %2893 = vmatprep.mubr.bf16.mxu0 %v5902_v50  ;;  %v1980_v29 = vadd.f32 %v5183_v45, %v5289_v33 }
 0x16c   :  { %v2188_v6 = vpop.f32.mrf.mxu1  ;;  %v2401_v31 = vpop.f32.mrf.mxu0  ;;  %v1984_v13 = vadd.f32 %v5187_v47, %v5287_v32  ;;  %v1986_v45 = vadd.f32 %v5192_v49, %v5289_v33  ;;  %v1988_v47 = vadd.f32 %v5196_v51, %v5287_v32  ;;  %v4273_v49 = vld [vmem:[%s5874_s0 + $0x378] ss:$36 sps:$4 sm:$0xff]   ;;  %v4279_v51 = vld [vmem:[%s5874_s0 + $0x3c4] ss:$36 sps:$4 sm:$0xff]  }
 0x16d   :  { %v5409_v16 = vadd.f32 %v2399_v56, %v2187_v25  ;;  %v2189_v18 = vadd.f32 %v2188_v6, %v1976_v34 }
 0x16e   :  { %v2190_v0 = vpop.f32.mrf.mxu1  ;;  %v2403_v27 = vpop.f32.mrf.mxu0 }
 0x16f   :  { %v5419_v28 = vadd.f32 %v2401_v31, %v2189_v18  ;;  %v2191_v11 = vadd.f32 %v2190_v0, %v1978_v36 }
 0x170   :  { %v2192_v2 = vpop.f32.mrf.mxu1  ;;  %v2405_v23 = vpop.f32.mrf.mxu0 }
 0x171   :  { %v5426_v56 = vadd.f32 %v2403_v27, %v2191_v11  ;;  %v2193_v34 = vadd.f32 %v2192_v2, %v1980_v29 }
 0x172   :  { %v2196_v25 = vpop.f32.mrf.mxu1  ;;  %v2409_v6 = vpop.f32.mrf.mxu0  ;;  %2681 = vmatmul.mubr.bf16.gmra.mxu1 %v4269_v38  ;;  %2894 = vmatmul.mubr.bf16.gmra.mxu0 %v4272_v39  ;;  %v4276_v39 = vld [vmem:[%s5874_s0 + $0x380] ss:$36 sps:$4 sm:$0xff]  }
 0x173   :  { %v5430_v31 = vadd.f32 %v2405_v23, %v2193_v34  ;;  %v2197_v36 = vadd.f32 %v2196_v25, %v1984_v13  ;;  %2690 = vmatprep.mubr.bf16.mxu1 %v4275_v40  ;;  %2903 = vmatprep.mubr.bf16.mxu0 %v5902_v50  ;;  %v1990_v40 = vadd.f32 %v5209_v62, %v5289_v33 }
 0x174   :  { %v2198_v18 = vpop.f32.mrf.mxu1  ;;  %v2411_v0 = vpop.f32.mrf.mxu0  ;;  %v1994_v25 = vadd.f32 %v5213_v8, %v5287_v32  ;;  %v1996_v62 = vadd.f32 %v5218_v10, %v5289_v33  ;;  %v1998_v8 = vadd.f32 %v5222_v21, %v5287_v32  ;;  %v4277_v10 = vld [vmem:[%s5874_s0 + $0x3c0] ss:$36 sps:$4 sm:$0xff]   ;;  %v4283_v21 = vld [vmem:[%s5874_s0 + $0x40c] ss:$36 sps:$4 sm:$0xff]  }
 0x175   :  { %v5435_v27 = vadd.f32 %v2409_v6, %v2197_v36  ;;  %v2199_v29 = vadd.f32 %v2198_v18, %v1986_v45 }
 0x176   :  { %v2200_v11 = vpop.f32.mrf.mxu1  ;;  %v2413_v38 = vpop.f32.mrf.mxu0 }
 0x177   :  { %v5445_v2 = vadd.f32 %v2411_v0, %v2199_v29  ;;  %v2201_v23 = vadd.f32 %v2200_v11, %v1988_v47 }
 0x178   :  { %v2202_v13 = vpop.f32.mrf.mxu1  ;;  %v2415_v34 = vpop.f32.mrf.mxu0 }
 0x179   :  { %v5452_v6 = vadd.f32 %v2413_v38, %v2201_v23  ;;  %v2203_v45 = vadd.f32 %v2202_v13, %v1990_v40 }
 0x17a   :  { %v2206_v36 = vpop.f32.mrf.mxu1  ;;  %v2419_v18 = vpop.f32.mrf.mxu0  ;;  %2691 = vmatmul.mubr.bf16.gmra.mxu1 %v4273_v49  ;;  %2904 = vmatmul.mubr.bf16.gmra.mxu0 %v4276_v39  ;;  %v4280_v39 = vld [vmem:[%s5874_s0 + $0x3c8] ss:$36 sps:$4 sm:$0xff]  }
 0x17b   :  { %v5456_v0 = vadd.f32 %v2415_v34, %v2203_v45  ;;  %v2207_v47 = vadd.f32 %v2206_v36, %v1994_v25  ;;  %2700 = vmatprep.mubr.bf16.mxu1 %v4279_v51  ;;  %2913 = vmatprep.mubr.bf16.mxu0 %v5902_v50  ;;  %v2000_v51 = vadd.f32 %v5235_v42, %v5289_v33 }
 0x17c   :  { %v2208_v29 = vpop.f32.mrf.mxu1  ;;  %v2421_v11 = vpop.f32.mrf.mxu0  ;;  %v2004_v36 = vadd.f32 %v5239_v44, %v5287_v32  ;;  %v2006_v42 = vadd.f32 %v5244_v61, %v5289_v33  ;;  %v2008_v44 = vadd.f32 %v5248_v20, %v5287_v32  ;;  %v4281_v61 = vld [vmem:[%s5874_s0 + $0x408] ss:$36 sps:$4 sm:$0xff]   ;;  %v4287_v20 = vld [vmem:[%s5874_s0 + $0x454] ss:$36 sps:$4 sm:$0xff]  }
 0x17d   :  { %v5461_v38 = vadd.f32 %v2419_v18, %v2207_v47  ;;  %v2209_v40 = vadd.f32 %v2208_v29, %v1996_v62 }
 0x17e   :  { %v2210_v23 = vpop.f32.mrf.mxu1  ;;  %v2423_v49 = vpop.f32.mrf.mxu0 }
 0x17f   :  { %v5471_v13 = vadd.f32 %v2421_v11, %v2209_v40  ;;  %v2211_v34 = vadd.f32 %v2210_v23, %v1998_v8 }
 0x180   :  { %v2212_v25 = vpop.f32.mrf.mxu1  ;;  %v2425_v45 = vpop.f32.mrf.mxu0 }
 0x181   :  { %v5478_v18 = vadd.f32 %v2423_v49, %v2211_v34  ;;  %v2213_v62 = vadd.f32 %v2212_v25, %v2000_v51 }
 0x182   :  { %v2216_v47 = vpop.f32.mrf.mxu1  ;;  %v2429_v29 = vpop.f32.mrf.mxu0  ;;  %2701 = vmatmul.mubr.bf16.gmra.mxu1 %v4277_v10  ;;  %2914 = vmatmul.mubr.bf16.gmra.mxu0 %v4280_v39  ;;  %v4284_v39 = vld [vmem:[%s5874_s0 + $0x410] ss:$36 sps:$4 sm:$0xff]  }
 0x183   :  { %v5482_v11 = vadd.f32 %v2425_v45, %v2213_v62  ;;  %v2217_v8 = vadd.f32 %v2216_v47, %v2004_v36  ;;  %2710 = vmatprep.mubr.bf16.mxu1 %v4283_v21  ;;  %2923 = vmatprep.mubr.bf16.mxu0 %v5902_v50  ;;  %v2010_v21 = vadd.f32 %v5261_v15, %v5289_v33 }
 0x184   :  { %v2218_v40 = vpop.f32.mrf.mxu1  ;;  %v2431_v23 = vpop.f32.mrf.mxu0  ;;  %v2014_v47 = vadd.f32 %v5265_v53, %v5287_v32  ;;  %v2016_v15 = vadd.f32 %v5273_v48, %v5289_v33  ;;  %v2018_v53 = vadd.f32 %v5277_v22, %v5287_v32  ;;  %v4285_v48 = vld [vmem:[%s5874_s0 + $0x450] ss:$36 sps:$4 sm:$0xff]   ;;  %v4291_v22 = vld [vmem:[%s5874_s0 + $0x49c] ss:$36 sps:$4 sm:$0xff]  }
 0x185   :  { %v5487_v49 = vadd.f32 %v2429_v29, %v2217_v8  ;;  %v2219_v51 = vadd.f32 %v2218_v40, %v2006_v42 }
 0x186   :  { %v2220_v34 = vpop.f32.mrf.mxu1  ;;  %v2433_v10 = vpop.f32.mrf.mxu0 }
 0x187   :  { %v5497_v25 = vadd.f32 %v2431_v23, %v2219_v51  ;;  %v2221_v45 = vadd.f32 %v2220_v34, %v2008_v44 }
 0x188   :  { %v2222_v36 = vpop.f32.mrf.mxu1  ;;  %v2435_v62 = vpop.f32.mrf.mxu0 }
 0x189   :  { %v5504_v29 = vadd.f32 %v2433_v10, %v2221_v45  ;;  %v2223_v42 = vadd.f32 %v2222_v36, %v2010_v21 }
 0x18a   :  { %v2226_v8 = vpop.f32.mrf.mxu1  ;;  %v2439_v40 = vpop.f32.mrf.mxu0  ;;  %2711 = vmatmul.mubr.bf16.gmra.mxu1 %v4281_v61  ;;  %2924 = vmatmul.mubr.bf16.gmra.mxu0 %v4284_v39  ;;  %v4288_v39 = vld [vmem:[%s5874_s0 + $0x458] ss:$36 sps:$4 sm:$0xff]  }
 0x18b   :  { %v5508_v23 = vadd.f32 %v2435_v62, %v2223_v42  ;;  %v2227_v44 = vadd.f32 %v2226_v8, %v2014_v47  ;;  %2720 = vmatprep.mubr.bf16.mxu1 %v4287_v20  ;;  %2933 = vmatprep.mubr.bf16.mxu0 %v5902_v50  ;;  %v2020_v20 = vadd.f32 %v5294_v9, %v5289_v33 }
 0x18c   :  { %v2228_v51 = vpop.f32.mrf.mxu1  ;;  %v2441_v34 = vpop.f32.mrf.mxu0  ;;  %v2024_v8 = vadd.f32 %v5058_v55, %v5287_v32  ;;  %v2026_v9 = vadd.f32 %v5062_v57, %v5289_v33  ;;  %v2028_v55 = vadd.f32 %v5066_v59, %v5287_v32  ;;  %v4289_v57 = vld [vmem:[%s5874_s0 + $0x498] ss:$36 sps:$4 sm:$0xff]   ;;  %v4295_v59 = vld [vmem:[%s5874_s0 + $0x4e4] ss:$36 sps:$4 sm:$0xff]  }
 0x18d   :  { %v5513_v10 = vadd.f32 %v2439_v40, %v2227_v44  ;;  %v2229_v21 = vadd.f32 %v2228_v51, %v2016_v15 }
 0x18e   :  { %v2230_v45 = vpop.f32.mrf.mxu1  ;;  %v2443_v61 = vpop.f32.mrf.mxu0 }
 0x18f   :  { %v5523_v36 = vadd.f32 %v2441_v34, %v2229_v21  ;;  %v2231_v62 = vadd.f32 %v2230_v45, %v2018_v53 }
 0x190   :  { %v2232_v47 = vpop.f32.mrf.mxu1  ;;  %v2445_v42 = vpop.f32.mrf.mxu0 }
 0x191   :  { %v5530_v40 = vadd.f32 %v2443_v61, %v2231_v62  ;;  %v2233_v15 = vadd.f32 %v2232_v47, %v2020_v20 }
 0x192   :  { %v2236_v44 = vpop.f32.mrf.mxu1  ;;  %v2449_v51 = vpop.f32.mrf.mxu0  ;;  %2721 = vmatmul.mubr.bf16.gmra.mxu1 %v4285_v48  ;;  %2934 = vmatmul.mubr.bf16.gmra.mxu0 %v4288_v39  ;;  %v4292_v39 = vld [vmem:[%s5874_s0 + $0x4a0] ss:$36 sps:$4 sm:$0xff]  }
 0x193   :  { %v5534_v34 = vadd.f32 %v2445_v42, %v2233_v15  ;;  %v2237_v53 = vadd.f32 %v2236_v44, %v2024_v8  ;;  %2730 = vmatprep.mubr.bf16.mxu1 %v4291_v22  ;;  %2943 = vmatprep.mubr.bf16.mxu0 %v5902_v50  ;;  %v2030_v22 = vadd.f32 %v5082_v1, %v5289_v33 }
 0x194   :  { %v2238_v21 = vpop.f32.mrf.mxu1  ;;  %v2451_v45 = vpop.f32.mrf.mxu0  ;;  %v2034_v44 = vadd.f32 %v5086_v3, %v5287_v32  ;;  %v2036_v1 = vadd.f32 %v5090_v5, %v5289_v33  ;;  %v2038_v3 = vadd.f32 %v5094_v7, %v5287_v32  ;;  %v4293_v5 = vld [vmem:[%s5874_s0 + $0x4e0] ss:$36 sps:$4 sm:$0xff]  }
 0x195   :  { %v5539_v61 = vadd.f32 %v2449_v51, %v2237_v53  ;;  %v2239_v20 = vadd.f32 %v2238_v21, %v2026_v9 }
 0x196   :  { %v2240_v62 = vpop.f32.mrf.mxu1  ;;  %v2453_v48 = vpop.f32.mrf.mxu0 }
 0x197   :  { %v5549_v47 = vadd.f32 %v2451_v45, %v2239_v20  ;;  %v2241_v42 = vadd.f32 %v2240_v62, %v2028_v55 }
 0x198   :  { %v2242_v8 = vpop.f32.mrf.mxu1  ;;  %v2455_v15 = vpop.f32.mrf.mxu0 }
 0x199   :  { %v5556_v51 = vadd.f32 %v2453_v48, %v2241_v42  ;;  %v2243_v9 = vadd.f32 %v2242_v8, %v2030_v22 }
 0x19a   :  { %v2246_v53 = vpop.f32.mrf.mxu1  ;;  %v2459_v21 = vpop.f32.mrf.mxu0  ;;  %2731 = vmatmul.mubr.bf16.gmra.mxu1 %v4289_v57  ;;  %2944 = vmatmul.mubr.bf16.gmra.mxu0 %v4292_v39  ;;  %v4296_v39 = vld [vmem:[%s5874_s0 + $0x4e8] ss:$36 sps:$4 sm:$0xff]  }
 0x19b   :  { %v5560_v45 = vadd.f32 %v2455_v15, %v2243_v9  ;;  %v2247_v55 = vadd.f32 %v2246_v53, %v2034_v44  ;;  %2740 = vmatprep.mubr.bf16.mxu1 %v4295_v59  ;;  %2953 = vmatprep.mubr.bf16.mxu0 %v5902_v50  ;;  %v2040_v50 = vadd.f32 %v5107_v12, %v5289_v33 }
 0x19c   :  { %v2248_v20 = vpop.f32.mrf.mxu1  ;;  %v2461_v62 = vpop.f32.mrf.mxu0  ;;  %v2044_v44 = vadd.f32 %v5111_v14, %v5287_v32 }
 0x19d   :  { %v5565_v48 = vadd.f32 %v2459_v21, %v2247_v55  ;;  %v2249_v22 = vadd.f32 %v2248_v20, %v2036_v1  ;;  %v2046_v55 = vadd.f32 %v5116_v17, %v5289_v33 }
 0x19e   :  { %v2250_v42 = vpop.f32.mrf.mxu1  ;;  %v2463_v57 = vpop.f32.mrf.mxu0 }
 0x19f   :  { %v5575_v59 = vadd.f32 %v2461_v62, %v2249_v22  ;;  %v2251_v8 = vadd.f32 %v2250_v42, %v2038_v3  ;;  %v5910_v22 = vld [vmem:[#allocation2_spill] sm:$0xff] }
 0x1a0   :  { %v2252_v7 = vpop.f32.mrf.mxu1  ;;  %v2465_v15 = vpop.f32.mrf.mxu0  ;;  %v2048_v42 = vadd.f32 %v5910_v22, %v5287_v32 }
 0x1a1   :  { %5907 = vst [vmem:[#allocation29_spill] sm:$0xff] %v5575_v59  ;;  %v5579_v9 = vadd.f32 %v2463_v57, %v2251_v8  ;;  %v2253_v53 = vadd.f32 %v2252_v7, %v2040_v50  ;;  %v5912_v8 = vld [vmem:[#allocation3_spill] sm:$0xff] }
 0x1a2   :  { %v2256_v21 = vpop.f32.mrf.mxu1  ;;  %v2469_v1 = vpop.f32.mrf.mxu0  ;;  %2741 = vmatmul.mubr.bf16.gmra.mxu1 %v4293_v5  ;;  %2954 = vmatmul.mubr.bf16.gmra.mxu0 %v4296_v39  ;;  %v2050_v5 = vadd.f32 %v5912_v8, %v5289_v33 }
 0x1a3   :  { %5908 = vst [vmem:[#allocation30_spill] sm:$0xff] %v5579_v9  ;;  %v5583_v20 = vadd.f32 %v2465_v15, %v2253_v53  ;;  %v2257_v12 = vadd.f32 %v2256_v21, %v2044_v44  ;;  %v5914_v44 = vld [vmem:[#allocation4_spill] sm:$0xff] }
 0x1a4   :  { %v2258_v62 = vpop.f32.mrf.mxu1  ;;  %v2471_v3 = vpop.f32.mrf.mxu0  ;;  %v2054_v53 = vadd.f32 %v5914_v44, %v5287_v32 }
 0x1a5   :  { %5909 = vst [vmem:[#allocation31_spill] sm:$0xff] %v5583_v20  ;;  %v5587_v59 = vadd.f32 %v2469_v1, %v2257_v12  ;;  %v2259_v14 = vadd.f32 %v2258_v62, %v2046_v55  ;;  %v5916_v55 = vld [vmem:[#allocation5_spill] sm:$0xff] }
 0x1a6   :  { %v2260_v57 = vpop.f32.mrf.mxu1  ;;  %v2473_v50 = vpop.f32.mrf.mxu0  ;;  %v2056_v12 = vadd.f32 %v5916_v55, %v5289_v33 }
 0x1a7   :  { %5911 = vst [vmem:[#allocation2_spill] sm:$0xff] %v5587_v59  ;;  %v5591_v39 = vadd.f32 %v2471_v3, %v2259_v14  ;;  %v2261_v7 = vadd.f32 %v2260_v57, %v2048_v42  ;;  %v5918_v42 = vld [vmem:[#allocation6_spill] sm:$0xff] }
 0x1a8   :  { %v2262_v17 = vpop.f32.mrf.mxu1  ;;  %v2475_v15 = vpop.f32.mrf.mxu0  ;;  %v2058_v14 = vadd.f32 %v5918_v42, %v5287_v32 }
 0x1a9   :  { %5913 = vst [vmem:[#allocation3_spill] sm:$0xff] %v5591_v39  ;;  %v5595_v21 = vadd.f32 %v2473_v50, %v2261_v7  ;;  %v2263_v20 = vadd.f32 %v2262_v17, %v2050_v5  ;;  %v5920_v5 = vld [vmem:[#allocation7_spill] sm:$0xff] }
 0x1aa   :  { %v2266_v22 = vpop.f32.mrf.mxu1  ;;  %v2479_v1 = vpop.f32.mrf.mxu0  ;;  %v2060_v7 = vadd.f32 %v5920_v5, %v5289_v33 }
 0x1ab   :  { %5915 = vst [vmem:[#allocation4_spill] sm:$0xff] %v5595_v21  ;;  %v5599_v62 = vadd.f32 %v2475_v15, %v2263_v20  ;;  %v2267_v59 = vadd.f32 %v2266_v22, %v2054_v53  ;;  %v5922_v15 = vld [vmem:[#allocation8_spill] sm:$0xff] }
 0x1ac   :  { %v2268_v8 = vpop.f32.mrf.mxu1  ;;  %v2481_v3 = vpop.f32.mrf.mxu0  ;;  %v2064_v53 = vadd.f32 %v5922_v15, %v5287_v32 }
 0x1ad   :  { %5917 = vst [vmem:[#allocation5_spill] sm:$0xff] %v5599_v62  ;;  %v5603_v57 = vadd.f32 %v2479_v1, %v2267_v59  ;;  %v2269_v39 = vadd.f32 %v2268_v8, %v2056_v12  ;;  %v5924_v1 = vld [vmem:[#allocation9_spill] sm:$0xff] }
 0x1ae   :  { %v2270_v44 = vpop.f32.mrf.mxu1  ;;  %v2483_v50 = vpop.f32.mrf.mxu0  ;;  %v2066_v12 = vadd.f32 %v5924_v1, %v5289_v33 }
 0x1af   :  { %5919 = vst [vmem:[#allocation6_spill] sm:$0xff] %v5603_v57  ;;  %v5607_v17 = vadd.f32 %v2481_v3, %v2269_v39  ;;  %v2271_v21 = vadd.f32 %v2270_v44, %v2058_v14  ;;  %v5926_v3 = vld [vmem:[#allocation10_spill] sm:$0xff] }
 0x1b0   :  { %v2272_v55 = vpop.f32.mrf.mxu1  ;;  %v2485_v20 = vpop.f32.mrf.mxu0  ;;  %v2068_v14 = vadd.f32 %v5926_v3, %v5287_v32 }
 0x1b1   :  { %5921 = vst [vmem:[#allocation7_spill] sm:$0xff] %v5607_v17  ;;  %v5611_v22 = vadd.f32 %v2483_v50, %v2271_v21  ;;  %v2273_v62 = vadd.f32 %v2272_v55, %v2060_v7  ;;  %v5928_v50 = vld [vmem:[#allocation11_spill] sm:$0xff] }
 0x1b2   :  { %v2276_v42 = vpop.f32.mrf.mxu1  ;;  %v2489_v59 = vpop.f32.mrf.mxu0  ;;  %v2070_v7 = vadd.f32 %v5928_v50, %v5289_v33 }
 0x1b3   :  { %5923 = vst [vmem:[#allocation8_spill] sm:$0xff] %v5611_v22  ;;  %v5615_v8 = vadd.f32 %v2485_v20, %v2273_v62  ;;  %v2277_v57 = vadd.f32 %v2276_v42, %v2064_v53  ;;  %v5930_v20 = vld [vmem:[#allocation12_spill] sm:$0xff] }
 0x1b4   :  { %v2278_v5 = vpop.f32.mrf.mxu1  ;;  %v2491_v39 = vpop.f32.mrf.mxu0  ;;  %v2074_v53 = vadd.f32 %v5930_v20, %v5287_v32 }
 0x1b5   :  { %5925 = vst [vmem:[#allocation9_spill] sm:$0xff] %v5615_v8  ;;  %v5619_v44 = vadd.f32 %v2489_v59, %v2277_v57  ;;  %v2279_v17 = vadd.f32 %v2278_v5, %v2066_v12  ;;  %v5932_v59 = vld [vmem:[#allocation13_spill] sm:$0xff] }
 0x1b6   :  { %v2280_v15 = vpop.f32.mrf.mxu1  ;;  %v2493_v21 = vpop.f32.mrf.mxu0  ;;  %v2076_v12 = vadd.f32 %v5932_v59, %v5289_v33 }
 0x1b7   :  { %5927 = vst [vmem:[#allocation10_spill] sm:$0xff] %v5619_v44  ;;  %v5623_v55 = vadd.f32 %v2491_v39, %v2279_v17  ;;  %v2281_v22 = vadd.f32 %v2280_v15, %v2068_v14  ;;  %v5934_v39 = vld [vmem:[#allocation14_spill] sm:$0xff] }
 0x1b8   :  { %v2282_v1 = vpop.f32.mrf.mxu1  ;;  %v2495_v62 = vpop.f32.mrf.mxu0  ;;  %v2078_v14 = vadd.f32 %v5934_v39, %v5287_v32 }
 0x1b9   :  { %5929 = vst [vmem:[#allocation11_spill] sm:$0xff] %v5623_v55  ;;  %v5627_v42 = vadd.f32 %v2493_v21, %v2281_v22  ;;  %v2283_v8 = vadd.f32 %v2282_v1, %v2070_v7  ;;  %v5936_v21 = vld [vmem:[#allocation15_spill] sm:$0xff] }
 0x1ba   :  { %v2286_v3 = vpop.f32.mrf.mxu1  ;;  %v2499_v57 = vpop.f32.mrf.mxu0  ;;  %v2080_v7 = vadd.f32 %v5936_v21, %v5289_v33 }
 0x1bb   :  { %5931 = vst [vmem:[#allocation12_spill] sm:$0xff] %v5627_v42  ;;  %v5631_v5 = vadd.f32 %v2495_v62, %v2283_v8  ;;  %v2287_v44 = vadd.f32 %v2286_v3, %v2074_v53  ;;  %v5938_v62 = vld [vmem:[#allocation16_spill] sm:$0xff] }
 0x1bc   :  { %v2288_v50 = vpop.f32.mrf.mxu1  ;;  %v2501_v17 = vpop.f32.mrf.mxu0  ;;  %v2084_v53 = vadd.f32 %v5938_v62, %v5287_v32 }
 0x1bd   :  { %5933 = vst [vmem:[#allocation13_spill] sm:$0xff] %v5631_v5  ;;  %v5635_v15 = vadd.f32 %v2499_v57, %v2287_v44  ;;  %v2289_v55 = vadd.f32 %v2288_v50, %v2076_v12  ;;  %v5940_v57 = vld [vmem:[#allocation17_spill] sm:$0xff] }
 0x1be   :  { %v2290_v20 = vpop.f32.mrf.mxu1  ;;  %v2503_v22 = vpop.f32.mrf.mxu0  ;;  %v2086_v12 = vadd.f32 %v5940_v57, %v5289_v33 }
 0x1bf   :  { %5935 = vst [vmem:[#allocation14_spill] sm:$0xff] %v5635_v15  ;;  %v5639_v1 = vadd.f32 %v2501_v17, %v2289_v55  ;;  %v2291_v42 = vadd.f32 %v2290_v20, %v2078_v14  ;;  %v5942_v17 = vld [vmem:[#allocation18_spill] sm:$0xff] }
 0x1c0   :  { %v2292_v59 = vpop.f32.mrf.mxu1  ;;  %v2505_v8 = vpop.f32.mrf.mxu0  ;;  %v2088_v14 = vadd.f32 %v5942_v17, %v5287_v32 }
 0x1c1   :  { %5937 = vst [vmem:[#allocation15_spill] sm:$0xff] %v5639_v1  ;;  %v5643_v3 = vadd.f32 %v2503_v22, %v2291_v42  ;;  %v2293_v5 = vadd.f32 %v2292_v59, %v2080_v7  ;;  %v5944_v22 = vld [vmem:[#allocation19_spill] sm:$0xff] }
 0x1c2   :  { %v2296_v39 = vpop.f32.mrf.mxu1  ;;  %v2509_v44 = vpop.f32.mrf.mxu0  ;;  %v2090_v7 = vadd.f32 %v5944_v22, %v5289_v33 }
 0x1c3   :  { %5939 = vst [vmem:[#allocation16_spill] sm:$0xff] %v5643_v3  ;;  %v5647_v50 = vadd.f32 %v2505_v8, %v2293_v5  ;;  %v2297_v15 = vadd.f32 %v2296_v39, %v2084_v53  ;;  %v5946_v8 = vld [vmem:[#allocation20_spill] sm:$0xff] }
 0x1c4   :  { %v2298_v21 = vpop.f32.mrf.mxu1  ;;  %v2511_v55 = vpop.f32.mrf.mxu0  ;;  %v2094_v53 = vadd.f32 %v5946_v8, %v5287_v32 }
 0x1c5   :  { %5941 = vst [vmem:[#allocation17_spill] sm:$0xff] %v5647_v50  ;;  %v5651_v20 = vadd.f32 %v2509_v44, %v2297_v15  ;;  %v2299_v1 = vadd.f32 %v2298_v21, %v2086_v12  ;;  %v5948_v44 = vld [vmem:[#allocation21_spill] sm:$0xff] }
 0x1c6   :  { %v2300_v62 = vpop.f32.mrf.mxu1  ;;  %v2513_v42 = vpop.f32.mrf.mxu0  ;;  %v2096_v12 = vadd.f32 %v5948_v44, %v5289_v33 }
 0x1c7   :  { %5943 = vst [vmem:[#allocation18_spill] sm:$0xff] %v5651_v20  ;;  %v5655_v59 = vadd.f32 %v2511_v55, %v2299_v1  ;;  %v2301_v3 = vadd.f32 %v2300_v62, %v2088_v14  ;;  %v5950_v55 = vld [vmem:[#allocation22_spill] sm:$0xff] }
 0x1c8   :  { %v2302_v57 = vpop.f32.mrf.mxu1  ;;  %v2515_v5 = vpop.f32.mrf.mxu0  ;;  %v2098_v14 = vadd.f32 %v5950_v55, %v5287_v32 }
 0x1c9   :  { %5945 = vst [vmem:[#allocation19_spill] sm:$0xff] %v5655_v59  ;;  %v5659_v39 = vadd.f32 %v2513_v42, %v2301_v3  ;;  %v2303_v50 = vadd.f32 %v2302_v57, %v2090_v7  ;;  %v5952_v42 = vld [vmem:[#allocation23_spill] sm:$0xff] }
 0x1ca   :  { %v2306_v17 = vpop.f32.mrf.mxu1  ;;  %v2519_v15 = vpop.f32.mrf.mxu0  ;;  %v2100_v7 = vadd.f32 %v5952_v42, %v5289_v33 }
 0x1cb   :  { %5947 = vst [vmem:[#allocation20_spill] sm:$0xff] %v5659_v39  ;;  %v5663_v21 = vadd.f32 %v2515_v5, %v2303_v50  ;;  %v2307_v20 = vadd.f32 %v2306_v17, %v2094_v53  ;;  %v5954_v5 = vld [vmem:[#allocation24_spill] sm:$0xff] }
 0x1cc   :  { %v2308_v22 = vpop.f32.mrf.mxu1  ;;  %v2521_v1 = vpop.f32.mrf.mxu0  ;;  %v2104_v53 = vadd.f32 %v5954_v5, %v5287_v32 }
 0x1cd   :  { %5949 = vst [vmem:[#allocation21_spill] sm:$0xff] %v5663_v21  ;;  %v5667_v62 = vadd.f32 %v2519_v15, %v2307_v20  ;;  %v2309_v59 = vadd.f32 %v2308_v22, %v2096_v12  ;;  %v5956_v15 = vld [vmem:[#allocation25_spill] sm:$0xff] }
 0x1ce   :  { %v2310_v8 = vpop.f32.mrf.mxu1  ;;  %v2523_v3 = vpop.f32.mrf.mxu0  ;;  %v2106_v12 = vadd.f32 %v5956_v15, %v5289_v33 }
 0x1cf   :  { %5951 = vst [vmem:[#allocation22_spill] sm:$0xff] %v5667_v62  ;;  %v5671_v57 = vadd.f32 %v2521_v1, %v2309_v59  ;;  %v2311_v39 = vadd.f32 %v2310_v8, %v2098_v14  ;;  %v5958_v1 = vld [vmem:[#allocation26_spill] sm:$0xff] }
 0x1d0   :  { %v2312_v44 = vpop.f32.mrf.mxu1  ;;  %v2525_v50 = vpop.f32.mrf.mxu0  ;;  %v2108_v14 = vadd.f32 %v5958_v1, %v5287_v32  ;;  %v5960_v32 = vld [vmem:[#allocation28_spill] sm:$0xff] }
 0x1d1   :  { %5953 = vst [vmem:[#allocation23_spill] sm:$0xff] %v5671_v57  ;;  %v5675_v17 = vadd.f32 %v2523_v3, %v2311_v39  ;;  %v2313_v21 = vadd.f32 %v2312_v44, %v2100_v7  ;;  %v5959_v3 = vld [vmem:[#allocation27_spill] sm:$0xff] }
 0x1d2   :  { %v2316_v55 = vpop.f32.mrf.mxu1  ;;  %v2529_v20 = vpop.f32.mrf.mxu0  ;;  %v2110_v7 = vadd.f32 %v5959_v3, %v5289_v33 }
 0x1d3   :  { %5955 = vst [vmem:[#allocation24_spill] sm:$0xff] %v5675_v17  ;;  %v5679_v22 = vadd.f32 %v2525_v50, %v2313_v21  ;;  %v2317_v62 = vadd.f32 %v2316_v55, %v2104_v53 }
 0x1d4   :  { %v2318_v42 = vpop.f32.mrf.mxu1  ;;  %v2531_v59 = vpop.f32.mrf.mxu0 }
 0x1d5   :  { %5957 = vst [vmem:[#allocation25_spill] sm:$0xff] %v5679_v22  ;;  %v5683_v8 = vadd.f32 %v2529_v20, %v2317_v62  ;;  %v2319_v57 = vadd.f32 %v2318_v42, %v2106_v12 }
 0x1d6   :  { %v2320_v5 = vpop.f32.mrf.mxu1  ;;  %v2533_v39 = vpop.f32.mrf.mxu0 }
 0x1d7   :  { %v5687_v44 = vadd.f32 %v2531_v59, %v2319_v57  ;;  %v2321_v17 = vadd.f32 %v2320_v5, %v2108_v14 }
 0x1d8   :  { %v2322_v15 = vpop.f32.mrf.mxu1  ;;  %v2535_v21 = vpop.f32.mrf.mxu0 }
 0x1d9   :  { %v5689_v50 = vadd.f32 %v2533_v39, %v2321_v17  ;;  %v2323_v53 = vadd.f32 %v2322_v15, %v2110_v7 }
 0x1da   :  { %v2572_v55 = vpop.f32.mrf.mxu1  ;;  %v2785_v22 = vpop.f32.mrf.mxu0 }
 0x1db   :  { %v5691_v9 = vadd.f32 %v2535_v21, %v2323_v53  ;;  %v2573_v62 = vadd.f32 %v2572_v55, %v5960_v32 }
 0x1dc   :  { %v2574_v20 = vpop.f32.mrf.mxu1  ;;  %v2787_v12 = vpop.f32.mrf.mxu0 }
 0x1dd   :  { %v2786_v42 = vadd.f32 %v2785_v22, %v2573_v62  ;;  %v2575_v1 = vadd.f32 %v2574_v20, %v5315_v41 }
 0x1de   :  { %v2576_v33 = vpop.f32.mrf.mxu1  ;;  %v2789_v57 = vpop.f32.mrf.mxu0 }
 0x1df   :  { %v3036_v59 = vmul.f32 0.01, %v2786_v42  ;;  %v2788_v14 = vadd.f32 %v2787_v12, %v2575_v1  ;;  %v2577_v5 = vadd.f32 %v2576_v33, %v5322_v52  ;;  %vm2964_vm0 = vcmp.ge.f32.partialorder %v2786_v42, 0.0 }
 0x1e0   :  { %v2578_v17 = vpop.f32.mrf.mxu1  ;;  %v2791_v39 = vpop.f32.mrf.mxu0 }
 0x1e1   :  { %vm2965_vm1 = vcmp.ge.f32.partialorder %v2788_v14, 0.0  ;;  %v3037_v3 = vmul.f32 0.01, %v2788_v14  ;;  %v2790_v7 = vadd.f32 %v2789_v57, %v2577_v5  ;;  %v2579_v15 = vadd.f32 %v2578_v17, %v5326_v26 }
 0x1e2   :  { %v2582_v21 = vpop.f32.mrf.mxu1  ;;  %v2795_v53 = vpop.f32.mrf.mxu0  ;;  %v3108_v55 = vsel %vm2964_vm0, %v2786_v42, %v3036_v59 }
 0x1e3   :  { %v3109_v22 = vsel %vm2965_vm1, %v2788_v14, %v3037_v3  ;;  %v2583_v41 = vadd.f32 %v2582_v21, %v5331_v24  ;;  %v3038_v62 = vmul.f32 0.01, %v2790_v7  ;;  %v2792_v20 = vadd.f32 %v2791_v39, %v2579_v15 }
 0x1e4   :  { %v3778_v32 = vpack.c.bf16 %v3109_v22, %v3108_v55  ;;  %v2584_v12 = vpop.f32.mrf.mxu1  ;;  %v2797_v1 = vpop.f32.mrf.mxu0  ;;  %vm2966_vm2 = vcmp.ge.f32.partialorder %v2790_v7, 0.0 }
 0x1e5   :  { %v2796_v52 = vadd.f32 %v2795_v53, %v2583_v41  ;;  %v2585_v33 = vadd.f32 %v2584_v12, %v5341_v58  ;;  %vm2967_vm3 = vcmp.ge.f32.partialorder %v2792_v20, 0.0  ;;  %v3039_v26 = vmul.f32 0.01, %v2792_v20 }
 0x1e6   :  { %3396 = vst [vmem:[%s5876_s3] sm:$0xff] %v3778_v32  ;;  %v2586_v57 = vpop.f32.mrf.mxu1  ;;  %v2799_v42 = vpop.f32.mrf.mxu0  ;;  %v3110_v5 = vsel %vm2966_vm2, %v2790_v7, %v3038_v62 }
 0x1e7   :  { %v3040_v59 = vmul.f32 0.01, %v2796_v52  ;;  %v2798_v14 = vadd.f32 %v2797_v1, %v2585_v33  ;;  %v2587_v24 = vadd.f32 %v2586_v57, %v5348_v60  ;;  %v3111_v17 = vsel %vm2967_vm3, %v2792_v20, %v3039_v26 }
 0x1e8   :  { %vm2968_vm4 = vcmp.ge.f32.partialorder %v2796_v52, 0.0  ;;  %v2588_v39 = vpop.f32.mrf.mxu1  ;;  %v2801_v3 = vpop.f32.mrf.mxu0  ;;  %v3779_v15 = vpack.c.bf16 %v3111_v17, %v3110_v5 }
 0x1e9   :  { %vm2969_vm5 = vcmp.ge.f32.partialorder %v2798_v14, 0.0  ;;  %v3041_v58 = vmul.f32 0.01, %v2798_v14  ;;  %v2800_v21 = vadd.f32 %v2799_v42, %v2587_v24  ;;  %v2589_v53 = vadd.f32 %v2588_v39, %v5352_v54 }
 0x1ea   :  { %v2592_v55 = vpop.f32.mrf.mxu1  ;;  %v2805_v22 = vpop.f32.mrf.mxu0  ;;  %3397 = vst [vmem:[%s5876_s3 + $0x8] sm:$0xff] %v3779_v15  ;;  %v3112_v41 = vsel %vm2968_vm4, %v2796_v52, %v3040_v59 }
 0x1eb   :  { %v3113_v32 = vsel %vm2969_vm5, %v2798_v14, %v3041_v58  ;;  %v2593_v60 = vadd.f32 %v2592_v55, %v5357_v43  ;;  %v3042_v62 = vmul.f32 0.01, %v2800_v21  ;;  %v2802_v20 = vadd.f32 %v2801_v3, %v2589_v53 }
 0x1ec   :  { %v3780_v7 = vpack.c.bf16 %v3113_v32, %v3112_v41  ;;  %v2594_v12 = vpop.f32.mrf.mxu1  ;;  %v2807_v1 = vpop.f32.mrf.mxu0  ;;  %vm2970_vm6 = vcmp.ge.f32.partialorder %v2800_v21, 0.0 }
 0x1ed   :  { %v2806_v33 = vadd.f32 %v2805_v22, %v2593_v60  ;;  %v2595_v26 = vadd.f32 %v2594_v12, %v5367_v19  ;;  %vm2971_vm7 = vcmp.ge.f32.partialorder %v2802_v20, 0.0  ;;  %v3043_v54 = vmul.f32 0.01, %v2802_v20 }
 0x1ee   :  { %3398 = vst [vmem:[%s5876_s3 + $0x10] sm:$0xff] %v3780_v7  ;;  %v2596_v57 = vpop.f32.mrf.mxu1  ;;  %v2809_v52 = vpop.f32.mrf.mxu0  ;;  %v3114_v14 = vsel %vm2970_vm6, %v2800_v21, %v3042_v62 }
 0x1ef   :  { %v3044_v42 = vmul.f32 0.01, %v2806_v33  ;;  %v2808_v59 = vadd.f32 %v2807_v1, %v2595_v26  ;;  %v2597_v43 = vadd.f32 %v2596_v57, %v5374_v30  ;;  %v3115_v24 = vsel %vm2971_vm7, %v2802_v20, %v3043_v54 }
 0x1f0   :  { %vm2972_vm8 = vcmp.ge.f32.partialorder %v2806_v33, 0.0  ;;  %v2598_v5 = vpop.f32.mrf.mxu1  ;;  %v2811_v17 = vpop.f32.mrf.mxu0  ;;  %v3781_v39 = vpack.c.bf16 %v3115_v24, %v3114_v14 }
 0x1f1   :  { %vm2973_vm9 = vcmp.ge.f32.partialorder %v2808_v59, 0.0  ;;  %v3045_v19 = vmul.f32 0.01, %v2808_v59  ;;  %v2810_v3 = vadd.f32 %v2809_v52, %v2597_v43  ;;  %v2599_v15 = vadd.f32 %v2598_v5, %v5378_v46 }
 0x1f2   :  { %v2602_v58 = vpop.f32.mrf.mxu1  ;;  %v2815_v53 = vpop.f32.mrf.mxu0  ;;  %3399 = vst [vmem:[%s5876_s3 + $0x18] sm:$0xff] %v3781_v39  ;;  %v3116_v55 = vsel %vm2972_vm8, %v2806_v33, %v3044_v42 }
 0x1f3   :  { %v3117_v22 = vsel %vm2973_vm9, %v2808_v59, %v3045_v19  ;;  %v2603_v30 = vadd.f32 %v2602_v58, %v5383_v4  ;;  %v3046_v41 = vmul.f32 0.01, %v2810_v3  ;;  %v2812_v32 = vadd.f32 %v2811_v17, %v2599_v15 }
 0x1f4   :  { %v3782_v21 = vpack.c.bf16 %v3117_v22, %v3116_v55  ;;  %v2604_v60 = vpop.f32.mrf.mxu1  ;;  %v2817_v7 = vpop.f32.mrf.mxu0  ;;  %vm2974_vm10 = vcmp.ge.f32.partialorder %v2810_v3, 0.0 }
 0x1f5   :  { %v2816_v62 = vadd.f32 %v2815_v53, %v2603_v30  ;;  %v2605_v20 = vadd.f32 %v2604_v60, %v5393_v63  ;;  %vm2975_vm11 = vcmp.ge.f32.partialorder %v2812_v32, 0.0  ;;  %v3047_v46 = vmul.f32 0.01, %v2812_v32 }
 0x1f6   :  { %3400 = vst [vmem:[%s5876_s3 + $0x20] sm:$0xff] %v3782_v21  ;;  %v2606_v12 = vpop.f32.mrf.mxu1  ;;  %v2819_v1 = vpop.f32.mrf.mxu0  ;;  %v3118_v54 = vsel %vm2974_vm10, %v2810_v3, %v3046_v41 }
 0x1f7   :  { %v3048_v33 = vmul.f32 0.01, %v2816_v62  ;;  %v2818_v26 = vadd.f32 %v2817_v7, %v2605_v20  ;;  %v2607_v4 = vadd.f32 %v2606_v12, %v5400_v37  ;;  %v3119_v57 = vsel %vm2975_vm11, %v2812_v32, %v3047_v46 }
 0x1f8   :  { %vm2976_vm12 = vcmp.ge.f32.partialorder %v2816_v62, 0.0  ;;  %v2608_v52 = vpop.f32.mrf.mxu1  ;;  %v2821_v42 = vpop.f32.mrf.mxu0  ;;  %v3783_v59 = vpack.c.bf16 %v3119_v57, %v3118_v54 }
 0x1f9   :  { %vm2977_vm13 = vcmp.ge.f32.partialorder %v2818_v26, 0.0  ;;  %v3049_v63 = vmul.f32 0.01, %v2818_v26  ;;  %v2820_v43 = vadd.f32 %v2819_v1, %v2607_v4  ;;  %v2609_v14 = vadd.f32 %v2608_v52, %v5404_v35 }
 0x1fa   :  { %v2612_v24 = vpop.f32.mrf.mxu1  ;;  %v2825_v5 = vpop.f32.mrf.mxu0  ;;  %3401 = vst [vmem:[%s5876_s3 + $0x28] sm:$0xff] %v3783_v59  ;;  %v3120_v17 = vsel %vm2976_vm12, %v2816_v62, %v3048_v33 }
 0x1fb   :  { %v3121_v39 = vsel %vm2977_vm13, %v2818_v26, %v3049_v63  ;;  %v2613_v37 = vadd.f32 %v2612_v24, %v5409_v16  ;;  %v3050_v3 = vmul.f32 0.01, %v2820_v43  ;;  %v2822_v15 = vadd.f32 %v2821_v42, %v2609_v14 }
 0x1fc   :  { %v3784_v19 = vpack.c.bf16 %v3121_v39, %v3120_v17  ;;  %v2614_v58 = vpop.f32.mrf.mxu1  ;;  %v2827_v53 = vpop.f32.mrf.mxu0  ;;  %vm2978_vm14 = vcmp.ge.f32.partialorder %v2820_v43, 0.0 }
 0x1fd   :  { %v2826_v55 = vadd.f32 %v2825_v5, %v2613_v37  ;;  %v2615_v22 = vadd.f32 %v2614_v58, %v5419_v28  ;;  %vm2979_vm15 = vcmp.ge.f32.partialorder %v2822_v15, 0.0  ;;  %v3051_v35 = vmul.f32 0.01, %v2822_v15 }
 0x1fe   :  { %3402 = vst [vmem:[%s5876_s3 + $0x30] sm:$0xff] %v3784_v19  ;;  %v2616_v30 = vpop.f32.mrf.mxu1  ;;  %v2829_v21 = vpop.f32.mrf.mxu0  ;;  %v3122_v60 = vsel %vm2978_vm14, %v2820_v43, %v3050_v3 }
 0x1ff   :  { %v3052_v41 = vmul.f32 0.01, %v2826_v55  ;;  %v2828_v32 = vadd.f32 %v2827_v53, %v2615_v22  ;;  %v2617_v16 = vadd.f32 %v2616_v30, %v5426_v56  ;;  %v3123_v7 = vsel %vm2979_vm15, %v2822_v15, %v3051_v35 }
 0x200   :  { %vm2980_vm0 = vcmp.ge.f32.partialorder %v2826_v55, 0.0  ;;  %v2618_v62 = vpop.f32.mrf.mxu1  ;;  %v2831_v20 = vpop.f32.mrf.mxu0  ;;  %v3785_v46 = vpack.c.bf16 %v3123_v7, %v3122_v60 }
 0x201   :  { %vm2981_vm1 = vcmp.ge.f32.partialorder %v2828_v32, 0.0  ;;  %v3053_v28 = vmul.f32 0.01, %v2828_v32  ;;  %v2830_v12 = vadd.f32 %v2829_v21, %v2617_v16  ;;  %v2619_v1 = vadd.f32 %v2618_v62, %v5430_v31 }
 0x202   :  { %v2622_v33 = vpop.f32.mrf.mxu1  ;;  %v2835_v26 = vpop.f32.mrf.mxu0  ;;  %3403 = vst [vmem:[%s5876_s3 + $0x38] sm:$0xff] %v3785_v46  ;;  %v3124_v4 = vsel %vm2980_vm0, %v2826_v55, %v3052_v41 }
 0x203   :  { %v3125_v54 = vsel %vm2981_vm1, %v2828_v32, %v3053_v28  ;;  %v2623_v56 = vadd.f32 %v2622_v33, %v5435_v27  ;;  %v3054_v52 = vmul.f32 0.01, %v2830_v12  ;;  %v2832_v42 = vadd.f32 %v2831_v20, %v2619_v1 }
 0x204   :  { %v3786_v57 = vpack.c.bf16 %v3125_v54, %v3124_v4  ;;  %v2624_v59 = vpop.f32.mrf.mxu1  ;;  %v2837_v63 = vpop.f32.mrf.mxu0  ;;  %vm2982_vm2 = vcmp.ge.f32.partialorder %v2830_v12, 0.0 }
 0x205   :  { %v2836_v43 = vadd.f32 %v2835_v26, %v2623_v56  ;;  %v2625_v14 = vadd.f32 %v2624_v59, %v5445_v2  ;;  %vm2983_vm3 = vcmp.ge.f32.partialorder %v2832_v42, 0.0  ;;  %v3055_v31 = vmul.f32 0.01, %v2832_v42 }
 0x206   :  { %3404 = vst [vmem:[%s5876_s3 + $0x40] sm:$0xff] %v3786_v57  ;;  %v2626_v24 = vpop.f32.mrf.mxu1  ;;  %v2839_v5 = vpop.f32.mrf.mxu0  ;;  %v3126_v37 = vsel %vm2982_vm2, %v2830_v12, %v3054_v52 }
 0x207   :  { %v3056_v17 = vmul.f32 0.01, %v2836_v43  ;;  %v2838_v39 = vadd.f32 %v2837_v63, %v2625_v14  ;;  %v2627_v27 = vadd.f32 %v2626_v24, %v5452_v6  ;;  %v3127_v19 = vsel %vm2983_vm3, %v2832_v42, %v3055_v31 }
 0x208   :  { %vm2984_vm4 = vcmp.ge.f32.partialorder %v2836_v43, 0.0  ;;  %v2628_v3 = vpop.f32.mrf.mxu1  ;;  %v2841_v15 = vpop.f32.mrf.mxu0  ;;  %v3787_v58 = vpack.c.bf16 %v3127_v19, %v3126_v37 }
 0x209   :  { %vm2985_vm5 = vcmp.ge.f32.partialorder %v2838_v39, 0.0  ;;  %v3057_v2 = vmul.f32 0.01, %v2838_v39  ;;  %v2840_v53 = vadd.f32 %v2839_v5, %v2627_v27  ;;  %v2629_v55 = vadd.f32 %v2628_v3, %v5456_v0 }
 0x20a   :  { %v2632_v22 = vpop.f32.mrf.mxu1  ;;  %v2845_v35 = vpop.f32.mrf.mxu0  ;;  %3405 = vst [vmem:[%s5876_s3 + $0x48] sm:$0xff] %v3787_v58  ;;  %v3128_v30 = vsel %vm2984_vm4, %v2836_v43, %v3056_v17 }
 0x20b   :  { %v3129_v21 = vsel %vm2985_vm5, %v2838_v39, %v3057_v2  ;;  %v2633_v6 = vadd.f32 %v2632_v22, %v5461_v38  ;;  %v3058_v32 = vmul.f32 0.01, %v2840_v53  ;;  %v2842_v16 = vadd.f32 %v2841_v15, %v2629_v55 }
 0x20c   :  { %v3788_v41 = vpack.c.bf16 %v3129_v21, %v3128_v30  ;;  %v2634_v60 = vpop.f32.mrf.mxu1  ;;  %v2847_v7 = vpop.f32.mrf.mxu0  ;;  %vm2986_vm6 = vcmp.ge.f32.partialorder %v2840_v53, 0.0 }
 0x20d   :  { %v2846_v62 = vadd.f32 %v2845_v35, %v2633_v6  ;;  %v2635_v20 = vadd.f32 %v2634_v60, %v5471_v13  ;;  %vm2987_vm7 = vcmp.ge.f32.partialorder %v2842_v16, 0.0  ;;  %v3059_v0 = vmul.f32 0.01, %v2842_v16 }
 0x20e   :  { %3406 = vst [vmem:[%s5876_s3 + $0x50] sm:$0xff] %v3788_v41  ;;  %v2636_v46 = vpop.f32.mrf.mxu1  ;;  %v2849_v28 = vpop.f32.mrf.mxu0  ;;  %v3130_v33 = vsel %vm2986_vm6, %v2840_v53, %v3058_v32 }
 0x20f   :  { %v3060_v12 = vmul.f32 0.01, %v2846_v62  ;;  %v2848_v1 = vadd.f32 %v2847_v7, %v2635_v20  ;;  %v2637_v38 = vadd.f32 %v2636_v46, %v5478_v18  ;;  %v3131_v26 = vsel %vm2987_vm7, %v2842_v16, %v3059_v0 }
 0x210   :  { %vm2988_vm8 = vcmp.ge.f32.partialorder %v2846_v62, 0.0  ;;  %v2638_v4 = vpop.f32.mrf.mxu1  ;;  %v2851_v54 = vpop.f32.mrf.mxu0  ;;  %v3789_v56 = vpack.c.bf16 %v3131_v26, %v3130_v33 }
 0x211   :  { %vm2989_vm9 = vcmp.ge.f32.partialorder %v2848_v1, 0.0  ;;  %v3061_v13 = vmul.f32 0.01, %v2848_v1  ;;  %v2850_v57 = vadd.f32 %v2849_v28, %v2637_v38  ;;  %v2639_v52 = vadd.f32 %v2638_v4, %v5482_v11 }
 0x212   :  { %v2642_v42 = vpop.f32.mrf.mxu1  ;;  %v2855_v59 = vpop.f32.mrf.mxu0  ;;  %3407 = vst [vmem:[%s5876_s3 + $0x58] sm:$0xff] %v3789_v56  ;;  %v3132_v63 = vsel %vm2988_vm8, %v2846_v62, %v3060_v12 }
 0x213   :  { %v3133_v43 = vsel %vm2989_vm9, %v2848_v1, %v3061_v13  ;;  %v2643_v18 = vadd.f32 %v2642_v42, %v5487_v49  ;;  %v3062_v31 = vmul.f32 0.01, %v2850_v57  ;;  %v2852_v24 = vadd.f32 %v2851_v54, %v2639_v52 }
 0x214   :  { %v3790_v14 = vpack.c.bf16 %v3133_v43, %v3132_v63  ;;  %v2644_v5 = vpop.f32.mrf.mxu1  ;;  %v2857_v17 = vpop.f32.mrf.mxu0  ;;  %vm2990_vm10 = vcmp.ge.f32.partialorder %v2850_v57, 0.0 }
 0x215   :  { %v2856_v39 = vadd.f32 %v2855_v59, %v2643_v18  ;;  %v2645_v27 = vadd.f32 %v2644_v5, %v5497_v25  ;;  %vm2991_vm11 = vcmp.ge.f32.partialorder %v2852_v24, 0.0  ;;  %v3063_v11 = vmul.f32 0.01, %v2852_v24 }
 0x216   :  { %3408 = vst [vmem:[%s5876_s3 + $0x60] sm:$0xff] %v3790_v14  ;;  %v2646_v37 = vpop.f32.mrf.mxu1  ;;  %v2859_v19 = vpop.f32.mrf.mxu0  ;;  %v3134_v58 = vsel %vm2990_vm10, %v2850_v57, %v3062_v31 }
 0x217   :  { %v3064_v3 = vmul.f32 0.01, %v2856_v39  ;;  %v2858_v15 = vadd.f32 %v2857_v17, %v2645_v27  ;;  %v2647_v49 = vadd.f32 %v2646_v37, %v5504_v29  ;;  %v3135_v2 = vsel %vm2991_vm11, %v2852_v24, %v3063_v11 }
 0x218   :  { %vm2992_vm12 = vcmp.ge.f32.partialorder %v2856_v39, 0.0  ;;  %v2648_v53 = vpop.f32.mrf.mxu1  ;;  %v2861_v55 = vpop.f32.mrf.mxu0  ;;  %v3791_v22 = vpack.c.bf16 %v3135_v2, %v3134_v58 }
 0x219   :  { %vm2993_vm13 = vcmp.ge.f32.partialorder %v2858_v15, 0.0  ;;  %v3065_v25 = vmul.f32 0.01, %v2858_v15  ;;  %v2860_v35 = vadd.f32 %v2859_v19, %v2647_v49  ;;  %v2649_v30 = vadd.f32 %v2648_v53, %v5508_v23 }
 0x21a   :  { %v2652_v21 = vpop.f32.mrf.mxu1  ;;  %v2865_v6 = vpop.f32.mrf.mxu0  ;;  %3409 = vst [vmem:[%s5876_s3 + $0x68] sm:$0xff] %v3791_v22  ;;  %v3136_v41 = vsel %vm2992_vm12, %v2856_v39, %v3064_v3 }
 0x21b   :  { %v3137_v32 = vsel %vm2993_vm13, %v2858_v15, %v3065_v25  ;;  %v2653_v29 = vadd.f32 %v2652_v21, %v5513_v10  ;;  %v3066_v60 = vmul.f32 0.01, %v2860_v35  ;;  %v2862_v7 = vadd.f32 %v2861_v55, %v2649_v30 }
 0x21c   :  { %v3792_v16 = vpack.c.bf16 %v3137_v32, %v3136_v41  ;;  %v2654_v62 = vpop.f32.mrf.mxu1  ;;  %v2867_v20 = vpop.f32.mrf.mxu0  ;;  %vm2994_vm14 = vcmp.ge.f32.partialorder %v2860_v35, 0.0 }
 0x21d   :  { %v2866_v0 = vadd.f32 %v2865_v6, %v2653_v29  ;;  %v2655_v46 = vadd.f32 %v2654_v62, %v5523_v36  ;;  %vm2995_vm15 = vcmp.ge.f32.partialorder %v2862_v7, 0.0  ;;  %v3067_v23 = vmul.f32 0.01, %v2862_v7 }
 0x21e   :  { %3410 = vst [vmem:[%s5876_s3 + $0x70] sm:$0xff] %v3792_v16  ;;  %v2656_v28 = vpop.f32.mrf.mxu1  ;;  %v2869_v12 = vpop.f32.mrf.mxu0  ;;  %v3138_v33 = vsel %vm2994_vm14, %v2860_v35, %v3066_v60  ;;  %v5961_v16 = vld [vmem:[#allocation29_spill] sm:$0xff] }
 0x21f   :  { %v3068_v1 = vmul.f32 0.01, %v2866_v0  ;;  %v2868_v38 = vadd.f32 %v2867_v20, %v2655_v46  ;;  %v2657_v10 = vadd.f32 %v2656_v28, %v5530_v40  ;;  %v3139_v26 = vsel %vm2995_vm15, %v2862_v7, %v3067_v23 }
 0x220   :  { %vm2996_vm0 = vcmp.ge.f32.partialorder %v2866_v0, 0.0  ;;  %v2658_v4 = vpop.f32.mrf.mxu1  ;;  %v2871_v54 = vpop.f32.mrf.mxu0  ;;  %v3793_v56 = vpack.c.bf16 %v3139_v26, %v3138_v33  ;;  %v5963_v26 = vld [vmem:[#allocation31_spill] sm:$0xff] }
 0x221   :  { %vm2997_vm1 = vcmp.ge.f32.partialorder %v2868_v38, 0.0  ;;  %v3069_v36 = vmul.f32 0.01, %v2868_v38  ;;  %v2870_v13 = vadd.f32 %v2869_v12, %v2657_v10  ;;  %v2659_v57 = vadd.f32 %v2658_v4, %v5534_v34 }
 0x222   :  { %v2662_v52 = vpop.f32.mrf.mxu1  ;;  %v2875_v42 = vpop.f32.mrf.mxu0  ;;  %3411 = vst [vmem:[%s5876_s3 + $0x78] sm:$0xff] %v3793_v56  ;;  %v3140_v59 = vsel %vm2996_vm0, %v2866_v0, %v3068_v1 }
 0x223   :  { %v3141_v63 = vsel %vm2997_vm1, %v2868_v38, %v3069_v36  ;;  %v2663_v40 = vadd.f32 %v2662_v52, %v5539_v61  ;;  %v3070_v18 = vmul.f32 0.01, %v2870_v13  ;;  %v2872_v14 = vadd.f32 %v2871_v54, %v2659_v57  ;;  %v5964_v57 = vld [vmem:[#allocation2_spill] sm:$0xff] }
 0x224   :  { %v3794_v43 = vpack.c.bf16 %v3141_v63, %v3140_v59  ;;  %v2664_v31 = vpop.f32.mrf.mxu1  ;;  %v2877_v24 = vpop.f32.mrf.mxu0  ;;  %vm2998_vm2 = vcmp.ge.f32.partialorder %v2870_v13, 0.0 }
 0x225   :  { %v2876_v5 = vadd.f32 %v2875_v42, %v2663_v40  ;;  %v2665_v17 = vadd.f32 %v2664_v31, %v5549_v47  ;;  %vm2999_vm3 = vcmp.ge.f32.partialorder %v2872_v14, 0.0  ;;  %v3071_v34 = vmul.f32 0.01, %v2872_v14 }
 0x226   :  { %3412 = vst [vmem:[%s5876_s3 + $0x80] sm:$0xff] %v3794_v43  ;;  %v2666_v39 = vpop.f32.mrf.mxu1  ;;  %v2879_v27 = vpop.f32.mrf.mxu0  ;;  %v3142_v19 = vsel %vm2998_vm2, %v2870_v13, %v3070_v18 }
 0x227   :  { %v3072_v11 = vmul.f32 0.01, %v2876_v5  ;;  %v2878_v37 = vadd.f32 %v2877_v24, %v2665_v17  ;;  %v2667_v61 = vadd.f32 %v2666_v39, %v5556_v51  ;;  %v3143_v3 = vsel %vm2999_vm3, %v2872_v14, %v3071_v34  ;;  %v5965_v14 = vld [vmem:[#allocation3_spill] sm:$0xff] }
 0x228   :  { %vm3000_vm4 = vcmp.ge.f32.partialorder %v2876_v5, 0.0  ;;  %v2668_v15 = vpop.f32.mrf.mxu1  ;;  %v2881_v49 = vpop.f32.mrf.mxu0  ;;  %v3795_v58 = vpack.c.bf16 %v3143_v3, %v3142_v19 }
 0x229   :  { %vm3001_vm5 = vcmp.ge.f32.partialorder %v2878_v37, 0.0  ;;  %v3073_v47 = vmul.f32 0.01, %v2878_v37  ;;  %v2880_v2 = vadd.f32 %v2879_v27, %v2667_v61  ;;  %v2669_v53 = vadd.f32 %v2668_v15, %v5560_v45  ;;  %v5966_v27 = vld [vmem:[#allocation4_spill] sm:$0xff] }
 0x22a   :  { %v2672_v55 = vpop.f32.mrf.mxu1  ;;  %v2885_v22 = vpop.f32.mrf.mxu0  ;;  %3413 = vst [vmem:[%s5876_s3 + $0x88] sm:$0xff] %v3795_v58  ;;  %v3144_v25 = vsel %vm3000_vm4, %v2876_v5, %v3072_v11 }
 0x22b   :  { %v3145_v35 = vsel %vm3001_vm5, %v2878_v37, %v3073_v47  ;;  %v2673_v51 = vadd.f32 %v2672_v55, %v5565_v48  ;;  %v3074_v21 = vmul.f32 0.01, %v2880_v2  ;;  %v2882_v6 = vadd.f32 %v2881_v49, %v2669_v53  ;;  %v5962_v48 = vld [vmem:[#allocation30_spill] sm:$0xff]  ;;  %v5967_v47 = vld [vmem:[#allocation5_spill] sm:$0xff] }
 0x22c   :  { %v3796_v30 = vpack.c.bf16 %v3145_v35, %v3144_v25  ;;  %v2674_v41 = vpop.f32.mrf.mxu1  ;;  %v2887_v32 = vpop.f32.mrf.mxu0  ;;  %vm3002_vm6 = vcmp.ge.f32.partialorder %v2880_v2, 0.0  ;;  %v5968_v35 = vld [vmem:[#allocation6_spill] sm:$0xff] }
 0x22d   :  { %v2886_v29 = vadd.f32 %v2885_v22, %v2673_v51  ;;  %v2675_v60 = vadd.f32 %v2674_v41, %v5961_v16  ;;  %vm3003_vm7 = vcmp.ge.f32.partialorder %v2882_v6, 0.0  ;;  %v3075_v45 = vmul.f32 0.01, %v2882_v6  ;;  %v5969_v16 = vld [vmem:[#allocation7_spill] sm:$0xff] }
 0x22e   :  { %3414 = vst [vmem:[%s5876_s3 + $0x90] sm:$0xff] %v3796_v30  ;;  %v2676_v7 = vpop.f32.mrf.mxu1  ;;  %v2889_v62 = vpop.f32.mrf.mxu0  ;;  %v3146_v23 = vsel %vm3002_vm6, %v2880_v2, %v3074_v21 }
 0x22f   :  { %v3076_v20 = vmul.f32 0.01, %v2886_v29  ;;  %v2888_v0 = vadd.f32 %v2887_v32, %v2675_v60  ;;  %v2677_v46 = vadd.f32 %v2676_v7, %v5962_v48  ;;  %v3147_v28 = vsel %vm3003_vm7, %v2882_v6, %v3075_v45  ;;  %v5970_v48 = vld [vmem:[#allocation8_spill] sm:$0xff] }
 0x230   :  { %vm3004_vm8 = vcmp.ge.f32.partialorder %v2886_v29, 0.0  ;;  %v2678_v12 = vpop.f32.mrf.mxu1  ;;  %v2891_v1 = vpop.f32.mrf.mxu0  ;;  %v3797_v38 = vpack.c.bf16 %v3147_v28, %v3146_v23 }
 0x231   :  { %vm3005_vm9 = vcmp.ge.f32.partialorder %v2888_v0, 0.0  ;;  %v3077_v10 = vmul.f32 0.01, %v2888_v0  ;;  %v2890_v33 = vadd.f32 %v2889_v62, %v2677_v46  ;;  %v2679_v4 = vadd.f32 %v2678_v12, %v5963_v26  ;;  %v5971_v26 = vld [vmem:[#allocation9_spill] sm:$0xff] }
 0x232   :  { %v2682_v54 = vpop.f32.mrf.mxu1  ;;  %v2895_v56 = vpop.f32.mrf.mxu0  ;;  %3415 = vst [vmem:[%s5876_s3 + $0x98] sm:$0xff] %v3797_v38  ;;  %v3148_v36 = vsel %vm3004_vm8, %v2886_v29, %v3076_v20 }
 0x233   :  { %v3149_v13 = vsel %vm3005_vm9, %v2888_v0, %v3077_v10  ;;  %v2683_v52 = vadd.f32 %v2682_v54, %v5964_v57  ;;  %v3078_v59 = vmul.f32 0.01, %v2890_v33  ;;  %v2892_v63 = vadd.f32 %v2891_v1, %v2679_v4  ;;  %v5972_v57 = vld [vmem:[#allocation10_spill] sm:$0xff] }
 0x234   :  { %v3798_v42 = vpack.c.bf16 %v3149_v13, %v3148_v36  ;;  %v2684_v40 = vpop.f32.mrf.mxu1  ;;  %v2897_v43 = vpop.f32.mrf.mxu0  ;;  %vm3006_vm10 = vcmp.ge.f32.partialorder %v2890_v33, 0.0 }
 0x235   :  { %v2896_v18 = vadd.f32 %v2895_v56, %v2683_v52  ;;  %v2685_v31 = vadd.f32 %v2684_v40, %v5965_v14  ;;  %vm3007_vm11 = vcmp.ge.f32.partialorder %v2892_v63, 0.0  ;;  %v3079_v24 = vmul.f32 0.01, %v2892_v63  ;;  %v5973_v14 = vld [vmem:[#allocation11_spill] sm:$0xff] }
 0x236   :  { %3416 = vst [vmem:[%s5876_s3 + $0xa0] sm:$0xff] %v3798_v42  ;;  %v2686_v5 = vpop.f32.mrf.mxu1  ;;  %v2899_v17 = vpop.f32.mrf.mxu0  ;;  %v3150_v37 = vsel %vm3006_vm10, %v2890_v33, %v3078_v59 }
 0x237   :  { %v3080_v34 = vmul.f32 0.01, %v2896_v18  ;;  %v2898_v39 = vadd.f32 %v2897_v43, %v2685_v31  ;;  %v2687_v11 = vadd.f32 %v2686_v5, %v5966_v27  ;;  %v3151_v61 = vsel %vm3007_vm11, %v2892_v63, %v3079_v24  ;;  %v5974_v27 = vld [vmem:[#allocation12_spill] sm:$0xff] }
 0x238   :  { %vm3008_vm12 = vcmp.ge.f32.partialorder %v2896_v18, 0.0  ;;  %v2688_v19 = vpop.f32.mrf.mxu1  ;;  %v2901_v3 = vpop.f32.mrf.mxu0  ;;  %v3799_v15 = vpack.c.bf16 %v3151_v61, %v3150_v37 }
 0x239   :  { %vm3009_vm13 = vcmp.ge.f32.partialorder %v2898_v39, 0.0  ;;  %v3081_v49 = vmul.f32 0.01, %v2898_v39  ;;  %v2900_v58 = vadd.f32 %v2899_v17, %v2687_v11  ;;  %v2689_v2 = vadd.f32 %v2688_v19, %v5967_v47  ;;  %v5975_v47 = vld [vmem:[#allocation13_spill] sm:$0xff] }
 0x23a   :  { %v2692_v53 = vpop.f32.mrf.mxu1  ;;  %v2905_v55 = vpop.f32.mrf.mxu0  ;;  %3417 = vst [vmem:[%s5876_s3 + $0xa8] sm:$0xff] %v3799_v15  ;;  %v3152_v22 = vsel %vm3008_vm12, %v2896_v18, %v3080_v34 }
 0x23b   :  { %v3153_v25 = vsel %vm3009_vm13, %v2898_v39, %v3081_v49  ;;  %v2693_v51 = vadd.f32 %v2692_v53, %v5968_v35  ;;  %v3082_v21 = vmul.f32 0.01, %v2900_v58  ;;  %v2902_v6 = vadd.f32 %v2901_v3, %v2689_v2  ;;  %v5976_v35 = vld [vmem:[#allocation14_spill] sm:$0xff] }
 0x23c   :  { %v3800_v30 = vpack.c.bf16 %v3153_v25, %v3152_v22  ;;  %v2694_v41 = vpop.f32.mrf.mxu1  ;;  %v2907_v32 = vpop.f32.mrf.mxu0  ;;  %vm3010_vm14 = vcmp.ge.f32.partialorder %v2900_v58, 0.0 }
 0x23d   :  { %v2906_v29 = vadd.f32 %v2905_v55, %v2693_v51  ;;  %v2695_v60 = vadd.f32 %v2694_v41, %v5969_v16  ;;  %vm3011_vm15 = vcmp.ge.f32.partialorder %v2902_v6, 0.0  ;;  %v3083_v45 = vmul.f32 0.01, %v2902_v6  ;;  %v5977_v16 = vld [vmem:[#allocation15_spill] sm:$0xff] }
 0x23e   :  { %3418 = vst [vmem:[%s5876_s3 + $0xb0] sm:$0xff] %v3800_v30  ;;  %v2696_v7 = vpop.f32.mrf.mxu1  ;;  %v2909_v62 = vpop.f32.mrf.mxu0  ;;  %v3154_v23 = vsel %vm3010_vm14, %v2900_v58, %v3082_v21 }
 0x23f   :  { %v3084_v20 = vmul.f32 0.01, %v2906_v29  ;;  %v2908_v0 = vadd.f32 %v2907_v32, %v2695_v60  ;;  %v2697_v46 = vadd.f32 %v2696_v7, %v5970_v48  ;;  %v3155_v28 = vsel %vm3011_vm15, %v2902_v6, %v3083_v45  ;;  %v5978_v48 = vld [vmem:[#allocation16_spill] sm:$0xff] }
 0x240   :  { %vm3012_vm0 = vcmp.ge.f32.partialorder %v2906_v29, 0.0  ;;  %v2698_v12 = vpop.f32.mrf.mxu1  ;;  %v2911_v1 = vpop.f32.mrf.mxu0  ;;  %v3801_v38 = vpack.c.bf16 %v3155_v28, %v3154_v23 }
 0x241   :  { %vm3013_vm1 = vcmp.ge.f32.partialorder %v2908_v0, 0.0  ;;  %v3085_v10 = vmul.f32 0.01, %v2908_v0  ;;  %v2910_v33 = vadd.f32 %v2909_v62, %v2697_v46  ;;  %v2699_v4 = vadd.f32 %v2698_v12, %v5971_v26  ;;  %v5979_v26 = vld [vmem:[#allocation17_spill] sm:$0xff] }
 0x242   :  { %v2702_v54 = vpop.f32.mrf.mxu1  ;;  %v2915_v56 = vpop.f32.mrf.mxu0  ;;  %3419 = vst [vmem:[%s5876_s3 + $0xb8] sm:$0xff] %v3801_v38  ;;  %v3156_v36 = vsel %vm3012_vm0, %v2906_v29, %v3084_v20 }
 0x243   :  { %v3157_v13 = vsel %vm3013_vm1, %v2908_v0, %v3085_v10  ;;  %v2703_v52 = vadd.f32 %v2702_v54, %v5972_v57  ;;  %v3086_v59 = vmul.f32 0.01, %v2910_v33  ;;  %v2912_v63 = vadd.f32 %v2911_v1, %v2699_v4  ;;  %v5980_v57 = vld [vmem:[#allocation18_spill] sm:$0xff] }
 0x244   :  { %v3802_v42 = vpack.c.bf16 %v3157_v13, %v3156_v36  ;;  %v2704_v40 = vpop.f32.mrf.mxu1  ;;  %v2917_v43 = vpop.f32.mrf.mxu0  ;;  %vm3014_vm2 = vcmp.ge.f32.partialorder %v2910_v33, 0.0 }
 0x245   :  { %v2916_v18 = vadd.f32 %v2915_v56, %v2703_v52  ;;  %v2705_v31 = vadd.f32 %v2704_v40, %v5973_v14  ;;  %vm3015_vm3 = vcmp.ge.f32.partialorder %v2912_v63, 0.0  ;;  %v3087_v24 = vmul.f32 0.01, %v2912_v63  ;;  %v5981_v14 = vld [vmem:[#allocation19_spill] sm:$0xff] }
 0x246   :  { %3420 = vst [vmem:[%s5876_s3 + $0xc0] sm:$0xff] %v3802_v42  ;;  %v2706_v5 = vpop.f32.mrf.mxu1  ;;  %v2919_v17 = vpop.f32.mrf.mxu0  ;;  %v3158_v37 = vsel %vm3014_vm2, %v2910_v33, %v3086_v59 }
 0x247   :  { %v3088_v34 = vmul.f32 0.01, %v2916_v18  ;;  %v2918_v39 = vadd.f32 %v2917_v43, %v2705_v31  ;;  %v2707_v11 = vadd.f32 %v2706_v5, %v5974_v27  ;;  %v3159_v61 = vsel %vm3015_vm3, %v2912_v63, %v3087_v24  ;;  %v5982_v27 = vld [vmem:[#allocation20_spill] sm:$0xff] }
 0x248   :  { %vm3016_vm4 = vcmp.ge.f32.partialorder %v2916_v18, 0.0  ;;  %v2708_v19 = vpop.f32.mrf.mxu1  ;;  %v2921_v3 = vpop.f32.mrf.mxu0  ;;  %v3803_v15 = vpack.c.bf16 %v3159_v61, %v3158_v37 }
 0x249   :  { %vm3017_vm5 = vcmp.ge.f32.partialorder %v2918_v39, 0.0  ;;  %v3089_v49 = vmul.f32 0.01, %v2918_v39  ;;  %v2920_v58 = vadd.f32 %v2919_v17, %v2707_v11  ;;  %v2709_v2 = vadd.f32 %v2708_v19, %v5975_v47  ;;  %v5983_v47 = vld [vmem:[#allocation21_spill] sm:$0xff] }
 0x24a   :  { %v2712_v53 = vpop.f32.mrf.mxu1  ;;  %v2925_v55 = vpop.f32.mrf.mxu0  ;;  %3421 = vst [vmem:[%s5876_s3 + $0xc8] sm:$0xff] %v3803_v15  ;;  %v3160_v22 = vsel %vm3016_vm4, %v2916_v18, %v3088_v34 }
 0x24b   :  { %v3161_v25 = vsel %vm3017_vm5, %v2918_v39, %v3089_v49  ;;  %v2713_v51 = vadd.f32 %v2712_v53, %v5976_v35  ;;  %v3090_v21 = vmul.f32 0.01, %v2920_v58  ;;  %v2922_v6 = vadd.f32 %v2921_v3, %v2709_v2  ;;  %v5984_v35 = vld [vmem:[#allocation22_spill] sm:$0xff] }
 0x24c   :  { %v3804_v30 = vpack.c.bf16 %v3161_v25, %v3160_v22  ;;  %v2714_v41 = vpop.f32.mrf.mxu1  ;;  %v2927_v32 = vpop.f32.mrf.mxu0  ;;  %vm3018_vm6 = vcmp.ge.f32.partialorder %v2920_v58, 0.0 }
 0x24d   :  { %v2926_v29 = vadd.f32 %v2925_v55, %v2713_v51  ;;  %v2715_v60 = vadd.f32 %v2714_v41, %v5977_v16  ;;  %vm3019_vm7 = vcmp.ge.f32.partialorder %v2922_v6, 0.0  ;;  %v3091_v45 = vmul.f32 0.01, %v2922_v6  ;;  %v5985_v16 = vld [vmem:[#allocation23_spill] sm:$0xff] }
 0x24e   :  { %3422 = vst [vmem:[%s5876_s3 + $0xd0] sm:$0xff] %v3804_v30  ;;  %v2716_v7 = vpop.f32.mrf.mxu1  ;;  %v2929_v62 = vpop.f32.mrf.mxu0  ;;  %v3162_v23 = vsel %vm3018_vm6, %v2920_v58, %v3090_v21 }
 0x24f   :  { %v3092_v20 = vmul.f32 0.01, %v2926_v29  ;;  %v2928_v0 = vadd.f32 %v2927_v32, %v2715_v60  ;;  %v2717_v46 = vadd.f32 %v2716_v7, %v5978_v48  ;;  %v3163_v28 = vsel %vm3019_vm7, %v2922_v6, %v3091_v45  ;;  %v5986_v48 = vld [vmem:[#allocation24_spill] sm:$0xff] }
 0x250   :  { %vm3020_vm8 = vcmp.ge.f32.partialorder %v2926_v29, 0.0  ;;  %v2718_v12 = vpop.f32.mrf.mxu1  ;;  %v2931_v1 = vpop.f32.mrf.mxu0  ;;  %v3805_v38 = vpack.c.bf16 %v3163_v28, %v3162_v23 }
 0x251   :  { %vm3021_vm9 = vcmp.ge.f32.partialorder %v2928_v0, 0.0  ;;  %v3093_v10 = vmul.f32 0.01, %v2928_v0  ;;  %v2930_v33 = vadd.f32 %v2929_v62, %v2717_v46  ;;  %v2719_v4 = vadd.f32 %v2718_v12, %v5979_v26  ;;  %v5987_v26 = vld [vmem:[#allocation25_spill] sm:$0xff] }
 0x252   :  { %v2722_v54 = vpop.f32.mrf.mxu1  ;;  %v2935_v56 = vpop.f32.mrf.mxu0  ;;  %3423 = vst [vmem:[%s5876_s3 + $0xd8] sm:$0xff] %v3805_v38  ;;  %v3164_v36 = vsel %vm3020_vm8, %v2926_v29, %v3092_v20 }
 0x253   :  { %v3165_v13 = vsel %vm3021_vm9, %v2928_v0, %v3093_v10  ;;  %v2723_v52 = vadd.f32 %v2722_v54, %v5980_v57  ;;  %v3094_v59 = vmul.f32 0.01, %v2930_v33  ;;  %v2932_v63 = vadd.f32 %v2931_v1, %v2719_v4 }
 0x254   :  { %v3806_v42 = vpack.c.bf16 %v3165_v13, %v3164_v36  ;;  %v2724_v40 = vpop.f32.mrf.mxu1  ;;  %v2937_v43 = vpop.f32.mrf.mxu0  ;;  %vm3022_vm10 = vcmp.ge.f32.partialorder %v2930_v33, 0.0 }
 0x255   :  { %v2936_v18 = vadd.f32 %v2935_v56, %v2723_v52  ;;  %v2725_v31 = vadd.f32 %v2724_v40, %v5981_v14  ;;  %vm3023_vm11 = vcmp.ge.f32.partialorder %v2932_v63, 0.0  ;;  %v3095_v24 = vmul.f32 0.01, %v2932_v63 }
 0x256   :  { %3424 = vst [vmem:[%s5876_s3 + $0xe0] sm:$0xff] %v3806_v42  ;;  %v2726_v5 = vpop.f32.mrf.mxu1  ;;  %v2939_v17 = vpop.f32.mrf.mxu0  ;;  %v3166_v37 = vsel %vm3022_vm10, %v2930_v33, %v3094_v59 }
 0x257   :  { %v3096_v34 = vmul.f32 0.01, %v2936_v18  ;;  %v2938_v39 = vadd.f32 %v2937_v43, %v2725_v31  ;;  %v2727_v11 = vadd.f32 %v2726_v5, %v5982_v27  ;;  %v3167_v61 = vsel %vm3023_vm11, %v2932_v63, %v3095_v24 }
 0x258   :  { %vm3024_vm12 = vcmp.ge.f32.partialorder %v2936_v18, 0.0  ;;  %v2728_v19 = vpop.f32.mrf.mxu1  ;;  %v2941_v3 = vpop.f32.mrf.mxu0  ;;  %v3807_v15 = vpack.c.bf16 %v3167_v61, %v3166_v37 }
 0x259   :  { %vm3025_vm13 = vcmp.ge.f32.partialorder %v2938_v39, 0.0  ;;  %v3097_v49 = vmul.f32 0.01, %v2938_v39  ;;  %v2940_v58 = vadd.f32 %v2939_v17, %v2727_v11  ;;  %v2729_v2 = vadd.f32 %v2728_v19, %v5983_v47 }
 0x25a   :  { %v2732_v53 = vpop.f32.mrf.mxu1  ;;  %v2945_v55 = vpop.f32.mrf.mxu0  ;;  %3425 = vst [vmem:[%s5876_s3 + $0xe8] sm:$0xff] %v3807_v15  ;;  %v3168_v22 = vsel %vm3024_vm12, %v2936_v18, %v3096_v34 }
 0x25b   :  { %v3169_v25 = vsel %vm3025_vm13, %v2938_v39, %v3097_v49  ;;  %v2733_v51 = vadd.f32 %v2732_v53, %v5984_v35  ;;  %v3098_v21 = vmul.f32 0.01, %v2940_v58  ;;  %v2942_v6 = vadd.f32 %v2941_v3, %v2729_v2 }
 0x25c   :  { %v3808_v30 = vpack.c.bf16 %v3169_v25, %v3168_v22  ;;  %v2734_v41 = vpop.f32.mrf.mxu1  ;;  %v2947_v32 = vpop.f32.mrf.mxu0  ;;  %vm3026_vm14 = vcmp.ge.f32.partialorder %v2940_v58, 0.0 }
 0x25d   :  { %v2946_v29 = vadd.f32 %v2945_v55, %v2733_v51  ;;  %v2735_v60 = vadd.f32 %v2734_v41, %v5985_v16  ;;  %vm3027_vm15 = vcmp.ge.f32.partialorder %v2942_v6, 0.0  ;;  %v3099_v45 = vmul.f32 0.01, %v2942_v6 }
 0x25e   :  { %3426 = vst [vmem:[%s5876_s3 + $0xf0] sm:$0xff] %v3808_v30  ;;  %v2736_v7 = vpop.f32.mrf.mxu1  ;;  %v2949_v62 = vpop.f32.mrf.mxu0  ;;  %v3170_v23 = vsel %vm3026_vm14, %v2940_v58, %v3098_v21 }
 0x25f   :  { %v3100_v20 = vmul.f32 0.01, %v2946_v29  ;;  %v2948_v0 = vadd.f32 %v2947_v32, %v2735_v60  ;;  %v2737_v46 = vadd.f32 %v2736_v7, %v5986_v48  ;;  %v3171_v28 = vsel %vm3027_vm15, %v2942_v6, %v3099_v45 }
 0x260   :  { %vm3028_vm0 = vcmp.ge.f32.partialorder %v2946_v29, 0.0  ;;  %v2738_v12 = vpop.f32.mrf.mxu1  ;;  %v2951_v1 = vpop.f32.mrf.mxu0  ;;  %v3809_v38 = vpack.c.bf16 %v3171_v28, %v3170_v23 }
 0x261   :  { %vm3029_vm1 = vcmp.ge.f32.partialorder %v2948_v0, 0.0  ;;  %v3101_v10 = vmul.f32 0.01, %v2948_v0  ;;  %v2950_v33 = vadd.f32 %v2949_v62, %v2737_v46  ;;  %v2739_v4 = vadd.f32 %v2738_v12, %v5987_v26 }
 0x262   :  { %v2742_v54 = vpop.f32.mrf.mxu1  ;;  %v2955_v56 = vpop.f32.mrf.mxu0  ;;  %3427 = vst [vmem:[%s5876_s3 + $0xf8] sm:$0xff] %v3809_v38  ;;  %v3172_v36 = vsel %vm3028_vm0, %v2946_v29, %v3100_v20 }
 0x263   :  { %v3173_v13 = vsel %vm3029_vm1, %v2948_v0, %v3101_v10  ;;  %v2743_v57 = vadd.f32 %v2742_v54, %v5683_v8  ;;  %v3102_v42 = vmul.f32 0.01, %v2950_v33  ;;  %v2952_v59 = vadd.f32 %v2951_v1, %v2739_v4 }
 0x264   :  { %v3810_v52 = vpack.c.bf16 %v3173_v13, %v3172_v36  ;;  %v2744_v63 = vpop.f32.mrf.mxu1  ;;  %v2957_v40 = vpop.f32.mrf.mxu0  ;;  %vm3030_vm2 = vcmp.ge.f32.partialorder %v2950_v33, 0.0 }
 0x265   :  { %v2956_v43 = vadd.f32 %v2955_v56, %v2743_v57  ;;  %v2745_v18 = vadd.f32 %v2744_v63, %v5687_v44  ;;  %vm3031_vm3 = vcmp.ge.f32.partialorder %v2952_v59, 0.0  ;;  %v3103_v14 = vmul.f32 0.01, %v2952_v59 }
 0x266   :  { %3428 = vst [vmem:[%s5876_s3 + $0x100] sm:$0xff] %v3810_v52  ;;  %v2746_v31 = vpop.f32.mrf.mxu1  ;;  %v2959_v17 = vpop.f32.mrf.mxu0  ;;  %v3174_v34 = vsel %vm3030_vm2, %v2950_v33, %v3102_v42 }
 0x267   :  { %v3104_v24 = vmul.f32 0.01, %v2956_v43  ;;  %v2958_v5 = vadd.f32 %v2957_v40, %v2745_v18  ;;  %v2747_v8 = vadd.f32 %v2746_v31, %v5689_v50  ;;  %v3175_v39 = vsel %vm3031_vm3, %v2952_v59, %v3103_v14 }
 0x268   :  { %vm3032_vm4 = vcmp.ge.f32.partialorder %v2956_v43, 0.0  ;;  %v2748_v27 = vpop.f32.mrf.mxu1  ;;  %v3811_v11 = vpack.c.bf16 %v3175_v39, %v3174_v34  ;;  %v2961_v15 = vpop.f32.mrf.mxu0 }
 0x269   :  { %vm3033_vm5 = vcmp.ge.f32.partialorder %v2958_v5, 0.0  ;;  %v3105_v37 = vmul.f32 0.01, %v2958_v5  ;;  %v2960_v44 = vadd.f32 %v2959_v17, %v2747_v8  ;;  %v2749_v61 = vadd.f32 %v2748_v27, %v5691_v9 }
 0x26a   :  { %3429 = vst [vmem:[%s5876_s3 + $0x108] sm:$0xff] %v3811_v11  ;;  %v3176_v19 = vsel %vm3032_vm4, %v2956_v43, %v3104_v24 }
 0x26b   :  { %v3177_v3 = vsel %vm3033_vm5, %v2958_v5, %v3105_v37  ;;  %v3106_v50 = vmul.f32 0.01, %v2960_v44  ;;  %v2962_v58 = vadd.f32 %v2961_v15, %v2749_v61  ;;  %vm3034_vm6 = vcmp.ge.f32.partialorder %v2960_v44, 0.0 }
 0x26c   :  { %v3812_v49 = vpack.c.bf16 %v3177_v3, %v3176_v19 }
 0x26d   :  { %vm3035_vm7 = vcmp.ge.f32.partialorder %v2962_v58, 0.0  ;;  %v3107_v47 = vmul.f32 0.01, %v2962_v58  ;;  %v3178_v2 = vsel %vm3034_vm6, %v2960_v44, %v3106_v50 }
 0x26e   :  { %3430 = vst [vmem:[%s5876_s3 + $0x110] sm:$0xff] %v3812_v49 }
 0x26f   :  { %v3179_v53 = vsel %vm3035_vm7, %v2962_v58, %v3107_v47 }
 0x270   :  { %v3813_v9 = vpack.c.bf16 %v3179_v53, %v3178_v2 }
 0x272   :  { %3431 = vst [vmem:[%s5876_s3 + $0x118] sm:$0xff] %v3813_v9 }

// kernel: _lambda_.12
= control target key start
LH: loop header
LB: loop body
LE: loop exit
PB: predicated region body
PF: predicated region fallthrough
CT: control target
= control target key end

     0   :  { %s4470_s1 = inlined_call_operand.vmem [shape: bf16[2304,256], index: 1, kind: input, shape index: {}]   ;;  %s4471_s0 = inlined_call_operand.vmem [shape: bf16[32,2304], index: 0, kind: input, shape index: {}]   ;;  %s4472_s2 = inlined_call_operand.vmem [shape: f32[1,256], index: 2, kind: input, shape index: {}]   ;;  %s4473_s3 = inlined_call_operand.vmem [shape: bf16[32,256], index: 3, kind: output, shape index: {}]  }
   0x1   :  { %v2867_v0 = vld [vmem:[%s4470_s1 + $0x74] ss:$8 sps:$4 sm:$0xff]   ;;  %v2871_v2 = vld [vmem:[%s4470_s1 + $0x70] ss:$8 sps:$4 sm:$0xff]   ;;  %v2873_v4 = vld [vmem:[%s4470_s1 + $0x64] ss:$8 sps:$4 sm:$0xff]  }
   0x2   :  { %v2869_v1 = vld [vmem:[%s4470_s1 + $0x174] ss:$8 sps:$4 sm:$0xff]   ;;  %1970 = vmatprep.subr.bf16.mxu0 %v2867_v0  ;;  %v2872_v3 = vld [vmem:[%s4470_s1 + $0x170] ss:$8 sps:$4 sm:$0xff]   ;;  %v2875_v5 = vld [vmem:[%s4470_s1 + $0x164] ss:$8 sps:$4 sm:$0xff]  }
   0x3   :  { %2023 = vmatprep.subr.bf16.mxu1 %v2869_v1  ;;  %1971 = vmatpush1.bf16.msra.mxu0 %v2871_v2  ;;  %v2877_v6 = vld [vmem:[%s4470_s1 + $0x60] ss:$8 sps:$4 sm:$0xff]   ;;  %v2879_v8 = vld [vmem:[%s4470_s1 + $0x54] ss:$8 sps:$4 sm:$0xff]   ;;  %v2883_v10 = vld [vmem:[%s4470_s1 + $0x50] ss:$8 sps:$4 sm:$0xff]  }
   0x4   :  { %2024 = vmatpush1.bf16.msra.mxu1 %v2872_v3  ;;  %1972 = vmatprep.subr.bf16.mxu0 %v2873_v4  ;;  %v2878_v7 = vld [vmem:[%s4470_s1 + $0x160] ss:$8 sps:$4 sm:$0xff]   ;;  %v2881_v9 = vld [vmem:[%s4470_s1 + $0x154] ss:$8 sps:$4 sm:$0xff]   ;;  %v2884_v11 = vld [vmem:[%s4470_s1 + $0x150] ss:$8 sps:$4 sm:$0xff]  }
   0x5   :  { %2025 = vmatprep.subr.bf16.mxu1 %v2875_v5  ;;  %v2885_v12 = vld [vmem:[%s4470_s1 + $0x44] ss:$8 sps:$4 sm:$0xff]   ;;  %v2889_v14 = vld [vmem:[%s4470_s1 + $0x40] ss:$8 sps:$4 sm:$0xff]   ;;  %v2891_v16 = vld [vmem:[%s4470_s1 + $0x34] ss:$8 sps:$4 sm:$0xff]  }
   0x6   :  { %v2887_v13 = vld [vmem:[%s4470_s1 + $0x144] ss:$8 sps:$4 sm:$0xff]   ;;  %v2890_v15 = vld [vmem:[%s4470_s1 + $0x140] ss:$8 sps:$4 sm:$0xff]   ;;  %v2893_v17 = vld [vmem:[%s4470_s1 + $0x134] ss:$8 sps:$4 sm:$0xff]  }
   0x7   :  { %1973 = vmatpush1.bf16.msra.mxu0 %v2877_v6  ;;  %v2895_v18 = vld [vmem:[%s4470_s1 + $0x30] ss:$8 sps:$4 sm:$0xff]   ;;  %v2897_v20 = vld [vmem:[%s4470_s1 + $0x24] ss:$8 sps:$4 sm:$0xff]   ;;  %v2901_v22 = vld [vmem:[%s4470_s1 + $0x20] ss:$8 sps:$4 sm:$0xff]  }
   0x8   :  { %2026 = vmatpush1.bf16.msra.mxu1 %v2878_v7  ;;  %1974 = vmatprep.subr.bf16.mxu0 %v2879_v8  ;;  %v2896_v19 = vld [vmem:[%s4470_s1 + $0x130] ss:$8 sps:$4 sm:$0xff]   ;;  %v2899_v21 = vld [vmem:[%s4470_s1 + $0x124] ss:$8 sps:$4 sm:$0xff]   ;;  %v2902_v23 = vld [vmem:[%s4470_s1 + $0x120] ss:$8 sps:$4 sm:$0xff]  }
   0x9   :  { %2027 = vmatprep.subr.bf16.mxu1 %v2881_v9  ;;  %v2903_v24 = vld [vmem:[%s4470_s1 + $0x14] ss:$8 sps:$4 sm:$0xff]   ;;  %v2907_v26 = vld [vmem:[%s4470_s1 + $0x10] ss:$8 sps:$4 sm:$0xff]   ;;  %v2909_v28 = vld [vmem:[%s4470_s1 + $0x4] ss:$8 sps:$4 sm:$0xff]  }
   0xa   :  { %v2905_v25 = vld [vmem:[%s4470_s1 + $0x114] ss:$8 sps:$4 sm:$0xff]   ;;  %v2908_v27 = vld [vmem:[%s4470_s1 + $0x110] ss:$8 sps:$4 sm:$0xff]   ;;  %v2911_v29 = vld [vmem:[%s4470_s1 + $0x104] ss:$8 sps:$4 sm:$0xff]  }
   0xb   :  { %1975 = vmatpush1.bf16.msra.mxu0 %v2883_v10  ;;  %v2913_v30 = vld [vmem:[%s4470_s1] ss:$8 sps:$4 sm:$0xff]   ;;  %v2915_v32 = vld [vmem:[%s4470_s1 + $0xf4] ss:$8 sps:$4 sm:$0xff]   ;;  %v2919_v34 = vld [vmem:[%s4470_s1 + $0xf0] ss:$8 sps:$4 sm:$0xff]  }
   0xc   :  { %2028 = vmatpush1.bf16.msra.mxu1 %v2884_v11  ;;  %1976 = vmatprep.subr.bf16.mxu0 %v2885_v12  ;;  %v2914_v31 = vld [vmem:[%s4470_s1 + $0x100] ss:$8 sps:$4 sm:$0xff]   ;;  %v2917_v33 = vld [vmem:[%s4470_s1 + $0x1f4] ss:$8 sps:$4 sm:$0xff]   ;;  %v2920_v35 = vld [vmem:[%s4470_s1 + $0x1f0] ss:$8 sps:$4 sm:$0xff]  }
   0xd   :  { %2029 = vmatprep.subr.bf16.mxu1 %v2887_v13  ;;  %v2921_v36 = vld [vmem:[%s4470_s1 + $0xe4] ss:$8 sps:$4 sm:$0xff]   ;;  %v2925_v38 = vld [vmem:[%s4470_s1 + $0xe0] ss:$8 sps:$4 sm:$0xff]   ;;  %v2927_v40 = vld [vmem:[%s4470_s1 + $0xd4] ss:$8 sps:$4 sm:$0xff]  }
   0xe   :  { %v2923_v37 = vld [vmem:[%s4470_s1 + $0x1e4] ss:$8 sps:$4 sm:$0xff]   ;;  %v2926_v39 = vld [vmem:[%s4470_s1 + $0x1e0] ss:$8 sps:$4 sm:$0xff]   ;;  %v2929_v41 = vld [vmem:[%s4470_s1 + $0x1d4] ss:$8 sps:$4 sm:$0xff]  }
   0xf   :  { %1977 = vmatpush1.bf16.msra.mxu0 %v2889_v14  ;;  %v2931_v42 = vld [vmem:[%s4470_s1 + $0xd0] ss:$8 sps:$4 sm:$0xff]   ;;  %v2933_v44 = vld [vmem:[%s4470_s1 + $0xc4] ss:$8 sps:$4 sm:$0xff]   ;;  %v2937_v46 = vld [vmem:[%s4470_s1 + $0xc0] ss:$8 sps:$4 sm:$0xff]  }
  0x10   :  { %2030 = vmatpush1.bf16.msra.mxu1 %v2890_v15  ;;  %1978 = vmatprep.subr.bf16.mxu0 %v2891_v16  ;;  %v2932_v43 = vld [vmem:[%s4470_s1 + $0x1d0] ss:$8 sps:$4 sm:$0xff]   ;;  %v2935_v45 = vld [vmem:[%s4470_s1 + $0x1c4] ss:$8 sps:$4 sm:$0xff]   ;;  %v2938_v47 = vld [vmem:[%s4470_s1 + $0x1c0] ss:$8 sps:$4 sm:$0xff]  }
  0x11   :  { %2031 = vmatprep.subr.bf16.mxu1 %v2893_v17  ;;  %v2939_v48 = vld [vmem:[%s4470_s1 + $0xb4] ss:$8 sps:$4 sm:$0xff]   ;;  %v2965_v49 = vld [vmem:[%s4471_s0 + $0x4] ss:$72 sps:$4 sm:$0xff]   ;;  %v2943_v52 = vld [vmem:[%s4470_s1 + $0xb0] ss:$8 sps:$4 sm:$0xff]  }
  0x12   :  { %v2941_v50 = vld [vmem:[%s4470_s1 + $0x1b4] ss:$8 sps:$4 sm:$0xff]   ;;  %2002 = vmatprep.mubr.bf16.mxu0 %v2965_v49  ;;  %v2944_v53 = vld [vmem:[%s4470_s1 + $0x1b0] ss:$8 sps:$4 sm:$0xff]   ;;  %v2945_v54 = vld [vmem:[%s4470_s1 + $0xa4] ss:$8 sps:$4 sm:$0xff]  }
  0x13   :  { %1979 = vmatpush1.bf16.msra.mxu0 %v2895_v18  ;;  %v2968_v51 = vld [vmem:[%s4471_s0 + $0xc] ss:$72 sps:$4 sm:$0xff]   ;;  %v2949_v56 = vld [vmem:[%s4470_s1 + $0xa0] ss:$8 sps:$4 sm:$0xff]   ;;  %v2955_v60 = vld [vmem:[%s4470_s1 + $0x90] ss:$8 sps:$4 sm:$0xff]  }
  0x14   :  { %2032 = vmatpush1.bf16.msra.mxu1 %v2896_v19  ;;  %1980 = vmatprep.subr.bf16.mxu0 %v2897_v20  ;;  %v2947_v55 = vld [vmem:[%s4470_s1 + $0x1a4] ss:$8 sps:$4 sm:$0xff]   ;;  %v2950_v57 = vld [vmem:[%s4470_s1 + $0x1a0] ss:$8 sps:$4 sm:$0xff]   ;;  %v2951_v58 = vld [vmem:[%s4470_s1 + $0x94] ss:$8 sps:$4 sm:$0xff]  }
  0x15   :  { %2033 = vmatprep.subr.bf16.mxu1 %v2899_v21  ;;  %2055 = vmatprep.mubr.bf16.mxu1 %v2968_v51  ;;  %v2953_v59 = vld [vmem:[%s4470_s1 + $0x194] ss:$8 sps:$4 sm:$0xff]   ;;  %v2956_v61 = vld [vmem:[%s4470_s1 + $0x190] ss:$8 sps:$4 sm:$0xff]   ;;  %v2957_v62 = vld [vmem:[%s4470_s1 + $0x84] ss:$8 sps:$4 sm:$0xff]  }
  0x16   :  { %v2959_v63 = vld [vmem:[%s4470_s1 + $0x184] ss:$8 sps:$4 sm:$0xff]   ;;  %v2961_v0 = vld [vmem:[%s4470_s1 + $0x80] ss:$8 sps:$4 sm:$0xff]   ;;  %v2971_v2 = vld [vmem:[%s4470_s1 + $0x274] ss:$8 sps:$4 sm:$0xff]  }
  0x17   :  { %1981 = vmatpush1.bf16.msra.mxu0 %v2901_v22  ;;  %v2962_v1 = vld [vmem:[%s4470_s1 + $0x180] ss:$8 sps:$4 sm:$0xff]   ;;  %v2974_v3 = vld [vmem:[%s4470_s1 + $0x374] ss:$8 sps:$4 sm:$0xff]   ;;  %v2969_v6 = vld [vmem:[%s4470_s1 + $0x270] ss:$8 sps:$4 sm:$0xff]  }
  0x18   :  { %2034 = vmatpush1.bf16.msra.mxu1 %v2902_v23  ;;  %1982 = vmatprep.subr.bf16.mxu0 %v2903_v24  ;;  %v2963_v4 = vld [vmem:[%s4471_s0] ss:$72 sps:$4 sm:$0xff]   ;;  %v2972_v7 = vld [vmem:[%s4470_s1 + $0x370] ss:$8 sps:$4 sm:$0xff]   ;;  %v2977_v8 = vld [vmem:[%s4470_s1 + $0x264] ss:$8 sps:$4 sm:$0xff]  }
  0x19   :  { %2035 = vmatprep.subr.bf16.mxu1 %v2905_v25  ;;  %v2966_v5 = vld [vmem:[%s4471_s0 + $0x8] ss:$72 sps:$4 sm:$0xff]   ;;  %v2980_v9 = vld [vmem:[%s4470_s1 + $0x364] ss:$8 sps:$4 sm:$0xff]   ;;  %v2983_v12 = vld [vmem:[%s4470_s1 + $0x254] ss:$8 sps:$4 sm:$0xff]  }
  0x1a   :  { %v2975_v10 = vld [vmem:[%s4470_s1 + $0x260] ss:$8 sps:$4 sm:$0xff]   ;;  %v2986_v13 = vld [vmem:[%s4470_s1 + $0x354] ss:$8 sps:$4 sm:$0xff]   ;;  %v2981_v14 = vld [vmem:[%s4470_s1 + $0x250] ss:$8 sps:$4 sm:$0xff]  }
  0x1b   :  { %1983 = vmatpush1.bf16.msra.mxu0 %v2907_v26  ;;  %v2978_v11 = vld [vmem:[%s4470_s1 + $0x360] ss:$8 sps:$4 sm:$0xff]   ;;  %v2984_v15 = vld [vmem:[%s4470_s1 + $0x350] ss:$8 sps:$4 sm:$0xff]   ;;  %v2989_v16 = vld [vmem:[%s4470_s1 + $0x244] ss:$8 sps:$4 sm:$0xff]  }
  0x1c   :  { %2036 = vmatpush1.bf16.msra.mxu1 %v2908_v27  ;;  %1984 = vmatprep.subr.bf16.mxu0 %v2909_v28  ;;  %v2992_v17 = vld [vmem:[%s4470_s1 + $0x344] ss:$8 sps:$4 sm:$0xff]   ;;  %v2987_v18 = vld [vmem:[%s4470_s1 + $0x240] ss:$8 sps:$4 sm:$0xff]   ;;  %v2995_v20 = vld [vmem:[%s4470_s1 + $0x234] ss:$8 sps:$4 sm:$0xff]  }
  0x1d   :  { %2037 = vmatprep.subr.bf16.mxu1 %v2911_v29  ;;  %v2990_v19 = vld [vmem:[%s4470_s1 + $0x340] ss:$8 sps:$4 sm:$0xff]   ;;  %v2998_v21 = vld [vmem:[%s4470_s1 + $0x334] ss:$8 sps:$4 sm:$0xff]   ;;  %v2993_v23 = vld [vmem:[%s4470_s1 + $0x230] ss:$8 sps:$4 sm:$0xff]  }
  0x1e   :  { %v3041_v22 = vld [vmem:[%s4471_s0 + $0x94] ss:$72 sps:$4 sm:$0xff]   ;;  %v2996_v24 = vld [vmem:[%s4470_s1 + $0x330] ss:$8 sps:$4 sm:$0xff]   ;;  %v3001_v25 = vld [vmem:[%s4470_s1 + $0x224] ss:$8 sps:$4 sm:$0xff]  }
  0x1f   :  { %1985 = vmatpush1.bf16.msra.mxu0 %v2913_v30  ;;  %v3004_v26 = vld [vmem:[%s4470_s1 + $0x324] ss:$8 sps:$4 sm:$0xff]   ;;  %v3049_v27 = vld [vmem:[%s4471_s0 + $0x90] ss:$72 sps:$4 sm:$0xff]   ;;  %v2999_v28 = vld [vmem:[%s4470_s1 + $0x220] ss:$8 sps:$4 sm:$0xff]  }
  0x20   :  { %2038 = vmatpush1.bf16.msra.mxu1 %v2914_v31  ;;  %1986 = vmatprep.subr.bf16.mxu0 %v2915_v32  ;;  %v3050_v29 = vld [vmem:[%s4471_s0 + $0x9c] ss:$72 sps:$4 sm:$0xff]   ;;  %v3002_v30 = vld [vmem:[%s4470_s1 + $0x320] ss:$8 sps:$4 sm:$0xff]  }
  0x21   :  { %2039 = vmatprep.subr.bf16.mxu1 %v2917_v33  ;;  %v3052_v31 = vld [vmem:[%s4471_s0 + $0x98] ss:$72 sps:$4 sm:$0xff]   ;;  %v3007_v32 = vld [vmem:[%s4470_s1 + $0x214] ss:$8 sps:$4 sm:$0xff]  }
  0x22   :  { %v3010_v33 = vld [vmem:[%s4470_s1 + $0x314] ss:$8 sps:$4 sm:$0xff]   ;;  %v3026_v49 = vld [vmem:[%s4470_s1 + $0x3e0] ss:$8 sps:$4 sm:$0xff]  }
  0x23   :  { %1987 = vmatpush2.bf16.msra.mxu0 %v2919_v34  ;;  %v3005_v34 = vld [vmem:[%s4470_s1 + $0x210] ss:$8 sps:$4 sm:$0xff]   ;;  %v3034_v51 = vld [vmem:[%s4470_s1 + $0x3d4] ss:$8 sps:$4 sm:$0xff]  }
  0x24   :  { %2040 = vmatpush2.bf16.msra.mxu1 %v2920_v35  ;;  %1988 = vmatprep.subr.bf16.mxu0 %v2921_v36  ;;  %v3008_v35 = vld [vmem:[%s4470_s1 + $0x310] ss:$8 sps:$4 sm:$0xff]   ;;  %v3013_v36 = vld [vmem:[%s4470_s1 + $0x204] ss:$8 sps:$4 sm:$0xff]  }
  0x25   :  { %2041 = vmatprep.subr.bf16.mxu1 %v2923_v37  ;;  %v3016_v37 = vld [vmem:[%s4470_s1 + $0x304] ss:$8 sps:$4 sm:$0xff]  }
  0x27   :  { %1989 = vmatpush2.bf16.msra.mxu0 %v2925_v38  ;;  %v3011_v38 = vld [vmem:[%s4470_s1 + $0x200] ss:$8 sps:$4 sm:$0xff]  }
  0x28   :  { %2042 = vmatpush2.bf16.msra.mxu1 %v2926_v39  ;;  %1990 = vmatprep.subr.bf16.mxu0 %v2927_v40  ;;  %v3014_v39 = vld [vmem:[%s4470_s1 + $0x300] ss:$8 sps:$4 sm:$0xff]   ;;  %v3019_v40 = vld [vmem:[%s4470_s1 + $0x2f4] ss:$8 sps:$4 sm:$0xff]  }
  0x29   :  { %2043 = vmatprep.subr.bf16.mxu1 %v2929_v41  ;;  %v3073_v41 = vld [vmem:[%s4471_s0 + $0x14] ss:$72 sps:$4 sm:$0xff]  }
  0x2b   :  { %1991 = vmatpush2.bf16.msra.mxu0 %v2931_v42  ;;  %v3022_v42 = vld [vmem:[%s4470_s1 + $0x3f4] ss:$8 sps:$4 sm:$0xff]  }
  0x2c   :  { %2044 = vmatpush2.bf16.msra.mxu1 %v2932_v43  ;;  %1992 = vmatprep.subr.bf16.mxu0 %v2933_v44  ;;  %v3076_v43 = vld [vmem:[%s4471_s0 + $0x1c] ss:$72 sps:$4 sm:$0xff]   ;;  %v3017_v44 = vld [vmem:[%s4470_s1 + $0x2f0] ss:$8 sps:$4 sm:$0xff]  }
  0x2d   :  { %2045 = vmatprep.subr.bf16.mxu1 %v2935_v45  ;;  %v3020_v45 = vld [vmem:[%s4470_s1 + $0x3f0] ss:$8 sps:$4 sm:$0xff]  }
  0x2f   :  { %1993 = vmatpush2.bf16.msra.mxu0 %v2937_v46  ;;  %v3025_v46 = vld [vmem:[%s4470_s1 + $0x2e4] ss:$8 sps:$4 sm:$0xff]  }
  0x30   :  { %2046 = vmatpush2.bf16.msra.mxu1 %v2938_v47  ;;  %1994 = vmatprep.subr.bf16.mxu0 %v2939_v48  ;;  %v3028_v47 = vld [vmem:[%s4470_s1 + $0x3e4] ss:$8 sps:$4 sm:$0xff]   ;;  %v3023_v48 = vld [vmem:[%s4470_s1 + $0x2e0] ss:$8 sps:$4 sm:$0xff]  }
  0x31   :  { %2047 = vmatprep.subr.bf16.mxu1 %v2941_v50  ;;  %v3031_v50 = vld [vmem:[%s4470_s1 + $0x2d4] ss:$8 sps:$4 sm:$0xff]  }
  0x33   :  { %1995 = vmatpush2.bf16.msra.mxu0 %v2943_v52  ;;  %v3029_v52 = vld [vmem:[%s4470_s1 + $0x2d0] ss:$8 sps:$4 sm:$0xff]  }
  0x34   :  { %2048 = vmatpush2.bf16.msra.mxu1 %v2944_v53  ;;  %1996 = vmatprep.subr.bf16.mxu0 %v2945_v54  ;;  %v3032_v53 = vld [vmem:[%s4470_s1 + $0x3d0] ss:$8 sps:$4 sm:$0xff]   ;;  %v3037_v54 = vld [vmem:[%s4470_s1 + $0x2c4] ss:$8 sps:$4 sm:$0xff]  }
  0x35   :  { %2049 = vmatprep.subr.bf16.mxu1 %v2947_v55  ;;  %v3040_v55 = vld [vmem:[%s4470_s1 + $0x3c4] ss:$8 sps:$4 sm:$0xff]  }
  0x37   :  { %1997 = vmatpush2.bf16.msra.mxu0 %v2949_v56  ;;  %v3035_v56 = vld [vmem:[%s4470_s1 + $0x2c0] ss:$8 sps:$4 sm:$0xff]  }
  0x38   :  { %2050 = vmatpush2.bf16.msra.mxu1 %v2950_v57  ;;  %1998 = vmatprep.subr.bf16.mxu0 %v2951_v58  ;;  %v3038_v57 = vld [vmem:[%s4470_s1 + $0x3c0] ss:$8 sps:$4 sm:$0xff]   ;;  %v3045_v58 = vld [vmem:[%s4470_s1 + $0x2b4] ss:$8 sps:$4 sm:$0xff]  }
  0x39   :  { %2051 = vmatprep.subr.bf16.mxu1 %v2953_v59  ;;  %v3048_v59 = vld [vmem:[%s4470_s1 + $0x3b4] ss:$8 sps:$4 sm:$0xff]  }
  0x3b   :  { %1999 = vmatpush2.bf16.msra.mxu0 %v2955_v60  ;;  %v3043_v60 = vld [vmem:[%s4470_s1 + $0x2b0] ss:$8 sps:$4 sm:$0xff]  }
  0x3c   :  { %2052 = vmatpush2.bf16.msra.mxu1 %v2956_v61  ;;  %2000 = vmatprep.subr.bf16.mxu0 %v2957_v62  ;;  %v3046_v61 = vld [vmem:[%s4470_s1 + $0x3b0] ss:$8 sps:$4 sm:$0xff]   ;;  %v3055_v62 = vld [vmem:[%s4470_s1 + $0x2a4] ss:$8 sps:$4 sm:$0xff]  }
  0x3d   :  { %2053 = vmatprep.subr.bf16.mxu1 %v2959_v63  ;;  %v3058_v63 = vld [vmem:[%s4470_s1 + $0x3a4] ss:$8 sps:$4 sm:$0xff]  }
  0x3f   :  { %2001 = vmatpush2.bf16.msra.mxu0 %v2961_v0  ;;  %v3053_v0 = vld [vmem:[%s4470_s1 + $0x2a0] ss:$8 sps:$4 sm:$0xff]  }
  0x40   :  { %2054 = vmatpush2.bf16.msra.mxu1 %v2962_v1  ;;  %2076 = vmatprep.subr.bf16.mxu0 %v2971_v2  ;;  %v3056_v1 = vld [vmem:[%s4470_s1 + $0x3a0] ss:$8 sps:$4 sm:$0xff]   ;;  %v3061_v2 = vld [vmem:[%s4470_s1 + $0x294] ss:$8 sps:$4 sm:$0xff]  }
  0x41   :  { %2129 = vmatprep.subr.bf16.mxu1 %v2974_v3  ;;  %v3064_v3 = vld [vmem:[%s4470_s1 + $0x394] ss:$8 sps:$4 sm:$0xff]  }
  0x42   :  { %2003 = vmatmul.mubr.bf16.vlgmr.msra.gmra.mxu0 %v2963_v4  ;;  %v3059_v4 = vld [vmem:[%s4470_s1 + $0x290] ss:$8 sps:$4 sm:$0xff]  }
  0x43   :  { %2056 = vmatmul.mubr.bf16.vlgmr.msra.gmra.mxu1 %v2966_v5  ;;  %2077 = vmatpush1.bf16.msra.mxu0 %v2969_v6  ;;  %v3062_v5 = vld [vmem:[%s4470_s1 + $0x390] ss:$8 sps:$4 sm:$0xff]   ;;  %v3067_v6 = vld [vmem:[%s4470_s1 + $0x284] ss:$8 sps:$4 sm:$0xff]  }
  0x44   :  { %2130 = vmatpush1.bf16.msra.mxu1 %v2972_v7  ;;  %2078 = vmatprep.subr.bf16.mxu0 %v2977_v8  ;;  %v3070_v7 = vld [vmem:[%s4470_s1 + $0x384] ss:$8 sps:$4 sm:$0xff]   ;;  %v3065_v8 = vld [vmem:[%s4470_s1 + $0x280] ss:$8 sps:$4 sm:$0xff]  }
  0x45   :  { %2131 = vmatprep.subr.bf16.mxu1 %v2980_v9  ;;  %2012 = vmatprep.mubr.bf16.mxu0 %v3041_v22  ;;  %v3068_v9 = vld [vmem:[%s4470_s1 + $0x380] ss:$8 sps:$4 sm:$0xff]   ;;  %v3094_v22 = vld [vmem:[%s4470_s1 + $0x454] ss:$8 sps:$4 sm:$0xff]  }
  0x46   :  { %2065 = vmatprep.mubr.bf16.mxu1 %v3050_v29  ;;  %v3106_v29 = vld [vmem:[%s4470_s1 + $0x544] ss:$8 sps:$4 sm:$0xff]  }
  0x47   :  { %2079 = vmatpush1.bf16.msra.mxu0 %v2975_v10  ;;  %v3079_v10 = vld [vmem:[%s4470_s1 + $0x474] ss:$8 sps:$4 sm:$0xff]  }
  0x48   :  { %2132 = vmatpush1.bf16.msra.mxu1 %v2978_v11  ;;  %2080 = vmatprep.subr.bf16.mxu0 %v2983_v12  ;;  %v3082_v11 = vld [vmem:[%s4470_s1 + $0x574] ss:$8 sps:$4 sm:$0xff]   ;;  %v3071_v12 = vld [vmem:[%s4471_s0 + $0x10] ss:$72 sps:$4 sm:$0xff]  }
  0x49   :  { %2133 = vmatprep.subr.bf16.mxu1 %v2986_v13  ;;  %v3074_v13 = vld [vmem:[%s4471_s0 + $0x18] ss:$72 sps:$4 sm:$0xff]  }
  0x4a   :  { %2013 = vmatmul.mubr.bf16.gmra.mxu0 %v3049_v27  ;;  %v3100_v27 = vld [vmem:[%s4471_s0 + $0xa8] ss:$72 sps:$4 sm:$0xff]  }
  0x4b   :  { %2081 = vmatpush1.bf16.msra.mxu0 %v2981_v14  ;;  %2066 = vmatmul.mubr.bf16.gmra.mxu1 %v3052_v31  ;;  %v3077_v14 = vld [vmem:[%s4470_s1 + $0x470] ss:$8 sps:$4 sm:$0xff]   ;;  %v3104_v31 = vld [vmem:[%s4470_s1 + $0x540] ss:$8 sps:$4 sm:$0xff]  }
  0x4c   :  { %2134 = vmatpush1.bf16.msra.mxu1 %v2984_v15  ;;  %2082 = vmatprep.subr.bf16.mxu0 %v2989_v16  ;;  %v3080_v15 = vld [vmem:[%s4470_s1 + $0x570] ss:$8 sps:$4 sm:$0xff]   ;;  %v3085_v16 = vld [vmem:[%s4470_s1 + $0x464] ss:$8 sps:$4 sm:$0xff]  }
  0x4d   :  { %2135 = vmatprep.subr.bf16.mxu1 %v2992_v17  ;;  %2108 = vmatprep.mubr.bf16.mxu0 %v3073_v41  ;;  %v3088_v17 = vld [vmem:[%s4470_s1 + $0x564] ss:$8 sps:$4 sm:$0xff]   ;;  %v3116_v41 = vld [vmem:[%s4470_s1 + $0x520] ss:$8 sps:$4 sm:$0xff]  }
  0x4e   :  { %2161 = vmatprep.mubr.bf16.mxu1 %v3076_v43  ;;  %v3124_v43 = vld [vmem:[%s4470_s1 + $0x514] ss:$8 sps:$4 sm:$0xff]  }
  0x4f   :  { %2083 = vmatpush1.bf16.msra.mxu0 %v2987_v18  ;;  %v3089_v18 = vld [vmem:[%s4471_s0 + $0xa4] ss:$72 sps:$4 sm:$0xff]  }
  0x50   :  { %2136 = vmatpush1.bf16.msra.mxu1 %v2990_v19  ;;  %2084 = vmatprep.subr.bf16.mxu0 %v2995_v20  ;;  %v3098_v19 = vld [vmem:[%s4471_s0 + $0xac] ss:$72 sps:$4 sm:$0xff]   ;;  %v3083_v20 = vld [vmem:[%s4470_s1 + $0x460] ss:$8 sps:$4 sm:$0xff]  }
  0x51   :  { %2137 = vmatprep.subr.bf16.mxu1 %v2998_v21  ;;  %v3086_v21 = vld [vmem:[%s4470_s1 + $0x560] ss:$8 sps:$4 sm:$0xff]  }
  0x53   :  { %2085 = vmatpush1.bf16.msra.mxu0 %v2993_v23  ;;  %v3097_v23 = vld [vmem:[%s4470_s1 + $0x554] ss:$8 sps:$4 sm:$0xff]  }
  0x54   :  { %2138 = vmatpush1.bf16.msra.mxu1 %v2996_v24  ;;  %2086 = vmatprep.subr.bf16.mxu0 %v3001_v25  ;;  %v3091_v24 = vld [vmem:[%s4471_s0 + $0xa0] ss:$72 sps:$4 sm:$0xff]   ;;  %v3092_v25 = vld [vmem:[%s4470_s1 + $0x450] ss:$8 sps:$4 sm:$0xff]  }
  0x55   :  { %2139 = vmatprep.subr.bf16.mxu1 %v3004_v26  ;;  %v3095_v26 = vld [vmem:[%s4470_s1 + $0x550] ss:$8 sps:$4 sm:$0xff]  }
  0x57   :  { %2087 = vmatpush1.bf16.msra.mxu0 %v2999_v28  ;;  %v3103_v28 = vld [vmem:[%s4470_s1 + $0x444] ss:$8 sps:$4 sm:$0xff]  }
  0x58   :  { %2140 = vmatpush1.bf16.msra.mxu1 %v3002_v30  ;;  %2088 = vmatprep.subr.bf16.mxu0 %v3007_v32  ;;  %v3101_v30 = vld [vmem:[%s4470_s1 + $0x440] ss:$8 sps:$4 sm:$0xff]   ;;  %v3109_v32 = vld [vmem:[%s4470_s1 + $0x434] ss:$8 sps:$4 sm:$0xff]  }
  0x59   :  { %2141 = vmatprep.subr.bf16.mxu1 %v3010_v33  ;;  %v3181_v33 = vld [vmem:[%s4471_s0 + $0x24] ss:$72 sps:$4 sm:$0xff]  }
  0x5b   :  { %2089 = vmatpush1.bf16.msra.mxu0 %v3005_v34  ;;  %v3112_v34 = vld [vmem:[%s4470_s1 + $0x534] ss:$8 sps:$4 sm:$0xff]  }
  0x5c   :  { %2142 = vmatpush1.bf16.msra.mxu1 %v3008_v35  ;;  %2090 = vmatprep.subr.bf16.mxu0 %v3013_v36  ;;  %v3184_v35 = vld [vmem:[%s4471_s0 + $0x2c] ss:$72 sps:$4 sm:$0xff]   ;;  %v3107_v36 = vld [vmem:[%s4470_s1 + $0x430] ss:$8 sps:$4 sm:$0xff]  }
  0x5d   :  { %2143 = vmatprep.subr.bf16.mxu1 %v3016_v37  ;;  %v3110_v37 = vld [vmem:[%s4470_s1 + $0x530] ss:$8 sps:$4 sm:$0xff]  }
  0x5f   :  { %2091 = vmatpush1.bf16.msra.mxu0 %v3011_v38  ;;  %v3115_v38 = vld [vmem:[%s4470_s1 + $0x424] ss:$8 sps:$4 sm:$0xff]  }
  0x60   :  { %2144 = vmatpush1.bf16.msra.mxu1 %v3014_v39  ;;  %2092 = vmatprep.subr.bf16.mxu0 %v3019_v40  ;;  %v3118_v39 = vld [vmem:[%s4470_s1 + $0x524] ss:$8 sps:$4 sm:$0xff]   ;;  %v3113_v40 = vld [vmem:[%s4470_s1 + $0x420] ss:$8 sps:$4 sm:$0xff]  }
  0x61   :  { %2145 = vmatprep.subr.bf16.mxu1 %v3022_v42  ;;  %v3121_v42 = vld [vmem:[%s4470_s1 + $0x414] ss:$8 sps:$4 sm:$0xff]  }
  0x63   :  { %2093 = vmatpush2.bf16.msra.mxu0 %v3017_v44  ;;  %v3119_v44 = vld [vmem:[%s4470_s1 + $0x410] ss:$8 sps:$4 sm:$0xff]  }
  0x64   :  { %2146 = vmatpush2.bf16.msra.mxu1 %v3020_v45  ;;  %2094 = vmatprep.subr.bf16.mxu0 %v3025_v46  ;;  %v3122_v45 = vld [vmem:[%s4470_s1 + $0x510] ss:$8 sps:$4 sm:$0xff]   ;;  %v3127_v46 = vld [vmem:[%s4470_s1 + $0x404] ss:$8 sps:$4 sm:$0xff]  }
  0x65   :  { %2147 = vmatprep.subr.bf16.mxu1 %v3028_v47  ;;  %v3130_v47 = vld [vmem:[%s4470_s1 + $0x504] ss:$8 sps:$4 sm:$0xff]  }
  0x67   :  { %2095 = vmatpush2.bf16.msra.mxu0 %v3023_v48  ;;  %v3125_v48 = vld [vmem:[%s4470_s1 + $0x400] ss:$8 sps:$4 sm:$0xff]  }
  0x68   :  { %2148 = vmatpush2.bf16.msra.mxu1 %v3026_v49  ;;  %2096 = vmatprep.subr.bf16.mxu0 %v3031_v50  ;;  %v3128_v49 = vld [vmem:[%s4470_s1 + $0x500] ss:$8 sps:$4 sm:$0xff]   ;;  %v3133_v50 = vld [vmem:[%s4470_s1 + $0x4f4] ss:$8 sps:$4 sm:$0xff]  }
  0x69   :  { %2149 = vmatprep.subr.bf16.mxu1 %v3034_v51  ;;  %v3136_v51 = vld [vmem:[%s4470_s1 + $0x5f4] ss:$8 sps:$4 sm:$0xff]  }
  0x6b   :  { %2097 = vmatpush2.bf16.msra.mxu0 %v3029_v52  ;;  %v3131_v52 = vld [vmem:[%s4470_s1 + $0x4f0] ss:$8 sps:$4 sm:$0xff]  }
  0x6c   :  { %2150 = vmatpush2.bf16.msra.mxu1 %v3032_v53  ;;  %2098 = vmatprep.subr.bf16.mxu0 %v3037_v54  ;;  %v3134_v53 = vld [vmem:[%s4470_s1 + $0x5f0] ss:$8 sps:$4 sm:$0xff]   ;;  %v3139_v54 = vld [vmem:[%s4470_s1 + $0x4e4] ss:$8 sps:$4 sm:$0xff]  }
  0x6d   :  { %2151 = vmatprep.subr.bf16.mxu1 %v3040_v55  ;;  %v3142_v55 = vld [vmem:[%s4470_s1 + $0x5e4] ss:$8 sps:$4 sm:$0xff]  }
  0x6f   :  { %2099 = vmatpush2.bf16.msra.mxu0 %v3035_v56  ;;  %v3137_v56 = vld [vmem:[%s4470_s1 + $0x4e0] ss:$8 sps:$4 sm:$0xff]  }
  0x70   :  { %2152 = vmatpush2.bf16.msra.mxu1 %v3038_v57  ;;  %2100 = vmatprep.subr.bf16.mxu0 %v3045_v58  ;;  %v3140_v57 = vld [vmem:[%s4470_s1 + $0x5e0] ss:$8 sps:$4 sm:$0xff]   ;;  %v3145_v58 = vld [vmem:[%s4470_s1 + $0x4d4] ss:$8 sps:$4 sm:$0xff]  }
  0x71   :  { %2153 = vmatprep.subr.bf16.mxu1 %v3048_v59  ;;  %v3148_v59 = vld [vmem:[%s4470_s1 + $0x5d4] ss:$8 sps:$4 sm:$0xff]  }
  0x73   :  { %2101 = vmatpush2.bf16.msra.mxu0 %v3043_v60  ;;  %v3143_v60 = vld [vmem:[%s4470_s1 + $0x4d0] ss:$8 sps:$4 sm:$0xff]  }
  0x74   :  { %2154 = vmatpush2.bf16.msra.mxu1 %v3046_v61  ;;  %2102 = vmatprep.subr.bf16.mxu0 %v3055_v62  ;;  %v3146_v61 = vld [vmem:[%s4470_s1 + $0x5d0] ss:$8 sps:$4 sm:$0xff]   ;;  %v3151_v62 = vld [vmem:[%s4470_s1 + $0x4c4] ss:$8 sps:$4 sm:$0xff]  }
  0x75   :  { %2155 = vmatprep.subr.bf16.mxu1 %v3058_v63  ;;  %v3154_v63 = vld [vmem:[%s4470_s1 + $0x5c4] ss:$8 sps:$4 sm:$0xff]  }
  0x77   :  { %2103 = vmatpush2.bf16.msra.mxu0 %v3053_v0  ;;  %v3149_v0 = vld [vmem:[%s4470_s1 + $0x4c0] ss:$8 sps:$4 sm:$0xff]  }
  0x78   :  { %2156 = vmatpush2.bf16.msra.mxu1 %v3056_v1  ;;  %2104 = vmatprep.subr.bf16.mxu0 %v3061_v2  ;;  %v3152_v1 = vld [vmem:[%s4470_s1 + $0x5c0] ss:$8 sps:$4 sm:$0xff]   ;;  %v3157_v2 = vld [vmem:[%s4470_s1 + $0x4b4] ss:$8 sps:$4 sm:$0xff]  }
  0x79   :  { %2157 = vmatprep.subr.bf16.mxu1 %v3064_v3  ;;  %v3160_v3 = vld [vmem:[%s4470_s1 + $0x5b4] ss:$8 sps:$4 sm:$0xff]  }
  0x7b   :  { %2105 = vmatpush2.bf16.msra.mxu0 %v3059_v4  ;;  %v3155_v4 = vld [vmem:[%s4470_s1 + $0x4b0] ss:$8 sps:$4 sm:$0xff]  }
  0x7c   :  { %2158 = vmatpush2.bf16.msra.mxu1 %v3062_v5  ;;  %2106 = vmatprep.subr.bf16.mxu0 %v3067_v6  ;;  %v3158_v5 = vld [vmem:[%s4470_s1 + $0x5b0] ss:$8 sps:$4 sm:$0xff]   ;;  %v3163_v6 = vld [vmem:[%s4470_s1 + $0x4a4] ss:$8 sps:$4 sm:$0xff]  }
  0x7d   :  { %2159 = vmatprep.subr.bf16.mxu1 %v3070_v7  ;;  %v3166_v7 = vld [vmem:[%s4470_s1 + $0x5a4] ss:$8 sps:$4 sm:$0xff]  }
  0x7f   :  { %2107 = vmatpush2.bf16.msra.mxu0 %v3065_v8  ;;  %v3161_v8 = vld [vmem:[%s4470_s1 + $0x4a0] ss:$8 sps:$4 sm:$0xff]  }
  0x80   :  { %2160 = vmatpush2.bf16.msra.mxu1 %v3068_v9  ;;  %2182 = vmatprep.subr.bf16.mxu0 %v3079_v10  ;;  %v3164_v9 = vld [vmem:[%s4470_s1 + $0x5a0] ss:$8 sps:$4 sm:$0xff]   ;;  %v3169_v10 = vld [vmem:[%s4470_s1 + $0x494] ss:$8 sps:$4 sm:$0xff]  }
  0x81   :  { %2235 = vmatprep.subr.bf16.mxu1 %v3082_v11  ;;  %v3172_v11 = vld [vmem:[%s4470_s1 + $0x594] ss:$8 sps:$4 sm:$0xff]  }
  0x82   :  { %2109 = vmatmul.mubr.bf16.vlgmr.msra.gmra.mxu0 %v3071_v12  ;;  %v3167_v12 = vld [vmem:[%s4470_s1 + $0x490] ss:$8 sps:$4 sm:$0xff]  }
  0x83   :  { %2162 = vmatmul.mubr.bf16.vlgmr.msra.gmra.mxu1 %v3074_v13  ;;  %2183 = vmatpush1.bf16.msra.mxu0 %v3077_v14  ;;  %v3170_v13 = vld [vmem:[%s4470_s1 + $0x590] ss:$8 sps:$4 sm:$0xff]   ;;  %v3175_v14 = vld [vmem:[%s4470_s1 + $0x484] ss:$8 sps:$4 sm:$0xff]  }
  0x84   :  { %2236 = vmatpush1.bf16.msra.mxu1 %v3080_v15  ;;  %2184 = vmatprep.subr.bf16.mxu0 %v3085_v16  ;;  %v3178_v15 = vld [vmem:[%s4470_s1 + $0x584] ss:$8 sps:$4 sm:$0xff]   ;;  %v3173_v16 = vld [vmem:[%s4470_s1 + $0x480] ss:$8 sps:$4 sm:$0xff]  }
  0x85   :  { %2237 = vmatprep.subr.bf16.mxu1 %v3088_v17  ;;  %2118 = vmatprep.mubr.bf16.mxu0 %v3089_v18  ;;  %v3176_v17 = vld [vmem:[%s4470_s1 + $0x580] ss:$8 sps:$4 sm:$0xff]   ;;  %v3187_v18 = vld [vmem:[%s4470_s1 + $0x674] ss:$8 sps:$4 sm:$0xff]  }
  0x86   :  { %2171 = vmatprep.mubr.bf16.mxu1 %v3098_v19  ;;  %v3190_v19 = vld [vmem:[%s4470_s1 + $0x774] ss:$8 sps:$4 sm:$0xff]  }
  0x87   :  { %2185 = vmatpush1.bf16.msra.mxu0 %v3083_v20  ;;  %v3179_v20 = vld [vmem:[%s4471_s0 + $0x20] ss:$72 sps:$4 sm:$0xff]  }
  0x88   :  { %2238 = vmatpush1.bf16.msra.mxu1 %v3086_v21  ;;  %2186 = vmatprep.subr.bf16.mxu0 %v3094_v22  ;;  %v3182_v21 = vld [vmem:[%s4471_s0 + $0x28] ss:$72 sps:$4 sm:$0xff]  }
  0x89   :  { %2239 = vmatprep.subr.bf16.mxu1 %v3097_v23  ;;  %v3185_v22 = vld [vmem:[%s4470_s1 + $0x670] ss:$8 sps:$4 sm:$0xff]  }
  0x8a   :  { %2119 = vmatmul.mubr.bf16.gmra.mxu0 %v3091_v24  ;;  %v3188_v23 = vld [vmem:[%s4470_s1 + $0x770] ss:$8 sps:$4 sm:$0xff]   ;;  %v3193_v24 = vld [vmem:[%s4470_s1 + $0x664] ss:$8 sps:$4 sm:$0xff]  }
  0x8b   :  { %2172 = vmatmul.mubr.bf16.gmra.mxu1 %v3100_v27  ;;  %2187 = vmatpush1.bf16.msra.mxu0 %v3092_v25  ;;  %v3196_v25 = vld [vmem:[%s4470_s1 + $0x764] ss:$8 sps:$4 sm:$0xff]  }
  0x8c   :  { %2240 = vmatpush1.bf16.msra.mxu1 %v3095_v26  ;;  %2188 = vmatprep.subr.bf16.mxu0 %v3103_v28  ;;  %v3197_v26 = vld [vmem:[%s4471_s0 + $0xb4] ss:$72 sps:$4 sm:$0xff]   ;;  %v3191_v28 = vld [vmem:[%s4470_s1 + $0x660] ss:$8 sps:$4 sm:$0xff]  }
  0x8d   :  { %2241 = vmatprep.subr.bf16.mxu1 %v3106_v29  ;;  %2214 = vmatprep.mubr.bf16.mxu0 %v3181_v33  ;;  %v3206_v27 = vld [vmem:[%s4471_s0 + $0xbc] ss:$72 sps:$4 sm:$0xff]   ;;  %v3194_v29 = vld [vmem:[%s4470_s1 + $0x760] ss:$8 sps:$4 sm:$0xff]   ;;  %v3200_v33 = vld [vmem:[%s4470_s1 + $0x650] ss:$8 sps:$4 sm:$0xff]  }
  0x8e   :  { %2267 = vmatprep.mubr.bf16.mxu1 %v3184_v35  ;;  %v3203_v35 = vld [vmem:[%s4470_s1 + $0x750] ss:$8 sps:$4 sm:$0xff]  }
  0x8f   :  { %2189 = vmatpush1.bf16.msra.mxu0 %v3101_v30  ;;  %v3202_v30 = vld [vmem:[%s4470_s1 + $0x654] ss:$8 sps:$4 sm:$0xff]  }
  0x90   :  { %2242 = vmatpush1.bf16.msra.mxu1 %v3104_v31  ;;  %2190 = vmatprep.subr.bf16.mxu0 %v3109_v32  ;;  %v3205_v31 = vld [vmem:[%s4470_s1 + $0x754] ss:$8 sps:$4 sm:$0xff]   ;;  %v3199_v32 = vld [vmem:[%s4471_s0 + $0xb0] ss:$72 sps:$4 sm:$0xff]  }
  0x91   :  { %2243 = vmatprep.subr.bf16.mxu1 %v3112_v34  ;;  %v3208_v34 = vld [vmem:[%s4471_s0 + $0xb8] ss:$72 sps:$4 sm:$0xff]  }
  0x93   :  { %2191 = vmatpush1.bf16.msra.mxu0 %v3107_v36  ;;  %v3211_v36 = vld [vmem:[%s4470_s1 + $0x644] ss:$8 sps:$4 sm:$0xff]  }
  0x94   :  { %2244 = vmatpush1.bf16.msra.mxu1 %v3110_v37  ;;  %2192 = vmatprep.subr.bf16.mxu0 %v3115_v38  ;;  %v3214_v37 = vld [vmem:[%s4470_s1 + $0x744] ss:$8 sps:$4 sm:$0xff]   ;;  %v3289_v38 = vld [vmem:[%s4471_s0 + $0x34] ss:$72 sps:$4 sm:$0xff]  }
  0x95   :  { %2245 = vmatprep.subr.bf16.mxu1 %v3118_v39  ;;  %v3292_v39 = vld [vmem:[%s4471_s0 + $0x3c] ss:$72 sps:$4 sm:$0xff]  }
  0x97   :  { %2193 = vmatpush1.bf16.msra.mxu0 %v3113_v40  ;;  %v3209_v40 = vld [vmem:[%s4470_s1 + $0x640] ss:$8 sps:$4 sm:$0xff]  }
  0x98   :  { %2246 = vmatpush1.bf16.msra.mxu1 %v3116_v41  ;;  %2194 = vmatprep.subr.bf16.mxu0 %v3121_v42  ;;  %v3212_v41 = vld [vmem:[%s4470_s1 + $0x740] ss:$8 sps:$4 sm:$0xff]   ;;  %v3217_v42 = vld [vmem:[%s4470_s1 + $0x634] ss:$8 sps:$4 sm:$0xff]  }
  0x99   :  { %2247 = vmatprep.subr.bf16.mxu1 %v3124_v43  ;;  %v3220_v43 = vld [vmem:[%s4470_s1 + $0x734] ss:$8 sps:$4 sm:$0xff]  }
  0x9b   :  { %2195 = vmatpush1.bf16.msra.mxu0 %v3119_v44  ;;  %v3215_v44 = vld [vmem:[%s4470_s1 + $0x630] ss:$8 sps:$4 sm:$0xff]  }
  0x9c   :  { %2248 = vmatpush1.bf16.msra.mxu1 %v3122_v45  ;;  %2196 = vmatprep.subr.bf16.mxu0 %v3127_v46  ;;  %v3218_v45 = vld [vmem:[%s4470_s1 + $0x730] ss:$8 sps:$4 sm:$0xff]   ;;  %v3223_v46 = vld [vmem:[%s4470_s1 + $0x624] ss:$8 sps:$4 sm:$0xff]  }
  0x9d   :  { %2249 = vmatprep.subr.bf16.mxu1 %v3130_v47  ;;  %v3226_v47 = vld [vmem:[%s4470_s1 + $0x724] ss:$8 sps:$4 sm:$0xff]  }
  0x9f   :  { %2197 = vmatpush1.bf16.msra.mxu0 %v3125_v48  ;;  %v3221_v48 = vld [vmem:[%s4470_s1 + $0x620] ss:$8 sps:$4 sm:$0xff]  }
  0xa0   :  { %2250 = vmatpush1.bf16.msra.mxu1 %v3128_v49  ;;  %2198 = vmatprep.subr.bf16.mxu0 %v3133_v50  ;;  %v3224_v49 = vld [vmem:[%s4470_s1 + $0x720] ss:$8 sps:$4 sm:$0xff]   ;;  %v3229_v50 = vld [vmem:[%s4470_s1 + $0x614] ss:$8 sps:$4 sm:$0xff]  }
  0xa1   :  { %2251 = vmatprep.subr.bf16.mxu1 %v3136_v51  ;;  %v3232_v51 = vld [vmem:[%s4470_s1 + $0x714] ss:$8 sps:$4 sm:$0xff]  }
  0xa3   :  { %2199 = vmatpush2.bf16.msra.mxu0 %v3131_v52  ;;  %v3227_v52 = vld [vmem:[%s4470_s1 + $0x610] ss:$8 sps:$4 sm:$0xff]  }
  0xa4   :  { %2252 = vmatpush2.bf16.msra.mxu1 %v3134_v53  ;;  %2200 = vmatprep.subr.bf16.mxu0 %v3139_v54  ;;  %v3230_v53 = vld [vmem:[%s4470_s1 + $0x710] ss:$8 sps:$4 sm:$0xff]   ;;  %v3235_v54 = vld [vmem:[%s4470_s1 + $0x604] ss:$8 sps:$4 sm:$0xff]  }
  0xa5   :  { %2253 = vmatprep.subr.bf16.mxu1 %v3142_v55  ;;  %v3238_v55 = vld [vmem:[%s4470_s1 + $0x704] ss:$8 sps:$4 sm:$0xff]  }
  0xa7   :  { %2201 = vmatpush2.bf16.msra.mxu0 %v3137_v56  ;;  %v3233_v56 = vld [vmem:[%s4470_s1 + $0x600] ss:$8 sps:$4 sm:$0xff]  }
  0xa8   :  { %2254 = vmatpush2.bf16.msra.mxu1 %v3140_v57  ;;  %2202 = vmatprep.subr.bf16.mxu0 %v3145_v58  ;;  %v3236_v57 = vld [vmem:[%s4470_s1 + $0x700] ss:$8 sps:$4 sm:$0xff]   ;;  %v3241_v58 = vld [vmem:[%s4470_s1 + $0x6f4] ss:$8 sps:$4 sm:$0xff]  }
  0xa9   :  { %2255 = vmatprep.subr.bf16.mxu1 %v3148_v59  ;;  %v3244_v59 = vld [vmem:[%s4470_s1 + $0x7f4] ss:$8 sps:$4 sm:$0xff]  }
  0xab   :  { %2203 = vmatpush2.bf16.msra.mxu0 %v3143_v60  ;;  %v3239_v60 = vld [vmem:[%s4470_s1 + $0x6f0] ss:$8 sps:$4 sm:$0xff]  }
  0xac   :  { %2256 = vmatpush2.bf16.msra.mxu1 %v3146_v61  ;;  %2204 = vmatprep.subr.bf16.mxu0 %v3151_v62  ;;  %v3242_v61 = vld [vmem:[%s4470_s1 + $0x7f0] ss:$8 sps:$4 sm:$0xff]   ;;  %v3247_v62 = vld [vmem:[%s4470_s1 + $0x6e4] ss:$8 sps:$4 sm:$0xff]  }
  0xad   :  { %2257 = vmatprep.subr.bf16.mxu1 %v3154_v63  ;;  %v3250_v63 = vld [vmem:[%s4470_s1 + $0x7e4] ss:$8 sps:$4 sm:$0xff]  }
  0xaf   :  { %2205 = vmatpush2.bf16.msra.mxu0 %v3149_v0  ;;  %v3245_v0 = vld [vmem:[%s4470_s1 + $0x6e0] ss:$8 sps:$4 sm:$0xff]  }
  0xb0   :  { %2258 = vmatpush2.bf16.msra.mxu1 %v3152_v1  ;;  %2206 = vmatprep.subr.bf16.mxu0 %v3157_v2  ;;  %v3248_v1 = vld [vmem:[%s4470_s1 + $0x7e0] ss:$8 sps:$4 sm:$0xff]   ;;  %v3253_v2 = vld [vmem:[%s4470_s1 + $0x6d4] ss:$8 sps:$4 sm:$0xff]  }
  0xb1   :  { %2259 = vmatprep.subr.bf16.mxu1 %v3160_v3  ;;  %v3256_v3 = vld [vmem:[%s4470_s1 + $0x7d4] ss:$8 sps:$4 sm:$0xff]  }
  0xb3   :  { %2207 = vmatpush2.bf16.msra.mxu0 %v3155_v4  ;;  %v3251_v4 = vld [vmem:[%s4470_s1 + $0x6d0] ss:$8 sps:$4 sm:$0xff]  }
  0xb4   :  { %2260 = vmatpush2.bf16.msra.mxu1 %v3158_v5  ;;  %2208 = vmatprep.subr.bf16.mxu0 %v3163_v6  ;;  %v3254_v5 = vld [vmem:[%s4470_s1 + $0x7d0] ss:$8 sps:$4 sm:$0xff]   ;;  %v3259_v6 = vld [vmem:[%s4470_s1 + $0x6c4] ss:$8 sps:$4 sm:$0xff]  }
  0xb5   :  { %2261 = vmatprep.subr.bf16.mxu1 %v3166_v7  ;;  %v3262_v7 = vld [vmem:[%s4470_s1 + $0x7c4] ss:$8 sps:$4 sm:$0xff]  }
  0xb7   :  { %2209 = vmatpush2.bf16.msra.mxu0 %v3161_v8  ;;  %v3257_v8 = vld [vmem:[%s4470_s1 + $0x6c0] ss:$8 sps:$4 sm:$0xff]  }
  0xb8   :  { %2262 = vmatpush2.bf16.msra.mxu1 %v3164_v9  ;;  %2210 = vmatprep.subr.bf16.mxu0 %v3169_v10  ;;  %v3260_v9 = vld [vmem:[%s4470_s1 + $0x7c0] ss:$8 sps:$4 sm:$0xff]   ;;  %v3265_v10 = vld [vmem:[%s4470_s1 + $0x6b4] ss:$8 sps:$4 sm:$0xff]  }
  0xb9   :  { %2263 = vmatprep.subr.bf16.mxu1 %v3172_v11  ;;  %v3268_v11 = vld [vmem:[%s4470_s1 + $0x7b4] ss:$8 sps:$4 sm:$0xff]  }
  0xbb   :  { %2211 = vmatpush2.bf16.msra.mxu0 %v3167_v12  ;;  %v3263_v12 = vld [vmem:[%s4470_s1 + $0x6b0] ss:$8 sps:$4 sm:$0xff]  }
  0xbc   :  { %2264 = vmatpush2.bf16.msra.mxu1 %v3170_v13  ;;  %2212 = vmatprep.subr.bf16.mxu0 %v3175_v14  ;;  %v3266_v13 = vld [vmem:[%s4470_s1 + $0x7b0] ss:$8 sps:$4 sm:$0xff]   ;;  %v3271_v14 = vld [vmem:[%s4470_s1 + $0x6a4] ss:$8 sps:$4 sm:$0xff]  }
  0xbd   :  { %2265 = vmatprep.subr.bf16.mxu1 %v3178_v15  ;;  %v3274_v15 = vld [vmem:[%s4470_s1 + $0x7a4] ss:$8 sps:$4 sm:$0xff]  }
  0xbf   :  { %2213 = vmatpush2.bf16.msra.mxu0 %v3173_v16  ;;  %v3269_v16 = vld [vmem:[%s4470_s1 + $0x6a0] ss:$8 sps:$4 sm:$0xff]  }
  0xc0   :  { %2266 = vmatpush2.bf16.msra.mxu1 %v3176_v17  ;;  %2288 = vmatprep.subr.bf16.mxu0 %v3187_v18  ;;  %v3272_v17 = vld [vmem:[%s4470_s1 + $0x7a0] ss:$8 sps:$4 sm:$0xff]   ;;  %v3277_v18 = vld [vmem:[%s4470_s1 + $0x694] ss:$8 sps:$4 sm:$0xff]  }
  0xc1   :  { %2341 = vmatprep.subr.bf16.mxu1 %v3190_v19  ;;  %v3280_v19 = vld [vmem:[%s4470_s1 + $0x794] ss:$8 sps:$4 sm:$0xff]  }
  0xc2   :  { %2215 = vmatmul.mubr.bf16.vlgmr.msra.gmra.mxu0 %v3179_v20  ;;  %v3275_v20 = vld [vmem:[%s4470_s1 + $0x690] ss:$8 sps:$4 sm:$0xff]  }
  0xc3   :  { %2268 = vmatmul.mubr.bf16.vlgmr.msra.gmra.mxu1 %v3182_v21  ;;  %2289 = vmatpush1.bf16.msra.mxu0 %v3185_v22  ;;  %v3278_v21 = vld [vmem:[%s4470_s1 + $0x790] ss:$8 sps:$4 sm:$0xff]   ;;  %v3283_v22 = vld [vmem:[%s4470_s1 + $0x684] ss:$8 sps:$4 sm:$0xff]  }
  0xc4   :  { %2342 = vmatpush1.bf16.msra.mxu1 %v3188_v23  ;;  %2290 = vmatprep.subr.bf16.mxu0 %v3193_v24  ;;  %v3286_v23 = vld [vmem:[%s4470_s1 + $0x784] ss:$8 sps:$4 sm:$0xff]   ;;  %v3281_v24 = vld [vmem:[%s4470_s1 + $0x680] ss:$8 sps:$4 sm:$0xff]  }
  0xc5   :  { %2343 = vmatprep.subr.bf16.mxu1 %v3196_v25  ;;  %2224 = vmatprep.mubr.bf16.mxu0 %v3197_v26  ;;  %v3284_v25 = vld [vmem:[%s4470_s1 + $0x780] ss:$8 sps:$4 sm:$0xff]   ;;  %v3295_v26 = vld [vmem:[%s4470_s1 + $0x874] ss:$8 sps:$4 sm:$0xff]  }
  0xc6   :  { %2277 = vmatprep.mubr.bf16.mxu1 %v3206_v27  ;;  %v3287_v27 = vld [vmem:[%s4471_s0 + $0x30] ss:$72 sps:$4 sm:$0xff]  }
  0xc7   :  { %2291 = vmatpush1.bf16.msra.mxu0 %v3191_v28  ;;  %v3290_v28 = vld [vmem:[%s4471_s0 + $0x38] ss:$72 sps:$4 sm:$0xff]  }
  0xc8   :  { %2344 = vmatpush1.bf16.msra.mxu1 %v3194_v29  ;;  %2292 = vmatprep.subr.bf16.mxu0 %v3202_v30  ;;  %v3293_v29 = vld [vmem:[%s4470_s1 + $0x870] ss:$8 sps:$4 sm:$0xff]   ;;  %v3298_v30 = vld [vmem:[%s4470_s1 + $0x864] ss:$8 sps:$4 sm:$0xff]  }
  0xc9   :  { %2345 = vmatprep.subr.bf16.mxu1 %v3205_v31  ;;  %v3299_v31 = vld [vmem:[%s4471_s0 + $0xc4] ss:$72 sps:$4 sm:$0xff]  }
  0xca   :  { %2225 = vmatmul.mubr.bf16.gmra.mxu0 %v3199_v32  ;;  %v3305_v32 = vld [vmem:[%s4471_s0 + $0xcc] ss:$72 sps:$4 sm:$0xff]  }
  0xcb   :  { %2278 = vmatmul.mubr.bf16.gmra.mxu1 %v3208_v34  ;;  %2293 = vmatpush1.bf16.msra.mxu0 %v3200_v33  ;;  %v3296_v33 = vld [vmem:[%s4470_s1 + $0x860] ss:$8 sps:$4 sm:$0xff]   ;;  %v3304_v34 = vld [vmem:[%s4470_s1 + $0x854] ss:$8 sps:$4 sm:$0xff]  }
  0xcc   :  { %2346 = vmatpush1.bf16.msra.mxu1 %v3203_v35  ;;  %2294 = vmatprep.subr.bf16.mxu0 %v3211_v36  ;;  %v3301_v35 = vld [vmem:[%s4471_s0 + $0xc0] ss:$72 sps:$4 sm:$0xff]  }
  0xcd   :  { %2347 = vmatprep.subr.bf16.mxu1 %v3214_v37  ;;  %2320 = vmatprep.mubr.bf16.mxu0 %v3289_v38  ;;  %v3307_v36 = vld [vmem:[%s4471_s0 + $0xc8] ss:$72 sps:$4 sm:$0xff]   ;;  %v3310_v38 = vld [vmem:[%s4470_s1 + $0x844] ss:$8 sps:$4 sm:$0xff]  }
  0xce   :  { %2373 = vmatprep.mubr.bf16.mxu1 %v3292_v39  ;;  %v3302_v37 = vld [vmem:[%s4470_s1 + $0x850] ss:$8 sps:$4 sm:$0xff]   ;;  %v3349_v39 = vld [vmem:[%s4471_s0 + $0x44] ss:$72 sps:$4 sm:$0xff]  }
  0xcf   :  { %2295 = vmatpush1.bf16.msra.mxu0 %v3209_v40  ;;  %v3352_v40 = vld [vmem:[%s4471_s0 + $0xd4] ss:$72 sps:$4 sm:$0xff]  }
  0xd0   :  { %2348 = vmatpush1.bf16.msra.mxu1 %v3212_v41  ;;  %2296 = vmatprep.subr.bf16.mxu0 %v3217_v42  ;;  %v3308_v41 = vld [vmem:[%s4470_s1 + $0x840] ss:$8 sps:$4 sm:$0xff]   ;;  %v3313_v42 = vld [vmem:[%s4470_s1 + $0x834] ss:$8 sps:$4 sm:$0xff]  }
  0xd1   :  { %2349 = vmatprep.subr.bf16.mxu1 %v3220_v43  ;;  %v3311_v43 = vld [vmem:[%s4470_s1 + $0x830] ss:$8 sps:$4 sm:$0xff]  }
  0xd3   :  { %2297 = vmatpush1.bf16.msra.mxu0 %v3215_v44  ;;  %v3316_v44 = vld [vmem:[%s4470_s1 + $0x824] ss:$8 sps:$4 sm:$0xff]  }
  0xd4   :  { %2350 = vmatpush1.bf16.msra.mxu1 %v3218_v45  ;;  %2298 = vmatprep.subr.bf16.mxu0 %v3223_v46  ;;  %v3314_v45 = vld [vmem:[%s4470_s1 + $0x820] ss:$8 sps:$4 sm:$0xff]   ;;  %v3319_v46 = vld [vmem:[%s4470_s1 + $0x814] ss:$8 sps:$4 sm:$0xff]  }
  0xd5   :  { %2351 = vmatprep.subr.bf16.mxu1 %v3226_v47  ;;  %v3317_v47 = vld [vmem:[%s4470_s1 + $0x810] ss:$8 sps:$4 sm:$0xff]  }
  0xd7   :  { %2299 = vmatpush1.bf16.msra.mxu0 %v3221_v48  ;;  %v3322_v48 = vld [vmem:[%s4470_s1 + $0x804] ss:$8 sps:$4 sm:$0xff]  }
  0xd8   :  { %2352 = vmatpush1.bf16.msra.mxu1 %v3224_v49  ;;  %2300 = vmatprep.subr.bf16.mxu0 %v3229_v50  ;;  %v3320_v49 = vld [vmem:[%s4470_s1 + $0x800] ss:$8 sps:$4 sm:$0xff]   ;;  %v3325_v50 = vld [vmem:[%s4470_s1 + $0x8f4] ss:$8 sps:$4 sm:$0xff]  }
  0xd9   :  { %2353 = vmatprep.subr.bf16.mxu1 %v3232_v51  ;;  %v3323_v51 = vld [vmem:[%s4470_s1 + $0x8f0] ss:$8 sps:$4 sm:$0xff]  }
  0xdb   :  { %2301 = vmatpush1.bf16.msra.mxu0 %v3227_v52  ;;  %v3328_v52 = vld [vmem:[%s4470_s1 + $0x8e4] ss:$8 sps:$4 sm:$0xff]  }
  0xdc   :  { %2354 = vmatpush1.bf16.msra.mxu1 %v3230_v53  ;;  %2302 = vmatprep.subr.bf16.mxu0 %v3235_v54  ;;  %v3326_v53 = vld [vmem:[%s4470_s1 + $0x8e0] ss:$8 sps:$4 sm:$0xff]   ;;  %v3331_v54 = vld [vmem:[%s4470_s1 + $0x8d4] ss:$8 sps:$4 sm:$0xff]  }
  0xdd   :  { %2355 = vmatprep.subr.bf16.mxu1 %v3238_v55  ;;  %v3329_v55 = vld [vmem:[%s4470_s1 + $0x8d0] ss:$8 sps:$4 sm:$0xff]  }
  0xdf   :  { %2303 = vmatpush1.bf16.msra.mxu0 %v3233_v56  ;;  %v3334_v56 = vld [vmem:[%s4470_s1 + $0x8c4] ss:$8 sps:$4 sm:$0xff]  }
  0xe0   :  { %2356 = vmatpush1.bf16.msra.mxu1 %v3236_v57  ;;  %2304 = vmatprep.subr.bf16.mxu0 %v3241_v58  ;;  %v3332_v57 = vld [vmem:[%s4470_s1 + $0x8c0] ss:$8 sps:$4 sm:$0xff]   ;;  %v3337_v58 = vld [vmem:[%s4470_s1 + $0x8b4] ss:$8 sps:$4 sm:$0xff]  }
  0xe1   :  { %2357 = vmatprep.subr.bf16.mxu1 %v3244_v59  ;;  %v3335_v59 = vld [vmem:[%s4470_s1 + $0x8b0] ss:$8 sps:$4 sm:$0xff]  }
  0xe3   :  { %2305 = vmatpush2.bf16.msra.mxu0 %v3239_v60  ;;  %v3340_v60 = vld [vmem:[%s4470_s1 + $0x8a4] ss:$8 sps:$4 sm:$0xff]  }
  0xe4   :  { %2358 = vmatpush2.bf16.msra.mxu1 %v3242_v61  ;;  %2306 = vmatprep.subr.bf16.mxu0 %v3247_v62  ;;  %v3338_v61 = vld [vmem:[%s4470_s1 + $0x8a0] ss:$8 sps:$4 sm:$0xff]   ;;  %v3343_v62 = vld [vmem:[%s4470_s1 + $0x894] ss:$8 sps:$4 sm:$0xff]  }
  0xe5   :  { %2359 = vmatprep.subr.bf16.mxu1 %v3250_v63  ;;  %v3341_v63 = vld [vmem:[%s4470_s1 + $0x890] ss:$8 sps:$4 sm:$0xff]  }
  0xe7   :  { %2307 = vmatpush2.bf16.msra.mxu0 %v3245_v0  ;;  %v3346_v0 = vld [vmem:[%s4470_s1 + $0x884] ss:$8 sps:$4 sm:$0xff]  }
  0xe8   :  { %2360 = vmatpush2.bf16.msra.mxu1 %v3248_v1  ;;  %2308 = vmatprep.subr.bf16.mxu0 %v3253_v2  ;;  %v3344_v1 = vld [vmem:[%s4470_s1 + $0x880] ss:$8 sps:$4 sm:$0xff]  }
  0xe9   :  { %2361 = vmatprep.subr.bf16.mxu1 %v3256_v3  ;;  %v3347_v2 = vld [vmem:[%s4471_s0 + $0x40] ss:$72 sps:$4 sm:$0xff]   ;;  %v3350_v3 = vld [vmem:[%s4471_s0 + $0xd0] ss:$72 sps:$4 sm:$0xff]  }
  0xeb   :  { %2309 = vmatpush2.bf16.msra.mxu0 %v3251_v4 }
  0xec   :  { %2362 = vmatpush2.bf16.msra.mxu1 %v3254_v5  ;;  %2310 = vmatprep.subr.bf16.mxu0 %v3259_v6 }
  0xed   :  { %2363 = vmatprep.subr.bf16.mxu1 %v3262_v7 }
  0xef   :  { %2311 = vmatpush2.bf16.msra.mxu0 %v3257_v8 }
  0xf0   :  { %2364 = vmatpush2.bf16.msra.mxu1 %v3260_v9  ;;  %2312 = vmatprep.subr.bf16.mxu0 %v3265_v10 }
  0xf1   :  { %2365 = vmatprep.subr.bf16.mxu1 %v3268_v11 }
  0xf3   :  { %2313 = vmatpush2.bf16.msra.mxu0 %v3263_v12 }
  0xf4   :  { %2366 = vmatpush2.bf16.msra.mxu1 %v3266_v13  ;;  %2314 = vmatprep.subr.bf16.mxu0 %v3271_v14 }
  0xf5   :  { %2367 = vmatprep.subr.bf16.mxu1 %v3274_v15 }
  0xf7   :  { %2315 = vmatpush2.bf16.msra.mxu0 %v3269_v16 }
  0xf8   :  { %2368 = vmatpush2.bf16.msra.mxu1 %v3272_v17  ;;  %2316 = vmatprep.subr.bf16.mxu0 %v3277_v18 }
  0xf9   :  { %2369 = vmatprep.subr.bf16.mxu1 %v3280_v19 }
  0xfb   :  { %2317 = vmatpush2.bf16.msra.mxu0 %v3275_v20 }
  0xfc   :  { %2370 = vmatpush2.bf16.msra.mxu1 %v3278_v21  ;;  %2318 = vmatprep.subr.bf16.mxu0 %v3283_v22 }
  0xfd   :  { %2371 = vmatprep.subr.bf16.mxu1 %v3286_v23 }
  0xff   :  { %2319 = vmatpush2.bf16.msra.mxu0 %v3281_v24 }
 0x100   :  { %2372 = vmatpush2.bf16.msra.mxu1 %v3284_v25  ;;  %2394 = vmatprep.subr.bf16.mxu0 %v3295_v26 }
 0x101   :  { %2835 = vmatprep.subr.bf16.mxu1 %v3295_v26 }
 0x102   :  { %2321 = vmatmul.mubr.bf16.vlgmr.msra.gmra.mxu0 %v3287_v27  ;;  %v2004_v4 = vpop.f32.mrf.mxu0 }
 0x103   :  { %2374 = vmatmul.mubr.bf16.vlgmr.msra.gmra.mxu1 %v3290_v28  ;;  %2395 = vmatpush1.bf16.msra.mxu0 %v3293_v29  ;;  %v4345_v6 = vpop.f32.mrf.mxu1 }
 0x104   :  { %2851 = vmatpush1.bf16.msra.mxu1 %v3293_v29  ;;  %2396 = vmatprep.subr.bf16.mxu0 %v3298_v30  ;;  %v2006_v5 = vpop.f32.mrf.mxu0 }
 0x105   :  { %2836 = vmatprep.subr.bf16.mxu1 %v3298_v30  ;;  %2330 = vmatprep.mubr.bf16.mxu0 %v3299_v31  ;;  %v4349_v8 = vpop.f32.mrf.mxu1 }
 0x106   :  { %2383 = vmatprep.mubr.bf16.mxu1 %v3305_v32  ;;  %v4347_v7 = vpop.f32.mrf.mxu0 }
 0x107   :  { %2397 = vmatpush1.bf16.msra.mxu0 %v3296_v33  ;;  %v4353_v10 = vpop.f32.mrf.mxu1 }
 0x108   :  { %2852 = vmatpush1.bf16.msra.mxu1 %v3296_v33  ;;  %2398 = vmatprep.subr.bf16.mxu0 %v3304_v34  ;;  %v4351_v9 = vpop.f32.mrf.mxu0 }
 0x109   :  { %2837 = vmatprep.subr.bf16.mxu1 %v3304_v34  ;;  %v4355_v12 = vpop.f32.mrf.mxu1 }
 0x10a   :  { %2331 = vmatmul.mubr.bf16.gmra.mxu0 %v3301_v35  ;;  %v2014_v11 = vpop.f32.mrf.mxu0 }
 0x10b   :  { %2384 = vmatmul.mubr.bf16.gmra.mxu1 %v3307_v36  ;;  %2399 = vmatpush1.bf16.msra.mxu0 %v3302_v37  ;;  %v2067_v14 = vpop.f32.mrf.mxu1 }
 0x10c   :  { %2853 = vmatpush1.bf16.msra.mxu1 %v3302_v37  ;;  %2400 = vmatprep.subr.bf16.mxu0 %v3310_v38  ;;  %v2016_v13 = vpop.f32.mrf.mxu0 }
 0x10d   :  { %2838 = vmatprep.subr.bf16.mxu1 %v3310_v38  ;;  %2426 = vmatprep.mubr.bf16.mxu0 %v3349_v39  ;;  %v4357_v16 = vpop.f32.mrf.mxu1 }
 0x10e   :  { %2436 = vmatprep.mubr.bf16.mxu1 %v3352_v40  ;;  %v2018_v15 = vpop.f32.mrf.mxu0 }
 0x10f   :  { %2401 = vmatpush1.bf16.msra.mxu0 %v3308_v41  ;;  %v4359_v18 = vpop.f32.mrf.mxu1 }
 0x110   :  { %2854 = vmatpush1.bf16.msra.mxu1 %v3308_v41  ;;  %2402 = vmatprep.subr.bf16.mxu0 %v3313_v42  ;;  %v2020_v17 = vpop.f32.mrf.mxu0 }
 0x111   :  { %2839 = vmatprep.subr.bf16.mxu1 %v3313_v42  ;;  %v4361_v20 = vpop.f32.mrf.mxu1 }
 0x113   :  { %2403 = vmatpush1.bf16.msra.mxu0 %v3311_v43 }
 0x114   :  { %2855 = vmatpush1.bf16.msra.mxu1 %v3311_v43  ;;  %2404 = vmatprep.subr.bf16.mxu0 %v3316_v44 }
 0x115   :  { %2840 = vmatprep.subr.bf16.mxu1 %v3316_v44 }
 0x117   :  { %2405 = vmatpush1.bf16.msra.mxu0 %v3314_v45 }
 0x118   :  { %2856 = vmatpush1.bf16.msra.mxu1 %v3314_v45  ;;  %2406 = vmatprep.subr.bf16.mxu0 %v3319_v46 }
 0x119   :  { %2841 = vmatprep.subr.bf16.mxu1 %v3319_v46 }
 0x11b   :  { %2407 = vmatpush1.bf16.msra.mxu0 %v3317_v47 }
 0x11c   :  { %2857 = vmatpush1.bf16.msra.mxu1 %v3317_v47  ;;  %2408 = vmatprep.subr.bf16.mxu0 %v3322_v48  ;;  %v340_v47 = vlaneseq }
 0x11d   :  { %2842 = vmatprep.subr.bf16.mxu1 %v3322_v48 }
 0x11f   :  { %2409 = vmatpush1.bf16.msra.mxu0 %v3320_v49 }
 0x120   :  { %2858 = vmatpush1.bf16.msra.mxu1 %v3320_v49  ;;  %2410 = vmatprep.subr.bf16.mxu0 %v3325_v50 }
 0x121   :  { %2843 = vmatprep.subr.bf16.mxu1 %v3325_v50  ;;  %v341_v50 = vshrl.u32 %v340_v47, 7 }
 0x123   :  { %2411 = vmatpush2.bf16.msra.mxu0 %v3323_v51 }
 0x124   :  { %2859 = vmatpush2.bf16.msra.mxu1 %v3323_v51  ;;  %2412 = vmatprep.subr.bf16.mxu0 %v3328_v52 }
 0x125   :  { %2844 = vmatprep.subr.bf16.mxu1 %v3328_v52 }
 0x127   :  { %2413 = vmatpush2.bf16.msra.mxu0 %v3326_v53 }
 0x128   :  { %2860 = vmatpush2.bf16.msra.mxu1 %v3326_v53  ;;  %2414 = vmatprep.subr.bf16.mxu0 %v3331_v54  ;;  %v342_v53 = vsub.s32 0, %v341_v50 }
 0x129   :  { %2845 = vmatprep.subr.bf16.mxu1 %v3331_v54  ;;  %v338_v54 = vld [vmem:[%s4472_s2] sm:$0x3] }
 0x12b   :  { %2415 = vmatpush2.bf16.msra.mxu0 %v3329_v55 }
 0x12c   :  { %2861 = vmatpush2.bf16.msra.mxu1 %v3329_v55  ;;  %2416 = vmatprep.subr.bf16.mxu0 %v3334_v56 }
 0x12d   :  { %2846 = vmatprep.subr.bf16.mxu1 %v3334_v56 }
 0x12f   :  { %2417 = vmatpush2.bf16.msra.mxu0 %v3332_v57 }
 0x130   :  { %2862 = vmatpush2.bf16.msra.mxu1 %v3332_v57  ;;  %2418 = vmatprep.subr.bf16.mxu0 %v3337_v58  ;;  %v346_v57 = vsub.s32 1, %v341_v50 }
 0x131   :  { %2847 = vmatprep.subr.bf16.mxu1 %v3337_v58 }
 0x133   :  { %2419 = vmatpush2.bf16.msra.mxu0 %v3335_v59 }
 0x134   :  { %2863 = vmatpush2.bf16.msra.mxu1 %v3335_v59  ;;  %2420 = vmatprep.subr.bf16.mxu0 %v3340_v60  ;;  %v343_v59 = vrot.slane %v338_v54, %v342_v53 }
 0x135   :  { %2848 = vmatprep.subr.bf16.mxu1 %v3340_v60 }
 0x136   :  { %v2009_v50 = vadd.f32 %v4347_v7, %v343_v59 }
 0x137   :  { %2421 = vmatpush2.bf16.msra.mxu0 %v3338_v61 }
 0x138   :  { %2864 = vmatpush2.bf16.msra.mxu1 %v3338_v61  ;;  %2422 = vmatprep.subr.bf16.mxu0 %v3343_v62  ;;  %v347_v61 = vrot.slane %v338_v54, %v346_v57 }
 0x139   :  { %2849 = vmatprep.subr.bf16.mxu1 %v3343_v62 }
 0x13a   :  { %v2011_v53 = vadd.f32 %v4351_v9, %v347_v61 }
 0x13b   :  { %2423 = vmatpush2.bf16.msra.mxu0 %v3341_v63 }
 0x13c   :  { %2865 = vmatpush2.bf16.msra.mxu1 %v3341_v63  ;;  %2424 = vmatprep.subr.bf16.mxu0 %v3346_v0  ;;  %v2005_v63 = vadd.f32 %v2004_v4, %v343_v59  ;;  %v2064_v7 = vadd.f32 %v4355_v12, %v2011_v53 }
 0x13d   :  { %2850 = vmatprep.subr.bf16.mxu1 %v3346_v0  ;;  %v2015_v0 = vadd.f32 %v2014_v11, %v343_v59 }
 0x13f   :  { %2425 = vmatpush2.bf16.msra.mxu0 %v3344_v1 }
 0x140   :  { %2866 = vmatpush2.bf16.msra.mxu1 %v3344_v1 }
 0x142   :  { %2427 = vmatmul.mubr.bf16.vlgmr.msra.gmra.mxu0 %v3347_v2  ;;  %v2110_v19 = vpop.f32.mrf.mxu0  ;;  %v2007_v2 = vadd.f32 %v2006_v5, %v347_v61 }
 0x143   :  { %2437 = vmatmul.mubr.bf16.vlgmr.msra.gmra.mxu1 %v3350_v3  ;;  %v4365_v22 = vpop.f32.mrf.mxu1  ;;  %v2017_v3 = vadd.f32 %v2016_v13, %v347_v61  ;;  %v2062_v13 = vadd.f32 %v4353_v10, %v2009_v50 }
 0x144   :  { %v4363_v21 = vpop.f32.mrf.mxu0  ;;  %v2060_v4 = vadd.f32 %v4349_v8, %v2007_v2 }
 0x145   :  { %v4369_v24 = vpop.f32.mrf.mxu1  ;;  %v2070_v11 = vadd.f32 %v4357_v16, %v2017_v3 }
 0x146   :  { %v4367_v23 = vpop.f32.mrf.mxu0  ;;  %v2113_v9 = vadd.f32 %v4363_v21, %v2060_v4 }
 0x147   :  { %v4373_v26 = vpop.f32.mrf.mxu1  ;;  %v2115_v8 = vadd.f32 %v4367_v23, %v2062_v13 }
 0x148   :  { %v4371_v25 = vpop.f32.mrf.mxu0  ;;  %v2166_v12 = vadd.f32 %v4369_v24, %v2113_v9 }
 0x149   :  { %v4375_v28 = vpop.f32.mrf.mxu1 }
 0x14a   :  { %v2120_v27 = vpop.f32.mrf.mxu0 }
 0x14b   :  { %v2173_v30 = vpop.f32.mrf.mxu1 }
 0x14c   :  { %v2122_v29 = vpop.f32.mrf.mxu0 }
 0x14d   :  { %v4377_v32 = vpop.f32.mrf.mxu1 }
 0x14e   :  { %v2124_v31 = vpop.f32.mrf.mxu0 }
 0x14f   :  { %v4379_v34 = vpop.f32.mrf.mxu1 }
 0x150   :  { %v2126_v33 = vpop.f32.mrf.mxu0 }
 0x151   :  { %v4381_v36 = vpop.f32.mrf.mxu1 }
 0x182   :  { %v2216_v35 = vpop.f32.mrf.mxu0 }
 0x183   :  { %v4383_v37 = vpop.f32.mrf.mxu1 }
 0x184   :  { %v4385_v38 = vpop.f32.mrf.mxu0 }
 0x185   :  { %v4387_v39 = vpop.f32.mrf.mxu1 }
 0x186   :  { %v4389_v40 = vpop.f32.mrf.mxu0 }
 0x187   :  { %v4391_v41 = vpop.f32.mrf.mxu1 }
 0x188   :  { %v4393_v42 = vpop.f32.mrf.mxu0 }
 0x189   :  { %v4395_v43 = vpop.f32.mrf.mxu1 }
 0x18a   :  { %4474 = vst [vmem:[#allocation2_spill] sm:$0xff] %v4395_v43  ;;  %v2226_v44 = vpop.f32.mrf.mxu0  ;;  %v2068_v43 = vadd.f32 %v2067_v14, %v2015_v0 }
 0x18b   :  { %v4397_v45 = vpop.f32.mrf.mxu1 }
 0x18c   :  { %v2228_v46 = vpop.f32.mrf.mxu0 }
 0x18d   :  { %v4399_v48 = vpop.f32.mrf.mxu1 }
 0x18e   :  { %v2230_v49 = vpop.f32.mrf.mxu0 }
 0x18f   :  { %v4401_v51 = vpop.f32.mrf.mxu1 }
 0x190   :  { %v2232_v52 = vpop.f32.mrf.mxu0 }
 0x191   :  { %v4406_v55 = vpop.f32.mrf.mxu1 }
 0x192   :  { %4475 = vst [vmem:[#allocation3_spill] sm:$0xff] %v4406_v55  ;;  %v2058_v55 = vadd.f32 %v4345_v6, %v2005_v63 }
 0x194   :  { %v2111_v57 = vadd.f32 %v2110_v19, %v2058_v55  ;;  %v2117_v55 = vadd.f32 %v4371_v25, %v2064_v7 }
 0x199   :  { %v4480_v63 = vld [vmem:[#allocation3_spill] sm:$0xff] }
 0x1c2   :  { %v2322_v56 = vpop.f32.mrf.mxu0 }
 0x1c3   :  { %v4408_v58 = vpop.f32.mrf.mxu1 }
 0x1c4   :  { %4476 = vst [vmem:[#allocation4_spill] sm:$0xff] %v4408_v58  ;;  %v4410_v60 = vpop.f32.mrf.mxu0  ;;  %v2019_v58 = vadd.f32 %v2018_v15, %v343_v59  ;;  %v2123_v15 = vadd.f32 %v2122_v29, %v2070_v11  ;;  %v2168_v29 = vadd.f32 %v4373_v26, %v2115_v8 }
 0x1c5   :  { %4477 = vst [vmem:[#allocation5_spill] sm:$0xff] %v4410_v60  ;;  %v4412_v62 = vpop.f32.mrf.mxu1  ;;  %v2021_v60 = vadd.f32 %v2020_v17, %v347_v61 }
 0x1c6   :  { %4478 = vst [vmem:[#allocation6_spill] sm:$0xff] %v4412_v62  ;;  %v4414_v1 = vpop.f32.mrf.mxu0  ;;  %v2121_v62 = vadd.f32 %v2120_v27, %v2068_v43  ;;  %v2072_v6 = vadd.f32 %v4359_v18, %v2019_v58  ;;  %v2164_v27 = vadd.f32 %v4365_v22, %v2111_v57  ;;  %v2170_v22 = vadd.f32 %v4375_v28, %v2117_v55 }
 0x1c7   :  { %v4416_v47 = vpop.f32.mrf.mxu1  ;;  %v2074_v14 = vadd.f32 %v4361_v20, %v2021_v60  ;;  %v2176_v20 = vadd.f32 %v4377_v32, %v2123_v15 }
 0x1c8   :  { %v2328_v54 = vpop.f32.mrf.mxu0  ;;  %v2174_v16 = vadd.f32 %v2173_v30, %v2121_v62  ;;  %v2125_v43 = vadd.f32 %v2124_v31, %v2072_v6  ;;  %v2217_v59 = vadd.f32 %v2216_v35, %v2164_v27  ;;  %v2219_v30 = vadd.f32 %v4385_v38, %v2166_v12 }
 0x1c9   :  { %v4423_v5 = vpop.f32.mrf.mxu1  ;;  %v2127_v10 = vadd.f32 %v2126_v33, %v2074_v14  ;;  %v2229_v25 = vadd.f32 %v2228_v46, %v2176_v20  ;;  %v2221_v33 = vadd.f32 %v4389_v40, %v2168_v29  ;;  %v2223_v35 = vadd.f32 %v4393_v42, %v2170_v22  ;;  %v4479_v46 = vld [vmem:[#allocation2_spill] sm:$0xff] }
 0x1ca   :  { %v2332_v17 = vpop.f32.mrf.mxu0  ;;  %v2227_v18 = vadd.f32 %v2226_v44, %v2174_v16  ;;  %v2178_v60 = vadd.f32 %v4379_v34, %v2125_v43  ;;  %v2270_v31 = vadd.f32 %v4383_v37, %v2217_v59  ;;  %v2272_v28 = vadd.f32 %v4387_v39, %v2219_v30 }
 0x1cb   :  { %v2385_v19 = vpop.f32.mrf.mxu1  ;;  %v2180_v23 = vadd.f32 %v4381_v36, %v2127_v10  ;;  %v2282_v36 = vadd.f32 %v4399_v48, %v2229_v25  ;;  %v2274_v38 = vadd.f32 %v4391_v41, %v2221_v33  ;;  %v2276_v40 = vadd.f32 %v4479_v46, %v2223_v35  ;;  %v4482_v3 = vld [vmem:[#allocation4_spill] sm:$0xff] }
 0x1cc   :  { %v2334_v58 = vpop.f32.mrf.mxu0  ;;  %v2280_v24 = vadd.f32 %v4397_v45, %v2227_v18  ;;  %v2231_v32 = vadd.f32 %v2230_v49, %v2178_v60  ;;  %v2323_v34 = vadd.f32 %v2322_v56, %v2270_v31  ;;  %v4481_v49 = vld [vmem:[#allocation5_spill] sm:$0xff] }
 0x1cd   :  { %v2387_v21 = vpop.f32.mrf.mxu1  ;;  %v2233_v44 = vadd.f32 %v2232_v52, %v2180_v23  ;;  %v2325_v0 = vadd.f32 %v4481_v49, %v2272_v28  ;;  %v2335_v42 = vadd.f32 %v2334_v58, %v2282_v36  ;;  %v2327_v50 = vadd.f32 %v4414_v1, %v2274_v38  ;;  %v4483_v13 = vld [vmem:[#allocation6_spill] sm:$0xff] }
 0x1ce   :  { %v2336_v26 = vpop.f32.mrf.mxu0  ;;  %v2333_v62 = vadd.f32 %v2332_v17, %v2280_v24  ;;  %v2284_v37 = vadd.f32 %v4401_v51, %v2231_v32  ;;  %v2376_v56 = vadd.f32 %v4482_v3, %v2323_v34  ;;  %v2329_v41 = vadd.f32 %v2328_v54, %v2276_v40 }
 0x1cf   :  { %v2389_v61 = vpop.f32.mrf.mxu1  ;;  %v2286_v45 = vadd.f32 %v4480_v63, %v2233_v44  ;;  %v2378_v6 = vadd.f32 %v4483_v13, %v2325_v0  ;;  %v2388_v7 = vadd.f32 %v2387_v21, %v2335_v42  ;;  %v2380_v15 = vadd.f32 %v4416_v47, %v2327_v50 }
 0x1d0   :  { %v2338_v52 = vpop.f32.mrf.mxu0  ;;  %v2386_v39 = vadd.f32 %v2385_v19, %v2333_v62  ;;  %v2337_v53 = vadd.f32 %v2336_v26, %v2284_v37  ;;  %v2382_v54 = vadd.f32 %v4423_v5, %v2329_v41 }
 0x1d1   :  { %v2391_v2 = vpop.f32.mrf.mxu1  ;;  %v2339_v4 = vadd.f32 %v2338_v52, %v2286_v45 }
 0x1d2   :  { %v2390_v17 = vadd.f32 %v2389_v61, %v2337_v53 }
 0x1d3   :  { %v2392_v55 = vadd.f32 %v2391_v2, %v2339_v4 }
 0x202   :  { %v2428_v48 = vpop.f32.mrf.mxu0 }
 0x203   :  { %v2438_v57 = vpop.f32.mrf.mxu1  ;;  %v2429_v51 = vadd.f32 %v2428_v48, %v2376_v56 }
 0x204   :  { %v2439_v11 = vadd.f32 %v2438_v57, %v2386_v39  ;;  %v2430_v14 = vpop.f32.mrf.mxu0 }
 0x205   :  { %v2440_v9 = vpop.f32.mrf.mxu1  ;;  %v2455_v27 = vmul.f32 0.01, %v2429_v51  ;;  %vm2447_vm0 = vcmp.ge.f32.partialorder %v2429_v51, 0.0  ;;  %v2431_v1 = vadd.f32 %v2430_v14, %v2378_v6 }
 0x206   :  { %v2459_v8 = vmul.f32 0.01, %v2439_v11  ;;  %vm2451_vm1 = vcmp.ge.f32.partialorder %v2439_v11, 0.0  ;;  %v2441_v19 = vadd.f32 %v2440_v9, %v2388_v7  ;;  %v2432_v16 = vpop.f32.mrf.mxu0 }
 0x207   :  { %v2442_v43 = vpop.f32.mrf.mxu1  ;;  %v2433_v10 = vadd.f32 %v2432_v16, %v2380_v15  ;;  %vm2448_vm2 = vcmp.ge.f32.partialorder %v2431_v1, 0.0  ;;  %v2456_v18 = vmul.f32 0.01, %v2431_v1  ;;  %v2463_v58 = vsel %vm2447_vm0, %v2429_v51, %v2455_v27 }
 0x208   :  { %v2443_v59 = vadd.f32 %v2442_v43, %v2390_v17  ;;  %vm2452_vm3 = vcmp.ge.f32.partialorder %v2441_v19, 0.0  ;;  %v2460_v12 = vmul.f32 0.01, %v2441_v19  ;;  %v2434_v20 = vpop.f32.mrf.mxu0  ;;  %v2467_v21 = vsel %vm2451_vm1, %v2439_v11, %v2459_v8 }
 0x209   :  { %v2444_v47 = vpop.f32.mrf.mxu1  ;;  %v2457_v29 = vmul.f32 0.01, %v2433_v10  ;;  %v2464_v22 = vsel %vm2448_vm2, %v2431_v1, %v2456_v18  ;;  %v2435_v30 = vadd.f32 %v2434_v20, %v2382_v54  ;;  %vm2449_vm4 = vcmp.ge.f32.partialorder %v2433_v10, 0.0 }
 0x20a   :  { %v2461_v60 = vmul.f32 0.01, %v2443_v59  ;;  %v2468_v23 = vsel %vm2452_vm3, %v2441_v19, %v2460_v12  ;;  %v2445_v25 = vadd.f32 %v2444_v47, %v2392_v55  ;;  %v2831_v5 = vpack.c.bf16 %v2464_v22, %v2463_v58 }
 0x20b   :  { %v2833_v31 = vpack.c.bf16 %v2468_v23, %v2467_v21  ;;  %vm2453_vm5 = vcmp.ge.f32.partialorder %v2443_v59, 0.0  ;;  %vm2450_vm6 = vcmp.ge.f32.partialorder %v2435_v30, 0.0  ;;  %v2458_v33 = vmul.f32 0.01, %v2435_v30 }
 0x20c   :  { %vm2454_vm7 = vcmp.ge.f32.partialorder %v2445_v25, 0.0  ;;  %v2462_v24 = vmul.f32 0.01, %v2445_v25  ;;  %2495 = vst [vmem:[%s4473_s3] sm:$0xff] %v2831_v5  ;;  %v2465_v32 = vsel %vm2449_vm4, %v2433_v10, %v2457_v29  ;;  %v2469_v35 = vsel %vm2453_vm5, %v2443_v59, %v2461_v60 }
 0x20d   :  { %2497 = vst [vmem:[%s4473_s3 + $0x10] sm:$0xff] %v2833_v31  ;;  %v2466_v44 = vsel %vm2450_vm6, %v2435_v30, %v2458_v33 }
 0x20e   :  { %v2470_v26 = vsel %vm2454_vm7, %v2445_v25, %v2462_v24  ;;  %v2832_v61 = vpack.c.bf16 %v2466_v44, %v2465_v32 }
 0x20f   :  { %v2834_v34 = vpack.c.bf16 %v2470_v26, %v2469_v35 }
 0x210   :  { %2496 = vst [vmem:[%s4473_s3 + $0x8] sm:$0xff] %v2832_v61 }
 0x211   :  { %2498 = vst [vmem:[%s4473_s3 + $0x18] sm:$0xff] %v2834_v34 }

// kernel: _lambda_.13
= control target key start
LH: loop header
LB: loop body
LE: loop exit
PB: predicated region body
PF: predicated region fallthrough
CT: control target
= control target key end

     0   :  { %v281_v36 = vlaneseq  ;;  %v2693_v37 = vmov 1966171168   ;;  %s3435_s0 = inlined_call_operand.vmem [shape: bf16[2,1024], index: 0, kind: input, shape index: {}]   ;;  %s3436_s1 = inlined_call_operand.vmem [shape: bf16[1024,384], index: 1, kind: input, shape index: {}]   ;;  %s3437_s2 = inlined_call_operand.vmem [shape: f32[1,384], index: 2, kind: input, shape index: {}]   ;;  %s3438_s3 = inlined_call_operand.vmem [shape: bf16[384,128], index: 3, kind: input, shape index: {}]   ;;  %s3439_s4 = inlined_call_operand.vmem [shape: f32[1,128], index: 4, kind: input, shape index: {}]   ;;  %s3440_s5 = inlined_call_operand.hbm [shape: f32[2,128], index: 5, kind: output, shape index: {}]  }
   0x1   :  { %v2386_v0 = vld [vmem:[%s3436_s1 + $0xac] ss:$12 sps:$4 sm:$0xff]   ;;  %v2390_v2 = vld [vmem:[%s3436_s1 + $0xa8] ss:$12 sps:$4 sm:$0xff]   ;;  %v2396_v6 = vld [vmem:[%s3436_s1 + $0x90] ss:$12 sps:$4 sm:$0xff]   ;;  %v299_v38 = vunpack.c.l.s4 %v2693_v37 }
   0x2   :  { %v2388_v1 = vld [vmem:[%s3436_s1 + $0x22c] ss:$12 sps:$4 sm:$0xff]   ;;  %1378 = vmatprep.subr.bf16.mxu0 %v2386_v0  ;;  %v2391_v3 = vld [vmem:[%s3436_s1 + $0x228] ss:$12 sps:$4 sm:$0xff]   ;;  %v2397_v7 = vld [vmem:[%s3436_s1 + $0x210] ss:$12 sps:$4 sm:$0xff]  }
   0x3   :  { %1419 = vmatprep.subr.bf16.mxu1 %v2388_v1  ;;  %v2392_v4 = vld [vmem:[%s3436_s1 + $0x94] ss:$12 sps:$4 sm:$0xff]   ;;  %1379 = vmatpush1.bf16.msra.mxu0 %v2390_v2  ;;  %v2398_v8 = vld [vmem:[%s3436_s1 + $0x7c] ss:$12 sps:$4 sm:$0xff]   ;;  %v2402_v10 = vld [vmem:[%s3436_s1 + $0x78] ss:$12 sps:$4 sm:$0xff]   ;;  %v300_v43 = vunpack.c.0.s8 %v299_v38 }
   0x4   :  { %1420 = vmatpush1.bf16.msra.mxu1 %v2391_v3  ;;  %v2394_v5 = vld [vmem:[%s3436_s1 + $0x214] ss:$12 sps:$4 sm:$0xff]   ;;  %1380 = vmatprep.subr.bf16.mxu0 %v2392_v4  ;;  %v2400_v9 = vld [vmem:[%s3436_s1 + $0x1fc] ss:$12 sps:$4 sm:$0xff]   ;;  %v2403_v11 = vld [vmem:[%s3436_s1 + $0x1f8] ss:$12 sps:$4 sm:$0xff]  }
   0x5   :  { %1421 = vmatprep.subr.bf16.mxu1 %v2394_v5  ;;  %v2404_v12 = vld [vmem:[%s3436_s1 + $0x64] ss:$12 sps:$4 sm:$0xff]   ;;  %v2408_v14 = vld [vmem:[%s3436_s1 + $0x60] ss:$12 sps:$4 sm:$0xff]   ;;  %v2414_v18 = vld [vmem:[%s3436_s1 + $0x48] ss:$12 sps:$4 sm:$0xff]  }
   0x6   :  { %v2406_v13 = vld [vmem:[%s3436_s1 + $0x1e4] ss:$12 sps:$4 sm:$0xff]   ;;  %v2409_v15 = vld [vmem:[%s3436_s1 + $0x1e0] ss:$12 sps:$4 sm:$0xff]   ;;  %v2415_v19 = vld [vmem:[%s3436_s1 + $0x1c8] ss:$12 sps:$4 sm:$0xff]  }
   0x7   :  { %1381 = vmatpush1.bf16.msra.mxu0 %v2396_v6  ;;  %v2410_v16 = vld [vmem:[%s3436_s1 + $0x4c] ss:$12 sps:$4 sm:$0xff]   ;;  %v2416_v20 = vld [vmem:[%s3436_s1 + $0x34] ss:$12 sps:$4 sm:$0xff]   ;;  %v2420_v22 = vld [vmem:[%s3436_s1 + $0x30] ss:$12 sps:$4 sm:$0xff]  }
   0x8   :  { %1422 = vmatpush1.bf16.msra.mxu1 %v2397_v7  ;;  %1382 = vmatprep.subr.bf16.mxu0 %v2398_v8  ;;  %v2412_v17 = vld [vmem:[%s3436_s1 + $0x1cc] ss:$12 sps:$4 sm:$0xff]   ;;  %v2418_v21 = vld [vmem:[%s3436_s1 + $0x1b4] ss:$12 sps:$4 sm:$0xff]   ;;  %v2421_v23 = vld [vmem:[%s3436_s1 + $0x1b0] ss:$12 sps:$4 sm:$0xff]  }
   0x9   :  { %1423 = vmatprep.subr.bf16.mxu1 %v2400_v9  ;;  %v2422_v24 = vld [vmem:[%s3436_s1 + $0x1c] ss:$12 sps:$4 sm:$0xff]   ;;  %v2426_v26 = vld [vmem:[%s3436_s1 + $0x18] ss:$12 sps:$4 sm:$0xff]   ;;  %v2432_v30 = vld [vmem:[%s3436_s1] ss:$12 sps:$4 sm:$0xff]  }
   0xa   :  { %v2424_v25 = vld [vmem:[%s3436_s1 + $0x19c] ss:$12 sps:$4 sm:$0xff]   ;;  %v2427_v27 = vld [vmem:[%s3436_s1 + $0x198] ss:$12 sps:$4 sm:$0xff]   ;;  %v2433_v31 = vld [vmem:[%s3436_s1 + $0x180] ss:$12 sps:$4 sm:$0xff]  }
   0xb   :  { %1383 = vmatpush1.bf16.msra.mxu0 %v2402_v10  ;;  %v2428_v28 = vld [vmem:[%s3436_s1 + $0x4] ss:$12 sps:$4 sm:$0xff]   ;;  %v2434_v32 = vld [vmem:[%s3436_s1 + $0x16c] ss:$12 sps:$4 sm:$0xff]   ;;  %v2438_v34 = vld [vmem:[%s3436_s1 + $0x168] ss:$12 sps:$4 sm:$0xff]  }
   0xc   :  { %1424 = vmatpush1.bf16.msra.mxu1 %v2403_v11  ;;  %1384 = vmatprep.subr.bf16.mxu0 %v2404_v12  ;;  %v2430_v29 = vld [vmem:[%s3436_s1 + $0x184] ss:$12 sps:$4 sm:$0xff]   ;;  %v2436_v33 = vld [vmem:[%s3436_s1 + $0x2ec] ss:$12 sps:$4 sm:$0xff]   ;;  %v2439_v35 = vld [vmem:[%s3436_s1 + $0x2e8] ss:$12 sps:$4 sm:$0xff]  }
   0xd   :  { %1425 = vmatprep.subr.bf16.mxu1 %v2406_v13  ;;  %v2440_v39 = vld [vmem:[%s3436_s1 + $0x154] ss:$12 sps:$4 sm:$0xff]   ;;  %v2444_v41 = vld [vmem:[%s3436_s1 + $0x150] ss:$12 sps:$4 sm:$0xff]   ;;  %v2845_v42 = vshrl.u32 %v281_v36, 7 }
   0xe   :  { %v2442_v40 = vld [vmem:[%s3436_s1 + $0x2d4] ss:$12 sps:$4 sm:$0xff]   ;;  %v2445_v44 = vld [vmem:[%s3436_s1 + $0x2d0] ss:$12 sps:$4 sm:$0xff]   ;;  %v2450_v47 = vld [vmem:[%s3436_s1 + $0x138] ss:$12 sps:$4 sm:$0xff]  }
   0xf   :  { %1385 = vmatpush1.bf16.msra.mxu0 %v2408_v14  ;;  %v2446_v45 = vld [vmem:[%s3436_s1 + $0x13c] ss:$12 sps:$4 sm:$0xff]   ;;  %v2451_v48 = vld [vmem:[%s3436_s1 + $0x2b8] ss:$12 sps:$4 sm:$0xff]   ;;  %v303_v49 = vsub.s32 %v300_v43, %v2845_v42  ;;  %v2456_v53 = vld [vmem:[%s3436_s1 + $0x120] ss:$12 sps:$4 sm:$0xff]  }
  0x10   :  { %1426 = vmatpush1.bf16.msra.mxu1 %v2409_v15  ;;  %1386 = vmatprep.subr.bf16.mxu0 %v2410_v16  ;;  %v2448_v46 = vld [vmem:[%s3436_s1 + $0x2bc] ss:$12 sps:$4 sm:$0xff]   ;;  %v2452_v50 = vld [vmem:[%s3436_s1 + $0x124] ss:$12 sps:$4 sm:$0xff]   ;;  %v2457_v56 = vld [vmem:[%s3436_s1 + $0x2a0] ss:$12 sps:$4 sm:$0xff]  }
  0x11   :  { %1427 = vmatprep.subr.bf16.mxu1 %v2412_v17  ;;  %v2454_v51 = vld [vmem:[%s3436_s1 + $0x2a4] ss:$12 sps:$4 sm:$0xff]   ;;  %v2458_v57 = vld [vmem:[%s3436_s1 + $0x10c] ss:$12 sps:$4 sm:$0xff]   ;;  %v2462_v61 = vld [vmem:[%s3436_s1 + $0x108] ss:$12 sps:$4 sm:$0xff]  }
  0x12   :  { %v22_v52 = vld [vmem:[%s3435_s0] sm:$0xff]  ;;  %v2460_v58 = vld [vmem:[%s3436_s1 + $0x28c] ss:$12 sps:$4 sm:$0xff]   ;;  %v2463_v0 = vld [vmem:[%s3436_s1 + $0x288] ss:$12 sps:$4 sm:$0xff]  }
  0x13   :  { %1387 = vmatpush1.bf16.msra.mxu0 %v2414_v18  ;;  %v304_v54 = vrot.slane %v22_v52, %v303_v49  ;;  %v297_v55 = vcombine.high %v22_v52, %v22_v52  ;;  %v2464_v1 = vld [vmem:[%s3436_s1 + $0xf4] ss:$12 sps:$4 sm:$0xff]   ;;  %v2468_v4 = vld [vmem:[%s3436_s1 + $0xf0] ss:$12 sps:$4 sm:$0xff]   ;;  %v2474_v8 = vld [vmem:[%s3436_s1 + $0xd8] ss:$12 sps:$4 sm:$0xff]  }
  0x14   :  { %1428 = vmatpush1.bf16.msra.mxu1 %v2415_v19  ;;  %1388 = vmatprep.subr.bf16.mxu0 %v2416_v20  ;;  %v2466_v2 = vld [vmem:[%s3436_s1 + $0x274] ss:$12 sps:$4 sm:$0xff]   ;;  %v2469_v5 = vld [vmem:[%s3436_s1 + $0x270] ss:$12 sps:$4 sm:$0xff]   ;;  %v2475_v9 = vld [vmem:[%s3436_s1 + $0x258] ss:$12 sps:$4 sm:$0xff]  }
  0x15   :  { %1429 = vmatprep.subr.bf16.mxu1 %v2418_v21  ;;  %v312_v59 = vcombine.high %v304_v54, %v304_v54  ;;  %v311_v60 = vrot.slane %v297_v55, %v303_v49  ;;  %v2470_v6 = vld [vmem:[%s3436_s1 + $0xdc] ss:$12 sps:$4 sm:$0xff]   ;;  %v2476_v10 = vld [vmem:[%s3436_s1 + $0xc4] ss:$12 sps:$4 sm:$0xff]   ;;  %v2480_v13 = vld [vmem:[%s3436_s1 + $0xc0] ss:$12 sps:$4 sm:$0xff]   ;;  %v2933_v14 = vrot.slane %v304_v54, %v303_v49 }
  0x16   :  { %v2472_v7 = vld [vmem:[%s3436_s1 + $0x25c] ss:$12 sps:$4 sm:$0xff]   ;;  %v2478_v11 = vld [vmem:[%s3436_s1 + $0x244] ss:$12 sps:$4 sm:$0xff]   ;;  %v2481_v15 = vld [vmem:[%s3436_s1 + $0x240] ss:$12 sps:$4 sm:$0xff]  }
  0x17   :  { %1389 = vmatpush1.bf16.msra.mxu0 %v2420_v22  ;;  %v2887_v62 = vrot.slane %v312_v59, %v303_v49  ;;  %v2889_v63 = vrot.slane %v311_v60, %v303_v49  ;;  %v313_v12 = vcombine.high %v311_v60, %v311_v60  ;;  %v2484_v16 = vld [vmem:[%s3436_s1 + $0x3ac] ss:$12 sps:$4 sm:$0xff]   ;;  %v2948_v19 = vcombine.high %v2933_v14, %v2933_v14  ;;  %v2482_v20 = vld [vmem:[%s3436_s1 + $0x3a8] ss:$12 sps:$4 sm:$0xff]   ;;  %v2512_v43 = vld [vmem:[%s3436_s1 + $0x330] ss:$12 sps:$4 sm:$0xff]  }
  0x18   :  { %1430 = vmatpush1.bf16.msra.mxu1 %v2421_v23  ;;  %1390 = vmatprep.subr.bf16.mxu0 %v2422_v24  ;;  %v2487_v17 = vld [vmem:[%s3436_s1 + $0x52c] ss:$12 sps:$4 sm:$0xff]   ;;  %v2485_v21 = vld [vmem:[%s3436_s1 + $0x528] ss:$12 sps:$4 sm:$0xff]   ;;  %v2536_v59 = vld [vmem:[%s3436_s1 + $0x450] ss:$12 sps:$4 sm:$0xff]  }
  0x19   :  { %1431 = vmatprep.subr.bf16.mxu1 %v2424_v25  ;;  %v2902_v3 = vcombine.high %v2887_v62, %v2887_v62  ;;  %1410 = vmatprep.mubr.bf16.mxu0 %v2887_v62  ;;  %v2944_v18 = vrot.slane %v313_v12, %v303_v49  ;;  %v2490_v22 = vld [vmem:[%s3436_s1 + $0x394] ss:$12 sps:$4 sm:$0xff]   ;;  %v2488_v25 = vld [vmem:[%s3436_s1 + $0x390] ss:$12 sps:$4 sm:$0xff]   ;;  %v2511_v37 = vld [vmem:[%s3436_s1 + $0x4cc] ss:$12 sps:$4 sm:$0xff]  }
  0x1a   :  { %v2493_v23 = vld [vmem:[%s3436_s1 + $0x514] ss:$12 sps:$4 sm:$0xff]   ;;  %v2526_v49 = vld [vmem:[%s3436_s1 + $0x304] ss:$12 sps:$4 sm:$0xff]   ;;  %v2535_v54 = vld [vmem:[%s3436_s1 + $0x5ec] ss:$12 sps:$4 sm:$0xff]  }
  0x1b   :  { %1391 = vmatpush1.bf16.msra.mxu0 %v2426_v26  ;;  %1451 = vmatprep.mubr.bf16.mxu1 %v2902_v3  ;;  %v2964_v24 = vcombine.high %v2944_v18, %v2944_v18  ;;  %v2491_v26 = vld [vmem:[%s3436_s1 + $0x510] ss:$12 sps:$4 sm:$0xff]   ;;  %v2506_v38 = vld [vmem:[%s3436_s1 + $0x348] ss:$12 sps:$4 sm:$0xff]   ;;  %v2527_v52 = vld [vmem:[%s3436_s1 + $0x480] ss:$12 sps:$4 sm:$0xff]  }
  0x1c   :  { %1432 = vmatpush1.bf16.msra.mxu1 %v2427_v27  ;;  %1392 = vmatprep.subr.bf16.mxu0 %v2428_v28  ;;  %v2496_v27 = vld [vmem:[%s3436_s1 + $0x37c] ss:$12 sps:$4 sm:$0xff]   ;;  %v2562_v12 = vld [vmem:[%s3436_s1 + $0x3f4] ss:$12 sps:$4 sm:$0xff]  }
  0x1d   :  { %1433 = vmatprep.subr.bf16.mxu1 %v2430_v29  ;;  %v2499_v28 = vld [vmem:[%s3436_s1 + $0x4fc] ss:$12 sps:$4 sm:$0xff]   ;;  %v2494_v29 = vld [vmem:[%s3436_s1 + $0x378] ss:$12 sps:$4 sm:$0xff]  }
  0x1e   :  { %v2530_v55 = vld [vmem:[%s3436_s1 + $0x468] ss:$12 sps:$4 sm:$0xff]   ;;  %v2539_v60 = vld [vmem:[%s3436_s1 + $0x5d0] ss:$12 sps:$4 sm:$0xff]  }
  0x1f   :  { %1393 = vmatpush1.bf16.msra.mxu0 %v2432_v30  ;;  %v2497_v30 = vld [vmem:[%s3436_s1 + $0x4f8] ss:$12 sps:$4 sm:$0xff]  }
  0x20   :  { %1434 = vmatpush1.bf16.msra.mxu1 %v2433_v31  ;;  %1394 = vmatprep.subr.bf16.mxu0 %v2434_v32  ;;  %v2502_v31 = vld [vmem:[%s3436_s1 + $0x364] ss:$12 sps:$4 sm:$0xff]  }
  0x21   :  { %1435 = vmatprep.subr.bf16.mxu1 %v2436_v33  ;;  %v2505_v32 = vld [vmem:[%s3436_s1 + $0x4e4] ss:$12 sps:$4 sm:$0xff]   ;;  %v2500_v33 = vld [vmem:[%s3436_s1 + $0x360] ss:$12 sps:$4 sm:$0xff]  }
  0x23   :  { %1395 = vmatpush2.bf16.msra.mxu0 %v2438_v34  ;;  %v2503_v34 = vld [vmem:[%s3436_s1 + $0x4e0] ss:$12 sps:$4 sm:$0xff]  }
  0x24   :  { %1436 = vmatpush2.bf16.msra.mxu1 %v2439_v35  ;;  %1396 = vmatprep.subr.bf16.mxu0 %v2440_v39  ;;  %v2508_v35 = vld [vmem:[%s3436_s1 + $0x34c] ss:$12 sps:$4 sm:$0xff]   ;;  %v2509_v39 = vld [vmem:[%s3436_s1 + $0x4c8] ss:$12 sps:$4 sm:$0xff]  }
  0x25   :  { %1437 = vmatprep.subr.bf16.mxu1 %v2442_v40  ;;  %v2514_v40 = vld [vmem:[%s3436_s1 + $0x334] ss:$12 sps:$4 sm:$0xff]  }
  0x27   :  { %1397 = vmatpush2.bf16.msra.mxu0 %v2444_v41  ;;  %v2517_v41 = vld [vmem:[%s3436_s1 + $0x4b4] ss:$12 sps:$4 sm:$0xff]  }
  0x28   :  { %1438 = vmatpush2.bf16.msra.mxu1 %v2445_v44  ;;  %1398 = vmatprep.subr.bf16.mxu0 %v2446_v45  ;;  %v2515_v44 = vld [vmem:[%s3436_s1 + $0x4b0] ss:$12 sps:$4 sm:$0xff]  }
  0x29   :  { %1439 = vmatprep.subr.bf16.mxu1 %v2448_v46  ;;  %v2520_v45 = vld [vmem:[%s3436_s1 + $0x31c] ss:$12 sps:$4 sm:$0xff]  }
  0x2a   :  { %v2523_v46 = vld [vmem:[%s3436_s1 + $0x49c] ss:$12 sps:$4 sm:$0xff]  }
  0x2b   :  { %1399 = vmatpush2.bf16.msra.mxu0 %v2450_v47  ;;  %v2518_v47 = vld [vmem:[%s3436_s1 + $0x318] ss:$12 sps:$4 sm:$0xff]  }
  0x2c   :  { %1440 = vmatpush2.bf16.msra.mxu1 %v2451_v48  ;;  %1400 = vmatprep.subr.bf16.mxu0 %v2452_v50  ;;  %v2521_v48 = vld [vmem:[%s3436_s1 + $0x498] ss:$12 sps:$4 sm:$0xff]  }
  0x2d   :  { %1441 = vmatprep.subr.bf16.mxu1 %v2454_v51  ;;  %v2529_v50 = vld [vmem:[%s3436_s1 + $0x484] ss:$12 sps:$4 sm:$0xff]   ;;  %v2524_v51 = vld [vmem:[%s3436_s1 + $0x300] ss:$12 sps:$4 sm:$0xff]  }
  0x2f   :  { %1401 = vmatpush2.bf16.msra.mxu0 %v2456_v53  ;;  %v2532_v53 = vld [vmem:[%s3436_s1 + $0x46c] ss:$12 sps:$4 sm:$0xff]  }
  0x30   :  { %1442 = vmatpush2.bf16.msra.mxu1 %v2457_v56  ;;  %1402 = vmatprep.subr.bf16.mxu0 %v2458_v57  ;;  %v2533_v56 = vld [vmem:[%s3436_s1 + $0x5e8] ss:$12 sps:$4 sm:$0xff]  }
  0x31   :  { %1443 = vmatprep.subr.bf16.mxu1 %v2460_v58  ;;  %v2538_v57 = vld [vmem:[%s3436_s1 + $0x454] ss:$12 sps:$4 sm:$0xff]  }
  0x32   :  { %v2541_v58 = vld [vmem:[%s3436_s1 + $0x5d4] ss:$12 sps:$4 sm:$0xff]  }
  0x33   :  { %1403 = vmatpush2.bf16.msra.mxu0 %v2462_v61  ;;  %v2544_v61 = vld [vmem:[%s3436_s1 + $0x43c] ss:$12 sps:$4 sm:$0xff]  }
  0x34   :  { %1444 = vmatpush2.bf16.msra.mxu1 %v2463_v0  ;;  %1404 = vmatprep.subr.bf16.mxu0 %v2464_v1  ;;  %v2547_v0 = vld [vmem:[%s3436_s1 + $0x5bc] ss:$12 sps:$4 sm:$0xff]   ;;  %v2542_v1 = vld [vmem:[%s3436_s1 + $0x438] ss:$12 sps:$4 sm:$0xff]  }
  0x35   :  { %1445 = vmatprep.subr.bf16.mxu1 %v2466_v2  ;;  %v2545_v2 = vld [vmem:[%s3436_s1 + $0x5b8] ss:$12 sps:$4 sm:$0xff]  }
  0x37   :  { %1405 = vmatpush2.bf16.msra.mxu0 %v2468_v4  ;;  %v2550_v4 = vld [vmem:[%s3436_s1 + $0x424] ss:$12 sps:$4 sm:$0xff]  }
  0x38   :  { %1446 = vmatpush2.bf16.msra.mxu1 %v2469_v5  ;;  %1406 = vmatprep.subr.bf16.mxu0 %v2470_v6  ;;  %v2553_v5 = vld [vmem:[%s3436_s1 + $0x5a4] ss:$12 sps:$4 sm:$0xff]   ;;  %v2548_v6 = vld [vmem:[%s3436_s1 + $0x420] ss:$12 sps:$4 sm:$0xff]  }
  0x39   :  { %1447 = vmatprep.subr.bf16.mxu1 %v2472_v7  ;;  %v2551_v7 = vld [vmem:[%s3436_s1 + $0x5a0] ss:$12 sps:$4 sm:$0xff]  }
  0x3b   :  { %1407 = vmatpush2.bf16.msra.mxu0 %v2474_v8  ;;  %v2556_v8 = vld [vmem:[%s3436_s1 + $0x40c] ss:$12 sps:$4 sm:$0xff]  }
  0x3c   :  { %1448 = vmatpush2.bf16.msra.mxu1 %v2475_v9  ;;  %1408 = vmatprep.subr.bf16.mxu0 %v2476_v10  ;;  %v2559_v9 = vld [vmem:[%s3436_s1 + $0x58c] ss:$12 sps:$4 sm:$0xff]   ;;  %v2554_v10 = vld [vmem:[%s3436_s1 + $0x408] ss:$12 sps:$4 sm:$0xff]  }
  0x3d   :  { %1449 = vmatprep.subr.bf16.mxu1 %v2478_v11  ;;  %v2557_v11 = vld [vmem:[%s3436_s1 + $0x588] ss:$12 sps:$4 sm:$0xff]  }
  0x3f   :  { %1409 = vmatpush2.bf16.msra.mxu0 %v2480_v13  ;;  %v2565_v13 = vld [vmem:[%s3436_s1 + $0x574] ss:$12 sps:$4 sm:$0xff]  }
  0x40   :  { %1450 = vmatpush2.bf16.msra.mxu1 %v2481_v15  ;;  %1460 = vmatprep.subr.bf16.mxu0 %v2484_v16  ;;  %v2560_v15 = vld [vmem:[%s3436_s1 + $0x3f0] ss:$12 sps:$4 sm:$0xff]  }
  0x41   :  { %1501 = vmatprep.subr.bf16.mxu1 %v2487_v17  ;;  %v2563_v16 = vld [vmem:[%s3436_s1 + $0x570] ss:$12 sps:$4 sm:$0xff]  }
  0x42   :  { %1411 = vmatmul.mubr.bf16.vlgmr.msra.gmra.mxu0 %v2933_v14  ;;  %v2568_v17 = vld [vmem:[%s3436_s1 + $0x3dc] ss:$12 sps:$4 sm:$0xff]  }
  0x43   :  { %1452 = vmatmul.mubr.bf16.vlgmr.msra.gmra.mxu1 %v2948_v19  ;;  %1461 = vmatpush1.bf16.msra.mxu0 %v2482_v20  ;;  %v2571_v20 = vld [vmem:[%s3436_s1 + $0x55c] ss:$12 sps:$4 sm:$0xff]  }
  0x44   :  { %1502 = vmatpush1.bf16.msra.mxu1 %v2485_v21  ;;  %1462 = vmatprep.subr.bf16.mxu0 %v2490_v22  ;;  %v2566_v21 = vld [vmem:[%s3436_s1 + $0x3d8] ss:$12 sps:$4 sm:$0xff]  }
  0x45   :  { %1503 = vmatprep.subr.bf16.mxu1 %v2493_v23  ;;  %1492 = vmatprep.mubr.bf16.mxu0 %v2944_v18  ;;  %v2569_v22 = vld [vmem:[%s3436_s1 + $0x558] ss:$12 sps:$4 sm:$0xff]  }
  0x46   :  { %1533 = vmatprep.mubr.bf16.mxu1 %v2964_v24  ;;  %v2574_v23 = vld [vmem:[%s3436_s1 + $0x3c4] ss:$12 sps:$4 sm:$0xff]  }
  0x47   :  { %1463 = vmatpush1.bf16.msra.mxu0 %v2488_v25  ;;  %v2577_v25 = vld [vmem:[%s3436_s1 + $0x544] ss:$12 sps:$4 sm:$0xff]  }
  0x48   :  { %1504 = vmatpush1.bf16.msra.mxu1 %v2491_v26  ;;  %1464 = vmatprep.subr.bf16.mxu0 %v2496_v27  ;;  %v2572_v26 = vld [vmem:[%s3436_s1 + $0x3c0] ss:$12 sps:$4 sm:$0xff]  }
  0x49   :  { %1505 = vmatprep.subr.bf16.mxu1 %v2499_v28  ;;  %v2575_v27 = vld [vmem:[%s3436_s1 + $0x540] ss:$12 sps:$4 sm:$0xff]   ;;  %v2579_v28 = vld [vmem:[%s3436_s1 + $0x170] ss:$12 sps:$4 sm:$0xff]  }
  0x4b   :  { %1465 = vmatpush1.bf16.msra.mxu0 %v2494_v29  ;;  %v2580_v29 = vld [vmem:[%s3436_s1 + $0x2f0] ss:$12 sps:$4 sm:$0xff]  }
  0x4c   :  { %1506 = vmatpush1.bf16.msra.mxu1 %v2497_v30  ;;  %1466 = vmatprep.subr.bf16.mxu0 %v2502_v31  ;;  %v2581_v30 = vld [vmem:[%s3436_s1 + $0xb0] ss:$12 sps:$4 sm:$0xff]   ;;  %v3155_v31 = vcombine.high %v2889_v63, %v2889_v63 }
  0x4d   :  { %1507 = vmatprep.subr.bf16.mxu1 %v2505_v32  ;;  %v2582_v32 = vld [vmem:[%s3436_s1 + $0x230] ss:$12 sps:$4 sm:$0xff]  }
  0x4f   :  { %1467 = vmatpush1.bf16.msra.mxu0 %v2500_v33  ;;  %v2583_v33 = vld [vmem:[%s3436_s1 + $0x158] ss:$12 sps:$4 sm:$0xff]  }
  0x50   :  { %1508 = vmatpush1.bf16.msra.mxu1 %v2503_v34  ;;  %1468 = vmatprep.subr.bf16.mxu0 %v2508_v35  ;;  %v2584_v34 = vld [vmem:[%s3436_s1 + $0x2d8] ss:$12 sps:$4 sm:$0xff]  }
  0x51   :  { %1509 = vmatprep.subr.bf16.mxu1 %v2511_v37  ;;  %v2585_v35 = vld [vmem:[%s3436_s1 + $0x98] ss:$12 sps:$4 sm:$0xff]  }
  0x52   :  { %v2586_v37 = vld [vmem:[%s3436_s1 + $0x218] ss:$12 sps:$4 sm:$0xff]  }
  0x53   :  { %1469 = vmatpush1.bf16.msra.mxu0 %v2506_v38  ;;  %v2587_v38 = vld [vmem:[%s3436_s1 + $0x140] ss:$12 sps:$4 sm:$0xff]  }
  0x54   :  { %1510 = vmatpush1.bf16.msra.mxu1 %v2509_v39  ;;  %1470 = vmatprep.subr.bf16.mxu0 %v2514_v40  ;;  %v2588_v39 = vld [vmem:[%s3436_s1 + $0x2c0] ss:$12 sps:$4 sm:$0xff]  }
  0x55   :  { %1511 = vmatprep.subr.bf16.mxu1 %v2517_v41  ;;  %v2589_v40 = vld [vmem:[%s3436_s1 + $0x80] ss:$12 sps:$4 sm:$0xff]  }
  0x56   :  { %v2590_v41 = vld [vmem:[%s3436_s1 + $0x200] ss:$12 sps:$4 sm:$0xff]  }
  0x57   :  { %1471 = vmatpush1.bf16.msra.mxu0 %v2512_v43  ;;  %v2591_v43 = vld [vmem:[%s3436_s1 + $0x128] ss:$12 sps:$4 sm:$0xff]  }
  0x58   :  { %1512 = vmatpush1.bf16.msra.mxu1 %v2515_v44  ;;  %1472 = vmatprep.subr.bf16.mxu0 %v2520_v45  ;;  %v2592_v44 = vld [vmem:[%s3436_s1 + $0x2a8] ss:$12 sps:$4 sm:$0xff]   ;;  %v2595_v45 = vld [vmem:[%s3436_s1 + $0x110] ss:$12 sps:$4 sm:$0xff]  }
  0x59   :  { %1513 = vmatprep.subr.bf16.mxu1 %v2523_v46  ;;  %v2596_v46 = vld [vmem:[%s3436_s1 + $0x290] ss:$12 sps:$4 sm:$0xff]  }
  0x5b   :  { %1473 = vmatpush1.bf16.msra.mxu0 %v2518_v47  ;;  %v2597_v47 = vld [vmem:[%s3436_s1 + $0x50] ss:$12 sps:$4 sm:$0xff]  }
  0x5c   :  { %1514 = vmatpush1.bf16.msra.mxu1 %v2521_v48  ;;  %1474 = vmatprep.subr.bf16.mxu0 %v2526_v49  ;;  %v2598_v48 = vld [vmem:[%s3436_s1 + $0x1d0] ss:$12 sps:$4 sm:$0xff]   ;;  %v2599_v49 = vld [vmem:[%s3436_s1 + $0xf8] ss:$12 sps:$4 sm:$0xff]  }
  0x5d   :  { %1515 = vmatprep.subr.bf16.mxu1 %v2529_v50  ;;  %v2600_v50 = vld [vmem:[%s3436_s1 + $0x278] ss:$12 sps:$4 sm:$0xff]  }
  0x5f   :  { %1475 = vmatpush1.bf16.msra.mxu0 %v2524_v51  ;;  %v2601_v51 = vld [vmem:[%s3436_s1 + $0x38] ss:$12 sps:$4 sm:$0xff]  }
  0x60   :  { %1516 = vmatpush1.bf16.msra.mxu1 %v2527_v52  ;;  %1476 = vmatprep.subr.bf16.mxu0 %v2532_v53  ;;  %v2602_v52 = vld [vmem:[%s3436_s1 + $0x1b8] ss:$12 sps:$4 sm:$0xff]   ;;  %v2603_v53 = vld [vmem:[%s3436_s1 + $0xe0] ss:$12 sps:$4 sm:$0xff]  }
  0x61   :  { %1517 = vmatprep.subr.bf16.mxu1 %v2535_v54  ;;  %v2604_v54 = vld [vmem:[%s3436_s1 + $0x260] ss:$12 sps:$4 sm:$0xff]  }
  0x63   :  { %1477 = vmatpush2.bf16.msra.mxu0 %v2530_v55  ;;  %v2605_v55 = vld [vmem:[%s3436_s1 + $0x20] ss:$12 sps:$4 sm:$0xff]  }
  0x64   :  { %1518 = vmatpush2.bf16.msra.mxu1 %v2533_v56  ;;  %1478 = vmatprep.subr.bf16.mxu0 %v2538_v57  ;;  %v2606_v56 = vld [vmem:[%s3436_s1 + $0x1a0] ss:$12 sps:$4 sm:$0xff]   ;;  %v2607_v57 = vld [vmem:[%s3436_s1 + $0xc8] ss:$12 sps:$4 sm:$0xff]  }
  0x65   :  { %1519 = vmatprep.subr.bf16.mxu1 %v2541_v58  ;;  %v2608_v58 = vld [vmem:[%s3436_s1 + $0x248] ss:$12 sps:$4 sm:$0xff]  }
  0x67   :  { %1479 = vmatpush2.bf16.msra.mxu0 %v2536_v59  ;;  %v2609_v59 = vld [vmem:[%s3436_s1 + $0x8] ss:$12 sps:$4 sm:$0xff]  }
  0x68   :  { %1520 = vmatpush2.bf16.msra.mxu1 %v2539_v60  ;;  %1480 = vmatprep.subr.bf16.mxu0 %v2544_v61  ;;  %v2610_v60 = vld [vmem:[%s3436_s1 + $0x188] ss:$12 sps:$4 sm:$0xff]   ;;  %v2611_v61 = vld [vmem:[%s3436_s1 + $0x470] ss:$12 sps:$4 sm:$0xff]  }
  0x69   :  { %1521 = vmatprep.subr.bf16.mxu1 %v2547_v0  ;;  %v2612_v0 = vld [vmem:[%s3436_s1 + $0x5f0] ss:$12 sps:$4 sm:$0xff]  }
  0x6b   :  { %1481 = vmatpush2.bf16.msra.mxu0 %v2542_v1  ;;  %v2613_v1 = vld [vmem:[%s3436_s1 + $0x3b0] ss:$12 sps:$4 sm:$0xff]  }
  0x6c   :  { %1522 = vmatpush2.bf16.msra.mxu1 %v2545_v2  ;;  %1482 = vmatprep.subr.bf16.mxu0 %v2550_v4  ;;  %v2614_v2 = vld [vmem:[%s3436_s1 + $0x530] ss:$12 sps:$4 sm:$0xff]   ;;  %v2615_v4 = vld [vmem:[%s3436_s1 + $0x458] ss:$12 sps:$4 sm:$0xff]  }
  0x6d   :  { %1523 = vmatprep.subr.bf16.mxu1 %v2553_v5  ;;  %v2616_v5 = vld [vmem:[%s3436_s1 + $0x5d8] ss:$12 sps:$4 sm:$0xff]  }
  0x6f   :  { %1483 = vmatpush2.bf16.msra.mxu0 %v2548_v6  ;;  %v2617_v6 = vld [vmem:[%s3436_s1 + $0x398] ss:$12 sps:$4 sm:$0xff]  }
  0x70   :  { %1524 = vmatpush2.bf16.msra.mxu1 %v2551_v7  ;;  %1484 = vmatprep.subr.bf16.mxu0 %v2556_v8  ;;  %v2618_v7 = vld [vmem:[%s3436_s1 + $0x518] ss:$12 sps:$4 sm:$0xff]   ;;  %v2619_v8 = vld [vmem:[%s3436_s1 + $0x440] ss:$12 sps:$4 sm:$0xff]  }
  0x71   :  { %1525 = vmatprep.subr.bf16.mxu1 %v2559_v9  ;;  %v2620_v9 = vld [vmem:[%s3436_s1 + $0x5c0] ss:$12 sps:$4 sm:$0xff]  }
  0x73   :  { %1485 = vmatpush2.bf16.msra.mxu0 %v2554_v10  ;;  %v2621_v10 = vld [vmem:[%s3436_s1 + $0x380] ss:$12 sps:$4 sm:$0xff]  }
  0x74   :  { %1526 = vmatpush2.bf16.msra.mxu1 %v2557_v11  ;;  %1486 = vmatprep.subr.bf16.mxu0 %v2562_v12  ;;  %v2624_v11 = vld [vmem:[%s3436_s1 + $0x5a8] ss:$12 sps:$4 sm:$0xff]  }
  0x75   :  { %1527 = vmatprep.subr.bf16.mxu1 %v2565_v13 }
  0x77   :  { %1487 = vmatpush2.bf16.msra.mxu0 %v2560_v15 }
  0x78   :  { %1528 = vmatpush2.bf16.msra.mxu1 %v2563_v16  ;;  %1488 = vmatprep.subr.bf16.mxu0 %v2568_v17 }
  0x79   :  { %1529 = vmatprep.subr.bf16.mxu1 %v2571_v20 }
  0x7b   :  { %1489 = vmatpush2.bf16.msra.mxu0 %v2566_v21 }
  0x7c   :  { %1530 = vmatpush2.bf16.msra.mxu1 %v2569_v22  ;;  %1490 = vmatprep.subr.bf16.mxu0 %v2574_v23 }
  0x7d   :  { %1531 = vmatprep.subr.bf16.mxu1 %v2577_v25 }
  0x7f   :  { %1491 = vmatpush2.bf16.msra.mxu0 %v2572_v26 }
  0x80   :  { %1532 = vmatpush2.bf16.msra.mxu1 %v2575_v27  ;;  %2243 = vmatprep.subr.bf16.mxu0 %v2579_v28 }
  0x81   :  { %2265 = vmatprep.subr.bf16.mxu1 %v2580_v29 }
  0x82   :  { %1493 = vmatmul.mubr.bf16.vlgmr.msra.gmra.mxu0 %v2889_v63 }
  0x83   :  { %1534 = vmatmul.mubr.bf16.vlgmr.msra.gmra.mxu1 %v3155_v31  ;;  %2244 = vmatpush3.bf16.msra.mxu0 %v2581_v30 }
  0x84   :  { %2266 = vmatpush3.bf16.msra.mxu1 %v2582_v32  ;;  %2245 = vmatprep.subr.bf16.mxu0 %v2583_v33 }
  0x85   :  { %2267 = vmatprep.subr.bf16.mxu1 %v2584_v34  ;;  %1574 = vmatprep.mubr.bf16.mxu0 %v2887_v62  ;;  %v2593_v62 = vld [vmem:[%s3436_s1 + $0x68] ss:$12 sps:$4 sm:$0xff]  }
  0x86   :  { %1614 = vmatprep.mubr.bf16.mxu1 %v2902_v3  ;;  %v2594_v3 = vld [vmem:[%s3436_s1 + $0x1e8] ss:$12 sps:$4 sm:$0xff]  }
  0x87   :  { %2246 = vmatpush3.bf16.msra.mxu0 %v2585_v35 }
  0x88   :  { %2268 = vmatpush3.bf16.msra.mxu1 %v2586_v37  ;;  %2247 = vmatprep.subr.bf16.mxu0 %v2587_v38 }
  0x89   :  { %2269 = vmatprep.subr.bf16.mxu1 %v2588_v39 }
  0x8b   :  { %2248 = vmatpush3.bf16.msra.mxu0 %v2589_v40 }
  0x8c   :  { %2270 = vmatpush3.bf16.msra.mxu1 %v2590_v41  ;;  %2249 = vmatprep.subr.bf16.mxu0 %v2591_v43 }
  0x8d   :  { %2271 = vmatprep.subr.bf16.mxu1 %v2592_v44 }
  0x8f   :  { %2250 = vmatpush3.bf16.msra.mxu0 %v2593_v62 }
  0x90   :  { %2272 = vmatpush3.bf16.msra.mxu1 %v2594_v3  ;;  %2251 = vmatprep.subr.bf16.mxu0 %v2595_v45 }
  0x91   :  { %2273 = vmatprep.subr.bf16.mxu1 %v2596_v46 }
  0x93   :  { %2252 = vmatpush3.bf16.msra.mxu0 %v2597_v47 }
  0x94   :  { %2274 = vmatpush3.bf16.msra.mxu1 %v2598_v48  ;;  %2253 = vmatprep.subr.bf16.mxu0 %v2599_v49 }
  0x95   :  { %2275 = vmatprep.subr.bf16.mxu1 %v2600_v50 }
  0x97   :  { %2254 = vmatpush3.bf16.msra.mxu0 %v2601_v51 }
  0x98   :  { %2276 = vmatpush3.bf16.msra.mxu1 %v2602_v52  ;;  %2255 = vmatprep.subr.bf16.mxu0 %v2603_v53 }
  0x99   :  { %2277 = vmatprep.subr.bf16.mxu1 %v2604_v54 }
  0x9b   :  { %2256 = vmatpush3.bf16.msra.mxu0 %v2605_v55 }
  0x9c   :  { %2278 = vmatpush3.bf16.msra.mxu1 %v2606_v56  ;;  %2257 = vmatprep.subr.bf16.mxu0 %v2607_v57 }
  0x9d   :  { %2279 = vmatprep.subr.bf16.mxu1 %v2608_v58 }
  0x9f   :  { %2258 = vmatpush3.bf16.msra.mxu0 %v2609_v59 }
  0xa0   :  { %2280 = vmatpush3.bf16.msra.mxu1 %v2610_v60  ;;  %2287 = vmatprep.subr.bf16.mxu0 %v2611_v61 }
  0xa1   :  { %2309 = vmatprep.subr.bf16.mxu1 %v2612_v0 }
  0xa2   :  { %1575 = vmatmul.mubr.bf16.vlgmr.msra.gmra.mxu0 %v2933_v14  ;;  %v2622_v14 = vld [vmem:[%s3436_s1 + $0x500] ss:$12 sps:$4 sm:$0xff]  }
  0xa3   :  { %1615 = vmatmul.mubr.bf16.vlgmr.msra.gmra.mxu1 %v2948_v19  ;;  %2288 = vmatpush3.bf16.msra.mxu0 %v2613_v1  ;;  %v2623_v19 = vld [vmem:[%s3436_s1 + $0x428] ss:$12 sps:$4 sm:$0xff]  }
  0xa4   :  { %2310 = vmatpush3.bf16.msra.mxu1 %v2614_v2  ;;  %2289 = vmatprep.subr.bf16.mxu0 %v2615_v4 }
  0xa5   :  { %2311 = vmatprep.subr.bf16.mxu1 %v2616_v5  ;;  %1654 = vmatprep.mubr.bf16.mxu0 %v2944_v18 }
  0xa6   :  { %1694 = vmatprep.mubr.bf16.mxu1 %v2964_v24 }
  0xa7   :  { %2290 = vmatpush3.bf16.msra.mxu0 %v2617_v6 }
  0xa8   :  { %2312 = vmatpush3.bf16.msra.mxu1 %v2618_v7  ;;  %2291 = vmatprep.subr.bf16.mxu0 %v2619_v8 }
  0xa9   :  { %2313 = vmatprep.subr.bf16.mxu1 %v2620_v9 }
  0xaa   :  { %10 = vsyncpa [#allocation3], 0  ;;  %v2625_v18 = vld [vmem:[%s3436_s1 + $0x368] ss:$12 sps:$4 sm:$0xff]   ;;  %v2627_v12 = vld [vmem:[%s3436_s1 + $0x410] ss:$12 sps:$4 sm:$0xff]  }
  0xab   :  { %2292 = vmatpush3.bf16.msra.mxu0 %v2621_v10  ;;  %v2626_v24 = vld [vmem:[%s3436_s1 + $0x4e8] ss:$12 sps:$4 sm:$0xff]   ;;  %v2628_v13 = vld [vmem:[%s3436_s1 + $0x590] ss:$12 sps:$4 sm:$0xff]   ;;  %v2631_v17 = vld [vmem:[%s3436_s1 + $0x3f8] ss:$12 sps:$4 sm:$0xff]  }
  0xac   :  { %2314 = vmatpush3.bf16.msra.mxu1 %v2622_v14  ;;  %2293 = vmatprep.subr.bf16.mxu0 %v2623_v19  ;;  %v2629_v15 = vld [vmem:[%s3436_s1 + $0x350] ss:$12 sps:$4 sm:$0xff]   ;;  %v2632_v20 = vld [vmem:[%s3436_s1 + $0x578] ss:$12 sps:$4 sm:$0xff]   ;;  %v2635_v23 = vld [vmem:[%s3436_s1 + $0x3e0] ss:$12 sps:$4 sm:$0xff]  }
  0xad   :  { %2315 = vmatprep.subr.bf16.mxu1 %v2624_v11  ;;  %v2630_v16 = vld [vmem:[%s3436_s1 + $0x4d0] ss:$12 sps:$4 sm:$0xff]   ;;  %v2633_v21 = vld [vmem:[%s3436_s1 + $0x338] ss:$12 sps:$4 sm:$0xff]   ;;  %v2636_v25 = vld [vmem:[%s3436_s1 + $0x560] ss:$12 sps:$4 sm:$0xff]  }
  0xae   :  { %v2634_v22 = vld [vmem:[%s3436_s1 + $0x4b8] ss:$12 sps:$4 sm:$0xff]   ;;  %v2637_v26 = vld [vmem:[%s3436_s1 + $0x320] ss:$12 sps:$4 sm:$0xff]   ;;  %v2639_v28 = vld [vmem:[%s3436_s1 + $0x3c8] ss:$12 sps:$4 sm:$0xff]  }
  0xaf   :  { %2294 = vmatpush3.bf16.msra.mxu0 %v2625_v18  ;;  %v2638_v27 = vld [vmem:[%s3436_s1 + $0x4a0] ss:$12 sps:$4 sm:$0xff]   ;;  %v2640_v29 = vld [vmem:[%s3436_s1 + $0x548] ss:$12 sps:$4 sm:$0xff]   ;;  %v2643_v33 = vld [vmem:[%s3438_s3 + $0x78] sm:$0xff]   ;;  %v2694_v48 = vmov 0.0  }
  0xb0   :  { %2316 = vmatpush3.bf16.msra.mxu1 %v2626_v24  ;;  %2295 = vmatprep.subr.bf16.mxu0 %v2627_v12  ;;  %v2641_v30 = vld [vmem:[%s3436_s1 + $0x308] ss:$12 sps:$4 sm:$0xff]   ;;  %v2644_v34 = vld [vmem:[%s3438_s3 + $0x38] sm:$0xff]   ;;  %v2657_v45 = vld [vmem:[%s3438_s3 + $0x40] sm:$0xff]   ;;  %vm2695_vm0 = vmmov 0   ;;  %v283_v2 = vsub.s32 0, %v2845_v42 }
  0xb1   :  { %2317 = vmatprep.subr.bf16.mxu1 %v2628_v13  ;;  %v2642_v32 = vld [vmem:[%s3436_s1 + $0x488] ss:$12 sps:$4 sm:$0xff]   ;;  %v2651_v40 = vld [vmem:[%s3438_s3 + $0x58] sm:$0xff]   ;;  %v2658_v46 = vld [vmem:[%s3438_s3] sm:$0xff]   ;;  %v287_v5 = vsub.s32 1, %v2845_v42  ;;  %vm1997_vm5 = vcmask 1041408  }
  0xb2   :  { %v2645_v35 = vld [vmem:[%s3438_s3 + $0x70] sm:$0xff]   ;;  %v2647_v38 = vld [vmem:[%s3438_s3 + $0x68] sm:$0xff]   ;;  %v2652_v41 = vld [vmem:[%s3438_s3 + $0x18] sm:$0xff]  }
  0xb3   :  { %2296 = vmatpush3.bf16.msra.mxu0 %v2629_v15  ;;  %v2646_v37 = vld [vmem:[%s3438_s3 + $0x30] sm:$0xff]   ;;  %v2648_v39 = vld [vmem:[%s3438_s3 + $0x28] sm:$0xff]   ;;  %v2659_v47 = vld [vmem:[%s3438_s3 + $0xb8] sm:$0xff]  }
  0xb4   :  { %2318 = vmatpush3.bf16.msra.mxu1 %v2630_v16  ;;  %2297 = vmatprep.subr.bf16.mxu0 %v2631_v17  ;;  %v2653_v43 = vld [vmem:[%s3438_s3 + $0x50] sm:$0xff]   ;;  %v2655_v62 = vld [vmem:[%s3438_s3 + $0x48] sm:$0xff]   ;;  %v2662_v51 = vld [vmem:[%s3438_s3 + $0xa0] sm:$0xff]  }
  0xb5   :  { %2319 = vmatprep.subr.bf16.mxu1 %v2632_v20  ;;  %v2654_v44 = vld [vmem:[%s3438_s3 + $0x10] sm:$0xff]   ;;  %v2656_v3 = vld [vmem:[%s3438_s3 + $0x8] sm:$0xff]   ;;  %v2663_v52 = vld [vmem:[%s3438_s3 + $0x98] sm:$0xff]  }
  0xb6   :  { %v2660_v49 = vld [vmem:[%s3438_s3 + $0xb0] sm:$0xff]   ;;  %v2661_v50 = vld [vmem:[%s3438_s3 + $0xa8] sm:$0xff]   ;;  %v2666_v1 = vld [vmem:[%s3438_s3 + $0x80] sm:$0xff]  }
  0xb7   :  { %2298 = vmatpush3.bf16.msra.mxu0 %v2633_v21  ;;  %v2664_v55 = vld [vmem:[%s3438_s3 + $0x90] sm:$0xff]   ;;  %v2665_v60 = vld [vmem:[%s3438_s3 + $0x88] sm:$0xff]   ;;  %v279_v4 = vld [vmem:[%s3437_s2] sm:$0x7] }
  0xb8   :  { %2320 = vmatpush3.bf16.msra.mxu1 %v2634_v22  ;;  %2299 = vmatprep.subr.bf16.mxu0 %v2635_v23  ;;  %v284_v6 = vrot.slane %v279_v4, %v283_v2  ;;  %v288_v7 = vrot.slane %v279_v4, %v287_v5 }
  0xb9   :  { %2321 = vmatprep.subr.bf16.mxu1 %v2636_v25 }
  0xbb   :  { %2300 = vmatpush3.bf16.msra.mxu0 %v2637_v26 }
  0xbc   :  { %2322 = vmatpush3.bf16.msra.mxu1 %v2638_v27  ;;  %2301 = vmatprep.subr.bf16.mxu0 %v2639_v28 }
  0xbd   :  { %2323 = vmatprep.subr.bf16.mxu1 %v2640_v29 }
  0xbf   :  { %2302 = vmatpush3.bf16.msra.mxu0 %v2641_v30 }
  0xc0   :  { %2324 = vmatpush3.bf16.msra.mxu1 %v2642_v32  ;;  %2331 = vmatprep.subr.bf16.mxu0 %v2643_v33 }
  0xc1   :  { %2362 = vmatprep.subr.bf16.mxu1 %v2694_v48 }
  0xc2   :  { %1655 = vmatmul.mubr.bf16.vlgmr.msra.gmra.mxu0 %v2889_v63  ;;  %v2649_v63 = vld [vmem:[%s3438_s3 + $0x60] sm:$0xff]  }
  0xc3   :  { %1695 = vmatmul.mubr.bf16.vlgmr.msra.gmra.mxu1 %v3155_v31  ;;  %2332 = vmatpush3.bf16.msra.mxu0 %v2644_v34  ;;  %v2650_v31 = vld [vmem:[%s3438_s3 + $0x20] sm:$0xff]  }
  0xc4   :  { %2333 = vmatprep.subr.bf16.mxu0 %v2645_v35  ;;  %2363 = vmatpush3.bf16.msra.mxu1 %v2659_v47 }
  0xc5   :  { %2364 = vmatprep.subr.bf16.mxu1 %v2694_v48  ;;  %2378 = vmatprep.mubr.msk.bf16.mxu1 %vm2695_vm0, %v2694_v48 }
  0xc7   :  { %2334 = vmatpush3.bf16.msra.mxu0 %v2646_v37 }
  0xc8   :  { %2335 = vmatprep.subr.bf16.mxu0 %v2647_v38  ;;  %2365 = vmatpush3.bf16.msra.mxu1 %v2660_v49 }
  0xc9   :  { %2366 = vmatprep.subr.bf16.mxu1 %v2694_v48 }
  0xcb   :  { %2336 = vmatpush3.bf16.msra.mxu0 %v2648_v39 }
  0xcc   :  { %2337 = vmatprep.subr.bf16.mxu0 %v2649_v63  ;;  %2367 = vmatpush3.bf16.msra.mxu1 %v2661_v50  ;;  %v291_v63 = vsub.s32 2, %v2845_v42 }
  0xcd   :  { %2368 = vmatprep.subr.bf16.mxu1 %v2694_v48 }
  0xcf   :  { %2338 = vmatpush3.bf16.msra.mxu0 %v2650_v31  ;;  %v292_v31 = vrot.slane %v279_v4, %v291_v63 }
  0xd0   :  { %2339 = vmatprep.subr.bf16.mxu0 %v2651_v40  ;;  %2369 = vmatpush3.bf16.msra.mxu1 %v2662_v51 }
  0xd1   :  { %2370 = vmatprep.subr.bf16.mxu1 %v2694_v48 }
  0xd3   :  { %2340 = vmatpush3.bf16.msra.mxu0 %v2652_v41 }
  0xd4   :  { %2341 = vmatprep.subr.bf16.mxu0 %v2653_v43  ;;  %2371 = vmatpush3.bf16.msra.mxu1 %v2663_v52 }
  0xd5   :  { %2372 = vmatprep.subr.bf16.mxu1 %v2694_v48 }
  0xd7   :  { %2342 = vmatpush3.bf16.msra.mxu0 %v2654_v44 }
  0xd8   :  { %2343 = vmatprep.subr.bf16.mxu0 %v2655_v62  ;;  %2373 = vmatpush3.bf16.msra.mxu1 %v2664_v55 }
  0xd9   :  { %2374 = vmatprep.subr.bf16.mxu1 %v2694_v48 }
  0xdb   :  { %2344 = vmatpush3.bf16.msra.mxu0 %v2656_v3 }
  0xdc   :  { %2345 = vmatprep.subr.bf16.mxu0 %v2657_v45  ;;  %2375 = vmatpush3.bf16.msra.mxu1 %v2665_v60 }
  0xdd   :  { %2376 = vmatprep.subr.bf16.mxu1 %v2694_v48 }
  0xdf   :  { %2346 = vmatpush3.bf16.msra.mxu0 %v2658_v46 }
  0xe0   :  { %2377 = vmatpush3.bf16.msra.mxu1 %v2666_v1  ;;  %v1994_v1 = vand.u32 127, %v281_v36 }
  0xe2   :  { %vm1995_vm4 = vcmp.lt.s32.totalorder %v1994_v1, 43 }
 0x102   :  { %v1412_v53 = vpop.f32.mrf.mxu0 }
 0x103   :  { %v1453_v54 = vpop.f32.mrf.mxu1  ;;  %v1413_v8 = vadd.f32 %v1412_v53, %v284_v6 }
 0x104   :  { %v1414_v56 = vpop.f32.mrf.mxu0 }
 0x105   :  { %v1455_v57 = vpop.f32.mrf.mxu1  ;;  %v1415_v9 = vadd.f32 %v1414_v56, %v288_v7  ;;  %v1454_v10 = vadd.f32 %v1453_v54, %v1413_v8 }
 0x106   :  { %v1416_v58 = vpop.f32.mrf.mxu0 }
 0x107   :  { %v1457_v59 = vpop.f32.mrf.mxu1  ;;  %v1456_v11 = vadd.f32 %v1455_v57, %v1415_v9 }
 0x108   :  { %v1417_v61 = vpop.f32.mrf.mxu0 }
 0x109   :  { %v1458_v0 = vpop.f32.mrf.mxu1 }
 0x10a   :  { %v2218_v0 = vld [vmem:[%s3439_s4] ss:$0 sm:$0xff]  ;;  %s2696_s4 = smov [#allocation2]  }
 0x10b   :  { %s2018_s14 = sshll.u32 %s2696_s4, 4  ;;  %s2019_s14 = int_to_ptr.vmem [resolvable:$true] %s2018_s14 }
 0x10c   :  { %s2671_s15 = scalar_lea.vmem %s2019_s14, 32  ;;  %p2676_p1 = scmp.lt.s32.totalorder %s2019_s14, %s2019_s14 }
 0x10d   :  { %p2672_p0 = scmp.ne.s32.totalorder %s2019_s14, %s2671_s15  ;;  %p2677_p2 = scmp.lt.s32.totalorder %s2671_s15, %s2671_s15 }
 0x10f   :  { %p2678_p3 = por %p2677_p2, %p2676_p1 }
 0x111   :  { %p2679_p4 = pnand %p2678_p3, %p2672_p0 }
 0x142   :  { %v1494_v14 = vpop.f32.mrf.mxu0 }
 0x143   :  { %v1535_v19 = vpop.f32.mrf.mxu1  ;;  %v1495_v18 = vadd.f32 %v1494_v14, %v1454_v10 }
 0x144   :  { %v1496_v24 = vpop.f32.mrf.mxu0 }
 0x145   :  { %v1537_v12 = vpop.f32.mrf.mxu1  ;;  %v1536_v13 = vadd.f32 %v1535_v19, %v1495_v18  ;;  %v1497_v15 = vadd.f32 %v1496_v24, %v1456_v11 }
 0x146   :  { %v1498_v16 = vpop.f32.mrf.mxu0 }
 0x147   :  { %v1539_v17 = vpop.f32.mrf.mxu1  ;;  %vm1702_vm1 = vcmp.ge.f32.partialorder %v1536_v13, 0.0  ;;  %v1705_v20 = vmul.f32 0.01, %v1536_v13  ;;  %v1538_v21 = vadd.f32 %v1537_v12, %v1497_v15 }
 0x148   :  { %v1499_v22 = vpop.f32.mrf.mxu0 }
 0x149   :  { %v1540_v23 = vpop.f32.mrf.mxu1  ;;  %vm1703_vm2 = vcmp.ge.f32.partialorder %v1538_v21, 0.0  ;;  %v1706_v25 = vmul.f32 0.01, %v1538_v21  ;;  %v1708_v26 = vsel %vm1702_vm1, %v1536_v13, %v1705_v20 }
 0x14a   :  { %v1711_v29 = vpack.c.bf16 %v1708_v26, %v1708_v26 }
 0x14b   :  { %v1709_v27 = vsel %vm1703_vm2, %v1538_v21, %v1706_v25 }
 0x14c   :  { %v1712_v28 = vpack.c.bf16 %v1709_v27, %v1709_v27 }
 0x14e   :  { %1945 = vmatprep.mubr.bf16.mxu0 %v1712_v28 }
 0x14f   :  { %1946 = vmatmul.mubr.bf16.vlgmr.msra.gmra.mxu0 %v1711_v29 }
 0x162   :  { %v2259_v30 = vpop.f32.mrf.mxu0 }
 0x163   :  { %v2281_v32 = vpop.f32.mrf.mxu1 }
 0x164   :  { %v2260_v33 = vpop.f32.mrf.mxu0 }
 0x165   :  { %v2282_v34 = vpop.f32.mrf.mxu1  ;;  %v2261_v40 = vadd.f32 %v2260_v33, %v2259_v30 }
 0x166   :  { %v2262_v35 = vpop.f32.mrf.mxu0  ;;  %v2283_v43 = vadd.f32 %v2282_v34, %v2281_v32 }
 0x167   :  { %v2284_v37 = vpop.f32.mrf.mxu1  ;;  %v1577_v41 = vadd.f32 %v2261_v40, %v292_v31 }
 0x168   :  { %v2263_v38 = vpop.f32.mrf.mxu0 }
 0x169   :  { %v2285_v39 = vpop.f32.mrf.mxu1  ;;  %v1617_v46 = vadd.f32 %v2283_v43, %v1577_v41 }
 0x182   :  { %v2303_v44 = vpop.f32.mrf.mxu0 }
 0x183   :  { %v2325_v62 = vpop.f32.mrf.mxu1 }
 0x184   :  { %v2304_v3 = vpop.f32.mrf.mxu0 }
 0x185   :  { %v2326_v45 = vpop.f32.mrf.mxu1  ;;  %v2305_v47 = vadd.f32 %v2304_v3, %v2303_v44 }
 0x186   :  { %v2306_v48 = vpop.f32.mrf.mxu0  ;;  %v2327_v51 = vadd.f32 %v2326_v45, %v2325_v62 }
 0x187   :  { %v2328_v49 = vpop.f32.mrf.mxu1  ;;  %v1657_v50 = vadd.f32 %v2305_v47, %v1617_v46 }
 0x188   :  { %v2307_v52 = vpop.f32.mrf.mxu0 }
 0x189   :  { %v2329_v53 = vpop.f32.mrf.mxu1  ;;  %v1697_v54 = vadd.f32 %v2327_v51, %v1657_v50 }
 0x18b   :  { %vm1704_vm3 = vcmp.ge.f32.partialorder %v1697_v54, 0.0  ;;  %v1707_v55 = vmul.f32 0.01, %v1697_v54 }
 0x18d   :  { %v1710_v42 = vsel %vm1704_vm3, %v1697_v54, %v1707_v55 }
 0x18e   :  { %v1713_v56 = vpack.c.bf16 %v1710_v42, %v1710_v42 }
 0x190   :  { %2379 = vmatmul.mubr.bf16.vlgmr.msra.gmra.mxu1 %v1713_v56 }
 0x20f   :  { %v2347_v57 = vpop.f32.mrf.mxu0 }
 0x211   :  { %v2348_v58 = vpop.f32.mrf.mxu0 }
 0x212   :  { %v2349_v61 = vadd.f32 %v2348_v58, %v2347_v57 }
 0x213   :  { %v2350_v59 = vpop.f32.mrf.mxu0 }
 0x214   :  { %v1948_v2 = vadd.f32 %v2349_v61, %v2218_v0 }
 0x215   :  { %v2351_v60 = vpop.f32.mrf.mxu0 }
 0x250   :  { %v1987_v4 = vpop.f32.mrf.mxu1 }
 0x251   :  { %v1988_v5 = vadd.f32 %v1987_v4, %v1948_v2 }
 0x252   :  { %v2380_v6 = vpop.f32.mrf.mxu1 }
 0x253   :  { %v1996_v7 = vsel %vm1995_vm4, %v1988_v5, -inf }
 0x254   :  { %v1990_v8 = vpop.f32.mrf.mxu1  ;;  %v1998_v9 = vsel %vm1997_vm5, %v1996_v7, -inf }
 0x255   :  { %1999 = vmax.xlane.f32.xlu0 %v1998_v9 }
 0x256   :  { %v2381_v10 = vpop.f32.mrf.mxu1 }
 0x2de   :  { %v2000_v14 = vpop.xlane.xlu0 %1999 }
 0x2df   :  { %v2001_v19 = vsub.f32 %v1996_v7, %v2000_v14  ;;  %v2007_v13 = vsub.f32 %v1988_v5, %v2000_v14 }
 0x2e1   :  { %v2002_v11 = vmul.f32 1.442695, %v2001_v19 }
 0x2e3   :  { %2667 = vpow2.f32 %v2002_v11 }
 0x2f0   :  { %v2668_v18 = vpop.eup %2667 }
 0x2f1   :  { %v2004_v24 = vsel %vm1997_vm5, %v2668_v18, 0.0 }
 0x2f2   :  { %2005 = vadd.xlane.f32.xlu0 %v2004_v24 }
 0x37b   :  { %v2006_v12 = vpop.xlane.xlu0 %2005 }
 0x37c   :  { %2669 = vlog2.f32 %v2006_v12 }
 0x389   :  { %v2670_v36 = vpop.eup %2669 }
 0x38a   :  { %v2009_v15 = vmul.f32 0.6931472, %v2670_v36 }
 0x38c   :  { %v2010_v16 = vsub.f32 %v2007_v13, %v2009_v15 }
 0x38e   :  { %2011 = vst [vmem:[#allocation2] sm:$0x3] %v2010_v16 }
 0x38f   :  { %2682 = shalt.err (!%p2679_p4)
}
 0x390   :  { %2021 = dma.vmem_to_hbm [thread:$0]  %s2019_s14, 32, %s3440_s5, [#allocation3]  }
 0x391   :  { %2691 = dma.done.wait [#allocation3], 32  }
 0x392   :  { %2692 = vsyncadd [#allocation3], 4294967264 }
 0x393   :  { %2025 = vsyncpa [#allocation3], 1 }

</bundles_post_ra>
